<compile_context>
chip_gen: v6e
topology: v6e:2x2x1
jax: 0.10.0
libtpu: 0.0.40
codegen_flags: <defaults>
</compile_context>

<pallas_src>
import numpy as np
import jax
import jax.numpy as jnp
from jax.experimental import pallas as pl
from jax.experimental.pallas import tpu as pltpu


_BN_EPS = 1e-5


# ------------------------------------------------------------------ kernel ---

def lenet_fused_kernel(x_ref, w1e_ref, b1_ref, s1_ref, t1_ref,
                       w2e_ref, b2_ref, s2_ref, t2_ref,
                       fc1w_ref, fc1b_ref, fc2w_ref, fc2b_ref, o_ref):
    """Whole LeNet forward for one batch tile, fully resident in VMEM.

    Activation layouts (2-D, rows x lanes, lane-dense):
      conv1 out : (TB*24, 240)  rows=(b,oh)  lanes=(ow, oc)      oc fastest
      h1        : (TB*12, 230)  rows=(b,ph)  lanes=(w_raw, ic)   valid @ even w_raw
      conv2 out : (TB*8 , 160)  rows=(b,qh)  lanes=(qw, oc)
      h2        : (TB*4 , 140)  rows=(b,rh)  lanes=(w_raw, oc)   valid @ even w_raw
    """
    tb = x_ref.shape[0]
    x = x_ref[...]                                           # (TB, 28, 28)

    # conv1: 5 banded matmuls over the width axis.
    y1 = jnp.zeros((tb * 24, 240), jnp.float32)
    for ki in range(5):
        rows = x[:, ki:ki + 24, :].reshape(tb * 24, 28)
        y1 = y1 + jnp.dot(rows, w1e_ref[ki],
                          preferred_element_type=jnp.float32)
    y1 = y1 + b1_ref[...]

    # 2x2 max-pool -> relu -> bn1 (running-stat affine)
    y1 = y1.reshape(tb * 12, 2, 240)
    a1 = jnp.maximum(y1[:, 0, :], y1[:, 1, :])               # pool over row pairs
    c1 = jnp.maximum(a1[:, :230], a1[:, 10:])                # pool over col pairs
    h1 = jnp.maximum(c1, 0.0) * s1_ref[...] + t1_ref[...]    # (TB*12, 230)

    # conv2 (+ Dropout2d == identity at inference): 5 banded matmuls.
    # Odd column groups of h1 carry no weight (structural zeros in w2e).
    h1 = h1.reshape(tb, 12, 230)
    y2 = jnp.zeros((tb * 8, 160), jnp.float32)
    for ki in range(5):
        rows = h1[:, ki:ki + 8, :].reshape(tb * 8, 230)
        y2 = y2 + jnp.dot(rows, w2e_ref[ki],
                          preferred_element_type=jnp.float32)
    y2 = y2 + b2_ref[...]

    # 2x2 max-pool -> relu -> bn2
    y2 = y2.reshape(tb * 4, 2, 160)
    a2 = jnp.maximum(y2[:, 0, :], y2[:, 1, :])
    c2 = jnp.maximum(a2[:, :140], a2[:, 20:])
    h2 = jnp.maximum(c2, 0.0) * s2_ref[...] + t2_ref[...]    # (TB*4, 140)

    # fc1 (+ Dropout == identity): 4 blocked dots == .view(-1,320) @ W_fc1.T
    h2 = h2.reshape(tb, 4, 140)
    f1 = jnp.zeros((tb, 50), jnp.float32)
    for hh in range(4):
        f1 = f1 + jnp.dot(h2[:, hh, :], fc1w_ref[hh],
                          preferred_element_type=jnp.float32)
    f1 = jnp.maximum(f1 + fc1b_ref[...], 0.0)

    # fc2 -> relu -> log_softmax
    z = jnp.dot(f1, fc2w_ref[...], preferred_element_type=jnp.float32)
    z = jnp.maximum(z + fc2b_ref[...], 0.0)
    zmax = jnp.max(z, axis=1, keepdims=True)
    lse = jnp.log(jnp.sum(jnp.exp(z - zmax), axis=1, keepdims=True)) + zmax
    o_ref[...] = z - lse


# ------------------------------------------------------- weight repacking ---

def _expand_conv1(w1):
    """w1: (10,1,5,5) torch layout -> banded (5, 28, 240).
    W1e[ki][w, ow*10+oc] = w1[oc,0,ki,w-ow] if 0 <= w-ow < 5 else 0."""
    oc = w1.shape[0]
    w1e = np.zeros((5, 28, 24 * oc), np.float32)
    for ki in range(5):
        for ow in range(24):
            for kj in range(5):
                w1e[ki, ow + kj, ow * oc:(ow + 1) * oc] = w1[:, 0, ki, kj]
    return w1e


def _expand_conv2(w2):
    """w2: (20,10,5,5) -> banded (5, 230, 160). Input lanes are the
    post-pool-1 layout (w_raw 0..22, ic 0..9), valid only at even w_raw, so
    odd groups get structurally zero weights (pool column selection folded
    into the matmul)."""
    oc, ic = w2.shape[0], w2.shape[1]
    w2e = np.zeros((5, 23 * ic, 8 * oc), np.float32)
    for ki in range(5):
        for qw in range(8):
            for kj in range(5):
                w_raw = 2 * (qw + kj)
                w2e[ki, w_raw * ic:(w_raw + 1) * ic,
                    qw * oc:(qw + 1) * oc] = w2[:, :, ki, kj].T
    return w2e


def _expand_fc1(fc1_w):
    """fc1_w: (50, 320). Torch .view(-1,320) order is (c,h,w), c slowest.
    -> (4, 140, 50) blocks over h; input lanes are the post-pool-2 layout
    (w_raw 0..6, c 0..19), valid only at even w_raw."""
    out_f = fc1_w.shape[0]
    w4 = fc1_w.reshape(out_f, 20, 4, 4)                      # [o, c, h, w]
    f = np.zeros((4, 7 * 20, out_f), np.float32)
    for h in range(4):
        for w in range(4):
            w_raw = 2 * w
            f[h, w_raw * 20:(w_raw + 1) * 20, :] = w4[:, :, h, w].T
    return f


def prepare_params(raw):
    """Pack PyTorch-layout params into the kernel's lane-dense layouts."""
    w1 = np.asarray(raw['w1']); b1 = np.asarray(raw['b1'])
    w2 = np.asarray(raw['w2']); b2 = np.asarray(raw['b2'])
    fc1_w = np.asarray(raw['fc1_w']); fc1_b = np.asarray(raw['fc1_b'])
    fc2_w = np.asarray(raw['fc2_w']); fc2_b = np.asarray(raw['fc2_b'])

    def affine(bn):
        gamma, beta, mean, var = (np.asarray(t) for t in bn)
        scale = gamma / np.sqrt(var + _BN_EPS)
        return scale, beta - mean * scale

    s1, t1 = affine(raw['bn1'])
    s2, t2 = affine(raw['bn2'])

    packed = dict(
        w1e=_expand_conv1(w1),
        b1t=np.tile(b1, 24)[None, :],        # (1, 240)
        bn1s=np.tile(s1, 23)[None, :],       # (1, 230)
        bn1t=np.tile(t1, 23)[None, :],
        w2e=_expand_conv2(w2),
        b2t=np.tile(b2, 8)[None, :],         # (1, 160)
        bn2s=np.tile(s2, 7)[None, :],        # (1, 140)
        bn2t=np.tile(t2, 7)[None, :],
        fc1e=_expand_fc1(fc1_w),
        fc1b=fc1_b[None, :],
        fc2wt=np.ascontiguousarray(fc2_w.T),
        fc2b=fc2_b[None, :],
    )
    return {k: jnp.asarray(v, jnp.float32) for k, v in packed.items()}


# ---------------------------------------------------------------- forward ---

def rpca_lenet_forward(x_nchw, p, tile=8):
    """Fused forward: a single pallas_call, grid over batch tiles."""
    n = x_nchw.shape[0]
    assert x_nchw.shape[1:] == (1, 28, 28), x_nchw.shape
    x = x_nchw.reshape(n, 28, 28).astype(jnp.float32)        # C == 1: free relabel

    n_pad = ((n + tile - 1) // tile) * tile
    if n_pad != n:
        x = jnp.pad(x, ((0, n_pad - n), (0, 0), (0, 0)))

    def rep(shape):                                           # replicated operand
        return pl.BlockSpec(shape, lambda i: (0,) * len(shape))

    order = ('w1e', 'b1t', 'bn1s', 'bn1t', 'w2e', 'b2t', 'bn2s', 'bn2t',
             'fc1e', 'fc1b', 'fc2wt', 'fc2b')
    in_specs = [pl.BlockSpec((tile, 28, 28), lambda i: (i, 0, 0))]
    in_specs += [rep(p[k].shape) for k in order]

    out = pl.pallas_call(
        lenet_fused_kernel,
        out_shape=jax.ShapeDtypeStruct((n_pad, 10), jnp.float32),
        grid_spec=pltpu.PrefetchScalarGridSpec(
            num_scalar_prefetch=0,
            grid=(n_pad // tile,),
            in_specs=in_specs,
            out_specs=pl.BlockSpec((tile, 10), lambda i: (i, 0)),
        ),
        compiler_params=pltpu.CompilerParams(
            dimension_semantics=("parallel",),   # shard batch tiles across TCs
            vmem_limit_bytes=48 * 1024 * 1024,
        ),
    )(x, *[p[k] for k in order])
    return out[:n]


# ------------------------------------------------------------------ params ---

def init_raw_params(key):
    """Random parameters in the original PyTorch layouts."""
    ks = jax.random.split(key, 8)
    raw = dict(
        w1=jax.random.normal(ks[0], (10, 1, 5, 5), jnp.float32) * 0.2,
        b1=jax.random.normal(ks[1], (10,), jnp.float32) * 0.1,
        w2=jax.random.normal(ks[2], (20, 10, 5, 5), jnp.float32) * 0.1,
        b2=jax.random.normal(ks[3], (20,), jnp.float32) * 0.1,
        fc1_w=jax.random.normal(ks[4], (50, 320), jnp.float32) * 0.05,
        fc1_b=jax.random.normal(ks[5], (50,), jnp.float32) * 0.05,
        fc2_w=jax.random.normal(ks[6], (10, 50), jnp.float32) * 0.1,
        fc2_b=jax.random.normal(ks[7], (10,), jnp.float32) * 0.1,
    )

    def bn_stats(c, seed):
        k1, k2, k3, k4 = jax.random.split(jax.random.PRNGKey(seed), 4)
        gamma = 1.0 + 0.1 * jax.random.normal(k1, (c,), jnp.float32)
        beta = 0.1 * jax.random.normal(k2, (c,), jnp.float32)
        mean = 0.1 * jax.random.normal(k3, (c,), jnp.float32)
        var = jnp.abs(1.0 + 0.1 * jax.random.normal(k4, (c,), jnp.float32))
        return gamma, beta, mean, var

    raw['bn1'] = bn_stats(10, 1)
    raw['bn2'] = bn_stats(20, 2)
    return raw


# --------------------------------------------------------------- reference ---

def reference_forward(x_nchw, raw):
    """Pure-JAX/XLA reference with the original PyTorch layouts."""
    x = x_nchw.astype(jnp.float32)

    def conv(a, w, b):
        y = jax.lax.conv_general_dilated(
            a, w, window_strides=(1, 1), padding='VALID',
            dimension_numbers=('NCHW', 'OIHW', 'NCHW'))
        return y + b.reshape(1, -1, 1, 1)

    def maxpool2(a):
        nn, c, hh, ww = a.shape
        return a.reshape(nn, c, hh // 2, 2, ww // 2, 2).max(axis=(3, 5))

    def bn(a, stats):
        gamma, beta, mean, var = stats
        s = gamma / jnp.sqrt(var + _BN_EPS)
        return a * s.reshape(1, -1, 1, 1) + (beta - mean * s).reshape(1, -1, 1, 1)

    h = bn(jax.nn.relu(maxpool2(conv(x, raw['w1'], raw['b1']))), raw['bn1'])
    h = bn(jax.nn.relu(maxpool2(conv(h, raw['w2'], raw['b2']))), raw['bn2'])
    h = h.reshape(h.shape[0], 320)
    h = jax.nn.relu(h @ raw['fc1_w'].T + raw['fc1_b'])
    h = jax.nn.relu(h @ raw['fc2_w'].T + raw['fc2_b'])
    return jax.nn.log_softmax(h, axis=1)


if __name__ == "__main__":
    # Input must be 1x28x28 so the flatten yields 320 features (20*4*4).
    x = jax.random.normal(jax.random.PRNGKey(0), (2, 1, 28, 28), jnp.float32)
    raw = init_raw_params(jax.random.PRNGKey(42))
    params = prepare_params(raw)

    out = jax.block_until_ready(rpca_lenet_forward(x, params))

    assert out.shape == (2, 10), out.shape
    assert bool(jnp.all(jnp.isfinite(out)))
    # log_softmax rows must (log-)normalize to ~0
    assert bool(jnp.allclose(jnp.sum(jnp.exp(out), axis=1), 1.0, atol=1e-4))

    # cross-check against a pure-XLA reference of the same network
    ref = jax.block_until_ready(reference_forward(x, raw))
    max_err = float(jnp.max(jnp.abs(out - ref)))
    assert max_err < 0.15, f"kernel/reference mismatch: max|diff|={max_err}"

    print("KERNEL_OK")
</pallas_src>

<mosaic_0001>
module attributes {stable_mosaic.version = 11 : i64} {
  func.func @lenet_fused_kernel(%arg0: i32, %arg1: memref<8x28x28xf32, #tpu.memory_space<vmem>>, %arg2: memref<5x28x240xf32, #tpu.memory_space<vmem>>, %arg3: memref<1x240xf32, #tpu.memory_space<vmem>>, %arg4: memref<1x230xf32, #tpu.memory_space<vmem>>, %arg5: memref<1x230xf32, #tpu.memory_space<vmem>>, %arg6: memref<5x230x160xf32, #tpu.memory_space<vmem>>, %arg7: memref<1x160xf32, #tpu.memory_space<vmem>>, %arg8: memref<1x140xf32, #tpu.memory_space<vmem>>, %arg9: memref<1x140xf32, #tpu.memory_space<vmem>>, %arg10: memref<4x140x50xf32, #tpu.memory_space<vmem>>, %arg11: memref<1x50xf32, #tpu.memory_space<vmem>>, %arg12: memref<50x10xf32, #tpu.memory_space<vmem>>, %arg13: memref<1x10xf32, #tpu.memory_space<vmem>>, %arg14: memref<8x10xf32, #tpu.memory_space<vmem>>) attributes {dimension_semantics = [#tpu.dimension_semantics<parallel>], iteration_bounds = array<i64: 1>, scalar_prefetch = 0 : i64, scratch_operands = 0 : i64, tpu.core_type = #tpu.core_type<tc>, window_params = [{transform_indices = @transform_0, window_bounds = array<i64: 8, 28, 28>}, {pipeline_mode = #tpu.pipeline_mode<synchronous>, transform_indices = @transform_1, window_bounds = array<i64: 5, 28, 240>}, {pipeline_mode = #tpu.pipeline_mode<synchronous>, transform_indices = @transform_2, window_bounds = array<i64: 1, 240>}, {pipeline_mode = #tpu.pipeline_mode<synchronous>, transform_indices = @transform_3, window_bounds = array<i64: 1, 230>}, {pipeline_mode = #tpu.pipeline_mode<synchronous>, transform_indices = @transform_4, window_bounds = array<i64: 1, 230>}, {pipeline_mode = #tpu.pipeline_mode<synchronous>, transform_indices = @transform_5, window_bounds = array<i64: 5, 230, 160>}, {pipeline_mode = #tpu.pipeline_mode<synchronous>, transform_indices = @transform_6, window_bounds = array<i64: 1, 160>}, {pipeline_mode = #tpu.pipeline_mode<synchronous>, transform_indices = @transform_7, window_bounds = array<i64: 1, 140>}, {pipeline_mode = #tpu.pipeline_mode<synchronous>, transform_indices = @transform_8, window_bounds = array<i64: 1, 140>}, {pipeline_mode = #tpu.pipeline_mode<synchronous>, transform_indices = @transform_9, window_bounds = array<i64: 4, 140, 50>}, {pipeline_mode = #tpu.pipeline_mode<synchronous>, transform_indices = @transform_10, window_bounds = array<i64: 1, 50>}, {pipeline_mode = #tpu.pipeline_mode<synchronous>, transform_indices = @transform_11, window_bounds = array<i64: 50, 10>}, {pipeline_mode = #tpu.pipeline_mode<synchronous>, transform_indices = @transform_12, window_bounds = array<i64: 1, 10>}, {transform_indices = @transform_13, window_bounds = array<i64: 8, 10>}]} {
    %c0 = arith.constant 0 : index
    %c0_0 = arith.constant 0 : index
    %c0_1 = arith.constant 0 : index
    %0 = vector.load %arg1[%c0, %c0_0, %c0_1] : memref<8x28x28xf32, #tpu.memory_space<vmem>>, vector<8x28x28xf32>
    %cst = arith.constant 0.000000e+00 : f32
    %1 = vector.broadcast %cst : f32 to vector<192x240xf32>
    %2 = vector.extract_strided_slice %0 {offsets = [0, 0, 0], sizes = [8, 24, 28], strides = [1, 1, 1]} : vector<8x28x28xf32> to vector<8x24x28xf32>
    %3 = vector.shape_cast %2 : vector<8x24x28xf32> to vector<192x28xf32>
    %c0_2 = arith.constant 0 : index
    %c0_3 = arith.constant 0 : index
    %c0_4 = arith.constant 0 : index
    %4 = vector.load %arg2[%c0_2, %c0_3, %c0_4] : memref<5x28x240xf32, #tpu.memory_space<vmem>>, vector<1x28x240xf32>
    %5 = vector.shape_cast %4 : vector<1x28x240xf32> to vector<28x240xf32>
    %cst_5 = arith.constant dense<0.000000e+00> : vector<192x240xf32>
    %6 = tpu.matmul %3, %5, %cst_5 {dimension_numbers = #tpu.dot_dimension_numbers<[1], [0], [0], [1], [0, 0, 1, 1], [], []>} : vector<192x28xf32>, vector<28x240xf32>, vector<192x240xf32> -> vector<192x240xf32>
    %7 = arith.addf %1, %6 : vector<192x240xf32>
    %8 = vector.extract_strided_slice %0 {offsets = [0, 1, 0], sizes = [8, 24, 28], strides = [1, 1, 1]} : vector<8x28x28xf32> to vector<8x24x28xf32>
    %9 = vector.shape_cast %8 : vector<8x24x28xf32> to vector<192x28xf32>
    %c1 = arith.constant 1 : index
    %c0_6 = arith.constant 0 : index
    %c0_7 = arith.constant 0 : index
    %10 = vector.load %arg2[%c1, %c0_6, %c0_7] : memref<5x28x240xf32, #tpu.memory_space<vmem>>, vector<1x28x240xf32>
    %11 = vector.shape_cast %10 : vector<1x28x240xf32> to vector<28x240xf32>
    %cst_8 = arith.constant dense<0.000000e+00> : vector<192x240xf32>
    %12 = tpu.matmul %9, %11, %cst_8 {dimension_numbers = #tpu.dot_dimension_numbers<[1], [0], [0], [1], [0, 0, 1, 1], [], []>} : vector<192x28xf32>, vector<28x240xf32>, vector<192x240xf32> -> vector<192x240xf32>
    %13 = arith.addf %7, %12 : vector<192x240xf32>
    %14 = vector.extract_strided_slice %0 {offsets = [0, 2, 0], sizes = [8, 24, 28], strides = [1, 1, 1]} : vector<8x28x28xf32> to vector<8x24x28xf32>
    %15 = vector.shape_cast %14 : vector<8x24x28xf32> to vector<192x28xf32>
    %c2 = arith.constant 2 : index
    %c0_9 = arith.constant 0 : index
    %c0_10 = arith.constant 0 : index
    %16 = vector.load %arg2[%c2, %c0_9, %c0_10] : memref<5x28x240xf32, #tpu.memory_space<vmem>>, vector<1x28x240xf32>
    %17 = vector.shape_cast %16 : vector<1x28x240xf32> to vector<28x240xf32>
    %cst_11 = arith.constant dense<0.000000e+00> : vector<192x240xf32>
    %18 = tpu.matmul %15, %17, %cst_11 {dimension_numbers = #tpu.dot_dimension_numbers<[1], [0], [0], [1], [0, 0, 1, 1], [], []>} : vector<192x28xf32>, vector<28x240xf32>, vector<192x240xf32> -> vector<192x240xf32>
    %19 = arith.addf %13, %18 : vector<192x240xf32>
    %20 = vector.extract_strided_slice %0 {offsets = [0, 3, 0], sizes = [8, 24, 28], strides = [1, 1, 1]} : vector<8x28x28xf32> to vector<8x24x28xf32>
    %21 = vector.shape_cast %20 : vector<8x24x28xf32> to vector<192x28xf32>
    %c3 = arith.constant 3 : index
    %c0_12 = arith.constant 0 : index
    %c0_13 = arith.constant 0 : index
    %22 = vector.load %arg2[%c3, %c0_12, %c0_13] : memref<5x28x240xf32, #tpu.memory_space<vmem>>, vector<1x28x240xf32>
    %23 = vector.shape_cast %22 : vector<1x28x240xf32> to vector<28x240xf32>
    %cst_14 = arith.constant dense<0.000000e+00> : vector<192x240xf32>
    %24 = tpu.matmul %21, %23, %cst_14 {dimension_numbers = #tpu.dot_dimension_numbers<[1], [0], [0], [1], [0, 0, 1, 1], [], []>} : vector<192x28xf32>, vector<28x240xf32>, vector<192x240xf32> -> vector<192x240xf32>
    %25 = arith.addf %19, %24 : vector<192x240xf32>
    %26 = vector.extract_strided_slice %0 {offsets = [0, 4, 0], sizes = [8, 24, 28], strides = [1, 1, 1]} : vector<8x28x28xf32> to vector<8x24x28xf32>
    %27 = vector.shape_cast %26 : vector<8x24x28xf32> to vector<192x28xf32>
    %c4 = arith.constant 4 : index
    %c0_15 = arith.constant 0 : index
    %c0_16 = arith.constant 0 : index
    %28 = vector.load %arg2[%c4, %c0_15, %c0_16] : memref<5x28x240xf32, #tpu.memory_space<vmem>>, vector<1x28x240xf32>
    %29 = vector.shape_cast %28 : vector<1x28x240xf32> to vector<28x240xf32>
    %cst_17 = arith.constant dense<0.000000e+00> : vector<192x240xf32>
    %30 = tpu.matmul %27, %29, %cst_17 {dimension_numbers = #tpu.dot_dimension_numbers<[1], [0], [0], [1], [0, 0, 1, 1], [], []>} : vector<192x28xf32>, vector<28x240xf32>, vector<192x240xf32> -> vector<192x240xf32>
    %31 = arith.addf %25, %30 : vector<192x240xf32>
    %c0_18 = arith.constant 0 : index
    %c0_19 = arith.constant 0 : index
    %32 = vector.load %arg3[%c0_18, %c0_19] : memref<1x240xf32, #tpu.memory_space<vmem>>, vector<1x240xf32>
    %33 = vector.broadcast %32 : vector<1x240xf32> to vector<192x240xf32>
    %34 = arith.addf %31, %33 : vector<192x240xf32>
    %35 = vector.shape_cast %34 : vector<192x240xf32> to vector<96x2x240xf32>
    %36 = vector.extract_strided_slice %35 {offsets = [0, 0, 0], sizes = [96, 1, 240], strides = [1, 1, 1]} : vector<96x2x240xf32> to vector<96x1x240xf32>
    %37 = vector.shape_cast %36 : vector<96x1x240xf32> to vector<96x240xf32>
    %38 = vector.extract_strided_slice %35 {offsets = [0, 1, 0], sizes = [96, 1, 240], strides = [1, 1, 1]} : vector<96x2x240xf32> to vector<96x1x240xf32>
    %39 = vector.shape_cast %38 : vector<96x1x240xf32> to vector<96x240xf32>
    %40 = arith.maximumf %37, %39 : vector<96x240xf32>
    %41 = vector.extract_strided_slice %40 {offsets = [0, 0], sizes = [96, 230], strides = [1, 1]} : vector<96x240xf32> to vector<96x230xf32>
    %42 = vector.extract_strided_slice %40 {offsets = [0, 10], sizes = [96, 230], strides = [1, 1]} : vector<96x240xf32> to vector<96x230xf32>
    %43 = arith.maximumf %41, %42 : vector<96x230xf32>
    %cst_20 = arith.constant 0.000000e+00 : f32
    %44 = vector.broadcast %cst_20 : f32 to vector<96x230xf32>
    %45 = arith.maximumf %43, %44 : vector<96x230xf32>
    %c0_21 = arith.constant 0 : index
    %c0_22 = arith.constant 0 : index
    %46 = vector.load %arg4[%c0_21, %c0_22] : memref<1x230xf32, #tpu.memory_space<vmem>>, vector<1x230xf32>
    %47 = vector.broadcast %46 : vector<1x230xf32> to vector<96x230xf32>
    %48 = arith.mulf %45, %47 : vector<96x230xf32>
    %c0_23 = arith.constant 0 : index
    %c0_24 = arith.constant 0 : index
    %49 = vector.load %arg5[%c0_23, %c0_24] : memref<1x230xf32, #tpu.memory_space<vmem>>, vector<1x230xf32>
    %50 = vector.broadcast %49 : vector<1x230xf32> to vector<96x230xf32>
    %51 = arith.addf %48, %50 : vector<96x230xf32>
    %52 = vector.shape_cast %51 : vector<96x230xf32> to vector<8x12x230xf32>
    %cst_25 = arith.constant 0.000000e+00 : f32
    %53 = vector.broadcast %cst_25 : f32 to vector<64x160xf32>
    %54 = vector.extract_strided_slice %52 {offsets = [0, 0, 0], sizes = [8, 8, 230], strides = [1, 1, 1]} : vector<8x12x230xf32> to vector<8x8x230xf32>
    %55 = vector.shape_cast %54 : vector<8x8x230xf32> to vector<64x230xf32>
    %c0_26 = arith.constant 0 : index
    %c0_27 = arith.constant 0 : index
    %c0_28 = arith.constant 0 : index
    %56 = vector.load %arg6[%c0_26, %c0_27, %c0_28] : memref<5x230x160xf32, #tpu.memory_space<vmem>>, vector<1x230x160xf32>
    %57 = vector.shape_cast %56 : vector<1x230x160xf32> to vector<230x160xf32>
    %cst_29 = arith.constant dense<0.000000e+00> : vector<64x160xf32>
    %58 = tpu.matmul %55, %57, %cst_29 {dimension_numbers = #tpu.dot_dimension_numbers<[1], [0], [0], [1], [0, 0, 1, 1], [], []>} : vector<64x230xf32>, vector<230x160xf32>, vector<64x160xf32> -> vector<64x160xf32>
    %59 = arith.addf %53, %58 : vector<64x160xf32>
    %60 = vector.extract_strided_slice %52 {offsets = [0, 1, 0], sizes = [8, 8, 230], strides = [1, 1, 1]} : vector<8x12x230xf32> to vector<8x8x230xf32>
    %61 = vector.shape_cast %60 : vector<8x8x230xf32> to vector<64x230xf32>
    %c1_30 = arith.constant 1 : index
    %c0_31 = arith.constant 0 : index
    %c0_32 = arith.constant 0 : index
    %62 = vector.load %arg6[%c1_30, %c0_31, %c0_32] : memref<5x230x160xf32, #tpu.memory_space<vmem>>, vector<1x230x160xf32>
    %63 = vector.shape_cast %62 : vector<1x230x160xf32> to vector<230x160xf32>
    %cst_33 = arith.constant dense<0.000000e+00> : vector<64x160xf32>
    %64 = tpu.matmul %61, %63, %cst_33 {dimension_numbers = #tpu.dot_dimension_numbers<[1], [0], [0], [1], [0, 0, 1, 1], [], []>} : vector<64x230xf32>, vector<230x160xf32>, vector<64x160xf32> -> vector<64x160xf32>
    %65 = arith.addf %59, %64 : vector<64x160xf32>
    %66 = vector.extract_strided_slice %52 {offsets = [0, 2, 0], sizes = [8, 8, 230], strides = [1, 1, 1]} : vector<8x12x230xf32> to vector<8x8x230xf32>
    %67 = vector.shape_cast %66 : vector<8x8x230xf32> to vector<64x230xf32>
    %c2_34 = arith.constant 2 : index
    %c0_35 = arith.constant 0 : index
    %c0_36 = arith.constant 0 : index
    %68 = vector.load %arg6[%c2_34, %c0_35, %c0_36] : memref<5x230x160xf32, #tpu.memory_space<vmem>>, vector<1x230x160xf32>
    %69 = vector.shape_cast %68 : vector<1x230x160xf32> to vector<230x160xf32>
    %cst_37 = arith.constant dense<0.000000e+00> : vector<64x160xf32>
    %70 = tpu.matmul %67, %69, %cst_37 {dimension_numbers = #tpu.dot_dimension_numbers<[1], [0], [0], [1], [0, 0, 1, 1], [], []>} : vector<64x230xf32>, vector<230x160xf32>, vector<64x160xf32> -> vector<64x160xf32>
    %71 = arith.addf %65, %70 : vector<64x160xf32>
    %72 = vector.extract_strided_slice %52 {offsets = [0, 3, 0], sizes = [8, 8, 230], strides = [1, 1, 1]} : vector<8x12x230xf32> to vector<8x8x230xf32>
    %73 = vector.shape_cast %72 : vector<8x8x230xf32> to vector<64x230xf32>
    %c3_38 = arith.constant 3 : index
    %c0_39 = arith.constant 0 : index
    %c0_40 = arith.constant 0 : index
    %74 = vector.load %arg6[%c3_38, %c0_39, %c0_40] : memref<5x230x160xf32, #tpu.memory_space<vmem>>, vector<1x230x160xf32>
    %75 = vector.shape_cast %74 : vector<1x230x160xf32> to vector<230x160xf32>
    %cst_41 = arith.constant dense<0.000000e+00> : vector<64x160xf32>
    %76 = tpu.matmul %73, %75, %cst_41 {dimension_numbers = #tpu.dot_dimension_numbers<[1], [0], [0], [1], [0, 0, 1, 1], [], []>} : vector<64x230xf32>, vector<230x160xf32>, vector<64x160xf32> -> vector<64x160xf32>
    %77 = arith.addf %71, %76 : vector<64x160xf32>
    %78 = vector.extract_strided_slice %52 {offsets = [0, 4, 0], sizes = [8, 8, 230], strides = [1, 1, 1]} : vector<8x12x230xf32> to vector<8x8x230xf32>
    %79 = vector.shape_cast %78 : vector<8x8x230xf32> to vector<64x230xf32>
    %c4_42 = arith.constant 4 : index
    %c0_43 = arith.constant 0 : index
    %c0_44 = arith.constant 0 : index
    %80 = vector.load %arg6[%c4_42, %c0_43, %c0_44] : memref<5x230x160xf32, #tpu.memory_space<vmem>>, vector<1x230x160xf32>
    %81 = vector.shape_cast %80 : vector<1x230x160xf32> to vector<230x160xf32>
    %cst_45 = arith.constant dense<0.000000e+00> : vector<64x160xf32>
    %82 = tpu.matmul %79, %81, %cst_45 {dimension_numbers = #tpu.dot_dimension_numbers<[1], [0], [0], [1], [0, 0, 1, 1], [], []>} : vector<64x230xf32>, vector<230x160xf32>, vector<64x160xf32> -> vector<64x160xf32>
    %83 = arith.addf %77, %82 : vector<64x160xf32>
    %c0_46 = arith.constant 0 : index
    %c0_47 = arith.constant 0 : index
    %84 = vector.load %arg7[%c0_46, %c0_47] : memref<1x160xf32, #tpu.memory_space<vmem>>, vector<1x160xf32>
    %85 = vector.broadcast %84 : vector<1x160xf32> to vector<64x160xf32>
    %86 = arith.addf %83, %85 : vector<64x160xf32>
    %87 = vector.shape_cast %86 : vector<64x160xf32> to vector<32x2x160xf32>
    %88 = vector.extract_strided_slice %87 {offsets = [0, 0, 0], sizes = [32, 1, 160], strides = [1, 1, 1]} : vector<32x2x160xf32> to vector<32x1x160xf32>
    %89 = vector.shape_cast %88 : vector<32x1x160xf32> to vector<32x160xf32>
    %90 = vector.extract_strided_slice %87 {offsets = [0, 1, 0], sizes = [32, 1, 160], strides = [1, 1, 1]} : vector<32x2x160xf32> to vector<32x1x160xf32>
    %91 = vector.shape_cast %90 : vector<32x1x160xf32> to vector<32x160xf32>
    %92 = arith.maximumf %89, %91 : vector<32x160xf32>
    %93 = vector.extract_strided_slice %92 {offsets = [0, 0], sizes = [32, 140], strides = [1, 1]} : vector<32x160xf32> to vector<32x140xf32>
    %94 = vector.extract_strided_slice %92 {offsets = [0, 20], sizes = [32, 140], strides = [1, 1]} : vector<32x160xf32> to vector<32x140xf32>
    %95 = arith.maximumf %93, %94 : vector<32x140xf32>
    %cst_48 = arith.constant 0.000000e+00 : f32
    %96 = vector.broadcast %cst_48 : f32 to vector<32x140xf32>
    %97 = arith.maximumf %95, %96 : vector<32x140xf32>
    %c0_49 = arith.constant 0 : index
    %c0_50 = arith.constant 0 : index
    %98 = vector.load %arg8[%c0_49, %c0_50] : memref<1x140xf32, #tpu.memory_space<vmem>>, vector<1x140xf32>
    %99 = vector.broadcast %98 : vector<1x140xf32> to vector<32x140xf32>
    %100 = arith.mulf %97, %99 : vector<32x140xf32>
    %c0_51 = arith.constant 0 : index
    %c0_52 = arith.constant 0 : index
    %101 = vector.load %arg9[%c0_51, %c0_52] : memref<1x140xf32, #tpu.memory_space<vmem>>, vector<1x140xf32>
    %102 = vector.broadcast %101 : vector<1x140xf32> to vector<32x140xf32>
    %103 = arith.addf %100, %102 : vector<32x140xf32>
    %104 = vector.shape_cast %103 : vector<32x140xf32> to vector<8x4x140xf32>
    %cst_53 = arith.constant 0.000000e+00 : f32
    %105 = vector.broadcast %cst_53 : f32 to vector<8x50xf32>
    %106 = vector.extract_strided_slice %104 {offsets = [0, 0, 0], sizes = [8, 1, 140], strides = [1, 1, 1]} : vector<8x4x140xf32> to vector<8x1x140xf32>
    %107 = vector.shape_cast %106 : vector<8x1x140xf32> to vector<8x140xf32>
    %c0_54 = arith.constant 0 : index
    %c0_55 = arith.constant 0 : index
    %c0_56 = arith.constant 0 : index
    %108 = vector.load %arg10[%c0_54, %c0_55, %c0_56] : memref<4x140x50xf32, #tpu.memory_space<vmem>>, vector<1x140x50xf32>
    %109 = vector.shape_cast %108 : vector<1x140x50xf32> to vector<140x50xf32>
    %cst_57 = arith.constant dense<0.000000e+00> : vector<8x50xf32>
    %110 = tpu.matmul %107, %109, %cst_57 {dimension_numbers = #tpu.dot_dimension_numbers<[1], [0], [0], [1], [0, 0, 1, 1], [], []>} : vector<8x140xf32>, vector<140x50xf32>, vector<8x50xf32> -> vector<8x50xf32>
    %111 = arith.addf %105, %110 : vector<8x50xf32>
    %112 = vector.extract_strided_slice %104 {offsets = [0, 1, 0], sizes = [8, 1, 140], strides = [1, 1, 1]} : vector<8x4x140xf32> to vector<8x1x140xf32>
    %113 = vector.shape_cast %112 : vector<8x1x140xf32> to vector<8x140xf32>
    %c1_58 = arith.constant 1 : index
    %c0_59 = arith.constant 0 : index
    %c0_60 = arith.constant 0 : index
    %114 = vector.load %arg10[%c1_58, %c0_59, %c0_60] : memref<4x140x50xf32, #tpu.memory_space<vmem>>, vector<1x140x50xf32>
    %115 = vector.shape_cast %114 : vector<1x140x50xf32> to vector<140x50xf32>
    %cst_61 = arith.constant dense<0.000000e+00> : vector<8x50xf32>
    %116 = tpu.matmul %113, %115, %cst_61 {dimension_numbers = #tpu.dot_dimension_numbers<[1], [0], [0], [1], [0, 0, 1, 1], [], []>} : vector<8x140xf32>, vector<140x50xf32>, vector<8x50xf32> -> vector<8x50xf32>
    %117 = arith.addf %111, %116 : vector<8x50xf32>
    %118 = vector.extract_strided_slice %104 {offsets = [0, 2, 0], sizes = [8, 1, 140], strides = [1, 1, 1]} : vector<8x4x140xf32> to vector<8x1x140xf32>
    %119 = vector.shape_cast %118 : vector<8x1x140xf32> to vector<8x140xf32>
    %c2_62 = arith.constant 2 : index
    %c0_63 = arith.constant 0 : index
    %c0_64 = arith.constant 0 : index
    %120 = vector.load %arg10[%c2_62, %c0_63, %c0_64] : memref<4x140x50xf32, #tpu.memory_space<vmem>>, vector<1x140x50xf32>
    %121 = vector.shape_cast %120 : vector<1x140x50xf32> to vector<140x50xf32>
    %cst_65 = arith.constant dense<0.000000e+00> : vector<8x50xf32>
    %122 = tpu.matmul %119, %121, %cst_65 {dimension_numbers = #tpu.dot_dimension_numbers<[1], [0], [0], [1], [0, 0, 1, 1], [], []>} : vector<8x140xf32>, vector<140x50xf32>, vector<8x50xf32> -> vector<8x50xf32>
    %123 = arith.addf %117, %122 : vector<8x50xf32>
    %124 = vector.extract_strided_slice %104 {offsets = [0, 3, 0], sizes = [8, 1, 140], strides = [1, 1, 1]} : vector<8x4x140xf32> to vector<8x1x140xf32>
    %125 = vector.shape_cast %124 : vector<8x1x140xf32> to vector<8x140xf32>
    %c3_66 = arith.constant 3 : index
    %c0_67 = arith.constant 0 : index
    %c0_68 = arith.constant 0 : index
    %126 = vector.load %arg10[%c3_66, %c0_67, %c0_68] : memref<4x140x50xf32, #tpu.memory_space<vmem>>, vector<1x140x50xf32>
    %127 = vector.shape_cast %126 : vector<1x140x50xf32> to vector<140x50xf32>
    %cst_69 = arith.constant dense<0.000000e+00> : vector<8x50xf32>
    %128 = tpu.matmul %125, %127, %cst_69 {dimension_numbers = #tpu.dot_dimension_numbers<[1], [0], [0], [1], [0, 0, 1, 1], [], []>} : vector<8x140xf32>, vector<140x50xf32>, vector<8x50xf32> -> vector<8x50xf32>
    %129 = arith.addf %123, %128 : vector<8x50xf32>
    %c0_70 = arith.constant 0 : index
    %c0_71 = arith.constant 0 : index
    %130 = vector.load %arg11[%c0_70, %c0_71] : memref<1x50xf32, #tpu.memory_space<vmem>>, vector<1x50xf32>
    %131 = vector.broadcast %130 : vector<1x50xf32> to vector<8x50xf32>
    %132 = arith.addf %129, %131 : vector<8x50xf32>
    %cst_72 = arith.constant 0.000000e+00 : f32
    %133 = vector.broadcast %cst_72 : f32 to vector<8x50xf32>
    %134 = arith.maximumf %132, %133 : vector<8x50xf32>
    %c0_73 = arith.constant 0 : index
    %c0_74 = arith.constant 0 : index
    %135 = vector.load %arg12[%c0_73, %c0_74] : memref<50x10xf32, #tpu.memory_space<vmem>>, vector<50x10xf32>
    %cst_75 = arith.constant dense<0.000000e+00> : vector<8x10xf32>
    %136 = tpu.matmul %134, %135, %cst_75 {dimension_numbers = #tpu.dot_dimension_numbers<[1], [0], [0], [1], [0, 0, 1, 1], [], []>} : vector<8x50xf32>, vector<50x10xf32>, vector<8x10xf32> -> vector<8x10xf32>
    %c0_76 = arith.constant 0 : index
    %c0_77 = arith.constant 0 : index
    %137 = vector.load %arg13[%c0_76, %c0_77] : memref<1x10xf32, #tpu.memory_space<vmem>>, vector<1x10xf32>
    %138 = vector.broadcast %137 : vector<1x10xf32> to vector<8x10xf32>
    %139 = arith.addf %136, %138 : vector<8x10xf32>
    %cst_78 = arith.constant 0.000000e+00 : f32
    %140 = vector.broadcast %cst_78 : f32 to vector<8x10xf32>
    %141 = arith.maximumf %139, %140 : vector<8x10xf32>
    %cst_79 = arith.constant dense<0xFF800000> : vector<8xf32>
    %142 = vector.multi_reduction <maximumf>, %141, %cst_79 [1] : vector<8x10xf32> to vector<8xf32>
    %143 = vector.shape_cast %142 : vector<8xf32> to vector<8x1xf32>
    %144 = vector.broadcast %143 : vector<8x1xf32> to vector<8x10xf32>
    %145 = arith.subf %141, %144 : vector<8x10xf32>
    %146 = math.exp %145 : vector<8x10xf32>
    %cst_80 = arith.constant dense<0.000000e+00> : vector<8xf32>
    %147 = vector.multi_reduction <add>, %146, %cst_80 [1] : vector<8x10xf32> to vector<8xf32>
    %148 = vector.shape_cast %147 : vector<8xf32> to vector<8x1xf32>
    %149 = math.log %148 : vector<8x1xf32>
    %150 = arith.addf %149, %143 : vector<8x1xf32>
    %151 = vector.broadcast %150 : vector<8x1xf32> to vector<8x10xf32>
    %152 = arith.subf %141, %151 : vector<8x10xf32>
    %c0_81 = arith.constant 0 : index
    %c0_82 = arith.constant 0 : index
    %153 = vector.load %arg14[%c0_81, %c0_82] : memref<8x10xf32, #tpu.memory_space<vmem>>, vector<8x10xf32>
    tpu.vector_store %arg14[%c0_81, %c0_82], %152 {strides = array<i32>} : memref<8x10xf32, #tpu.memory_space<vmem>>, vector<8x10xf32>,
    return
  }
  func.func @transform_0(%arg0: i32) -> (i32, i32, i32) {
    %c0_i32 = arith.constant 0 : i32
    %c0_i32_0 = arith.constant 0 : i32
    %c0_i32_1 = arith.constant 0 : i32
    return %arg0, %c0_i32, %c0_i32_0 : i32, i32, i32
  }
  func.func @transform_1(%arg0: i32) -> (i32, i32, i32) {
    %c0_i32 = arith.constant 0 : i32
    %c0_i32_0 = arith.constant 0 : i32
    %c0_i32_1 = arith.constant 0 : i32
    %c0_i32_2 = arith.constant 0 : i32
    return %c0_i32, %c0_i32_0, %c0_i32_1 : i32, i32, i32
  }
  func.func @transform_2(%arg0: i32) -> (i32, i32) {
    %c0_i32 = arith.constant 0 : i32
    %c0_i32_0 = arith.constant 0 : i32
    %c0_i32_1 = arith.constant 0 : i32
    return %c0_i32, %c0_i32_0 : i32, i32
  }
  func.func @transform_3(%arg0: i32) -> (i32, i32) {
    %c0_i32 = arith.constant 0 : i32
    %c0_i32_0 = arith.constant 0 : i32
    %c0_i32_1 = arith.constant 0 : i32
    return %c0_i32, %c0_i32_0 : i32, i32
  }
  func.func @transform_4(%arg0: i32) -> (i32, i32) {
    %c0_i32 = arith.constant 0 : i32
    %c0_i32_0 = arith.constant 0 : i32
    %c0_i32_1 = arith.constant 0 : i32
    return %c0_i32, %c0_i32_0 : i32, i32
  }
  func.func @transform_5(%arg0: i32) -> (i32, i32, i32) {
    %c0_i32 = arith.constant 0 : i32
    %c0_i32_0 = arith.constant 0 : i32
    %c0_i32_1 = arith.constant 0 : i32
    %c0_i32_2 = arith.constant 0 : i32
    return %c0_i32, %c0_i32_0, %c0_i32_1 : i32, i32, i32
  }
  func.func @transform_6(%arg0: i32) -> (i32, i32) {
    %c0_i32 = arith.constant 0 : i32
    %c0_i32_0 = arith.constant 0 : i32
    %c0_i32_1 = arith.constant 0 : i32
    return %c0_i32, %c0_i32_0 : i32, i32
  }
  func.func @transform_7(%arg0: i32) -> (i32, i32) {
    %c0_i32 = arith.constant 0 : i32
    %c0_i32_0 = arith.constant 0 : i32
    %c0_i32_1 = arith.constant 0 : i32
    return %c0_i32, %c0_i32_0 : i32, i32
  }
  func.func @transform_8(%arg0: i32) -> (i32, i32) {
    %c0_i32 = arith.constant 0 : i32
    %c0_i32_0 = arith.constant 0 : i32
    %c0_i32_1 = arith.constant 0 : i32
    return %c0_i32, %c0_i32_0 : i32, i32
  }
  func.func @transform_9(%arg0: i32) -> (i32, i32, i32) {
    %c0_i32 = arith.constant 0 : i32
    %c0_i32_0 = arith.constant 0 : i32
    %c0_i32_1 = arith.constant 0 : i32
    %c0_i32_2 = arith.constant 0 : i32
    return %c0_i32, %c0_i32_0, %c0_i32_1 : i32, i32, i32
  }
  func.func @transform_10(%arg0: i32) -> (i32, i32) {
    %c0_i32 = arith.constant 0 : i32
    %c0_i32_0 = arith.constant 0 : i32
    %c0_i32_1 = arith.constant 0 : i32
    return %c0_i32, %c0_i32_0 : i32, i32
  }
  func.func @transform_11(%arg0: i32) -> (i32, i32) {
    %c0_i32 = arith.constant 0 : i32
    %c0_i32_0 = arith.constant 0 : i32
    %c0_i32_1 = arith.constant 0 : i32
    return %c0_i32, %c0_i32_0 : i32, i32
  }
  func.func @transform_12(%arg0: i32) -> (i32, i32) {
    %c0_i32 = arith.constant 0 : i32
    %c0_i32_0 = arith.constant 0 : i32
    %c0_i32_1 = arith.constant 0 : i32
    return %c0_i32, %c0_i32_0 : i32, i32
  }
  func.func @transform_13(%arg0: i32) -> (i32, i32) {
    %c0_i32 = arith.constant 0 : i32
    %c0_i32_0 = arith.constant 0 : i32
    return %arg0, %c0_i32 : i32, i32
  }
}

</mosaic_0001>

<bundles_post_ra>
// kernel: tpu_custom_call.1
= control target key start
LH: loop header
LB: loop body
LE: loop exit
PB: predicated region body
PF: predicated region fallthrough
CT: control target
= control target key end

     0   :  { %vm232_vm0 = vcmask 1043456   ;;  %v15544_v7 = vmov 0.0   ;;  %vm117_vm1 = vcmask 1046528   ;;  %vm183_vm2 = vcmask 228352   ;;  %s15530_s0 = inlined_call_operand.vmem [shape: f32[8,28,28], index: 0, kind: input, shape index: {}]   ;;  %s15531_s1 = inlined_call_operand.vmem [shape: f32[5,28,240], index: 1, kind: input, shape index: {}]   ;;  %s15532_s2 = inlined_call_operand.vmem [shape: f32[1,240], index: 2, kind: input, shape index: {}]   ;;  %s15533_s3 = inlined_call_operand.vmem [shape: f32[1,230], index: 3, kind: input, shape index: {}]   ;;  %s15534_s4 = inlined_call_operand.vmem [shape: f32[1,230], index: 4, kind: input, shape index: {}]   ;;  %s15535_s5 = inlined_call_operand.vmem [shape: f32[5,230,160], index: 5, kind: input, shape index: {}]   ;;  %s15536_s6 = inlined_call_operand.vmem [shape: f32[1,160], index: 6, kind: input, shape index: {}]   ;;  %s15537_s7 = inlined_call_operand.vmem [shape: f32[1,140], index: 7, kind: input, shape index: {}]   ;;  %s15538_s8 = inlined_call_operand.vmem [shape: f32[1,140], index: 8, kind: input, shape index: {}]   ;;  %s15539_s9 = inlined_call_operand.vmem [shape: f32[4,140,50], index: 9, kind: input, shape index: {}]   ;;  %s15540_s10 = inlined_call_operand.vmem [shape: f32[1,50], index: 10, kind: input, shape index: {}]   ;;  %s15541_s11 = inlined_call_operand.vmem [shape: f32[50,10], index: 11, kind: input, shape index: {}]   ;;  %s15542_s12 = inlined_call_operand.vmem [shape: f32[1,10], index: 12, kind: input, shape index: {}]   ;;  %s15543_s13 = inlined_call_operand.hbm [shape: f32[8,10], index: 13, kind: output, shape index: {}]  }
   0x1   :  { %v8004_v0 = vld [vmem:[%s15531_s1 + $0x78] sm:$0xf]  ;;  %v8003_v1 = vld [vmem:[%s15531_s1 + $0x70] sm:$0xf]  ;;  %v8002_v2 = vld [vmem:[%s15531_s1 + $0x68] sm:$0xff]  ;;  %303 = vmatprep.mubr.f32.mxu0 %v15544_v7  ;;  %578 = vmatprep.mubr.f32.mxu1 %v15544_v7 }
   0x2   :  { %8005 = vmatprep.subr.msk.mxu0 %vm232_vm0, %v8004_v0  ;;  %v8001_v3 = vld [vmem:[%s15531_s1 + $0x60] sm:$0xff]  ;;  %v8000_v4 = vld [vmem:[%s15531_s1 + $0x58] sm:$0xff]  ;;  %v7999_v5 = vld [vmem:[%s15531_s1 + $0x50] sm:$0xff] }
   0x3   :  { %8006 = vmatpush1.msk.msra.mxu0 %vm232_vm0, %v8003_v1  ;;  %v7998_v6 = vld [vmem:[%s15531_s1 + $0x48] sm:$0xff]  ;;  %v8803_v8 = vld [vmem:[%s15530_s0] sm:$0xff]  ;;  %v84_v11 = vld [vmem:[%s15531_s1 + $0x38] sm:$0xf] }
   0x4   :  { %265 = vmatprep.subr.mxu0 %v8002_v2  ;;  %v8808_v9 = vld [vmem:[%s15530_s0 + $0x8] sm:$0xff]  ;;  %v118_v10 = vrot.slane %v8803_v8, 1  ;;  %v83_v12 = vld [vmem:[%s15531_s1 + $0x30] sm:$0xf]  ;;  %8660 = vmatprep.subr.msk.mxu1 %vm232_vm0, %v84_v11  ;;  %v81_v15 = vld [vmem:[%s15531_s1 + $0x20] sm:$0xff] }
   0x5   :  { %266 = vmatpush1.msra.mxu0 %v8001_v3  ;;  %v119_v13 = vrot.slane %v8808_v9, 1  ;;  %v82_v14 = vld [vmem:[%s15531_s1 + $0x28] sm:$0xff]  ;;  %v8829_v16 = vld [vmem:[%s15530_s0 + $0x10] sm:$0xff]  ;;  %v7997_v17 = vld [vmem:[%s15531_s1 + $0x40] sm:$0xff]  ;;  %8664 = vmatpush1.msk.msra.mxu1 %vm232_vm0, %v83_v12 }
   0x6   :  { %267 = vmatprep.subr.mxu0 %v8000_v4  ;;  %v80_v18 = vld [vmem:[%s15531_s1 + $0x18] sm:$0xff]  ;;  %8661 = vmatprep.subr.mxu1 %v82_v14  ;;  %v121_v20 = vrot.slane %v8829_v16, 1  ;;  %v79_v22 = vld [vmem:[%s15531_s1 + $0x10] sm:$0xff]  ;;  %v78_v23 = vld [vmem:[%s15531_s1 + $0x8] sm:$0xff] }
   0x7   :  { %268 = vmatpush1.msra.mxu0 %v7999_v5  ;;  %v120_v19 = vsel %vm117_vm1, %v118_v10, %v119_v13  ;;  %8665 = vmatpush1.msra.mxu1 %v81_v15  ;;  %v8843_v21 = vld [vmem:[%s15530_s0 + $0x18] sm:$0xf]  ;;  %v77_v25 = vld [vmem:[%s15531_s1] sm:$0xff]  ;;  %v8868_v28 = vld [vmem:[%s15530_s0 + $0x28] sm:$0xff] }
   0x8   :  { %269 = vmatprep.subr.mxu0 %v7998_v6  ;;  %8662 = vmatprep.subr.mxu1 %v80_v18  ;;  %v122_v24 = vsel %vm117_vm1, %v119_v13, %v121_v20  ;;  %v123_v26 = vrot.slane %v8843_v21, 1  ;;  %v8863_v27 = vld [vmem:[%s15530_s0 + $0x20] sm:$0xff]  ;;  %v126_v31 = vrot.slane %v8868_v28, 1  ;;  %v8881_v32 = vld [vmem:[%s15530_s0 + $0x30] sm:$0xff]  ;;  %v8064_v33 = vld [vmem:[%s15531_s1 + $0xb8] sm:$0xf] }
   0x9   :  { %270 = vmatpush1.msra.mxu0 %v7997_v17  ;;  %8666 = vmatpush1.msra.mxu1 %v79_v22  ;;  %v125_v30 = vrot.slane %v8863_v27, 1  ;;  %v128_v35 = vrot.slane %v8881_v32, 1  ;;  %v8098_v36 = vld [vmem:[%s15531_s1 + $0xf8] sm:$0xf]  ;;  %v8097_v38 = vld [vmem:[%s15531_s1 + $0xf0] sm:$0xf] }
   0xa   :  { %8007 = vmatmul.mubr.msk.f32.vlgmr.msra.gmra.mxu0 %vm183_vm2, %v120_v19  ;;  %8031 = vmatprep.subr.msk.mxu0 %vm232_vm0, %v84_v11  ;;  %v124_v29 = vsel %vm117_vm1, %v121_v20, %v123_v26  ;;  %v8899_v37 = vld [vmem:[%s15530_s0 + $0x38] sm:$0xf]  ;;  %v8096_v39 = vld [vmem:[%s15531_s1 + $0xe8] sm:$0xff]  ;;  %v8095_v40 = vld [vmem:[%s15531_s1 + $0xe0] sm:$0xff] }
   0xb   :  { %8032 = vmatpush1.msk.msra.mxu0 %vm232_vm0, %v83_v12  ;;  %309 = vmatprep.mubr.f32.mxu0 %v15544_v7  ;;  %v127_v34 = vsel %vm117_vm1, %v125_v30, %v126_v31  ;;  %v129_v41 = vsel %vm117_vm1, %v126_v31, %v128_v35  ;;  %v130_v42 = vrot.slane %v8899_v37, 1  ;;  %v8094_v43 = vld [vmem:[%s15531_s1 + $0xd8] sm:$0xff]  ;;  %v8926_v44 = vld [vmem:[%s15530_s0 + $0x40] sm:$0xff]  ;;  %v8931_v45 = vld [vmem:[%s15530_s0 + $0x48] sm:$0xff] }
   0xc   :  { %528 = vmatprep.subr.mxu0 %v82_v14  ;;  %8663 = vmatprep.subr.mxu1 %v78_v23  ;;  %v8093_v46 = vld [vmem:[%s15531_s1 + $0xd0] sm:$0xff] }
   0xd   :  { %529 = vmatpush1.msra.mxu0 %v81_v15  ;;  %8667 = vmatpush1.msra.mxu1 %v77_v25 }
   0xe   :  { %8008 = vmatmul.mubr.msk.f32.gmra.mxu0 %vm183_vm2, %v122_v24  ;;  %8035 = vmatmul.mubr.msk.f32.vlgmr.msra.gmra.mxu1 %vm183_vm2, %v8829_v16 }
   0xf   :  { %315 = vmatprep.mubr.f32.mxu0 %v15544_v7  ;;  %584 = vmatprep.mubr.f32.mxu1 %v15544_v7 }
  0x10   :  { %530 = vmatprep.subr.mxu0 %v80_v18  ;;  %8099 = vmatprep.subr.msk.mxu1 %vm232_vm0, %v8098_v36 }
  0x11   :  { %531 = vmatpush1.msra.mxu0 %v79_v22  ;;  %8100 = vmatpush1.msk.msra.mxu1 %vm232_vm0, %v8097_v38 }
  0x12   :  { %8009 = vmatmul.mubr.msk.f32.gmra.mxu0 %vm183_vm2, %v124_v29  ;;  %532 = vmatprep.subr.mxu0 %v78_v23 }
  0x13   :  { %321 = vmatprep.mubr.f32.mxu0 %v15544_v7  ;;  %8036 = vmatmul.mubr.msk.f32.gmra.mxu1 %vm183_vm2, %v8863_v27 }
  0x14   :  { %590 = vmatprep.mubr.f32.mxu1 %v15544_v7  ;;  %533 = vmatpush1.msra.mxu0 %v77_v25 }
  0x15   :  { %8065 = vmatprep.subr.msk.mxu0 %vm232_vm0, %v8064_v33  ;;  %1234 = vmatprep.subr.mxu1 %v8096_v39 }
  0x16   :  { %8010 = vmatmul.mubr.msk.f32.gmra.mxu0 %vm183_vm2, %v127_v34  ;;  %1235 = vmatpush1.msra.mxu1 %v8095_v40 }
  0x17   :  { %327 = vmatprep.mubr.f32.mxu0 %v15544_v7  ;;  %8037 = vmatmul.mubr.msk.f32.gmra.mxu1 %vm183_vm2, %v8868_v28 }
  0x18   :  { %596 = vmatprep.mubr.f32.mxu1 %v15544_v7 }
  0x19   :  { %18 = vsyncpa [#allocation3], 0  ;;  %1236 = vmatprep.subr.mxu1 %v8094_v43  ;;  %v8092_v47 = vld [vmem:[%s15531_s1 + $0xc8] sm:$0xff]  ;;  %v131_v48 = vsel %vm117_vm1, %v128_v35, %v130_v42  ;;  %v132_v49 = vrot.slane %v8926_v44, 1  ;;  %v133_v50 = vrot.slane %v8931_v45, 1  ;;  %v8091_v51 = vld [vmem:[%s15531_s1 + $0xc0] sm:$0xff] }
  0x1a   :  { %8011 = vmatmul.mubr.msk.f32.gmra.mxu0 %vm183_vm2, %v129_v41  ;;  %v8953_v52 = vld [vmem:[%s15530_s0 + $0x50] sm:$0xff]  ;;  %1237 = vmatpush1.msra.mxu1 %v8093_v46  ;;  %v8965_v55 = vld [vmem:[%s15530_s0 + $0x58] sm:$0xf]  ;;  %v8977_v58 = vld [vmem:[%s15530_s0 + $0x60] sm:$0xff]  ;;  %vm1088_vm3 = vcmask 1044480   ;;  %vm711_vm4 = vcmask 1045504  }
  0x1b   :  { %333 = vmatprep.mubr.f32.mxu0 %v15544_v7  ;;  %8038 = vmatmul.mubr.msk.f32.gmra.mxu1 %vm183_vm2, %v8881_v32  ;;  %v134_v53 = vsel %vm117_vm1, %v132_v49, %v133_v50  ;;  %v135_v54 = vrot.slane %v8953_v52, 1  ;;  %v137_v57 = vrot.slane %v8965_v55, 1  ;;  %v8982_v59 = vld [vmem:[%s15530_s0 + $0x68] sm:$0xff]  ;;  %v139_v61 = vrot.slane %v8977_v58, 1  ;;  %v8995_v63 = vld [vmem:[%s15530_s0 + $0x70] sm:$0xff]  ;;  %v9019_v5 = vld [vmem:[%s15530_s0 + $0x80] sm:$0xff] }
  0x1c   :  { %602 = vmatprep.mubr.f32.mxu1 %v15544_v7  ;;  %1238 = vmatprep.subr.mxu1 %v8092_v47  ;;  %v140_v62 = vrot.slane %v8982_v59, 1  ;;  %v142_v1 = vrot.slane %v8995_v63, 1  ;;  %v9007_v2 = vld [vmem:[%s15530_s0 + $0x78] sm:$0xf]  ;;  %v9024_v6 = vld [vmem:[%s15530_s0 + $0x88] sm:$0xff]  ;;  %v146_v11 = vrot.slane %v9019_v5, 1 }
  0x1d   :  { %1239 = vmatpush1.msra.mxu1 %v8091_v51  ;;  %v136_v56 = vsel %vm117_vm1, %v133_v50, %v135_v54  ;;  %v138_v60 = vsel %vm117_vm1, %v135_v54, %v137_v57  ;;  %v144_v4 = vrot.slane %v9007_v2, 1  ;;  %v147_v12 = vrot.slane %v9024_v6, 1  ;;  %v9037_v13 = vld [vmem:[%s15530_s0 + $0x90] sm:$0xff]  ;;  %v9049_v17 = vld [vmem:[%s15530_s0 + $0x98] sm:$0xf]  ;;  %v9061_v20 = vld [vmem:[%s15530_s0 + $0xa0] sm:$0xff] }
  0x1e   :  { %8012 = vmatmul.mubr.msk.f32.gmra.mxu0 %vm183_vm2, %v131_v48  ;;  %v141_v0 = vsel %vm117_vm1, %v139_v61, %v140_v62  ;;  %v143_v3 = vsel %vm117_vm1, %v140_v62, %v142_v1  ;;  %v149_v15 = vrot.slane %v9037_v13, 1  ;;  %v151_v19 = vrot.slane %v9049_v17, 1  ;;  %v9066_v22 = vld [vmem:[%s15530_s0 + $0xa8] sm:$0xff]  ;;  %v9079_v26 = vld [vmem:[%s15530_s0 + $0xb0] sm:$0xff]  ;;  %v9091_v31 = vld [vmem:[%s15530_s0 + $0xb8] sm:$0xf] }
  0x1f   :  { %339 = vmatprep.mubr.f32.mxu0 %v15544_v7  ;;  %8039 = vmatmul.mubr.msk.f32.gmra.mxu1 %vm183_vm2, %v8926_v44  ;;  %v145_v10 = vsel %vm117_vm1, %v142_v1, %v144_v4  ;;  %v148_v14 = vsel %vm117_vm1, %v146_v11, %v147_v12  ;;  %v153_v24 = vrot.slane %v9061_v20, 1  ;;  %v154_v25 = vrot.slane %v9066_v22, 1  ;;  %v9103_v35 = vld [vmem:[%s15530_s0 + $0xc0] sm:$0xff]  ;;  %v9108_v36 = vld [vmem:[%s15530_s0 + $0xc8] sm:$0xff]  ;;  %v9121_v41 = vld [vmem:[%s15530_s0 + $0xd0] sm:$0xff]  ;;  %s8702_s15 = smov 118  }
  0x20   :  { %608 = vmatprep.mubr.f32.mxu1 %v15544_v7  ;;  %v150_v18 = vsel %vm117_vm1, %v147_v12, %v149_v15  ;;  %v152_v23 = vsel %vm117_vm1, %v149_v15, %v151_v19  ;;  %v156_v30 = vrot.slane %v9079_v26, 1  ;;  %v158_v34 = vrot.slane %v9091_v31, 1  ;;  %v9133_v46 = vld [vmem:[%s15530_s0 + $0xd8] sm:$0xf]  ;;  %v9145_v49 = vld [vmem:[%s15530_s0 + $0xe0] sm:$0xff]  ;;  %v9150_v50 = vld [vmem:[%s15530_s0 + $0xe8] sm:$0xff] }
  0x21   :  { %v155_v29 = vsel %vm117_vm1, %v153_v24, %v154_v25  ;;  %v160_v39 = vrot.slane %v9103_v35, 1  ;;  %v161_v40 = vrot.slane %v9108_v36, 1  ;;  %v163_v43 = vrot.slane %v9121_v41, 1  ;;  %v9175_v61 = vld [vmem:[%s15530_s0 + $0xf8] sm:$0xf]  ;;  %v8061_v19 = vld [vmem:[%s15531_s1 + $0xa0] sm:$0xff] }
  0x22   :  { %8013 = vmatmul.mubr.msk.f32.gmra.mxu0 %vm183_vm2, %v134_v53  ;;  %v157_v33 = vsel %vm117_vm1, %v154_v25, %v156_v30  ;;  %v159_v38 = vsel %vm117_vm1, %v156_v30, %v158_v34  ;;  %v165_v48 = vrot.slane %v9133_v46, 1  ;;  %v167_v53 = vrot.slane %v9145_v49, 1  ;;  %v8063_v12 = vld [vmem:[%s15531_s1 + $0xb0] sm:$0xf]  ;;  %v8058_v30 = vld [vmem:[%s15531_s1 + $0x88] sm:$0xff] }
  0x23   :  { %345 = vmatprep.mubr.f32.mxu0 %v15544_v7  ;;  %8040 = vmatmul.mubr.msk.f32.gmra.mxu1 %vm183_vm2, %v8931_v45  ;;  %v162_v42 = vsel %vm117_vm1, %v160_v39, %v161_v40  ;;  %v164_v47 = vsel %vm117_vm1, %v161_v40, %v163_v43  ;;  %v168_v54 = vrot.slane %v9150_v50, 1  ;;  %v1089_v1 = vrot.slane %v8803_v8, 3  ;;  %v8057_v39 = vld [vmem:[%s15531_s1 + $0x80] sm:$0xff] }
  0x24   :  { %614 = vmatprep.mubr.f32.mxu1 %v15544_v7  ;;  %v166_v51 = vsel %vm117_vm1, %v163_v43, %v165_v48  ;;  %v1092_v11 = vrot.slane %v8829_v16, 3  ;;  %v712_v24 = vrot.slane %v8803_v8, 2  ;;  %v713_v25 = vrot.slane %v8808_v9, 2 }
  0x25   :  { %v169_v57 = vsel %vm117_vm1, %v167_v53, %v168_v54  ;;  %v1096_v34 = vrot.slane %v8863_v27, 3  ;;  %v715_v43 = vrot.slane %v8829_v16, 2  ;;  %v8130_v53 = vld [vmem:[%s15531_s1 + $0x128] sm:$0xff]  ;;  %vm3245_vm5 = vcmask 965632  }
  0x26   :  { %8014 = vmatmul.mubr.msk.f32.gmra.mxu0 %vm183_vm2, %v136_v56  ;;  %v9163_v56 = vld [vmem:[%s15530_s0 + $0xf0] sm:$0xff]  ;;  %v714_v40 = vsel %vm711_vm4, %v712_v24, %v713_v25  ;;  %v722_v24 = vrot.slane %v8881_v32, 2  ;;  %vm4595_vm6 = vcmask 1041409   ;;  %vm4597_vm7 = vcmask 1042434  }
  0x27   :  { %351 = vmatprep.mubr.f32.mxu0 %v15544_v7  ;;  %8041 = vmatmul.mubr.msk.f32.gmra.mxu1 %vm183_vm2, %v8953_v52  ;;  %vm4599_vm8 = vcmask 1043459   ;;  %vm4601_vm9 = vcmask 1044484   ;;  %vm4603_vm10 = vcmask 1045509   ;;  %vm4605_vm11 = vcmask 1046534  }
  0x28   :  { %620 = vmatprep.mubr.f32.mxu1 %v15544_v7  ;;  %vm4722_vm12 = vcmask 834560   ;;  %vm4607_vm13 = vcmask 1047559   ;;  %vm6867_vm14 = vcmask 883712   ;;  %vm7264_vm15 = vcmask 97280  }
  0x2a   :  { %8015 = vmatmul.mubr.msk.f32.gmra.mxu0 %vm183_vm2, %v138_v60  ;;  %v170_v60 = vrot.slane %v9163_v56, 1 }
  0x2b   :  { %357 = vmatprep.mubr.f32.mxu0 %v15544_v7  ;;  %8042 = vmatmul.mubr.msk.f32.gmra.mxu1 %vm183_vm2, %v8977_v58 }
  0x2c   :  { %626 = vmatprep.mubr.f32.mxu1 %v15544_v7  ;;  %v171_v62 = vsel %vm117_vm1, %v168_v54, %v170_v60  ;;  %v8129_v54 = vld [vmem:[%s15531_s1 + $0x120] sm:$0xff] }
  0x2e   :  { %8016 = vmatmul.mubr.msk.f32.gmra.mxu0 %vm183_vm2, %v141_v0  ;;  %v172_v0 = vrot.slane %v9175_v61, 1 }
  0x2f   :  { %363 = vmatprep.mubr.f32.mxu0 %v15544_v7  ;;  %8043 = vmatmul.mubr.msk.f32.gmra.mxu1 %vm183_vm2, %v8982_v59 }
  0x30   :  { %632 = vmatprep.mubr.f32.mxu1 %v15544_v7  ;;  %v173_v4 = vsel %vm117_vm1, %v170_v60, %v172_v0  ;;  %v717_v60 = vrot.slane %v8843_v21, 2  ;;  %v8127_v0 = vld [vmem:[%s15531_s1 + $0x110] sm:$0xff]  ;;  %vm7893_vm1 = vcmask 1041408  }
  0x32   :  { %8017 = vmatmul.mubr.msk.f32.gmra.mxu0 %vm183_vm2, %v143_v3  ;;  %v1090_v3 = vrot.slane %v8808_v9, 3 }
  0x33   :  { %369 = vmatprep.mubr.f32.mxu0 %v15544_v7  ;;  %8044 = vmatmul.mubr.msk.f32.gmra.mxu1 %vm183_vm2, %v8995_v63 }
  0x34   :  { %638 = vmatprep.mubr.f32.mxu1 %v15544_v7  ;;  %v1093_v15 = vsel %vm1088_vm3, %v1090_v3, %v1092_v11 }
  0x36   :  { %8018 = vmatmul.mubr.msk.f32.gmra.mxu0 %vm183_vm2, %v145_v10  ;;  %v1091_v10 = vsel %vm1088_vm3, %v1089_v1, %v1090_v3  ;;  %v1101_v3 = vrot.slane %v8899_v37, 3 }
  0x37   :  { %375 = vmatprep.mubr.f32.mxu0 %v15544_v7  ;;  %8045 = vmatmul.mubr.msk.f32.gmra.mxu1 %vm183_vm2, %v9019_v5 }
  0x38   :  { %644 = vmatprep.mubr.f32.mxu1 %v15544_v7 }
  0x3a   :  { %8019 = vmatmul.mubr.msk.f32.gmra.mxu0 %vm183_vm2, %v148_v14  ;;  %v8062_v14 = vld [vmem:[%s15531_s1 + $0xa8] sm:$0xff] }
  0x3b   :  { %381 = vmatprep.mubr.f32.mxu0 %v15544_v7  ;;  %8046 = vmatmul.mubr.msk.f32.gmra.mxu1 %vm183_vm2, %v9024_v6 }
  0x3c   :  { %650 = vmatprep.mubr.f32.mxu1 %v15544_v7 }
  0x3e   :  { %8020 = vmatmul.mubr.msk.f32.gmra.mxu0 %vm183_vm2, %v150_v18  ;;  %v1094_v18 = vrot.slane %v8843_v21, 3 }
  0x3f   :  { %387 = vmatprep.mubr.f32.mxu0 %v15544_v7  ;;  %8047 = vmatmul.mubr.msk.f32.gmra.mxu1 %vm183_vm2, %v9037_v13 }
  0x40   :  { %656 = vmatprep.mubr.f32.mxu1 %v15544_v7 }
  0x42   :  { %8021 = vmatmul.mubr.msk.f32.gmra.mxu0 %vm183_vm2, %v152_v23  ;;  %v8060_v23 = vld [vmem:[%s15531_s1 + $0x98] sm:$0xff] }
  0x43   :  { %393 = vmatprep.mubr.f32.mxu0 %v15544_v7  ;;  %8048 = vmatmul.mubr.msk.f32.gmra.mxu1 %vm183_vm2, %v9061_v20 }
  0x44   :  { %662 = vmatprep.mubr.f32.mxu1 %v15544_v7 }
  0x46   :  { %8022 = vmatmul.mubr.msk.f32.gmra.mxu0 %vm183_vm2, %v155_v29  ;;  %v8059_v29 = vld [vmem:[%s15531_s1 + $0x90] sm:$0xff] }
  0x47   :  { %399 = vmatprep.mubr.f32.mxu0 %v15544_v7  ;;  %8049 = vmatmul.mubr.msk.f32.gmra.mxu1 %vm183_vm2, %v9066_v22 }
  0x48   :  { %668 = vmatprep.mubr.f32.mxu1 %v15544_v7 }
  0x4a   :  { %8023 = vmatmul.mubr.msk.f32.gmra.mxu0 %vm183_vm2, %v157_v33  ;;  %v1095_v33 = vsel %vm1088_vm3, %v1092_v11, %v1094_v18  ;;  %v718_v11 = vsel %vm711_vm4, %v715_v43, %v717_v60  ;;  %v1103_v18 = vrot.slane %v8926_v44, 3 }
  0x4b   :  { %405 = vmatprep.mubr.f32.mxu0 %v15544_v7  ;;  %8050 = vmatmul.mubr.msk.f32.gmra.mxu1 %vm183_vm2, %v9079_v26 }
  0x4c   :  { %674 = vmatprep.mubr.f32.mxu1 %v15544_v7 }
  0x4e   :  { %8024 = vmatmul.mubr.msk.f32.gmra.mxu0 %vm183_vm2, %v159_v38  ;;  %v1097_v38 = vrot.slane %v8868_v28, 3 }
  0x4f   :  { %411 = vmatprep.mubr.f32.mxu0 %v15544_v7  ;;  %8051 = vmatmul.mubr.msk.f32.gmra.mxu1 %vm183_vm2, %v9103_v35 }
  0x50   :  { %680 = vmatprep.mubr.f32.mxu1 %v15544_v7  ;;  %v1098_v48 = vsel %vm1088_vm3, %v1096_v34, %v1097_v38 }
  0x52   :  { %8025 = vmatmul.mubr.msk.f32.gmra.mxu0 %vm183_vm2, %v162_v42  ;;  %v8132_v42 = vld [vmem:[%s15531_s1 + $0x138] sm:$0xf] }
  0x53   :  { %417 = vmatprep.mubr.f32.mxu0 %v15544_v7  ;;  %8052 = vmatmul.mubr.msk.f32.gmra.mxu1 %vm183_vm2, %v9108_v36 }
  0x54   :  { %686 = vmatprep.mubr.f32.mxu1 %v15544_v7 }
  0x56   :  { %8026 = vmatmul.mubr.msk.f32.gmra.mxu0 %vm183_vm2, %v164_v47  ;;  %v8131_v47 = vld [vmem:[%s15531_s1 + $0x130] sm:$0xf] }
  0x57   :  { %423 = vmatprep.mubr.f32.mxu0 %v15544_v7  ;;  %8053 = vmatmul.mubr.msk.f32.gmra.mxu1 %vm183_vm2, %v9121_v41 }
  0x58   :  { %692 = vmatprep.mubr.f32.mxu1 %v15544_v7 }
  0x5a   :  { %8027 = vmatmul.mubr.msk.f32.gmra.mxu0 %vm183_vm2, %v166_v51  ;;  %v1099_v51 = vrot.slane %v8881_v32, 3 }
  0x5b   :  { %429 = vmatprep.mubr.f32.mxu0 %v15544_v7  ;;  %8054 = vmatmul.mubr.msk.f32.gmra.mxu1 %vm183_vm2, %v9145_v49 }
  0x5c   :  { %698 = vmatprep.mubr.f32.mxu1 %v15544_v7  ;;  %v1100_v1 = vsel %vm1088_vm3, %v1097_v38, %v1099_v51  ;;  %v1108_v38 = vrot.slane %v8965_v55, 3 }
  0x5e   :  { %8028 = vmatmul.mubr.msk.f32.gmra.mxu0 %vm183_vm2, %v169_v57  ;;  %v716_v57 = vsel %vm711_vm4, %v713_v25, %v715_v43 }
  0x5f   :  { %435 = vmatprep.mubr.f32.mxu0 %v15544_v7  ;;  %8055 = vmatmul.mubr.msk.f32.gmra.mxu1 %vm183_vm2, %v9150_v50 }
  0x60   :  { %704 = vmatprep.mubr.f32.mxu1 %v15544_v7 }
  0x62   :  { %8029 = vmatmul.mubr.msk.f32.gmra.mxu0 %vm183_vm2, %v171_v62  ;;  %v8128_v62 = vld [vmem:[%s15531_s1 + $0x118] sm:$0xff] }
  0x63   :  { %441 = vmatprep.mubr.f32.mxu0 %v15544_v7  ;;  %8056 = vmatmul.mubr.msk.f32.gmra.mxu1 %vm183_vm2, %v9163_v56 }
  0x64   :  { %1272 = vmatprep.mubr.f32.mxu1 %v15544_v7 }
  0x66   :  { %8030 = vmatmul.mubr.msk.f32.gmra.mxu0 %vm183_vm2, %v173_v4  ;;  %v8126_v4 = vld [vmem:[%s15531_s1 + $0x108] sm:$0xff] }
  0x67   :  { %566 = vmatprep.mubr.f32.mxu0 %v15544_v7  ;;  %8101 = vmatmul.mubr.msk.f32.vlgmr.msra.gmra.mxu1 %vm183_vm2, %v1091_v10  ;;  %v8125_v10 = vld [vmem:[%s15531_s1 + $0x100] sm:$0xff] }
  0x68   :  { %1278 = vmatprep.mubr.f32.mxu1 %v15544_v7 }
  0x6a   :  { %8033 = vmatmul.mubr.msk.f32.vlgmr.msra.gmra.mxu0 %vm183_vm2, %v8803_v8 }
  0x6b   :  { %8066 = vmatpush1.msk.msra.mxu0 %vm232_vm0, %v8063_v12  ;;  %572 = vmatprep.mubr.f32.mxu0 %v15544_v7  ;;  %v719_v12 = vrot.slane %v8863_v27, 2 }
  0x6c   :  { %857 = vmatprep.subr.mxu0 %v8062_v14  ;;  %8102 = vmatmul.mubr.msk.f32.gmra.mxu1 %vm183_vm2, %v1093_v15  ;;  %v720_v14 = vrot.slane %v8868_v28, 2  ;;  %v1102_v15 = vsel %vm1088_vm3, %v1099_v51, %v1101_v3 }
  0x6d   :  { %858 = vmatpush1.msra.mxu0 %v8061_v19  ;;  %1284 = vmatprep.mubr.f32.mxu1 %v15544_v7  ;;  %v1104_v19 = vrot.slane %v8931_v45, 3 }
  0x6e   :  { %8034 = vmatmul.mubr.msk.f32.gmra.mxu0 %vm183_vm2, %v8808_v9  ;;  %859 = vmatprep.subr.mxu0 %v8060_v23  ;;  %v721_v23 = vsel %vm711_vm4, %v719_v12, %v720_v14  ;;  %v1117_v12 = vrot.slane %v9019_v5, 3 }
  0x6f   :  { %860 = vmatpush1.msra.mxu0 %v8059_v29  ;;  %895 = vmatprep.mubr.f32.mxu0 %v15544_v7  ;;  %v1105_v25 = vsel %vm1088_vm3, %v1103_v18, %v1104_v19  ;;  %v1106_v29 = vrot.slane %v8953_v52, 3  ;;  %v736_v18 = vrot.slane %v8995_v63, 2 }
  0x70   :  { %861 = vmatprep.subr.mxu0 %v8058_v30  ;;  %8103 = vmatmul.mubr.msk.f32.gmra.mxu1 %vm183_vm2, %v1095_v33  ;;  %v723_v30 = vsel %vm711_vm4, %v720_v14, %v722_v24  ;;  %v724_v33 = vrot.slane %v8899_v37, 2  ;;  %v1118_v14 = vrot.slane %v9024_v6, 3 }
  0x71   :  { %862 = vmatpush1.msra.mxu0 %v8057_v39  ;;  %1290 = vmatprep.mubr.f32.mxu1 %v15544_v7  ;;  %v1107_v34 = vsel %vm1088_vm3, %v1104_v19, %v1106_v29  ;;  %v1109_v43 = vsel %vm1088_vm3, %v1106_v29, %v1108_v38  ;;  %v741_v38 = vrot.slane %v9024_v6, 2 }
  0x72   :  { %8067 = vmatmul.mubr.msk.f32.vlgmr.msra.gmra.mxu0 %vm183_vm2, %v714_v40  ;;  %8133 = vmatprep.subr.msk.mxu0 %vm232_vm0, %v8132_v42  ;;  %v725_v39 = vsel %vm711_vm4, %v722_v24, %v724_v33  ;;  %v726_v40 = vrot.slane %v8926_v44, 2  ;;  %v727_v42 = vrot.slane %v8931_v45, 2  ;;  %v1119_v19 = vsel %vm1088_vm3, %v1117_v12, %v1118_v14 }
  0x73   :  { %8134 = vmatpush1.msk.msra.mxu0 %vm232_vm0, %v8131_v47  ;;  %901 = vmatprep.mubr.f32.mxu0 %v15544_v7  ;;  %v1110_v47 = vrot.slane %v8977_v58, 3  ;;  %v750_v12 = vrot.slane %v9079_v26, 2 }
  0x74   :  { %8104 = vmatmul.mubr.msk.f32.gmra.mxu1 %vm183_vm2, %v1098_v48  ;;  %1610 = vmatprep.subr.mxu0 %v8130_v53  ;;  %v1111_v48 = vrot.slane %v8982_v59, 3  ;;  %v728_v51 = vsel %vm711_vm4, %v726_v40, %v727_v42  ;;  %v729_v53 = vrot.slane %v8953_v52, 2  ;;  %v1124_v40 = vrot.slane %v9061_v20, 3 }
  0x75   :  { %1296 = vmatprep.mubr.f32.mxu1 %v15544_v7  ;;  %1611 = vmatpush1.msra.mxu0 %v8129_v54 }
  0x76   :  { %8068 = vmatmul.mubr.msk.f32.gmra.mxu0 %vm183_vm2, %v716_v57  ;;  %1612 = vmatprep.subr.mxu0 %v8128_v62  ;;  %v1112_v54 = vsel %vm1088_vm3, %v1110_v47, %v1111_v48  ;;  %v1113_v57 = vrot.slane %v8995_v63, 3  ;;  %v730_v60 = vsel %vm711_vm4, %v727_v42, %v729_v53  ;;  %v731_v62 = vrot.slane %v8965_v55, 2 }
  0x77   :  { %907 = vmatprep.mubr.f32.mxu0 %v15544_v7  ;;  %1613 = vmatpush1.msra.mxu0 %v8127_v0  ;;  %v1125_v42 = vrot.slane %v9066_v22, 3  ;;  %v743_v47 = vrot.slane %v9037_v13, 2 }
  0x78   :  { %8105 = vmatmul.mubr.msk.f32.gmra.mxu1 %vm183_vm2, %v1100_v1  ;;  %1614 = vmatprep.subr.mxu0 %v8126_v4  ;;  %v1114_v0 = vsel %vm1088_vm3, %v1111_v48, %v1113_v57  ;;  %v1115_v1 = vrot.slane %v9007_v2, 3  ;;  %v732_v3 = vsel %vm711_vm4, %v729_v53, %v731_v62  ;;  %v733_v4 = vrot.slane %v8977_v58, 2 }
  0x79   :  { %1302 = vmatprep.mubr.f32.mxu1 %v15544_v7  ;;  %1615 = vmatpush1.msra.mxu0 %v8125_v10  ;;  %v734_v10 = vrot.slane %v8982_v59, 2  ;;  %v1126_v48 = vsel %vm1088_vm3, %v1124_v40, %v1125_v42  ;;  %v744_v53 = vsel %vm711_vm4, %v741_v38, %v743_v47  ;;  %v757_v40 = vrot.slane %v9121_v41, 2 }
  0x7a   :  { %8069 = vmatmul.mubr.msk.f32.gmra.mxu0 %vm183_vm2, %v718_v11  ;;  %v1116_v11 = vsel %vm1088_vm3, %v1113_v57, %v1115_v1  ;;  %v748_v1 = vrot.slane %v9066_v22, 2 }
  0x7b   :  { %913 = vmatprep.mubr.f32.mxu0 %v15544_v7  ;;  %v737_v24 = vsel %vm711_vm4, %v734_v10, %v736_v18 }
  0x7c   :  { %8106 = vmatmul.mubr.msk.f32.gmra.mxu1 %vm183_vm2, %v1102_v15  ;;  %v735_v15 = vsel %vm711_vm4, %v733_v4, %v734_v10  ;;  %v1131_v4 = vrot.slane %v9103_v35, 3  ;;  %v1132_v10 = vrot.slane %v9108_v36, 3 }
  0x7d   :  { %1308 = vmatprep.mubr.f32.mxu1 %v15544_v7 }
  0x7e   :  { %8070 = vmatmul.mubr.msk.f32.gmra.mxu0 %vm183_vm2, %v721_v23  ;;  %v1120_v23 = vrot.slane %v9037_v13, 3 }
  0x7f   :  { %919 = vmatprep.mubr.f32.mxu0 %v15544_v7 }
  0x80   :  { %8107 = vmatmul.mubr.msk.f32.gmra.mxu1 %vm183_vm2, %v1105_v25  ;;  %v738_v25 = vrot.slane %v9007_v2, 2  ;;  %v1121_v29 = vsel %vm1088_vm3, %v1118_v14, %v1120_v23  ;;  %v1133_v14 = vsel %vm1088_vm3, %v1131_v4, %v1132_v10  ;;  %v766_v4 = vrot.slane %v9175_v61, 2 }
  0x81   :  { %1314 = vmatprep.mubr.f32.mxu1 %v15544_v7 }
  0x82   :  { %8071 = vmatmul.mubr.msk.f32.gmra.mxu0 %vm183_vm2, %v723_v30  ;;  %v1122_v30 = vrot.slane %v9049_v17, 3  ;;  %v739_v33 = vsel %vm711_vm4, %v736_v18, %v738_v25  ;;  %v751_v18 = vsel %vm711_vm4, %v748_v1, %v750_v12 }
  0x83   :  { %925 = vmatprep.mubr.f32.mxu0 %v15544_v7 }
  0x84   :  { %8108 = vmatmul.mubr.msk.f32.gmra.mxu1 %vm183_vm2, %v1107_v34  ;;  %v740_v34 = vrot.slane %v9019_v5, 2 }
  0x85   :  { %1320 = vmatprep.mubr.f32.mxu1 %v15544_v7 }
  0x86   :  { %8072 = vmatmul.mubr.msk.f32.gmra.mxu0 %vm183_vm2, %v725_v39  ;;  %v1123_v39 = vsel %vm1088_vm3, %v1120_v23, %v1122_v30  ;;  %v755_v30 = vrot.slane %v9108_v36, 2 }
  0x87   :  { %931 = vmatprep.mubr.f32.mxu0 %v15544_v7 }
  0x88   :  { %8109 = vmatmul.mubr.msk.f32.gmra.mxu1 %vm183_vm2, %v1109_v43  ;;  %v742_v43 = vsel %vm711_vm4, %v740_v34, %v741_v38  ;;  %v1138_v34 = vrot.slane %v9145_v49, 3  ;;  %v1139_v38 = vrot.slane %v9150_v50, 3 }
  0x89   :  { %1326 = vmatprep.mubr.f32.mxu1 %v15544_v7 }
  0x8a   :  { %8073 = vmatmul.mubr.msk.f32.gmra.mxu0 %vm183_vm2, %v728_v51  ;;  %v1127_v51 = vrot.slane %v9079_v26, 3 }
  0x8b   :  { %937 = vmatprep.mubr.f32.mxu0 %v15544_v7 }
  0x8c   :  { %8110 = vmatmul.mubr.msk.f32.gmra.mxu1 %vm183_vm2, %v1112_v54  ;;  %v745_v54 = vrot.slane %v9049_v17, 2  ;;  %v1128_v57 = vsel %vm1088_vm3, %v1125_v42, %v1127_v51  ;;  %v1140_v42 = vsel %vm1088_vm3, %v1138_v34, %v1139_v38  ;;  %v1470_v34 = vrot.slane %v8843_v21, 4 }
  0x8d   :  { %1332 = vmatprep.mubr.f32.mxu1 %v15544_v7 }
  0x8e   :  { %8074 = vmatmul.mubr.msk.f32.gmra.mxu0 %vm183_vm2, %v730_v60  ;;  %v1129_v60 = vrot.slane %v9091_v31, 3  ;;  %v746_v62 = vsel %vm711_vm4, %v743_v47, %v745_v54  ;;  %v758_v47 = vsel %vm711_vm4, %v755_v30, %v757_v40 }
  0x8f   :  { %943 = vmatprep.mubr.f32.mxu0 %v15544_v7 }
  0x90   :  { %8111 = vmatmul.mubr.msk.f32.gmra.mxu1 %vm183_vm2, %v1114_v0  ;;  %v747_v0 = vrot.slane %v9061_v20, 2 }
  0x91   :  { %1338 = vmatprep.mubr.f32.mxu1 %v15544_v7 }
  0x92   :  { %8075 = vmatmul.mubr.msk.f32.gmra.mxu0 %vm183_vm2, %v732_v3  ;;  %v1130_v3 = vsel %vm1088_vm3, %v1127_v51, %v1129_v60  ;;  %v762_v60 = vrot.slane %v9150_v50, 2 }
  0x93   :  { %949 = vmatprep.mubr.f32.mxu0 %v15544_v7 }
  0x94   :  { %8112 = vmatmul.mubr.msk.f32.gmra.mxu1 %vm183_vm2, %v1116_v11  ;;  %v749_v11 = vsel %vm711_vm4, %v747_v0, %v748_v1  ;;  %v764_v1 = vrot.slane %v9163_v56, 2 }
  0x95   :  { %1344 = vmatprep.mubr.f32.mxu1 %v15544_v7 }
  0x96   :  { %8076 = vmatmul.mubr.msk.f32.gmra.mxu0 %vm183_vm2, %v735_v15  ;;  %v1134_v15 = vrot.slane %v9121_v41, 3 }
  0x97   :  { %955 = vmatprep.mubr.f32.mxu0 %v15544_v7 }
  0x98   :  { %8113 = vmatmul.mubr.msk.f32.gmra.mxu1 %vm183_vm2, %v1119_v19  ;;  %v752_v19 = vrot.slane %v9091_v31, 2  ;;  %v1135_v23 = vsel %vm1088_vm3, %v1132_v10, %v1134_v15 }
  0x99   :  { %1350 = vmatprep.mubr.f32.mxu1 %v15544_v7 }
  0x9a   :  { %8077 = vmatmul.mubr.msk.f32.gmra.mxu0 %vm183_vm2, %v737_v24  ;;  %v1136_v24 = vrot.slane %v9133_v46, 3  ;;  %v753_v25 = vsel %vm711_vm4, %v750_v12, %v752_v19  ;;  %v1465_v12 = vrot.slane %v8803_v8, 4 }
  0x9b   :  { %961 = vmatprep.mubr.f32.mxu0 %v15544_v7 }
  0x9c   :  { %8114 = vmatmul.mubr.msk.f32.gmra.mxu1 %vm183_vm2, %v1121_v29  ;;  %v754_v29 = vrot.slane %v9103_v35, 2 }
  0x9d   :  { %1356 = vmatprep.mubr.f32.mxu1 %v15544_v7 }
  0x9e   :  { %8078 = vmatmul.mubr.msk.f32.gmra.mxu0 %vm183_vm2, %v739_v33  ;;  %v1137_v33 = vsel %vm1088_vm3, %v1134_v15, %v1136_v24  ;;  %v1468_v24 = vrot.slane %v8829_v16, 4 }
  0x9f   :  { %967 = vmatprep.mubr.f32.mxu0 %v15544_v7 }
  0xa0   :  { %8115 = vmatmul.mubr.msk.f32.gmra.mxu1 %vm183_vm2, %v1123_v39  ;;  %v756_v39 = vsel %vm711_vm4, %v754_v29, %v755_v30 }
  0xa1   :  { %1362 = vmatprep.mubr.f32.mxu1 %v15544_v7 }
  0xa2   :  { %8079 = vmatmul.mubr.msk.f32.gmra.mxu0 %vm183_vm2, %v742_v43  ;;  %v1141_v43 = vrot.slane %v9163_v56, 3 }
  0xa3   :  { %973 = vmatprep.mubr.f32.mxu0 %v15544_v7 }
  0xa4   :  { %8116 = vmatmul.mubr.msk.f32.gmra.mxu1 %vm183_vm2, %v1126_v48  ;;  %v759_v48 = vrot.slane %v9133_v46, 2  ;;  %v1142_v51 = vsel %vm1088_vm3, %v1139_v38, %v1141_v43 }
  0xa5   :  { %1368 = vmatprep.mubr.f32.mxu1 %v15544_v7 }
  0xa6   :  { %8080 = vmatmul.mubr.msk.f32.gmra.mxu0 %vm183_vm2, %v744_v53  ;;  %v1143_v53 = vrot.slane %v9175_v61, 3  ;;  %v760_v54 = vsel %vm711_vm4, %v757_v40, %v759_v48  ;;  %v1473_v48 = vrot.slane %v8868_v28, 4 }
  0xa7   :  { %979 = vmatprep.mubr.f32.mxu0 %v15544_v7 }
  0xa8   :  { %8117 = vmatmul.mubr.msk.f32.gmra.mxu1 %vm183_vm2, %v1128_v57  ;;  %v761_v57 = vrot.slane %v9145_v49, 2 }
  0xa9   :  { %1374 = vmatprep.mubr.f32.mxu1 %v15544_v7 }
  0xaa   :  { %8081 = vmatmul.mubr.msk.f32.gmra.mxu0 %vm183_vm2, %v746_v62  ;;  %v1144_v62 = vsel %vm1088_vm3, %v1141_v43, %v1143_v53  ;;  %v763_v0 = vsel %vm711_vm4, %v761_v57, %v762_v60  ;;  %v1471_v43 = vsel %vm232_vm0, %v1468_v24, %v1470_v34  ;;  %vm7968_vm3 = vcmask 80896  }
  0xab   :  { %985 = vmatprep.mubr.f32.mxu0 %v15544_v7 }
  0xac   :  { %8118 = vmatmul.mubr.msk.f32.gmra.mxu1 %vm183_vm2, %v1130_v3  ;;  %v765_v3 = vsel %vm711_vm4, %v762_v60, %v764_v1 }
  0xad   :  { %1380 = vmatprep.mubr.f32.mxu1 %v15544_v7 }
  0xae   :  { %8082 = vmatmul.mubr.msk.f32.gmra.mxu0 %vm183_vm2, %v749_v11  ;;  %v767_v11 = vsel %vm711_vm4, %v764_v1, %v766_v4 }
  0xaf   :  { %991 = vmatprep.mubr.f32.mxu0 %v15544_v7 }
  0xb0   :  { %8119 = vmatmul.mubr.msk.f32.gmra.mxu1 %vm183_vm2, %v1133_v14  ;;  %v1466_v14 = vrot.slane %v8808_v9, 4 }
  0xb1   :  { %1386 = vmatprep.mubr.f32.mxu1 %v15544_v7 }
  0xb2   :  { %8083 = vmatmul.mubr.msk.f32.gmra.mxu0 %vm183_vm2, %v751_v18 }
  0xb3   :  { %997 = vmatprep.mubr.f32.mxu0 %v15544_v7 }
  0xb4   :  { %8120 = vmatmul.mubr.msk.f32.gmra.mxu1 %vm183_vm2, %v1135_v23  ;;  %v1467_v23 = vsel %vm232_vm0, %v1465_v12, %v1466_v14 }
  0xb5   :  { %1392 = vmatprep.mubr.f32.mxu1 %v15544_v7 }
  0xb6   :  { %8084 = vmatmul.mubr.msk.f32.gmra.mxu0 %vm183_vm2, %v753_v25 }
  0xb7   :  { %1003 = vmatprep.mubr.f32.mxu0 %v15544_v7 }
  0xb8   :  { %8121 = vmatmul.mubr.msk.f32.gmra.mxu1 %vm183_vm2, %v1137_v33  ;;  %v1469_v33 = vsel %vm232_vm0, %v1466_v14, %v1468_v24 }
  0xb9   :  { %1398 = vmatprep.mubr.f32.mxu1 %v15544_v7 }
  0xba   :  { %8085 = vmatmul.mubr.msk.f32.gmra.mxu0 %vm183_vm2, %v756_v39 }
  0xbb   :  { %1009 = vmatprep.mubr.f32.mxu0 %v15544_v7 }
  0xbc   :  { %8122 = vmatmul.mubr.msk.f32.gmra.mxu1 %vm183_vm2, %v1140_v42 }
  0xbd   :  { %1404 = vmatprep.mubr.f32.mxu1 %v15544_v7 }
  0xbe   :  { %8086 = vmatmul.mubr.msk.f32.gmra.mxu0 %vm183_vm2, %v758_v47  ;;  %v1472_v47 = vrot.slane %v8863_v27, 4 }
  0xbf   :  { %1015 = vmatprep.mubr.f32.mxu0 %v15544_v7 }
  0xc0   :  { %8123 = vmatmul.mubr.msk.f32.gmra.mxu1 %vm183_vm2, %v1142_v51  ;;  %v1474_v60 = vsel %vm232_vm0, %v1472_v47, %v1473_v48  ;;  %v1482_v47 = vrot.slane %v8953_v52, 4 }
  0xc1   :  { %1410 = vmatprep.mubr.f32.mxu1 %v15544_v7 }
  0xc2   :  { %8087 = vmatmul.mubr.msk.f32.gmra.mxu0 %vm183_vm2, %v760_v54 }
  0xc3   :  { %1021 = vmatprep.mubr.f32.mxu0 %v15544_v7 }
  0xc4   :  { %8124 = vmatmul.mubr.msk.f32.gmra.mxu1 %vm183_vm2, %v1144_v62  ;;  %v1475_v62 = vrot.slane %v8881_v32, 4 }
  0xc6   :  { %8088 = vmatmul.mubr.msk.f32.gmra.mxu0 %vm183_vm2, %v763_v0  ;;  %v1476_v4 = vsel %vm232_vm0, %v1473_v48, %v1475_v62 }
  0xc7   :  { %1027 = vmatprep.mubr.f32.mxu0 %v15544_v7 }
  0xca   :  { %v9448_v10 = vpop.f32.mrf.mxu0  ;;  %8089 = vmatmul.mubr.msk.f32.gmra.mxu0 %vm183_vm2, %v765_v3 }
  0xcb   :  { %1033 = vmatprep.mubr.f32.mxu0 %v15544_v7 }
  0xcc   :  { %v9455_v15 = vpop.f32.mrf.mxu0 }
  0xce   :  { %v9457_v18 = vpop.f32.mrf.mxu0  ;;  %8090 = vmatmul.mubr.msk.f32.gmra.mxu0 %vm183_vm2, %v767_v11  ;;  %v580_v19 = vpop.f32.mrf.mxu1  ;;  %v1477_v11 = vrot.slane %v8899_v37, 4 }
  0xcf   :  { %1648 = vmatprep.mubr.f32.mxu0 %v15544_v7 }
  0xd0   :  { %v9463_v25 = vpop.f32.mrf.mxu0  ;;  %v9465_v29 = vpop.f32.mrf.mxu1  ;;  %v1478_v24 = vsel %vm232_vm0, %v1475_v62, %v1477_v11  ;;  %v1484_v62 = vrot.slane %v8965_v55, 4 }
  0xd1   :  { %15987 = vst [vmem:[#allocation5_spill] sm:$0xff] %v9463_v25  ;;  %15988 = vst [vmem:[#allocation6_spill] sm:$0xff] %v9465_v29 }
  0xd2   :  { %v317_v8 = vpop.f32.mrf.mxu0  ;;  %8135 = vmatmul.mubr.msk.f32.vlgmr.msra.gmra.mxu0 %vm183_vm2, %v1467_v23 }
  0xd3   :  { %v9468_v9 = vadd.f32 %v580_v19, %v317_v8  ;;  %1654 = vmatprep.mubr.f32.mxu0 %v15544_v7  ;;  %v586_v30 = vpop.f32.mrf.mxu1  ;;  %v1479_v8 = vrot.slane %v8926_v44, 4 }
  0xd4   :  { %v9473_v38 = vpop.f32.mrf.mxu0 }
  0xd5   :  { %15989 = vst [vmem:[#allocation7_spill] sm:$0xff] %v9473_v38  ;;  %v9475_v39 = vpop.f32.mrf.mxu1 }
  0xd6   :  { %15990 = vst [vmem:[#allocation8_spill] sm:$0xff] %v9475_v39  ;;  %v323_v16 = vpop.f32.mrf.mxu0  ;;  %8136 = vmatmul.mubr.msk.f32.gmra.mxu0 %vm183_vm2, %v1469_v33 }
  0xd7   :  { %v9478_v40 = vadd.f32 %v586_v30, %v323_v16  ;;  %1660 = vmatprep.mubr.f32.mxu0 %v15544_v7  ;;  %v592_v42 = vpop.f32.mrf.mxu1  ;;  %v1480_v30 = vrot.slane %v8931_v45, 4 }
  0xd8   :  { %v9484_v51 = vpop.f32.mrf.mxu0 }
  0xd9   :  { %15991 = vst [vmem:[#allocation9_spill] sm:$0xff] %v9484_v51  ;;  %v9486_v21 = vpop.f32.mrf.mxu1 }
  0xda   :  { %15992 = vst [vmem:[#allocation10_spill] sm:$0xff] %v9486_v21  ;;  %v329_v53 = vpop.f32.mrf.mxu0  ;;  %8137 = vmatmul.mubr.msk.f32.gmra.mxu0 %vm183_vm2, %v1471_v43  ;;  %v1481_v43 = vsel %vm232_vm0, %v1479_v8, %v1480_v30 }
  0xdb   :  { %v9489_v54 = vadd.f32 %v592_v42, %v329_v53  ;;  %1666 = vmatprep.mubr.f32.mxu0 %v15544_v7  ;;  %v598_v57 = vpop.f32.mrf.mxu1 }
  0xdc   :  { %v9494_v0 = vpop.f32.mrf.mxu0 }
  0xdd   :  { %15993 = vst [vmem:[#allocation11_spill] sm:$0xff] %v9494_v0  ;;  %v9496_v27 = vpop.f32.mrf.mxu1 }
  0xde   :  { %15994 = vst [vmem:[#allocation12_spill] sm:$0xff] %v9496_v27  ;;  %v335_v28 = vpop.f32.mrf.mxu0  ;;  %8138 = vmatmul.mubr.msk.f32.gmra.mxu0 %vm183_vm2, %v1474_v60  ;;  %v1483_v60 = vsel %vm232_vm0, %v1480_v30, %v1482_v47 }
  0xdf   :  { %v9499_v1 = vadd.f32 %v598_v57, %v335_v28  ;;  %1672 = vmatprep.mubr.f32.mxu0 %v15544_v7  ;;  %v604_v3 = vpop.f32.mrf.mxu1 }
  0xe0   :  { %v9504_v12 = vpop.f32.mrf.mxu0 }
  0xe1   :  { %15995 = vst [vmem:[#allocation13_spill] sm:$0xff] %v9504_v12  ;;  %v9506_v14 = vpop.f32.mrf.mxu1 }
  0xe2   :  { %15996 = vst [vmem:[#allocation14_spill] sm:$0xff] %v9506_v14  ;;  %v341_v32 = vpop.f32.mrf.mxu0  ;;  %8139 = vmatmul.mubr.msk.f32.gmra.mxu0 %vm183_vm2, %v1476_v4 }
  0xe3   :  { %v9509_v19 = vadd.f32 %v604_v3, %v341_v32  ;;  %1678 = vmatprep.mubr.f32.mxu0 %v15544_v7  ;;  %v610_v23 = vpop.f32.mrf.mxu1  ;;  %v1485_v32 = vsel %vm232_vm0, %v1482_v47, %v1484_v62  ;;  %v1489_v47 = vrot.slane %v8995_v63, 4 }
  0xe4   :  { %v9515_v33 = vpop.f32.mrf.mxu0 }
  0xe5   :  { %15997 = vst [vmem:[#allocation15_spill] sm:$0xff] %v9515_v33  ;;  %v9517_v37 = vpop.f32.mrf.mxu1 }
  0xe6   :  { %15998 = vst [vmem:[#allocation16_spill] sm:$0xff] %v9517_v37  ;;  %v347_v34 = vpop.f32.mrf.mxu0  ;;  %8140 = vmatmul.mubr.msk.f32.gmra.mxu0 %vm183_vm2, %v1478_v24  ;;  %v1487_v24 = vrot.slane %v8982_v59, 4 }
  0xe7   :  { %v9520_v16 = vadd.f32 %v610_v23, %v347_v34  ;;  %1684 = vmatprep.mubr.f32.mxu0 %v15544_v7  ;;  %v616_v42 = vpop.f32.mrf.mxu1  ;;  %v1486_v23 = vrot.slane %v8977_v58, 4 }
  0xe8   :  { %v9525_v48 = vpop.f32.mrf.mxu0  ;;  %v1490_v62 = vsel %vm232_vm0, %v1487_v24, %v1489_v47 }
  0xe9   :  { %15999 = vst [vmem:[#allocation17_spill] sm:$0xff] %v9525_v48  ;;  %v9527_v44 = vpop.f32.mrf.mxu1 }
  0xea   :  { %16000 = vst [vmem:[#allocation18_spill] sm:$0xff] %v9527_v44  ;;  %v353_v45 = vpop.f32.mrf.mxu0  ;;  %8141 = vmatmul.mubr.msk.f32.gmra.mxu0 %vm183_vm2, %v1481_v43  ;;  %v1488_v43 = vsel %vm232_vm0, %v1486_v23, %v1487_v24  ;;  %v1494_v24 = vrot.slane %v9024_v6, 4 }
  0xeb   :  { %v9530_v53 = vadd.f32 %v616_v42, %v353_v45  ;;  %1690 = vmatprep.mubr.f32.mxu0 %v15544_v7  ;;  %v622_v57 = vpop.f32.mrf.mxu1 }
  0xec   :  { %v9535_v28 = vpop.f32.mrf.mxu0 }
  0xed   :  { %16001 = vst [vmem:[#allocation19_spill] sm:$0xff] %v9535_v28  ;;  %v9537_v3 = vpop.f32.mrf.mxu1 }
  0xee   :  { %16002 = vst [vmem:[#allocation20_spill] sm:$0xff] %v9537_v3  ;;  %v359_v52 = vpop.f32.mrf.mxu0  ;;  %8142 = vmatmul.mubr.msk.f32.gmra.mxu0 %vm183_vm2, %v1483_v60 }
  0xef   :  { %v9540_v4 = vadd.f32 %v622_v57, %v359_v52  ;;  %1696 = vmatprep.mubr.f32.mxu0 %v15544_v7  ;;  %v628_v11 = vpop.f32.mrf.mxu1  ;;  %v1491_v52 = vrot.slane %v9007_v2, 4 }
  0xf0   :  { %v9546_v8 = vpop.f32.mrf.mxu0 }
  0xf1   :  { %16003 = vst [vmem:[#allocation21_spill] sm:$0xff] %v9546_v8  ;;  %v9548_v55 = vpop.f32.mrf.mxu1 }
  0xf2   :  { %v365_v30 = vpop.f32.mrf.mxu0  ;;  %8143 = vmatmul.mubr.msk.f32.gmra.mxu0 %vm183_vm2, %v1485_v32 }
  0xf3   :  { %v9551_v34 = vadd.f32 %v628_v11, %v365_v30  ;;  %1702 = vmatprep.mubr.f32.mxu0 %v15544_v7  ;;  %v634_v42 = vpop.f32.mrf.mxu1 }
  0xf4   :  { %v9556_v45 = vpop.f32.mrf.mxu0 }
  0xf5   :  { %v9558_v58 = vpop.f32.mrf.mxu1 }
  0xf6   :  { %v371_v59 = vpop.f32.mrf.mxu0  ;;  %8144 = vmatmul.mubr.msk.f32.gmra.mxu0 %vm183_vm2, %v1488_v43  ;;  %v1493_v43 = vrot.slane %v9019_v5, 4 }
  0xf7   :  { %v9561_v57 = vadd.f32 %v634_v42, %v371_v59  ;;  %1708 = vmatprep.mubr.f32.mxu0 %v15544_v7  ;;  %v640_v60 = vpop.f32.mrf.mxu1  ;;  %v1492_v42 = vsel %vm232_vm0, %v1489_v47, %v1491_v52  ;;  %v1496_v47 = vrot.slane %v9037_v13, 4 }
  0xf8   :  { %v9566_v11 = vpop.f32.mrf.mxu0 }
  0xf9   :  { %v9568_v32 = vpop.f32.mrf.mxu1 }
  0xfa   :  { %v377_v63 = vpop.f32.mrf.mxu0  ;;  %8145 = vmatmul.mubr.msk.f32.gmra.mxu0 %vm183_vm2, %v1490_v62  ;;  %v1495_v62 = vsel %vm232_vm0, %v1493_v43, %v1494_v24 }
  0xfb   :  { %v9571_v23 = vadd.f32 %v640_v60, %v377_v63  ;;  %1714 = vmatprep.mubr.f32.mxu0 %v15544_v7  ;;  %v646_v30 = vpop.f32.mrf.mxu1 }
  0xfc   :  { %v9577_v59 = vpop.f32.mrf.mxu0 }
  0xfd   :  { %v9579_v2 = vpop.f32.mrf.mxu1 }
  0xfe   :  { %v383_v3 = vpop.f32.mrf.mxu0  ;;  %8146 = vmatmul.mubr.msk.f32.gmra.mxu0 %vm183_vm2, %v1492_v42  ;;  %v1498_v42 = vrot.slane %v9049_v17, 4 }
  0xff   :  { %v9582_v8 = vadd.f32 %v646_v30, %v383_v3  ;;  %1720 = vmatprep.mubr.f32.mxu0 %v15544_v7  ;;  %v652_v60 = vpop.f32.mrf.mxu1  ;;  %v1497_v30 = vsel %vm232_vm0, %v1494_v24, %v1496_v47  ;;  %v1501_v24 = vrot.slane %v9066_v22, 4 }
 0x100   :  { %v9587_v52 = vpop.f32.mrf.mxu0 }
 0x101   :  { %v9589_v5 = vpop.f32.mrf.mxu1 }
 0x102   :  { %v389_v6 = vpop.f32.mrf.mxu0  ;;  %8147 = vmatmul.mubr.msk.f32.gmra.mxu0 %vm183_vm2, %v1495_v62  ;;  %v1499_v62 = vsel %vm232_vm0, %v1496_v47, %v1498_v42  ;;  %v1503_v47 = vrot.slane %v9079_v26, 4 }
 0x103   :  { %v9592_v63 = vadd.f32 %v652_v60, %v389_v6  ;;  %1726 = vmatprep.mubr.f32.mxu0 %v15544_v7  ;;  %v658_v3 = vpop.f32.mrf.mxu1  ;;  %v1500_v6 = vrot.slane %v9061_v20, 4 }
 0x104   :  { %v9597_v44 = vpop.f32.mrf.mxu0 }
 0x105   :  { %v9599_v43 = vpop.f32.mrf.mxu1 }
 0x106   :  { %v395_v13 = vpop.f32.mrf.mxu0  ;;  %8148 = vmatmul.mubr.msk.f32.gmra.mxu0 %vm183_vm2, %v1497_v30  ;;  %v1502_v30 = vsel %vm232_vm0, %v1500_v6, %v1501_v24 }
 0x107   :  { %v9602_v28 = vadd.f32 %v658_v3, %v395_v13  ;;  %1732 = vmatprep.mubr.f32.mxu0 %v15544_v7  ;;  %v664_v60 = vpop.f32.mrf.mxu1 }
 0x108   :  { %v9608_v37 = vpop.f32.mrf.mxu0 }
 0x109   :  { %v9610_v17 = vpop.f32.mrf.mxu1 }
 0x10a   :  { %v401_v48 = vpop.f32.mrf.mxu0  ;;  %8149 = vmatmul.mubr.msk.f32.gmra.mxu0 %vm183_vm2, %v1499_v62  ;;  %v1505_v62 = vrot.slane %v9091_v31, 4 }
 0x10b   :  { %v9613_v14 = vadd.f32 %v664_v60, %v401_v48  ;;  %1738 = vmatprep.mubr.f32.mxu0 %v15544_v7  ;;  %v670_v3 = vpop.f32.mrf.mxu1  ;;  %v1504_v60 = vsel %vm232_vm0, %v1501_v24, %v1503_v47  ;;  %v1508_v24 = vrot.slane %v9108_v36, 4 }
 0x10c   :  { %v9618_v42 = vpop.f32.mrf.mxu0 }
 0x10d   :  { %v9620_v20 = vpop.f32.mrf.mxu1 }
 0x10e   :  { %v407_v22 = vpop.f32.mrf.mxu0  ;;  %8150 = vmatmul.mubr.msk.f32.gmra.mxu0 %vm183_vm2, %v1502_v30  ;;  %v1506_v30 = vsel %vm232_vm0, %v1503_v47, %v1505_v62  ;;  %v1510_v47 = vrot.slane %v9121_v41, 4 }
 0x10f   :  { %v9623_v13 = vadd.f32 %v670_v3, %v407_v22  ;;  %1744 = vmatprep.mubr.f32.mxu0 %v15544_v7  ;;  %v676_v48 = vpop.f32.mrf.mxu1  ;;  %v1507_v22 = vrot.slane %v9103_v35, 4 }
 0x110   :  { %v9628_v33 = vpop.f32.mrf.mxu0 }
 0x111   :  { %v9630_v6 = vpop.f32.mrf.mxu1 }
 0x112   :  { %16004 = vst [vmem:[#allocation22_spill] sm:$0xff] %v9630_v6  ;;  %v413_v26 = vpop.f32.mrf.mxu0  ;;  %8151 = vmatmul.mubr.msk.f32.gmra.mxu0 %vm183_vm2, %v1504_v60  ;;  %v1509_v60 = vsel %vm232_vm0, %v1507_v22, %v1508_v24 }
 0x113   :  { %v9633_v27 = vadd.f32 %v676_v48, %v413_v26  ;;  %1750 = vmatprep.mubr.f32.mxu0 %v15544_v7  ;;  %v682_v3 = vpop.f32.mrf.mxu1 }
 0x114   :  { %v9639_v12 = vpop.f32.mrf.mxu0 }
 0x115   :  { %16005 = vst [vmem:[#allocation23_spill] sm:$0xff] %v9639_v12  ;;  %v9641_v31 = vpop.f32.mrf.mxu1 }
 0x116   :  { %v419_v21 = vpop.f32.mrf.mxu0  ;;  %8152 = vmatmul.mubr.msk.f32.gmra.mxu0 %vm183_vm2, %v1506_v30  ;;  %v1512_v30 = vrot.slane %v9133_v46, 4 }
 0x117   :  { %v9644_v6 = vadd.f32 %v682_v3, %v419_v21  ;;  %1756 = vmatprep.mubr.f32.mxu0 %v15544_v7  ;;  %v688_v48 = vpop.f32.mrf.mxu1  ;;  %v1511_v3 = vsel %vm232_vm0, %v1508_v24, %v1510_v47  ;;  %v1515_v24 = vrot.slane %v9150_v50, 4 }
 0x118   :  { %v9649_v62 = vpop.f32.mrf.mxu0 }
 0x119   :  { %v9651_v35 = vpop.f32.mrf.mxu1 }
 0x11a   :  { %v425_v36 = vpop.f32.mrf.mxu0  ;;  %8153 = vmatmul.mubr.msk.f32.gmra.mxu0 %vm183_vm2, %v1509_v60  ;;  %v1513_v60 = vsel %vm232_vm0, %v1510_v47, %v1512_v30 }
 0x11b   :  { %v9654_v26 = vadd.f32 %v688_v48, %v425_v36  ;;  %1762 = vmatprep.mubr.f32.mxu0 %v15544_v7  ;;  %v694_v21 = vpop.f32.mrf.mxu1  ;;  %v1514_v36 = vrot.slane %v9145_v49, 4 }
 0x11c   :  { %v9659_v12 = vpop.f32.mrf.mxu0 }
 0x11d   :  { %v9661_v22 = vpop.f32.mrf.mxu1 }
 0x11e   :  { %v431_v41 = vpop.f32.mrf.mxu0  ;;  %8154 = vmatmul.mubr.msk.f32.gmra.mxu0 %vm183_vm2, %v1511_v3  ;;  %v1517_v3 = vrot.slane %v9163_v56, 4 }
 0x11f   :  { %v9664_v0 = vadd.f32 %v694_v21, %v431_v41  ;;  %1768 = vmatprep.mubr.f32.mxu0 %v15544_v7  ;;  %v700_v48 = vpop.f32.mrf.mxu1  ;;  %v1516_v21 = vsel %vm232_vm0, %v1514_v36, %v1515_v24 }
 0x120   :  { %v9670_v39 = vpop.f32.mrf.mxu0  ;;  %v1518_v41 = vsel %vm232_vm0, %v1515_v24, %v1517_v3 }
 0x121   :  { %v9672_v46 = vpop.f32.mrf.mxu1 }
 0x122   :  { %v437_v51 = vpop.f32.mrf.mxu0  ;;  %8155 = vmatmul.mubr.msk.f32.gmra.mxu0 %vm183_vm2, %v1513_v60 }
 0x123   :  { %v9675_v29 = vadd.f32 %v700_v48, %v437_v51  ;;  %1774 = vmatprep.mubr.f32.mxu0 %v15544_v7  ;;  %v706_v49 = vpop.f32.mrf.mxu1  ;;  %v1519_v51 = vrot.slane %v9175_v61, 4 }
 0x124   :  { %v9680_v47 = vpop.f32.mrf.mxu0 }
 0x125   :  { %v9690_v60 = vpop.f32.mrf.mxu1  ;;  %v1520_v56 = vsel %vm232_vm0, %v1517_v3, %v1519_v51 }
 0x126   :  { %v443_v30 = vpop.f32.mrf.mxu0  ;;  %8156 = vmatmul.mubr.msk.f32.gmra.mxu0 %vm183_vm2, %v1516_v21  ;;  %16007 = vst [vmem:[#allocation25_spill] sm:$0xff] %v9690_v60 }
 0x127   :  { %v9683_v50 = vadd.f32 %v706_v49, %v443_v30  ;;  %1780 = vmatprep.mubr.f32.mxu0 %v15544_v7  ;;  %v9695_v21 = vpop.f32.mrf.mxu1 }
 0x128   :  { %v9688_v48 = vpop.f32.mrf.mxu0  ;;  %16008 = vst [vmem:[#allocation26_spill] sm:$0xff] %v9695_v21 }
 0x129   :  { %16006 = vst [vmem:[#allocation24_spill] sm:$0xff] %v9683_v50  ;;  %v9700_v24 = vpop.f32.mrf.mxu1 }
 0x12a   :  { %v568_v36 = vpop.f32.mrf.mxu0  ;;  %8157 = vmatmul.mubr.msk.f32.gmra.mxu0 %vm183_vm2, %v1518_v41  ;;  %16009 = vst [vmem:[#allocation27_spill] sm:$0xff] %v9700_v24 }
 0x12b   :  { %1786 = vmatprep.mubr.f32.mxu0 %v15544_v7  ;;  %v569_v38 = vadd.f32 %v568_v36, %v9448_v10 }
 0x12c   :  { %v9697_v49 = vpop.f32.mrf.mxu0  ;;  %v9707_v41 = vpop.f32.mrf.mxu1 }
 0x12e   :  { %v574_v30 = vpop.f32.mrf.mxu0  ;;  %8158 = vmatmul.mubr.msk.f32.gmra.mxu0 %vm183_vm2, %v1520_v56  ;;  %v9714_v60 = vpop.f32.mrf.mxu1  ;;  %vm7889_vm2 = vcmask 408576  }
 0x12f   :  { %v575_v3 = vadd.f32 %v574_v30, %v9457_v18  ;;  %16011 = vst [vmem:[#allocation29_spill] sm:$0xff] %v9714_v60 }
 0x130   :  { %v9702_v61 = vpop.f32.mrf.mxu0  ;;  %v9721_v10 = vpop.f32.mrf.mxu1 }
 0x131   :  { %16010 = vst [vmem:[#allocation28_spill] sm:$0xff] %v9702_v61  ;;  %16013 = vst [vmem:[#allocation31_spill] sm:$0xff] %v9721_v10 }
 0x132   :  { %v897_v25 = vpop.f32.mrf.mxu0  ;;  %v9728_v18 = vpop.f32.mrf.mxu1 }
 0x133   :  { %v9705_v50 = vadd.f32 %v897_v25, %v569_v38  ;;  %16015 = vst [vmem:[#allocation33_spill] sm:$0xff] %v9728_v18 }
 0x134   :  { %v9709_v7 = vpop.f32.mrf.mxu0 }
 0x136   :  { %v903_v51 = vpop.f32.mrf.mxu0 }
 0x137   :  { %v9712_v21 = vadd.f32 %v903_v51, %v575_v3  ;;  %v9732_v51 = vpop.f32.mrf.mxu1 }
 0x138   :  { %v9716_v56 = vpop.f32.mrf.mxu0  ;;  %16016 = vst [vmem:[#allocation34_spill] sm:$0xff] %v9732_v51 }
 0x139   :  { %v9739_v10 = vpop.f32.mrf.mxu1 }
 0x13a   :  { %v909_v24 = vpop.f32.mrf.mxu0 }
 0x13b   :  { %v9719_v61 = vadd.f32 %v909_v24, %v9468_v9 }
 0x13c   :  { %v9723_v25 = vpop.f32.mrf.mxu0 }
 0x13d   :  { %16012 = vst [vmem:[#allocation30_spill] sm:$0xff] %v9719_v61 }
 0x13e   :  { %v915_v38 = vpop.f32.mrf.mxu0 }
 0x13f   :  { %v9726_v36 = vadd.f32 %v915_v38, %v9478_v40 }
 0x140   :  { %v9730_v30 = vpop.f32.mrf.mxu0 }
 0x141   :  { %16014 = vst [vmem:[#allocation32_spill] sm:$0xff] %v9726_v36  ;;  %v9746_v36 = vpop.f32.mrf.mxu1 }
 0x142   :  { %v921_v3 = vpop.f32.mrf.mxu0 }
 0x143   :  { %v9735_v60 = vadd.f32 %v921_v3, %v9489_v54  ;;  %v9753_v3 = vpop.f32.mrf.mxu1 }
 0x144   :  { %v9737_v9 = vpop.f32.mrf.mxu0 }
 0x145   :  { %16017 = vst [vmem:[#allocation35_spill] sm:$0xff] %v9735_v60  ;;  %16018 = vst [vmem:[#allocation36_spill] sm:$0xff] %v9737_v9 }
 0x146   :  { %v927_v24 = vpop.f32.mrf.mxu0 }
 0x147   :  { %v9742_v61 = vadd.f32 %v927_v24, %v9499_v1  ;;  %v9760_v24 = vpop.f32.mrf.mxu1 }
 0x148   :  { %v9744_v40 = vpop.f32.mrf.mxu0 }
 0x149   :  { %16019 = vst [vmem:[#allocation37_spill] sm:$0xff] %v9742_v61  ;;  %16020 = vst [vmem:[#allocation38_spill] sm:$0xff] %v9744_v40 }
 0x14a   :  { %v933_v38 = vpop.f32.mrf.mxu0 }
 0x14b   :  { %v9749_v18 = vadd.f32 %v933_v38, %v9509_v19  ;;  %v9767_v38 = vpop.f32.mrf.mxu1 }
 0x14c   :  { %v9751_v51 = vpop.f32.mrf.mxu0 }
 0x14d   :  { %16021 = vst [vmem:[#allocation39_spill] sm:$0xff] %v9749_v18  ;;  %16022 = vst [vmem:[#allocation40_spill] sm:$0xff] %v9751_v51 }
 0x14e   :  { %v939_v54 = vpop.f32.mrf.mxu0 }
 0x14f   :  { %v9756_v60 = vadd.f32 %v939_v54, %v9520_v16  ;;  %v631_v54 = vadd.f32 %v9548_v55, %v9556_v45 }
 0x150   :  { %v9758_v9 = vpop.f32.mrf.mxu0 }
 0x151   :  { %16023 = vst [vmem:[#allocation41_spill] sm:$0xff] %v9756_v60  ;;  %16024 = vst [vmem:[#allocation42_spill] sm:$0xff] %v9758_v9  ;;  %v9776_v60 = vpop.f32.mrf.mxu1 }
 0x152   :  { %v945_v1 = vpop.f32.mrf.mxu0 }
 0x153   :  { %v9763_v61 = vadd.f32 %v945_v1, %v9530_v53 }
 0x154   :  { %v9765_v40 = vpop.f32.mrf.mxu0 }
 0x155   :  { %16025 = vst [vmem:[#allocation43_spill] sm:$0xff] %v9763_v61  ;;  %16026 = vst [vmem:[#allocation44_spill] sm:$0xff] %v9765_v40  ;;  %v637_v40 = vadd.f32 %v9558_v58, %v9566_v11 }
 0x156   :  { %v951_v19 = vpop.f32.mrf.mxu0 }
 0x157   :  { %v9770_v18 = vadd.f32 %v951_v19, %v9540_v4  ;;  %v9785_v4 = vpop.f32.mrf.mxu1 }
 0x158   :  { %v9772_v51 = vpop.f32.mrf.mxu0 }
 0x159   :  { %16027 = vst [vmem:[#allocation45_spill] sm:$0xff] %v9770_v18  ;;  %16028 = vst [vmem:[#allocation46_spill] sm:$0xff] %v9772_v51  ;;  %v9794_v45 = vpop.f32.mrf.mxu1 }
 0x15a   :  { %v957_v16 = vpop.f32.mrf.mxu0 }
 0x15b   :  { %v9779_v9 = vadd.f32 %v957_v16, %v9551_v34  ;;  %v643_v34 = vadd.f32 %v9568_v32, %v9577_v59  ;;  %v9803_v11 = vpop.f32.mrf.mxu1 }
 0x15c   :  { %v959_v53 = vpop.f32.mrf.mxu0 }
 0x15d   :  { %v9781_v1 = vadd.f32 %v959_v53, %v631_v54  ;;  %v9812_v59 = vpop.f32.mrf.mxu1 }
 0x15e   :  { %v963_v61 = vpop.f32.mrf.mxu0 }
 0x15f   :  { %v9788_v19 = vadd.f32 %v963_v61, %v9561_v57  ;;  %v649_v57 = vadd.f32 %v9579_v2, %v9587_v52  ;;  %v9821_v52 = vpop.f32.mrf.mxu1 }
 0x160   :  { %v965_v18 = vpop.f32.mrf.mxu0 }
 0x161   :  { %v9790_v51 = vadd.f32 %v965_v18, %v637_v40 }
 0x162   :  { %v969_v55 = vpop.f32.mrf.mxu0 }
 0x163   :  { %v9797_v16 = vadd.f32 %v969_v55, %v9571_v23  ;;  %v655_v23 = vadd.f32 %v9589_v5, %v9597_v44  ;;  %v667_v5 = vadd.f32 %v9610_v17, %v9618_v42  ;;  %v8286_v17 = vld [vmem:[%s15535_s5 + $0x2c8] sm:$0xff] }
 0x164   :  { %v971_v54 = vpop.f32.mrf.mxu0  ;;  %4745 = vmatprep.subr.mxu1 %v8286_v17  ;;  %v8279_v17 = vld [vmem:[%s15535_s5 + $0x290] sm:$0xff] }
 0x165   :  { %v9799_v53 = vadd.f32 %v971_v54, %v643_v34 }
 0x166   :  { %v975_v58 = vpop.f32.mrf.mxu0 }
 0x167   :  { %v9806_v61 = vadd.f32 %v975_v58, %v9582_v8  ;;  %v661_v8 = vadd.f32 %v9599_v43, %v9608_v37 }
 0x168   :  { %v977_v18 = vpop.f32.mrf.mxu0 }
 0x169   :  { %v9808_v40 = vadd.f32 %v977_v18, %v649_v57 }
 0x16a   :  { %v981_v32 = vpop.f32.mrf.mxu0 }
 0x16b   :  { %v9815_v55 = vadd.f32 %v981_v32, %v9592_v63  ;;  %v9830_v63 = vpop.f32.mrf.mxu1 }
 0x16c   :  { %v983_v34 = vpop.f32.mrf.mxu0 }
 0x16d   :  { %v9817_v54 = vadd.f32 %v983_v34, %v655_v23  ;;  %v9839_v43 = vpop.f32.mrf.mxu1 }
 0x16e   :  { %v987_v2 = vpop.f32.mrf.mxu0 }
 0x16f   :  { %v9824_v58 = vadd.f32 %v987_v2, %v9602_v28  ;;  %v673_v28 = vadd.f32 %v9620_v20, %v9628_v33  ;;  %v8284_v33 = vld [vmem:[%s15535_s5 + $0x2b8] sm:$0xff]  ;;  %v8283_v20 = vld [vmem:[%s15535_s5 + $0x2b0] sm:$0xff] }
 0x170   :  { %v989_v57 = vpop.f32.mrf.mxu0 }
 0x171   :  { %16029 = vst [vmem:[#allocation47_spill] sm:$0xff] %v9824_v58  ;;  %v9826_v18 = vadd.f32 %v989_v57, %v661_v8  ;;  %v8285_v57 = vld [vmem:[%s15535_s5 + $0x2c0] sm:$0xff] }
 0x172   :  { %v993_v44 = vpop.f32.mrf.mxu0  ;;  %4746 = vmatpush1.msra.mxu1 %v8285_v57 }
 0x173   :  { %16030 = vst [vmem:[#allocation48_spill] sm:$0xff] %v9826_v18  ;;  %v9833_v32 = vadd.f32 %v993_v44, %v9613_v14  ;;  %4747 = vmatprep.subr.mxu1 %v8284_v33  ;;  %v8278_v33 = vld [vmem:[%s15535_s5 + $0x288] sm:$0xff] }
 0x174   :  { %v995_v23 = vpop.f32.mrf.mxu0  ;;  %4748 = vmatpush1.msra.mxu1 %v8283_v20 }
 0x175   :  { %16031 = vst [vmem:[#allocation49_spill] sm:$0xff] %v9833_v32  ;;  %v9835_v34 = vadd.f32 %v995_v23, %v667_v5  ;;  %v8282_v5 = vld [vmem:[%s15535_s5 + $0x2a8] sm:$0xff] }
 0x176   :  { %v999_v37 = vpop.f32.mrf.mxu0  ;;  %4749 = vmatprep.subr.mxu1 %v8282_v5 }
 0x177   :  { %16032 = vst [vmem:[#allocation50_spill] sm:$0xff] %v9835_v34  ;;  %v9842_v2 = vadd.f32 %v999_v37, %v9623_v13  ;;  %v9858_v13 = vpop.f32.mrf.mxu1 }
 0x178   :  { %v1001_v42 = vpop.f32.mrf.mxu0 }
 0x179   :  { %16033 = vst [vmem:[#allocation51_spill] sm:$0xff] %v9842_v2  ;;  %v9847_v14 = vadd.f32 %v1001_v42, %v673_v28  ;;  %v8281_v28 = vld [vmem:[%s15535_s5 + $0x2a0] sm:$0xff]  ;;  %v685_v42 = vadd.f32 %v9641_v31, %v9649_v62  ;;  %v8275_v62 = vld [vmem:[%s15535_s5 + $0x270] sm:$0xff]  ;;  %v16074_v2 = vld [vmem:[#allocation33_spill] sm:$0xff] }
 0x17a   :  { %v1005_v8 = vpop.f32.mrf.mxu0  ;;  %4750 = vmatpush1.msra.mxu1 %v8281_v28  ;;  %v8277_v31 = vld [vmem:[%s15535_s5 + $0x280] sm:$0xff] }
 0x17b   :  { %16034 = vst [vmem:[#allocation52_spill] sm:$0xff] %v9847_v14  ;;  %v9861_v44 = vadd.f32 %v1005_v8, %v9633_v27  ;;  %v8280_v27 = vld [vmem:[%s15535_s5 + $0x298] sm:$0xff]  ;;  %v9879_v8 = vpop.f32.mrf.mxu1  ;;  %v16058_v14 = vld [vmem:[#allocation9_spill] sm:$0xff] }
 0x17c   :  { %v9866_v23 = vpop.f32.mrf.mxu0  ;;  %4751 = vmatprep.subr.mxu1 %v8280_v27 }
 0x17d   :  { %16035 = vst [vmem:[#allocation53_spill] sm:$0xff] %v9861_v44  ;;  %16036 = vst [vmem:[#allocation54_spill] sm:$0xff] %v9866_v23  ;;  %4752 = vmatpush1.msra.mxu1 %v8279_v17  ;;  %v9900_v28 = vpop.f32.mrf.mxu1  ;;  %v8274_v17 = vld [vmem:[%s15535_s5 + $0x268] sm:$0xff] }
 0x17e   :  { %v1011_v37 = vpop.f32.mrf.mxu0  ;;  %4753 = vmatprep.subr.mxu1 %v8278_v33 }
 0x17f   :  { %v9882_v57 = vadd.f32 %v1011_v37, %v9644_v6  ;;  %v8276_v6 = vld [vmem:[%s15535_s5 + $0x278] sm:$0xff]  ;;  %v691_v37 = vadd.f32 %v9651_v35, %v9659_v12  ;;  %4754 = vmatpush1.msra.mxu1 %v8277_v31  ;;  %v8273_v12 = vld [vmem:[%s15535_s5 + $0x260] sm:$0xff]  ;;  %v9921_v31 = vpop.f32.mrf.mxu1 }
 0x180   :  { %v1013_v20 = vpop.f32.mrf.mxu0  ;;  %4755 = vmatprep.subr.mxu1 %v8276_v6  ;;  %v8272_v35 = vld [vmem:[%s15535_s5 + $0x258] sm:$0xff] }
 0x181   :  { %16037 = vst [vmem:[#allocation55_spill] sm:$0xff] %v9882_v57  ;;  %v9887_v5 = vadd.f32 %v1013_v20, %v685_v42  ;;  %4756 = vmatpush1.msra.mxu1 %v8275_v62  ;;  %v8270_v62 = vld [vmem:[%s15535_s5 + $0x248] sm:$0xff] }
 0x182   :  { %v1017_v44 = vpop.f32.mrf.mxu0  ;;  %4757 = vmatprep.subr.mxu1 %v8274_v17 }
 0x183   :  { %16038 = vst [vmem:[#allocation56_spill] sm:$0xff] %v9887_v5  ;;  %v9903_v27 = vadd.f32 %v1017_v44, %v9654_v26  ;;  %v1843_v5 = vlaneseq  ;;  %v8271_v26 = vld [vmem:[%s15535_s5 + $0x250] sm:$0xff]  ;;  %v697_v44 = vadd.f32 %v9661_v22, %v9670_v39  ;;  %4758 = vmatpush1.msra.mxu1 %v8273_v12  ;;  %v8269_v39 = vld [vmem:[%s15535_s5 + $0x240] sm:$0xff]  ;;  %v9944_v12 = vpop.f32.mrf.mxu1 }
 0x184   :  { %v1019_v42 = vpop.f32.mrf.mxu0  ;;  %4759 = vmatprep.subr.mxu1 %v8272_v35  ;;  %v8267_v22 = vld [vmem:[%s15535_s5 + $0x230] sm:$0xff]  ;;  %v8266_v35 = vld [vmem:[%s15535_s5 + $0x228] sm:$0xff] }
 0x185   :  { %16039 = vst [vmem:[#allocation57_spill] sm:$0xff] %v9903_v27  ;;  %v9908_v33 = vadd.f32 %v1019_v42, %v691_v37  ;;  %4760 = vmatpush1.msra.mxu1 %v8271_v26  ;;  %v8261_v27 = vld [vmem:[%s15535_s5 + $0x200] sm:$0xff] }
 0x186   :  { %v1023_v20 = vpop.f32.mrf.mxu0  ;;  %4761 = vmatprep.subr.mxu1 %v8270_v62 }
 0x187   :  { %16040 = vst [vmem:[#allocation58_spill] sm:$0xff] %v9908_v33  ;;  %v9924_v6 = vadd.f32 %v1023_v20, %v9664_v0  ;;  %v9931_v33 = vshrl.u32 %v1843_v5, 7  ;;  %v8268_v0 = vld [vmem:[%s15535_s5 + $0x238] sm:$0xff]  ;;  %v703_v20 = vadd.f32 %v9672_v46, %v9680_v47  ;;  %4762 = vmatpush1.msra.mxu1 %v8269_v39  ;;  %v8701_v47 = vmov 1983009808  }
 0x188   :  { %v1025_v37 = vpop.f32.mrf.mxu0  ;;  %4763 = vmatprep.subr.mxu1 %v8268_v0  ;;  %v8264_v39 = vld [vmem:[%s15535_s5 + $0x218] sm:$0xff] }
 0x189   :  { %16041 = vst [vmem:[#allocation59_spill] sm:$0xff] %v9924_v6  ;;  %v9929_v17 = vadd.f32 %v1025_v37, %v697_v44  ;;  %16043 = vst [vmem:[#allocation61_spill] sm:$0xff] %v9931_v33  ;;  %v571_v44 = vadd.f32 %v9697_v49, %v9455_v15  ;;  %4764 = vmatpush1.msra.mxu1 %v8267_v22  ;;  %v9957_v46 = vsub.s32 0, %v9931_v33  ;;  %v8263_v15 = vld [vmem:[%s15535_s5 + $0x210] sm:$0xff]  ;;  %v16047_v49 = vld [vmem:[#allocation25_spill] sm:$0xff] }
 0x18a   :  { %v1029_v42 = vpop.f32.mrf.mxu0  ;;  %4765 = vmatprep.subr.mxu1 %v8266_v35  ;;  %v709_v0 = vadd.f32 %v16047_v49, %v9688_v48  ;;  %v16048_v35 = vld [vmem:[#allocation24_spill] sm:$0xff] }
 0x18b   :  { %16042 = vst [vmem:[#allocation60_spill] sm:$0xff] %v9929_v17  ;;  %v9947_v5 = vadd.f32 %v1029_v42, %v9675_v29  ;;  %16046 = vst [vmem:[#allocation64_spill] sm:$0xff] %v9957_v46  ;;  %v1952_v29 = vunpack.c.l.s4 %v8701_v47  ;;  %v8265_v42 = vld [vmem:[%s15535_s5 + $0x220] sm:$0xff]  ;;  %v1041_v22 = vadd.f32 %v9709_v7, %v571_v44  ;;  %v16051_v7 = vld [vmem:[#allocation5_spill] sm:$0xff] }
 0x18c   :  { %v1031_v26 = vpop.f32.mrf.mxu0  ;;  %v1841_v47 = vld [vmem:[%s15532_s2] sm:$0x3]  ;;  %4766 = vmatpush1.msra.mxu1 %v8265_v42 }
 0x18d   :  { %16044 = vst [vmem:[#allocation62_spill] sm:$0xff] %v9947_v5  ;;  %v9954_v62 = vadd.f32 %v1031_v26, %v703_v20  ;;  %v9971_v20 = vpop.f32.mrf.mxu1  ;;  %v8262_v5 = vld [vmem:[%s15535_s5 + $0x208] sm:$0xff]  ;;  %4767 = vmatprep.subr.mxu1 %v8264_v39  ;;  %v16052_v44 = vld [vmem:[#allocation28_spill] sm:$0xff]  ;;  %v9992_v6 = vrot.slane %v1841_v47, %v9957_v46  ;;  %v1953_v42 = vunpack.c.0.s8 %v1952_v29  ;;  %v8260_v39 = vld [vmem:[%s15535_s5 + $0x1f8] sm:$0xff]  ;;  %v1419_v46 = vadd.f32 %v9707_v41, %v9712_v21 }
 0x18e   :  { %v1035_v37 = vpop.f32.mrf.mxu0  ;;  %v577_v49 = vadd.f32 %v16052_v44, %v16051_v7  ;;  %4768 = vmatpush1.msra.mxu1 %v8263_v15  ;;  %v16055_v7 = vld [vmem:[#allocation27_spill] sm:$0xff]  ;;  %v16057_v29 = vld [vmem:[#allocation6_spill] sm:$0xff] }
 0x18f   :  { %16045 = vst [vmem:[#allocation63_spill] sm:$0xff] %v9954_v62  ;;  %v9974_v26 = vadd.f32 %v1035_v37, %v16048_v35  ;;  %v9980_v62 = vsub.s32 1, %v9931_v33  ;;  %v16053_v37 = vld [vmem:[#allocation26_spill] sm:$0xff]  ;;  %4769 = vmatprep.subr.mxu1 %v8262_v5  ;;  %v1418_v44 = vadd.f32 %v16055_v7, %v1041_v22  ;;  %v16056_v5 = vld [vmem:[#allocation7_spill] sm:$0xff]  ;;  %v16059_v22 = vld [vmem:[#allocation8_spill] sm:$0xff] }
 0x190   :  { %v1037_v48 = vpop.f32.mrf.mxu0  ;;  %v1417_v35 = vadd.f32 %v16053_v37, %v9705_v50  ;;  %v1043_v50 = vadd.f32 %v9716_v56, %v577_v49  ;;  %4770 = vmatpush1.msra.mxu1 %v8261_v27  ;;  %v583_v37 = vadd.f32 %v16057_v29, %v16056_v5  ;;  %v589_v7 = vadd.f32 %v16059_v22, %v16058_v14  ;;  %v8259_v27 = vld [vmem:[%s15535_s5 + $0x1f0] sm:$0xff]  ;;  %v16062_v14 = vld [vmem:[#allocation11_spill] sm:$0xff]  ;;  %v16064_v5 = vld [vmem:[#allocation13_spill] sm:$0xff] }
 0x191   :  { %16049 = vst [vmem:[#allocation25_spill] sm:$0xff] %v9974_v26  ;;  %16050 = vst [vmem:[#allocation24_spill] sm:$0xff] %v9980_v62  ;;  %v9989_v26 = vadd.f32 %v1037_v48, %v709_v0  ;;  %v10002_v0 = vpop.f32.mrf.mxu1  ;;  %v10005_v48 = vrot.slane %v1841_v47, %v9980_v62  ;;  %4771 = vmatprep.subr.mxu1 %v8260_v39  ;;  %v16061_v47 = vld [vmem:[#allocation29_spill] sm:$0xff]  ;;  %v16065_v29 = vld [vmem:[#allocation12_spill] sm:$0xff] }
 0x192   :  { %v1650_v17 = vpop.f32.mrf.mxu0  ;;  %v1045_v56 = vadd.f32 %v9723_v25, %v583_v37  ;;  %4772 = vmatpush1.msra.mxu1 %v8259_v27  ;;  %v8258_v25 = vld [vmem:[%s15535_s5 + $0x1e8] sm:$0xff]  ;;  %v10032_v37 = vadd.f32 %v16065_v29, %v16064_v5  ;;  %v16067_v22 = vld [vmem:[#allocation14_spill] sm:$0xff]  ;;  %v16069_v27 = vld [vmem:[#allocation31_spill] sm:$0xff] }
 0x193   :  { %16054 = vst [vmem:[#allocation5_spill] sm:$0xff] %v9989_v26  ;;  %v1793_v15 = vadd.f32 %v1650_v17, %v1417_v35  ;;  %v10015_v17 = vsub.s32 %v1953_v42, %v9931_v33  ;;  %v1420_v35 = vadd.f32 %v16061_v47, %v1043_v50  ;;  %v10021_v39 = vpop.f32.mrf.mxu1  ;;  %v16063_v42 = vld [vmem:[#allocation10_spill] sm:$0xff]  ;;  %v16066_v50 = vld [vmem:[#allocation15_spill] sm:$0xff]  ;;  %4773 = vmatprep.subr.mxu1 %v8258_v25  ;;  %v16070_v29 = vld [vmem:[#allocation17_spill] sm:$0xff] }
 0x194   :  { %v1652_v26 = vpop.f32.mrf.mxu0  ;;  %v10036_v47 = vadd.f32 %v16067_v22, %v16066_v50  ;;  %v8256_v5 = vld [vmem:[%s15535_s5 + $0x1d8] sm:$0xff]  ;;  %v16071_v50 = vld [vmem:[#allocation16_spill] sm:$0xff]  ;;  %v16073_v25 = vld [vmem:[#allocation18_spill] sm:$0xff]  ;;  %v1422_v23 = vadd.f32 %v16074_v2, %v1045_v56 }
 0x195   :  { %v1794_v57 = vadd.f32 %v1652_v26, %v1418_v44  ;;  %16060 = vst [vmem:[#allocation28_spill] sm:$0xff] %v10015_v17  ;;  %v1853_v21 = vadd.f32 %v9992_v6, %v1793_v15  ;;  %v595_v44 = vadd.f32 %v16063_v42, %v16062_v14  ;;  %v1047_v15 = vadd.f32 %v9730_v30, %v589_v7  ;;  %v16072_v7 = vld [vmem:[#allocation19_spill] sm:$0xff]  ;;  %v16075_v56 = vld [vmem:[#allocation21_spill] sm:$0xff] }
 0x196   :  { %v1656_v49 = vpop.f32.mrf.mxu0  ;;  %v10049_v30 = vadd.f32 %v16071_v50, %v16070_v29  ;;  %v10053_v22 = vadd.f32 %v16073_v25, %v16072_v7  ;;  %v8312_v2 = vld [vmem:[%s15535_s5 + $0x398] sm:$0x3f]  ;;  %v16077_v50 = vld [vmem:[#allocation32_spill] sm:$0xff]  ;;  %v16078_v7 = vld [vmem:[#allocation34_spill] sm:$0xff] }
 0x197   :  { %v1854_v41 = vadd.f32 %v10005_v48, %v1794_v57  ;;  %v1795_v26 = vadd.f32 %v1656_v49, %v1419_v46  ;;  %v8257_v46 = vld [vmem:[%s15535_s5 + $0x1e0] sm:$0xff]  ;;  %v16068_v49 = vld [vmem:[#allocation30_spill] sm:$0xff]  ;;  %v1423_v25 = vadd.f32 %v16078_v7, %v16077_v50  ;;  %v1424_v34 = vadd.f32 %v9739_v10, %v1047_v15  ;;  %v8310_v10 = vld [vmem:[%s15535_s5 + $0x388] sm:$0xff] }
 0x198   :  { %v1658_v57 = vpop.f32.mrf.mxu0  ;;  %v1421_v33 = vadd.f32 %v16069_v27, %v16068_v49  ;;  %4774 = vmatpush1.msra.mxu1 %v8257_v46 }
 0x199   :  { %v1949_v14 = vcombine.low %v1853_v21, %v1854_v41  ;;  %v1950_v42 = vcombine.high %v1853_v21, %v1854_v41  ;;  %v1796_v62 = vadd.f32 %v1658_v57, %v1420_v35  ;;  %v1855_v49 = vadd.f32 %v9992_v6, %v1795_v26  ;;  %4775 = vmatprep.subr.mxu1 %v8256_v5  ;;  %v8255_v35 = vld [vmem:[%s15535_s5 + $0x1d0] sm:$0xff]  ;;  %v10060_v21 = vpop.f32.mrf.mxu1  ;;  %v16076_v26 = vld [vmem:[#allocation20_spill] sm:$0xff] }
 0x19a   :  { %v1662_v27 = vpop.f32.mrf.mxu0  ;;  %4776 = vmatpush1.msra.mxu1 %v8255_v35  ;;  %v10070_v5 = vadd.f32 %v16076_v26, %v16075_v56 }
 0x19b   :  { %v1856_v41 = vadd.f32 %v10005_v48, %v1796_v62  ;;  %v1797_v57 = vadd.f32 %v1662_v27, %v1421_v33  ;;  %v1964_v46 = vrot.slane %v1950_v42, %v10015_v17  ;;  %v1957_v29 = vrot.slane %v1949_v14, %v10015_v17  ;;  %v16079_v62 = vld [vmem:[#allocation36_spill] sm:$0xff]  ;;  %8313 = vmatprep.subr.msk.mxu1 %vm711_vm4, %v8312_v2  ;;  %v8311_v14 = vld [vmem:[%s15535_s5 + $0x390] sm:$0x3f] }
 0x19c   :  { %v1049_v33 = vadd.f32 %v16079_v62, %v595_v44  ;;  %v1664_v27 = vpop.f32.mrf.mxu0  ;;  %8314 = vmatpush2.msk.msra.mxu1 %vm711_vm4, %v8311_v14 }
 0x19d   :  { %v1967_v42 = vcombine.low %v1855_v49, %v1856_v41  ;;  %v1968_v35 = vcombine.high %v1855_v49, %v1856_v41  ;;  %v10081_v32 = vadd.f32 %v9992_v6, %v1797_v57  ;;  %v1798_v56 = vadd.f32 %v1664_v27, %v1422_v23  ;;  %4785 = vmatprep.subr.mxu1 %v8310_v10  ;;  %v8309_v49 = vld [vmem:[%s15535_s5 + $0x380] sm:$0xff]  ;;  %v10090_v41 = vpop.f32.mrf.mxu1  ;;  %v8308_v27 = vld [vmem:[%s15535_s5 + $0x378] sm:$0xff] }
 0x19e   :  { %v1668_v44 = vpop.f32.mrf.mxu0  ;;  %v8161_v15 = vrot.slane %v1964_v46, 9  ;;  %v8159_v26 = vrot.slane %v1957_v29, 9  ;;  %v1966_v2 = vcombine.high %v1964_v46, %v1964_v46  ;;  %v1965_v50 = vcombine.high %v1957_v29, %v1957_v29  ;;  %16081 = vst [vmem:[#allocation27_spill] sm:$0xff] %v10090_v41  ;;  %4786 = vmatpush2.msra.mxu1 %v8309_v49 }
 0x19f   :  { %16080 = vst [vmem:[#allocation26_spill] sm:$0xff] %v10081_v32  ;;  %v1975_v23 = vrot.slane %v1967_v42, %v10015_v17  ;;  %v10094_v57 = vrot.slane %v1968_v35, %v10015_v17  ;;  %v10097_v7 = vadd.f32 %v10005_v48, %v1798_v56  ;;  %v1799_v62 = vadd.f32 %v1668_v44, %v1423_v25  ;;  %v8307_v42 = vld [vmem:[%s15535_s5 + $0x370] sm:$0xff]  ;;  %v16085_v35 = vld [vmem:[#allocation35_spill] sm:$0xff] }
 0x1a0   :  { %v1670_v14 = vpop.f32.mrf.mxu0  ;;  %v10102_v10 = vmax.f32 %v1964_v46, %v8161_v15  ;;  %v10104_v18 = vmax.f32 %v1957_v29, %v8159_v26  ;;  %v8162_v58 = vrot.slane %v1966_v2, 9  ;;  %v8160_v41 = vrot.slane %v1965_v50, 9  ;;  %4787 = vmatprep.subr.mxu1 %v8308_v27  ;;  %v8306_v29 = vld [vmem:[%s15535_s5 + $0x368] sm:$0xff]  ;;  %v16086_v26 = vld [vmem:[#allocation38_spill] sm:$0xff] }
 0x1a1   :  { %16082 = vst [vmem:[#allocation7_spill] sm:$0xff] %v10097_v7  ;;  %v1425_v25 = vadd.f32 %v9746_v36, %v16085_v35  ;;  %v1985_v56 = vcombine.low %v10081_v32, %v10097_v7  ;;  %v1800_v46 = vadd.f32 %v1670_v14, %v1424_v34  ;;  %4788 = vmatpush2.msra.mxu1 %v8307_v42  ;;  %v10125_v34 = vpop.f32.mrf.mxu1  ;;  %v8163_v44 = vrot.slane %v1975_v23, 9 }
 0x1a2   :  { %16083 = vst [vmem:[#allocation6_spill] sm:$0xff] %v10102_v10  ;;  %16084 = vst [vmem:[#allocation9_spill] sm:$0xff] %v10104_v18  ;;  %v1426_v15 = vadd.f32 %v9753_v3, %v1049_v33  ;;  %v1051_v49 = vadd.f32 %v16086_v26, %v10032_v37  ;;  %2961 = vrot.lane.b32.xlu0 %v10102_v10, %s8702_s15  ;;  %2957 = vrot.lane.b32.xlu1 %v10104_v18, %s8702_s15  ;;  %v1674_v36 = vpop.f32.mrf.mxu0  ;;  %v8305_v37 = vld [vmem:[%s15535_s5 + $0x360] sm:$0xff] }
 0x1a3   :  { %v1983_v27 = vcombine.high %v1975_v23, %v1975_v23  ;;  %v1859_v14 = vadd.f32 %v9992_v6, %v1799_v62  ;;  %v1860_v42 = vadd.f32 %v10005_v48, %v1800_v46  ;;  %v1801_v35 = vadd.f32 %v1674_v36, %v1425_v25  ;;  %4789 = vmatprep.subr.mxu1 %v8306_v29  ;;  %v8304_v62 = vld [vmem:[%s15535_s5 + $0x358] sm:$0xff] }
 0x1a4   :  { %v10129_v3 = vmax.f32 %v1966_v2, %v8162_v58  ;;  %v1676_v33 = vpop.f32.mrf.mxu0  ;;  %v10134_v26 = vmax.f32 %v1965_v50, %v8160_v41  ;;  %v1984_v10 = vcombine.high %v10094_v57, %v10094_v57  ;;  %4790 = vmatpush2.msra.mxu1 %v8305_v37  ;;  %v16089_v58 = vld [vmem:[#allocation37_spill] sm:$0xff]  ;;  %v1428_v50 = vadd.f32 %v9767_v38, %v1051_v49  ;;  %v16090_v41 = vld [vmem:[#allocation40_spill] sm:$0xff] }
 0x1a5   :  { %v8164_v18 = vrot.slane %v1983_v27, 9  ;;  %v1427_v2 = vadd.f32 %v9760_v24, %v16089_v58  ;;  %v2003_v25 = vcombine.low %v1859_v14, %v1860_v42  ;;  %v2004_v46 = vcombine.high %v1859_v14, %v1860_v42  ;;  %4791 = vmatprep.subr.mxu1 %v8304_v62  ;;  %v10154_v14 = vpop.f32.mrf.mxu1 }
 0x1a6   :  { %16087 = vst [vmem:[#allocation8_spill] sm:$0xff] %v10129_v3  ;;  %16088 = vst [vmem:[#allocation29_spill] sm:$0xff] %v10134_v26  ;;  %v1802_v29 = vadd.f32 %v1676_v33, %v1426_v15  ;;  %v1053_v36 = vadd.f32 %v16090_v41, %v10036_v47  ;;  %v10147_v7 = vrot.slane %v1985_v56, %v10015_v17  ;;  %2963 = vrot.lane.b32.xlu1 %v10129_v3, %s8702_s15  ;;  %v1680_v37 = vpop.f32.mrf.mxu0  ;;  %v16093_v41 = vld [vmem:[#allocation39_spill] sm:$0xff] }
 0x1a7   :  { %2959 = vrot.lane.b32.xlu0 %v10134_v26, %s8702_s15  ;;  %v8165_v24 = vrot.slane %v10094_v57, 9  ;;  %v10157_v15 = vrot.slane %v2003_v25, %v10015_v17  ;;  %v1861_v38 = vadd.f32 %v9992_v6, %v1801_v35  ;;  %v1803_v56 = vadd.f32 %v1680_v37, %v1427_v2 }
 0x1a8   :  { %v1862_v47 = vadd.f32 %v10005_v48, %v1802_v29  ;;  %v10162_v49 = vrot.slane %v2004_v46, %v10015_v17  ;;  %v1682_v42 = vpop.f32.mrf.mxu0  ;;  %v10164_v33 = vmax.f32 %v1975_v23, %v8163_v44  ;;  %v10166_v62 = vmax.f32 %v1983_v27, %v8164_v18  ;;  %v16094_v29 = vld [vmem:[#allocation42_spill] sm:$0xff]  ;;  %v10180_v44 = vpop.f32.mrf.mxu1 }
 0x1a9   :  { %v8166_v58 = vrot.slane %v1984_v10, 9  ;;  %v1429_v26 = vadd.f32 %v9776_v60, %v16093_v41  ;;  %v1804_v32 = vadd.f32 %v1682_v42, %v1428_v50  ;;  %v1430_v35 = vadd.f32 %v9785_v4, %v1053_v36  ;;  %v16097_v42 = vld [vmem:[#allocation41_spill] sm:$0xff] }
 0x1aa   :  { %16091 = vst [vmem:[#allocation11_spill] sm:$0xff] %v10164_v33  ;;  %16092 = vst [vmem:[#allocation10_spill] sm:$0xff] %v10166_v62  ;;  %v2021_v3 = vcombine.low %v1861_v38, %v1862_v47  ;;  %v2022_v25 = vcombine.high %v1861_v38, %v1862_v47  ;;  %v1055_v2 = vadd.f32 %v16094_v29, %v10049_v30  ;;  %2965 = vrot.lane.b32.xlu1 %v10164_v33, %s8702_s15  ;;  %v1686_v18 = vpop.f32.mrf.mxu0  ;;  %v10214_v41 = vpop.f32.mrf.mxu1 }
 0x1ab   :  { %2967 = vrot.lane.b32.xlu0 %v10166_v62, %s8702_s15  ;;  %v8167_v23 = vrot.slane %v10147_v7, 9  ;;  %v2019_v60 = vcombine.high %v10157_v15, %v10157_v15  ;;  %v10183_v27 = vadd.f32 %v9992_v6, %v1803_v56  ;;  %v10186_v4 = vadd.f32 %v10005_v48, %v1804_v32 }
 0x1ac   :  { %v1805_v30 = vadd.f32 %v1686_v18, %v1429_v26  ;;  %v10189_v46 = vmax.f32 %v10094_v57, %v8165_v24  ;;  %v10192_v50 = vrot.slane %v2021_v3, %v10015_v17  ;;  %v1688_v36 = vpop.f32.mrf.mxu0  ;;  %v10194_v37 = vmax.f32 %v1984_v10, %v8166_v58  ;;  %v16098_v24 = vld [vmem:[#allocation44_spill] sm:$0xff]  ;;  %v8302_v18 = vld [vmem:[%s15535_s5 + $0x348] sm:$0xff] }
 0x1ad   :  { %v8172_v38 = vrot.slane %v2019_v60, 9  ;;  %v2020_v47 = vcombine.high %v10162_v49, %v10162_v49  ;;  %v1431_v56 = vadd.f32 %v9794_v45, %v16097_v42  ;;  %v2039_v32 = vcombine.low %v10183_v27, %v10186_v4 }
 0x1ae   :  { %16095 = vst [vmem:[#allocation13_spill] sm:$0xff] %v10189_v46  ;;  %16096 = vst [vmem:[#allocation12_spill] sm:$0xff] %v10194_v37  ;;  %v1806_v26 = vadd.f32 %v1688_v36, %v1430_v35  ;;  %v1432_v3 = vadd.f32 %v9803_v11, %v1055_v2  ;;  %v1057_v10 = vadd.f32 %v16098_v24, %v10053_v22  ;;  %2969 = vrot.lane.b32.xlu1 %v10189_v46, %s8702_s15  ;;  %v1692_v58 = vpop.f32.mrf.mxu0  ;;  %v8303_v2 = vld [vmem:[%s15535_s5 + $0x350] sm:$0xff] }
 0x1af   :  { %2971 = vrot.lane.b32.xlu0 %v10194_v37, %s8702_s15  ;;  %v10212_v45 = vmax.f32 %v10147_v7, %v8167_v23  ;;  %v10217_v29 = vrot.slane %v2022_v25, %v10015_v17  ;;  %v1865_v11 = vadd.f32 %v9992_v6, %v1805_v30  ;;  %v1807_v22 = vadd.f32 %v1692_v58, %v1431_v56  ;;  %v16102_v46 = vld [vmem:[#allocation46_spill] sm:$0xff] }
 0x1b0   :  { %v1866_v35 = vadd.f32 %v10005_v48, %v1806_v26  ;;  %v1694_v23 = vpop.f32.mrf.mxu0  ;;  %v10227_v36 = vmax.f32 %v2019_v60, %v8172_v38  ;;  %v8173_v42 = vrot.slane %v10162_v49, 9  ;;  %v8174_v25 = vrot.slane %v2020_v47, 9  ;;  %4792 = vmatpush2.msra.mxu1 %v8303_v2  ;;  %v16101_v26 = vld [vmem:[#allocation43_spill] sm:$0xff]  ;;  %v10241_v2 = vpop.f32.mrf.mxu1 }
 0x1b1   :  { %16099 = vst [vmem:[#allocation15_spill] sm:$0xff] %v10212_v45  ;;  %v2037_v30 = vcombine.high %v10192_v50, %v10192_v50  ;;  %v1433_v56 = vadd.f32 %v9812_v59, %v16101_v26  ;;  %v1808_v57 = vadd.f32 %v1694_v23, %v1432_v3  ;;  %4793 = vmatprep.subr.mxu1 %v8302_v18  ;;  %v16105_v23 = vld [vmem:[#allocation45_spill] sm:$0xff] }
 0x1b2   :  { %16100 = vst [vmem:[#allocation14_spill] sm:$0xff] %v10227_v36  ;;  %v2057_v24 = vcombine.low %v1865_v11, %v1866_v35  ;;  %v2058_v58 = vcombine.high %v1865_v11, %v1866_v35  ;;  %v1434_v37 = vadd.f32 %v9821_v52, %v1057_v10  ;;  %v1059_v60 = vadd.f32 %v16102_v46, %v10070_v5  ;;  %v1698_v38 = vpop.f32.mrf.mxu0 }
 0x1b3   :  { %2973 = vrot.lane.b32.xlu1 %v10212_v45, %s8702_s15  ;;  %2983 = vrot.lane.b32.xlu0 %v10227_v36, %s8702_s15  ;;  %v10244_v59 = vadd.f32 %v9992_v6, %v1807_v22  ;;  %v10247_v3 = vadd.f32 %v10005_v48, %v1808_v57  ;;  %v1809_v11 = vadd.f32 %v1698_v38, %v1433_v56  ;;  %v8175_v35 = vrot.slane %v10192_v50, 9  ;;  %v8301_v22 = vld [vmem:[%s15535_s5 + $0x340] sm:$0xff]  ;;  %v8300_v57 = vld [vmem:[%s15535_s5 + $0x338] sm:$0xff] }
 0x1b4   :  { %v2038_v52 = vcombine.high %v10217_v29, %v10217_v29  ;;  %v1700_v5 = vpop.f32.mrf.mxu0  ;;  %v10252_v46 = vmax.f32 %v10162_v49, %v8173_v42  ;;  %v10254_v10 = vmax.f32 %v2020_v47, %v8174_v25  ;;  %v8176_v18 = vrot.slane %v2037_v30, 9  ;;  %4794 = vmatpush2.msra.mxu1 %v8301_v22  ;;  %v8299_v25 = vld [vmem:[%s15535_s5 + $0x330] sm:$0xff] }
 0x1b5   :  { %v1435_v26 = vadd.f32 %v9830_v63, %v16105_v23  ;;  %v2075_v49 = vcombine.low %v10244_v59, %v10247_v3  ;;  %v1810_v42 = vadd.f32 %v1700_v5, %v1434_v37  ;;  %v1436_v56 = vadd.f32 %v9839_v43, %v1059_v60  ;;  %v8298_v37 = vld [vmem:[%s15535_s5 + $0x328] sm:$0xff]  ;;  %v10284_v5 = vpop.f32.mrf.mxu1  ;;  %4795 = vmatprep.subr.mxu1 %v8300_v57 }
 0x1b6   :  { %16103 = vst [vmem:[#allocation30_spill] sm:$0xff] %v10252_v46  ;;  %16104 = vst [vmem:[#allocation31_spill] sm:$0xff] %v10254_v10  ;;  %v10274_v38 = vrot.slane %v2039_v32, %v10015_v17  ;;  %v1704_v63 = vpop.f32.mrf.mxu0  ;;  %v8177_v23 = vrot.slane %v10217_v29, 9  ;;  %v10287_v43 = vadd.f32 %v9992_v6, %v1809_v11  ;;  %v8178_v22 = vrot.slane %v2038_v52, 9  ;;  %4796 = vmatpush2.msra.mxu1 %v8299_v25 }
 0x1b7   :  { %2985 = vrot.lane.b32.xlu1 %v10252_v46, %s8702_s15  ;;  %2987 = vrot.lane.b32.xlu0 %v10254_v10, %s8702_s15  ;;  %v10290_v32 = vadd.f32 %v10005_v48, %v1810_v42  ;;  %v1811_v60 = vadd.f32 %v1704_v63, %v1435_v26  ;;  %v10293_v47 = vrot.slane %v2057_v24, %v10015_v17 }
 0x1b8   :  { %v2072_v10 = vrot.slane %v2058_v58, %v10015_v17  ;;  %v1706_v46 = vpop.f32.mrf.mxu0  ;;  %v10297_v36 = vmax.f32 %v10192_v50, %v8175_v35  ;;  %v10299_v45 = vmax.f32 %v2037_v30, %v8176_v18  ;;  %v1437_v11 = vadd.f32 %v9858_v13, %v9779_v9  ;;  %4797 = vmatprep.subr.mxu1 %v8298_v37  ;;  %v8297_v58 = vld [vmem:[%s15535_s5 + $0x320] sm:$0xff]  ;;  %v8296_v50 = vld [vmem:[%s15535_s5 + $0x318] sm:$0xff]  ;;  %v8295_v35 = vld [vmem:[%s15535_s5 + $0x310] sm:$0xff]  ;;  %v10326_v18 = vpop.f32.mrf.mxu1 }
 0x1b9   :  { %v1812_v24 = vadd.f32 %v1706_v46, %v1436_v56  ;;  %v1438_v30 = vadd.f32 %v9879_v8, %v9781_v1  ;;  %v10320_v13 = vmax.f32 %v10217_v29, %v8177_v23  ;;  %v8179_v46 = vrot.slane %v10274_v38, 9  ;;  %4798 = vmatpush2.msra.mxu1 %v8297_v58 }
 0x1ba   :  { %16106 = vst [vmem:[#allocation17_spill] sm:$0xff] %v10297_v36  ;;  %16107 = vst [vmem:[#allocation16_spill] sm:$0xff] %v10299_v45  ;;  %v1710_v9 = vpop.f32.mrf.mxu0  ;;  %v10329_v1 = vadd.f32 %v9992_v6, %v1811_v60  ;;  %v10334_v25 = vmax.f32 %v2038_v52, %v8178_v22  ;;  %v10337_v29 = vrot.slane %v2075_v49, %v10015_v17  ;;  %v8185_v63 = vrot.slane %v2072_v10, 9  ;;  %v8294_v60 = vld [vmem:[%s15535_s5 + $0x308] sm:$0xff] }
 0x1bb   :  { %2989 = vrot.lane.b32.xlu1 %v10297_v36, %s8702_s15  ;;  %2991 = vrot.lane.b32.xlu0 %v10299_v45, %s8702_s15  ;;  %16108 = vst [vmem:[#allocation19_spill] sm:$0xff] %v10320_v13  ;;  %v10332_v8 = vadd.f32 %v10005_v48, %v1812_v24  ;;  %v1813_v42 = vadd.f32 %v1710_v9, %v1437_v11  ;;  %v8293_v24 = vld [vmem:[%s15535_s5 + $0x300] sm:$0xff] }
 0x1bc   :  { %16109 = vst [vmem:[#allocation18_spill] sm:$0xff] %v10334_v25  ;;  %v1712_v56 = vpop.f32.mrf.mxu0  ;;  %v2074_v23 = vcombine.high %v2072_v10, %v2072_v10  ;;  %v2073_v37 = vcombine.high %v10293_v47, %v10293_v47  ;;  %4799 = vmatprep.subr.mxu1 %v8296_v50  ;;  %v1439_v11 = vadd.f32 %v9900_v28, %v9788_v19  ;;  %v8292_v50 = vld [vmem:[%s15535_s5 + $0x2f8] sm:$0xff] }
 0x1bd   :  { %v1814_v22 = vadd.f32 %v1712_v56, %v1438_v30  ;;  %4800 = vmatpush2.msra.mxu1 %v8295_v35  ;;  %v1440_v58 = vadd.f32 %v9921_v31, %v9790_v51  ;;  %v10360_v28 = vmax.f32 %v10274_v38, %v8179_v46  ;;  %v10365_v30 = vpop.f32.mrf.mxu1  ;;  %v16111_v51 = vcombine.high %v10244_v59, %v10247_v3  ;;  %v8291_v59 = vld [vmem:[%s15535_s5 + $0x2f0] sm:$0xff] }
 0x1be   :  { %v1716_v19 = vpop.f32.mrf.mxu0  ;;  %v10374_v9 = vadd.f32 %v9992_v6, %v1813_v42  ;;  %4801 = vmatprep.subr.mxu1 %v8294_v60  ;;  %v10379_v57 = vmax.f32 %v2072_v10, %v8185_v63  ;;  %v8186_v49 = vrot.slane %v2074_v23, 9  ;;  %v8184_v52 = vrot.slane %v2073_v37, 9  ;;  %v8290_v60 = vld [vmem:[%s15535_s5 + $0x2e8] sm:$0xff] }
 0x1bf   :  { %2993 = vrot.lane.b32.xlu1 %v10320_v13, %s8702_s15  ;;  %2995 = vrot.lane.b32.xlu0 %v10334_v25, %s8702_s15  ;;  %16110 = vst [vmem:[#allocation33_spill] sm:$0xff] %v10360_v28  ;;  %v10371_v31 = vrot.slane %v16111_v51, %v10015_v17  ;;  %v10377_v35 = vadd.f32 %v10005_v48, %v1814_v22  ;;  %v16114_v22 = vld [vmem:[#allocation22_spill] sm:$0xff]  ;;  %v8187_v10 = vrot.slane %v10337_v29, 9 }
 0x1c0   :  { %v1815_v46 = vadd.f32 %v1716_v19, %v1439_v11  ;;  %v1718_v56 = vpop.f32.mrf.mxu0  ;;  %16112 = vst [vmem:[#allocation21_spill] sm:$0xff] %v10379_v57  ;;  %v2091_v26 = vcombine.high %v10337_v29, %v10337_v29  ;;  %4802 = vmatpush2.msra.mxu1 %v8293_v24  ;;  %v1441_v3 = vadd.f32 %v9944_v12, %v9797_v16  ;;  %v16113_v11 = vld [vmem:[#allocation23_spill] sm:$0xff]  ;;  %v8289_v12 = vld [vmem:[%s15535_s5 + $0x2e0] sm:$0xff] }
 0x1c1   :  { %v1816_v63 = vadd.f32 %v1718_v56, %v1440_v58  ;;  %4803 = vmatprep.subr.mxu1 %v8292_v50  ;;  %v10397_v24 = vadd.f32 %v16114_v22, %v16113_v11  ;;  %v1442_v19 = vadd.f32 %v9971_v20, %v9799_v53  ;;  %v10408_v58 = vpop.f32.mrf.mxu1  ;;  %v2092_v20 = vcombine.high %v10371_v31, %v10371_v31 }
 0x1c2   :  { %v1722_v16 = vpop.f32.mrf.mxu0  ;;  %v10411_v50 = vadd.f32 %v9992_v6, %v1815_v46  ;;  %4804 = vmatpush2.msra.mxu1 %v8291_v59  ;;  %v10418_v11 = vmax.f32 %v2074_v23, %v8186_v49  ;;  %v10420_v22 = vmax.f32 %v2073_v37, %v8184_v52  ;;  %v8188_v42 = vrot.slane %v2091_v26, 9  ;;  %v8288_v46 = vld [vmem:[%s15535_s5 + $0x2d8] sm:$0xff]  ;;  %v8287_v37 = vld [vmem:[%s15535_s5 + $0x2d0] sm:$0xff] }
 0x1c3   :  { %3009 = vrot.lane.b32.xlu1 %v10379_v57, %s8702_s15  ;;  %2997 = vrot.lane.b32.xlu0 %v10360_v28, %s8702_s15  ;;  %v10414_v51 = vadd.f32 %v10005_v48, %v1816_v63  ;;  %v1817_v53 = vadd.f32 %v1722_v16, %v1441_v3  ;;  %v1443_v3 = vadd.f32 %v10002_v0, %v9806_v61  ;;  %v10450_v16 = vpop.f32.mrf.mxu1 }
 0x1c4   :  { %v1724_v56 = vpop.f32.mrf.mxu0  ;;  %16115 = vst [vmem:[#allocation20_spill] sm:$0xff] %v10418_v11  ;;  %16116 = vst [vmem:[#allocation32_spill] sm:$0xff] %v10420_v22  ;;  %4805 = vmatprep.subr.mxu1 %v8290_v60  ;;  %v1444_v52 = vadd.f32 %v10021_v39, %v9808_v40  ;;  %v1445_v59 = vadd.f32 %v10060_v21, %v9815_v55  ;;  %v16117_v61 = vcombine.low %v10287_v43, %v10290_v32 }
 0x1c5   :  { %v1818_v49 = vadd.f32 %v1724_v56, %v1442_v19  ;;  %4806 = vmatpush2.msra.mxu1 %v8289_v12  ;;  %v8189_v19 = vrot.slane %v10371_v31, 9  ;;  %v10453_v40 = vadd.f32 %v9992_v6, %v1817_v53  ;;  %v8190_v21 = vrot.slane %v2092_v20, 9 }
 0x1c6   :  { %v10443_v0 = vrot.slane %v16117_v61, %v10015_v17  ;;  %v1728_v60 = vpop.f32.mrf.mxu0  ;;  %4807 = vmatprep.subr.mxu1 %v8288_v46  ;;  %v16118_v12 = vcombine.low %v10329_v1, %v10332_v8  ;;  %v16119_v61 = vcombine.high %v10329_v1, %v10332_v8  ;;  %v10469_v53 = vmax.f32 %v10337_v29, %v8187_v10  ;;  %v16122_v46 = vld [vmem:[#allocation27_spill] sm:$0xff]  ;;  %v16124_v8 = vld [vmem:[#allocation48_spill] sm:$0xff]  ;;  %v1394_v10 = vpop.f32.mrf.mxu1 }
 0x1c7   :  { %3011 = vrot.lane.b32.xlu1 %v10418_v11, %s8702_s15  ;;  %3007 = vrot.lane.b32.xlu0 %v10420_v22, %s8702_s15  ;;  %v10456_v55 = vadd.f32 %v10005_v48, %v1818_v49  ;;  %v1819_v39 = vadd.f32 %v1728_v60, %v1443_v3  ;;  %v10471_v49 = vmax.f32 %v2091_v26, %v8188_v42  ;;  %v16123_v11 = vld [vmem:[#allocation47_spill] sm:$0xff] }
 0x1c8   :  { %v10462_v56 = vrot.slane %v16118_v12, %v10015_v17  ;;  %v2126_v23 = vrot.slane %v16119_v61, %v10015_v17  ;;  %v1730_v63 = vpop.f32.mrf.mxu0  ;;  %16120 = vst [vmem:[#allocation34_spill] sm:$0xff] %v10469_v53  ;;  %4808 = vmatpush2.msra.mxu1 %v8287_v37  ;;  %v1446_v3 = vadd.f32 %v16122_v46, %v9817_v54  ;;  %v8191_v42 = vrot.slane %v10443_v0, 9 }
 0x1c9   :  { %16121 = vst [vmem:[#allocation36_spill] sm:$0xff] %v10471_v49  ;;  %v1820_v22 = vadd.f32 %v1730_v63, %v1444_v52  ;;  %v1447_v1 = vadd.f32 %v10125_v34, %v16123_v11  ;;  %v1448_v29 = vadd.f32 %v10154_v14, %v16124_v8  ;;  %v10488_v26 = vmax.f32 %v10371_v31, %v8189_v19 }
 0x1ca   :  { %v1734_v54 = vpop.f32.mrf.mxu0  ;;  %v10492_v63 = vadd.f32 %v9992_v6, %v1819_v39  ;;  %v10497_v11 = vmax.f32 %v2092_v20, %v8190_v21  ;;  %v16127_v37 = vcombine.low %v10374_v9, %v10377_v35  ;;  %v8197_v19 = vrot.slane %v2126_v23, 9  ;;  %v16128_v39 = vld [vmem:[#allocation49_spill] sm:$0xff]  ;;  %v16129_v21 = vld [vmem:[#allocation50_spill] sm:$0xff] }
 0x1cb   :  { %3013 = vrot.lane.b32.xlu1 %v10469_v53, %s8702_s15  ;;  %3015 = vrot.lane.b32.xlu0 %v10471_v49, %s8702_s15  ;;  %16125 = vst [vmem:[#allocation35_spill] sm:$0xff] %v10488_v26  ;;  %v10495_v34 = vadd.f32 %v10005_v48, %v1820_v22  ;;  %v1821_v14 = vadd.f32 %v1734_v54, %v1445_v59  ;;  %v1396_v22 = vpop.f32.mrf.mxu1  ;;  %v16148_v53 = vld [vmem:[#allocation59_spill] sm:$0xff] }
 0x1cc   :  { %16126 = vst [vmem:[#allocation38_spill] sm:$0xff] %v10497_v11  ;;  %v10503_v52 = vrot.slane %v16127_v37, %v10015_v17  ;;  %v1736_v31 = vpop.f32.mrf.mxu0  ;;  %v2128_v61 = vcombine.high %v2126_v23, %v2126_v23  ;;  %v2127_v46 = vcombine.high %v10462_v56, %v10462_v56  ;;  %v1449_v8 = vadd.f32 %v10180_v44, %v16128_v39  ;;  %v16130_v37 = vld [vmem:[#allocation54_spill] sm:$0xff] }
 0x1cd   :  { %v1822_v59 = vadd.f32 %v1736_v31, %v1446_v3  ;;  %v1450_v54 = vadd.f32 %v10214_v41, %v16129_v21  ;;  %v1077_v12 = vadd.f32 %v16130_v37, %v10397_v24  ;;  %v10522_v39 = vmax.f32 %v10443_v0, %v8191_v42 }
 0x1ce   :  { %v1740_v44 = vpop.f32.mrf.mxu0  ;;  %v16132_v3 = vcombine.high %v10374_v9, %v10377_v35  ;;  %v10529_v41 = vadd.f32 %v9992_v6, %v1821_v14  ;;  %v10534_v20 = vmax.f32 %v2126_v23, %v8197_v19  ;;  %v8198_v60 = vrot.slane %v2128_v61, 9  ;;  %v16136_v23 = vld [vmem:[#allocation53_spill] sm:$0xff]  ;;  %v16139_v35 = vld [vmem:[#allocation55_spill] sm:$0xff] }
 0x1cf   :  { %3017 = vrot.lane.b32.xlu1 %v10488_v26, %s8702_s15  ;;  %3019 = vrot.lane.b32.xlu0 %v10497_v11, %s8702_s15  ;;  %16131 = vst [vmem:[#allocation37_spill] sm:$0xff] %v10522_v39  ;;  %v10532_v24 = vadd.f32 %v10005_v48, %v1822_v59  ;;  %v1823_v21 = vadd.f32 %v1740_v44, %v1447_v1  ;;  %v8196_v11 = vrot.slane %v2127_v46, 9  ;;  %v16134_v26 = vld [vmem:[#allocation51_spill] sm:$0xff]  ;;  %v16135_v59 = vld [vmem:[#allocation52_spill] sm:$0xff] }
 0x1d0   :  { %v2144_v31 = vrot.slane %v16132_v3, %v10015_v17  ;;  %v1742_v37 = vpop.f32.mrf.mxu0  ;;  %16133 = vst [vmem:[#allocation40_spill] sm:$0xff] %v10534_v20  ;;  %v2145_v42 = vcombine.high %v10503_v52, %v10503_v52  ;;  %v1451_v49 = vadd.f32 %v10241_v2, %v16134_v26  ;;  %v1452_v1 = vadd.f32 %v10284_v5, %v16135_v59  ;;  %v1400_v26 = vpop.f32.mrf.mxu1 }
 0x1d1   :  { %v1824_v14 = vadd.f32 %v1742_v37, %v1448_v29  ;;  %v1453_v19 = vadd.f32 %v10326_v18, %v16136_v23  ;;  %v1454_v44 = vadd.f32 %v10365_v30, %v1077_v12  ;;  %v10554_v3 = vadd.f32 %v9992_v6, %v1823_v21 }
 0x1d2   :  { %v1746_v2 = vpop.f32.mrf.mxu0  ;;  %v2146_v37 = vcombine.high %v2144_v31, %v2144_v31  ;;  %v10559_v18 = vmax.f32 %v2128_v61, %v8198_v60  ;;  %v10561_v30 = vmax.f32 %v2127_v46, %v8196_v11  ;;  %v8199_v12 = vrot.slane %v10503_v52, 9  ;;  %v16141_v60 = vld [vmem:[#allocation57_spill] sm:$0xff] }
 0x1d3   :  { %3033 = vrot.lane.b32.xlu1 %v10534_v20, %s8702_s15  ;;  %3021 = vrot.lane.b32.xlu0 %v10522_v39, %s8702_s15  ;;  %v10557_v29 = vadd.f32 %v10005_v48, %v1824_v14  ;;  %v1825_v5 = vadd.f32 %v1746_v2, %v1449_v8  ;;  %v8200_v23 = vrot.slane %v2145_v42, 9  ;;  %v1455_v9 = vadd.f32 %v10408_v58, %v16139_v35  ;;  %v16140_v8 = vld [vmem:[#allocation56_spill] sm:$0xff]  ;;  %v1402_v35 = vpop.f32.mrf.mxu1 }
 0x1d4   :  { %v1748_v59 = vpop.f32.mrf.mxu0  ;;  %16137 = vst [vmem:[#allocation39_spill] sm:$0xff] %v10559_v18  ;;  %16138 = vst [vmem:[#allocation42_spill] sm:$0xff] %v10561_v30  ;;  %v1456_v2 = vadd.f32 %v10450_v16, %v16140_v8  ;;  %v10573_v61 = vadd.f32 %v1394_v10, %v16141_v60  ;;  %v16142_v11 = vcombine.low %v10411_v50, %v10414_v51  ;;  %v8202_v8 = vrot.slane %v2146_v37, 9 }
 0x1d5   :  { %v1826_v39 = vadd.f32 %v1748_v59, %v1450_v54  ;;  %v8201_v54 = vrot.slane %v2144_v31, 9  ;;  %v10586_v16 = vadd.f32 %v9992_v6, %v1825_v5  ;;  %v16143_v60 = vcombine.low %v10453_v40, %v10456_v55 }
 0x1d6   :  { %v10579_v46 = vrot.slane %v16142_v11, %v10015_v17  ;;  %v1752_v58 = vpop.f32.mrf.mxu0  ;;  %v16144_v14 = vcombine.high %v10453_v40, %v10456_v55  ;;  %v10602_v5 = vmax.f32 %v10503_v52, %v8199_v12  ;;  %v10614_v28 = vadd.f32 %v1400_v26, %v16148_v53  ;;  %v16149_v40 = vld [vmem:[#allocation60_spill] sm:$0xff]  ;;  %v1406_v53 = vpop.f32.mrf.mxu1 }
 0x1d7   :  { %3035 = vrot.lane.b32.xlu1 %v10559_v18, %s8702_s15  ;;  %3031 = vrot.lane.b32.xlu0 %v10561_v30, %s8702_s15  ;;  %v10589_v10 = vadd.f32 %v10005_v48, %v1826_v39  ;;  %v1827_v59 = vadd.f32 %v1752_v58, %v1451_v49  ;;  %v10595_v11 = vrot.slane %v16143_v60, %v10015_v17  ;;  %v16147_v39 = vld [vmem:[#allocation58_spill] sm:$0xff]  ;;  %v16155_v58 = vld [vmem:[#allocation24_spill] sm:$0xff] }
 0x1d8   :  { %v2180_v21 = vrot.slane %v16144_v14, %v10015_v17  ;;  %v1754_v30 = vpop.f32.mrf.mxu0  ;;  %16145 = vst [vmem:[#allocation41_spill] sm:$0xff] %v10602_v5  ;;  %v10604_v18 = vmax.f32 %v2145_v42, %v8200_v23  ;;  %v10607_v49 = vadd.f32 %v1396_v22, %v16147_v39  ;;  %v10617_v55 = vadd.f32 %v1402_v35, %v16149_v40  ;;  %v16153_v40 = vld [vmem:[#allocation64_spill] sm:$0xff] }
 0x1d9   :  { %v1828_v20 = vadd.f32 %v1754_v30, %v1452_v1  ;;  %v10623_v22 = vmax.f32 %v2144_v31, %v8201_v54  ;;  %v8203_v42 = vrot.slane %v10579_v46, 9  ;;  %v3630_v1 = vld [vmem:[%s15533_s3] sm:$0x3]  ;;  %v10630_v26 = vadd.f32 %v9992_v6, %v1827_v59 }
 0x1da   :  { %16146 = vst [vmem:[#allocation44_spill] sm:$0xff] %v10604_v18  ;;  %v1758_v52 = vpop.f32.mrf.mxu0  ;;  %v10635_v23 = vmax.f32 %v2146_v37, %v8202_v8  ;;  %v3766_v31 = vld [vmem:[%s15534_s4] sm:$0x3]  ;;  %v16152_v14 = vcombine.low %v10492_v63, %v10495_v34  ;;  %v8209_v39 = vrot.slane %v2180_v21, 9  ;;  %v2182_v59 = vcombine.high %v2180_v21, %v2180_v21 }
 0x1db   :  { %3037 = vrot.lane.b32.xlu1 %v10602_v5, %s8702_s15  ;;  %3039 = vrot.lane.b32.xlu0 %v10604_v18, %s8702_s15  ;;  %16150 = vst [vmem:[#allocation43_spill] sm:$0xff] %v10623_v22  ;;  %v10633_v30 = vadd.f32 %v10005_v48, %v1828_v20  ;;  %v1829_v12 = vadd.f32 %v1758_v52, %v1453_v19 }
 0x1dc   :  { %16151 = vst [vmem:[#allocation46_spill] sm:$0xff] %v10635_v23  ;;  %v10644_v54 = vrot.slane %v16152_v14, %v10015_v17  ;;  %v1760_v35 = vpop.f32.mrf.mxu0  ;;  %v2181_v20 = vcombine.high %v10595_v11, %v10595_v11  ;;  %v10653_v52 = vrot.slane %v3630_v1, %v16153_v40  ;;  %v10660_v60 = vmax.f32 %v10579_v46, %v8203_v42 }
 0x1dd   :  { %v1830_v8 = vadd.f32 %v1760_v35, %v1454_v44  ;;  %v10663_v18 = vrot.slane %v3630_v1, %v16155_v58  ;;  %v10666_v19 = vrot.slane %v3766_v31, %v16153_v40  ;;  %v1408_v44 = vpop.f32.mrf.mxu1  ;;  %v16156_v35 = vcombine.high %v10492_v63, %v10495_v34  ;;  %v16160_v63 = vld [vmem:[#allocation61_spill] sm:$0xff] }
 0x1de   :  { %v1764_v14 = vpop.f32.mrf.mxu0  ;;  %16154 = vst [vmem:[#allocation45_spill] sm:$0xff] %v10660_v60  ;;  %v10680_v1 = vmax.f32 %v2180_v21, %v8209_v39  ;;  %v8210_v57 = vrot.slane %v2182_v59, 9  ;;  %v8208_v25 = vrot.slane %v2181_v20, 9  ;;  %v2199_v13 = vcombine.high %v10644_v54, %v10644_v54  ;;  %v8363_v21 = vld [vmem:[%s15535_s5 + $0x490] sm:$0xff] }
 0x1df   :  { %3041 = vrot.lane.b32.xlu1 %v10623_v22, %s8702_s15  ;;  %3043 = vrot.lane.b32.xlu0 %v10635_v23, %s8702_s15  ;;  %v10672_v37 = vrot.slane %v16156_v35, %v10015_v17  ;;  %v10675_v22 = vadd.f32 %v9992_v6, %v1829_v12  ;;  %v10678_v23 = vadd.f32 %v10005_v48, %v1830_v8  ;;  %v16158_v39 = vld [vmem:[#allocation62_spill] sm:$0xff]  ;;  %v10702_v36 = vsub.s32 2, %v16160_v63 }
 0x1e0   :  { %v1831_v42 = vadd.f32 %v1764_v14, %v1455_v9  ;;  %v1766_v5 = vpop.f32.mrf.mxu0  ;;  %16157 = vst [vmem:[#allocation23_spill] sm:$0xff] %v10680_v1  ;;  %v10689_v35 = vrot.slane %v3766_v31, %v16155_v58  ;;  %v8364_v9 = vld [vmem:[%s15535_s5 + $0x498] sm:$0xff]  ;;  %v1461_v8 = vadd.f32 %v1406_v53, %v16158_v39  ;;  %v8362_v53 = vld [vmem:[%s15535_s5 + $0x488] sm:$0xff]  ;;  %v1412_v31 = vpop.f32.mrf.mxu1  ;;  %v10722_v58 = vmax.f32 %v2182_v59, %v8210_v57 }
 0x1e1   :  { %v1832_v12 = vadd.f32 %v1766_v5, %v1456_v2  ;;  %v16159_v14 = vld [vmem:[#allocation63_spill] sm:$0xff]  ;;  %16161 = vst [vmem:[#allocation22_spill] sm:$0xff] %v10702_v36  ;;  %v3640_v5 = vcombine.low %v10653_v52, %v10663_v18  ;;  %5458 = vmatprep.subr.mxu0 %v8364_v9  ;;  %v8212_v36 = vrot.slane %v2199_v13, 9  ;;  %v16167_v40 = vcombine.high %v10554_v3, %v10557_v29 }
 0x1e2   :  { %v10699_v45 = vadd.f32 %v1408_v44, %v16159_v14  ;;  %v1770_v2 = vpop.f32.mrf.mxu0  ;;  %v10714_v44 = vadd.f32 %v9992_v6, %v1831_v42  ;;  %v2200_v14 = vcombine.high %v10672_v37, %v10672_v37  ;;  %16162 = vst [vmem:[#allocation27_spill] sm:$0xff] %v10722_v58  ;;  %5459 = vmatpush1.msra.mxu0 %v8363_v21  ;;  %v8361_v42 = vld [vmem:[%s15535_s5 + $0x480] sm:$0xff] }
 0x1e3   :  { %3057 = vrot.lane.b32.xlu1 %v10680_v1, %s8702_s15  ;;  %3045 = vrot.lane.b32.xlu0 %v10660_v60, %s8702_s15  ;;  %v10717_v63 = vadd.f32 %v10005_v48, %v1832_v12  ;;  %v1833_v39 = vadd.f32 %v1770_v2, %v10573_v61  ;;  %v10724_v60 = vmax.f32 %v2181_v20, %v8208_v25  ;;  %v8211_v1 = vrot.slane %v10644_v54, 9  ;;  %v16164_v25 = vld [vmem:[#allocation25_spill] sm:$0xff] }
 0x1e4   :  { %v1772_v34 = vpop.f32.mrf.mxu0  ;;  %v3776_v57 = vcombine.low %v10666_v19, %v10689_v35  ;;  %5460 = vmatprep.subr.mxu0 %v8362_v53  ;;  %v1463_v59 = vadd.f32 %v1412_v31, %v16164_v25  ;;  %v16165_v20 = vcombine.low %v10529_v41, %v10532_v24  ;;  %v8360_v53 = vld [vmem:[%s15535_s5 + $0x478] sm:$0xff]  ;;  %v8359_v31 = vld [vmem:[%s15535_s5 + $0x470] sm:$0xff]  ;;  %v1414_v25 = vpop.f32.mrf.mxu1  ;;  %v2234_v62 = vrot.slane %v16167_v40, %v10015_v17 }
 0x1e5   :  { %16163 = vst [vmem:[#allocation47_spill] sm:$0xff] %v10724_v60  ;;  %v1834_v9 = vadd.f32 %v1772_v34, %v10607_v49  ;;  %v8213_v49 = vrot.slane %v10672_v37, 9  ;;  %v10750_v34 = vrot.slane %v3640_v5, %v10015_v17  ;;  %5461 = vmatpush1.msra.mxu0 %v8361_v42  ;;  %v16166_v5 = vcombine.low %v10554_v3, %v10557_v29 }
 0x1e6   :  { %v10742_v21 = vrot.slane %v16165_v20, %v10015_v17  ;;  %v1776_v2 = vpop.f32.mrf.mxu0  ;;  %v10759_v20 = vadd.f32 %v9992_v6, %v1833_v39  ;;  %v10776_v33 = vmax.f32 %v10644_v54, %v8211_v1  ;;  %5462 = vmatprep.subr.mxu0 %v8360_v53  ;;  %v10789_v29 = vrot.slane %v3776_v57, %v10015_v17  ;;  %v16170_v54 = vld [vmem:[#allocation5_spill] sm:$0xff] }
 0x1e7   :  { %3059 = vrot.lane.b32.xlu1 %v10722_v58, %s8702_s15  ;;  %3055 = vrot.lane.b32.xlu0 %v10724_v60, %s8702_s15  ;;  %v10762_v12 = vadd.f32 %v10005_v48, %v1834_v9  ;;  %v1835_v61 = vadd.f32 %v1776_v2, %v10614_v28  ;;  %v8214_v60 = vrot.slane %v2200_v14, 9  ;;  %v10769_v58 = vrot.slane %v16166_v5, %v10015_v17  ;;  %v8358_v28 = vld [vmem:[%s15535_s5 + $0x468] sm:$0xff] }
 0x1e8   :  { %v1778_v39 = vpop.f32.mrf.mxu0  ;;  %16168 = vst [vmem:[#allocation48_spill] sm:$0xff] %v10776_v33  ;;  %v10778_v9 = vmax.f32 %v2199_v13, %v8212_v36  ;;  %5463 = vmatpush1.msra.mxu0 %v8359_v31  ;;  %v1464_v36 = vadd.f32 %v1414_v25, %v16170_v54  ;;  %v10797_v40 = vmax.f32 %v10672_v37, %v8213_v49  ;;  %v8215_v1 = vrot.slane %v10742_v21, 9 }
 0x1e9   :  { %v1836_v3 = vadd.f32 %v1778_v39, %v10617_v55  ;;  %v10802_v55 = vcombine.high %v10750_v34, %v10750_v34  ;;  %v10805_v57 = vadd.f32 %v9992_v6, %v1835_v61  ;;  %v10810_v25 = vmax.f32 %v2200_v14, %v8214_v60  ;;  %5464 = vmatprep.subr.mxu0 %v8358_v28  ;;  %v16174_v28 = vld [vmem:[#allocation26_spill] sm:$0xff] }
 0x1ea   :  { %16169 = vst [vmem:[#allocation49_spill] sm:$0xff] %v10778_v9  ;;  %v1782_v13 = vpop.f32.mrf.mxu0  ;;  %16171 = vst [vmem:[#allocation50_spill] sm:$0xff] %v10797_v40  ;;  %v16173_v37 = vcombine.low %v10586_v16, %v10589_v10  ;;  %v8221_v39 = vrot.slane %v2234_v62, 9  ;;  %v2236_v54 = vcombine.high %v2234_v62, %v2234_v62  ;;  %v2235_v61 = vcombine.high %v10769_v58, %v10769_v58 }
 0x1eb   :  { %3061 = vrot.lane.b32.xlu1 %v10776_v33, %s8702_s15  ;;  %3063 = vrot.lane.b32.xlu0 %v10778_v9, %s8702_s15  ;;  %v10808_v53 = vadd.f32 %v10005_v48, %v1836_v3  ;;  %v1837_v31 = vadd.f32 %v1782_v13, %v1461_v8  ;;  %16172 = vst [vmem:[#allocation54_spill] sm:$0xff] %v10810_v25  ;;  %v16175_v13 = vld [vmem:[#allocation7_spill] sm:$0xff] }
 0x1ec   :  { %v10816_v49 = vrot.slane %v16173_v37, %v10015_v17  ;;  %v1784_v5 = vpop.f32.mrf.mxu0  ;;  %v10827_v14 = vcombine.high %v10789_v29, %v10789_v29  ;;  %v16176_v37 = vcombine.high %v16174_v28, %v16175_v13  ;;  %v10840_v60 = vmax.f32 %v10742_v21, %v8215_v1 }
 0x1ed   :  { %v1838_v8 = vadd.f32 %v1784_v5, %v10699_v45  ;;  %v10843_v45 = vrot.slane %v10802_v55, 1  ;;  %v3641_v5 = vcombine.high %v10653_v52, %v10663_v18  ;;  %v16178_v28 = vcombine.high %v10586_v16, %v10589_v10  ;;  %v8356_v18 = vld [vmem:[%s15535_s5 + $0x458] sm:$0xff] }
 0x1ee   :  { %v10833_v2 = vrot.slane %v16176_v37, %v10015_v17  ;;  %v1788_v42 = vpop.f32.mrf.mxu0  ;;  %16177 = vst [vmem:[#allocation51_spill] sm:$0xff] %v10840_v60  ;;  %v10854_v37 = vadd.f32 %v9992_v6, %v1837_v31  ;;  %v8222_v16 = vrot.slane %v2236_v54, 9  ;;  %v8220_v10 = vrot.slane %v2235_v61, 9 }
 0x1ef   :  { %3065 = vrot.lane.b32.xlu1 %v10797_v40, %s8702_s15  ;;  %3067 = vrot.lane.b32.xlu0 %v10810_v25, %s8702_s15  ;;  %v10851_v13 = vrot.slane %v16178_v28, %v10015_v17  ;;  %v10857_v3 = vadd.f32 %v10005_v48, %v1838_v8  ;;  %v1839_v1 = vadd.f32 %v1788_v42, %v1463_v59  ;;  %v8357_v25 = vld [vmem:[%s15535_s5 + $0x460] sm:$0xff] }
 0x1f0   :  { %v1790_v52 = vpop.f32.mrf.mxu0  ;;  %v10865_v40 = vmax.f32 %v2234_v62, %v8221_v39  ;;  %v2253_v31 = vcombine.high %v10816_v49, %v10816_v49  ;;  %5465 = vmatpush1.msra.mxu0 %v8357_v25  ;;  %v3777_v28 = vcombine.high %v10666_v19, %v10689_v35  ;;  %v16180_v62 = vcombine.high %v10183_v27, %v10186_v4 }
 0x1f1   :  { %v1840_v8 = vadd.f32 %v1790_v52, %v1464_v36  ;;  %5466 = vmatprep.subr.mxu0 %v8356_v18  ;;  %v10886_v25 = vrot.slane %v10827_v14, 1  ;;  %v10889_v36 = vrot.slane %v10750_v34, 1  ;;  %v10892_v19 = vrot.slane %v10789_v29, 1 }
 0x1f2   :  { %16179 = vst [vmem:[#allocation52_spill] sm:$0xff] %v10865_v40  ;;  %v10879_v39 = vrot.slane %v16180_v62, %v10015_v17  ;;  %v10895_v35 = vadd.f32 %v9992_v6, %v1839_v1  ;;  %v8223_v4 = vrot.slane %v10816_v49, 9  ;;  %v10902_v18 = vrot.slane %v3641_v5, %v10015_v17  ;;  %v8355_v6 = vld [vmem:[%s15535_s5 + $0x450] sm:$0xff] }
 0x1f3   :  { %3081 = vrot.lane.b32.xlu1 %v10865_v40, %s8702_s15  ;;  %3069 = vrot.lane.b32.xlu0 %v10840_v60, %s8702_s15  ;;  %v10898_v27 = vadd.f32 %v10005_v48, %v1840_v8  ;;  %v10904_v52 = vmax.f32 %v2236_v54, %v8222_v16  ;;  %v10906_v62 = vmax.f32 %v2235_v61, %v8220_v10  ;;  %v8224_v59 = vrot.slane %v2253_v31, 9  ;;  %v8354_v48 = vld [vmem:[%s15535_s5 + $0x448] sm:$0xff]  ;;  %v8353_v16 = vld [vmem:[%s15535_s5 + $0x440] sm:$0xff] }
 0x1f4   :  { %v2254_v42 = vcombine.high %v10851_v13, %v10851_v13  ;;  %v10921_v61 = vrot.slane %v3777_v28, %v10015_v17  ;;  %v2001_v1 = vcombine.high %v10147_v7, %v10147_v7  ;;  %5467 = vmatpush1.msra.mxu0 %v8355_v6  ;;  %v16183_v10 = vcombine.high %v10287_v43, %v10290_v32 }
 0x1f5   :  { %16181 = vst [vmem:[#allocation53_spill] sm:$0xff] %v10904_v52  ;;  %16182 = vst [vmem:[#allocation55_spill] sm:$0xff] %v10906_v62  ;;  %v16184_v54 = vcombine.high %v10675_v22, %v10678_v23  ;;  %v10944_v7 = vcombine.high %v10902_v18, %v10902_v18  ;;  %v8219_v6 = vrot.slane %v10769_v58, 9  ;;  %v16186_v43 = vcombine.low %v10630_v26, %v10633_v30 }
 0x1f6   :  { %v10932_v8 = vrot.slane %v16183_v10, %v10015_v17  ;;  %v10960_v5 = vmax.f32 %v10816_v49, %v8223_v4  ;;  %5468 = vmatprep.subr.mxu0 %v8354_v48  ;;  %v10968_v60 = vmax.f32 %v2253_v31, %v8224_v59  ;;  %v8226_v40 = vrot.slane %v2254_v42, 9 }
 0x1f7   :  { %v2288_v28 = vrot.slane %v16184_v54, %v10015_v17  ;;  %3083 = vrot.lane.b32.xlu1 %v10904_v52, %s8702_s15  ;;  %3079 = vrot.lane.b32.xlu0 %v10906_v62, %s8702_s15  ;;  %16185 = vst [vmem:[#allocation56_spill] sm:$0xff] %v10944_v7  ;;  %v10951_v32 = vrot.slane %v16186_v43, %v10015_v17  ;;  %v10963_v62 = vrot.slane %v10902_v18, 1  ;;  %v8352_v52 = vld [vmem:[%s15535_s5 + $0x438] sm:$0xff]  ;;  %v8225_v43 = vrot.slane %v10851_v13, 9 }
 0x1f8   :  { %v16187_v54 = vcombine.low %v10675_v22, %v10678_v23  ;;  %16188 = vst [vmem:[#allocation57_spill] sm:$0xff] %v10960_v5  ;;  %16189 = vst [vmem:[#allocation58_spill] sm:$0xff] %v10968_v60  ;;  %v10972_v22 = vmax.f32 %v10769_v58, %v8219_v6  ;;  %5469 = vmatpush1.msra.mxu0 %v8353_v16  ;;  %v8351_v23 = vld [vmem:[%s15535_s5 + $0x430] sm:$0xff]  ;;  %v16191_v49 = vcombine.high %v10411_v50, %v10414_v51  ;;  %v8350_v16 = vld [vmem:[%s15535_s5 + $0x428] sm:$0xff] }
 0x1f9   :  { %v16192_v31 = vcombine.low %v10714_v44, %v10717_v63  ;;  %v10988_v48 = vrot.slane %v10921_v61, 1  ;;  %v8168_v58 = vrot.slane %v2001_v1, 9  ;;  %5470 = vmatprep.subr.mxu0 %v8352_v52  ;;  %v2290_v50 = vcombine.high %v2288_v28, %v2288_v28 }
 0x1fa   :  { %v10957_v10 = vrot.slane %v16187_v54, %v10015_v17  ;;  %16190 = vst [vmem:[#allocation59_spill] sm:$0xff] %v10972_v22  ;;  %v10981_v4 = vrot.slane %v16191_v49, %v10015_v17  ;;  %v10999_v51 = vcombine.high %v10921_v61, %v10921_v61  ;;  %v11002_v6 = vrot.slane %v10944_v7, 1  ;;  %v8349_v54 = vld [vmem:[%s15535_s5 + $0x420] sm:$0xff]  ;;  %5471 = vmatpush1.msra.mxu0 %v8351_v23 }
 0x1fb   :  { %v2299_v59 = vrot.slane %v16192_v31, %v10015_v17  ;;  %16193 = vst [vmem:[#allocation60_spill] sm:$0xff] %v10988_v48  ;;  %3085 = vrot.lane.b32.xlu1 %v10960_v5, %s8702_s15  ;;  %3087 = vrot.lane.b32.xlu0 %v10968_v60, %s8702_s15  ;;  %v8183_v52 = vrot.slane %v10293_v47, 9  ;;  %v16196_v49 = vcombine.high %v10529_v41, %v10532_v24  ;;  %v8227_v9 = vrot.slane %v10951_v32, 9 }
 0x1fc   :  { %16194 = vst [vmem:[#allocation62_spill] sm:$0xff] %v10999_v51  ;;  %16195 = vst [vmem:[#allocation63_spill] sm:$0xff] %v11002_v6  ;;  %v16197_v60 = vcombine.high %v10714_v44, %v10717_v63  ;;  %v2289_v33 = vcombine.high %v10957_v10, %v10957_v10  ;;  %v11022_v22 = vmax.f32 %v10851_v13, %v8225_v43  ;;  %v8233_v7 = vrot.slane %v2288_v28, 9 }
 0x1fd   :  { %v11012_v31 = vrot.slane %v16196_v49, %v10015_v17  ;;  %v11024_v6 = vmax.f32 %v2254_v42, %v8226_v40  ;;  %v8171_v41 = vrot.slane %v10157_v15, 9  ;;  %5472 = vmatprep.subr.mxu0 %v8350_v16  ;;  %v16200_v24 = vcombine.low %v10805_v57, %v10808_v53 }
 0x1fe   :  { %v2306_v5 = vrot.slane %v16197_v60, %v10015_v17  ;;  %16198 = vst [vmem:[#allocation61_spill] sm:$0xff] %v11022_v22  ;;  %v16201_v63 = vcombine.high %v10805_v57, %v10808_v53  ;;  %v2307_v23 = vcombine.high %v2299_v59, %v2299_v59  ;;  %v11037_v13 = vmax.f32 %v2001_v1, %v8168_v58 }
 0x1ff   :  { %16199 = vst [vmem:[#allocation25_spill] sm:$0xff] %v11024_v6  ;;  %v11031_v44 = vrot.slane %v16200_v24, %v10015_v17  ;;  %5473 = vmatpush1.msra.mxu0 %v8349_v54  ;;  %v16203_v40 = vcombine.high %v10630_v26, %v10633_v30  ;;  %3089 = vrot.lane.b32.xlu1 %v11022_v22, %s8702_s15  ;;  %v8234_v43 = vrot.slane %v2290_v50, 9  ;;  %v8195_v53 = vrot.slane %v10462_v56, 9 }
 0x200   :  { %v2342_v60 = vrot.slane %v16201_v63, %v10015_v17  ;;  %16202 = vst [vmem:[#allocation5_spill] sm:$0xff] %v11037_v13  ;;  %3091 = vrot.lane.b32.xlu0 %v11024_v6, %s8702_s15  ;;  %v11050_v57 = vmax.f32 %v10293_v47, %v8183_v52  ;;  %v16205_v1 = vcombine.low %v10759_v20, %v10762_v12  ;;  %v8232_v30 = vrot.slane %v2289_v33, 9 }
 0x201   :  { %v11043_v42 = vrot.slane %v16203_v40, %v10015_v17  ;;  %v11060_v26 = vmax.f32 %v10951_v32, %v8227_v9  ;;  %v2308_v16 = vcombine.high %v2306_v5, %v2306_v5  ;;  %v16207_v54 = vcombine.high %v10854_v37, %v10857_v3 }
 0x202   :  { %16204 = vst [vmem:[#allocation26_spill] sm:$0xff] %v11050_v57  ;;  %v11057_v58 = vrot.slane %v16205_v1, %v10015_v17  ;;  %v11068_v47 = vmax.f32 %v2288_v28, %v8233_v7  ;;  %v8235_v52 = vrot.slane %v2299_v59, 9  ;;  %v11071_v24 = vmax.f32 %v10157_v15, %v8171_v41 }
 0x203   :  { %16206 = vst [vmem:[#allocation7_spill] sm:$0xff] %v11060_v26  ;;  %v11066_v49 = vrot.slane %v16207_v54, %v10015_v17  ;;  %v8236_v63 = vrot.slane %v2307_v23, 9  ;;  %v2344_v40 = vcombine.high %v2342_v60, %v2342_v60  ;;  %v2343_v9 = vcombine.high %v11031_v44, %v11031_v44 }
 0x204   :  { %16208 = vst [vmem:[#allocation65_spill] sm:$0xff] %v11068_v47  ;;  %16209 = vst [vmem:[#allocation66_spill] sm:$0xff] %v11071_v24  ;;  %v2055_v1 = vcombine.high %v10274_v38, %v10274_v38  ;;  %v16210_v6 = vcombine.low %v10854_v37, %v10857_v3  ;;  %3105 = vrot.lane.b32.xlu1 %v11068_v47, %s8702_s15  ;;  %3093 = vrot.lane.b32.xlu0 %v11060_v26, %s8702_s15  ;;  %v8237_v28 = vrot.slane %v2306_v5, 9  ;;  %v8348_v38 = vld [vmem:[%s15535_s5 + $0x418] sm:$0xff]  ;;  %v8347_v3 = vld [vmem:[%s15535_s5 + $0x410] sm:$0xff] }
 0x205   :  { %v11085_v15 = vmax.f32 %v2290_v50, %v8234_v43  ;;  %v11088_v7 = vmax.f32 %v10462_v56, %v8195_v53  ;;  %v11096_v37 = vmax.f32 %v2289_v33, %v8232_v30  ;;  %v8239_v41 = vrot.slane %v11057_v58, 9  ;;  %5474 = vmatprep.subr.mxu0 %v8348_v38  ;;  %v8346_v56 = vld [vmem:[%s15535_s5 + $0x408] sm:$0xff] }
 0x206   :  { %v2353_v54 = vrot.slane %v16210_v6, %v10015_v17  ;;  %v8238_v6 = vrot.slane %v2308_v16, 9  ;;  %v8207_v50 = vrot.slane %v10595_v11, 9  ;;  %v16214_v43 = vcombine.high %v10759_v20, %v10762_v12  ;;  %5475 = vmatpush1.msra.mxu0 %v8347_v3 }
 0x207   :  { %16211 = vst [vmem:[#allocation67_spill] sm:$0xff] %v11085_v15  ;;  %16212 = vst [vmem:[#allocation68_spill] sm:$0xff] %v11088_v7  ;;  %v11109_v26 = vmax.f32 %v2299_v59, %v8235_v52  ;;  %v8245_v33 = vrot.slane %v2342_v60, 9  ;;  %v2362_v30 = vcombine.high %v11066_v49, %v11066_v49  ;;  %v11113_v47 = vmax.f32 %v2307_v23, %v8236_v63 }
 0x208   :  { %16213 = vst [vmem:[#allocation69_spill] sm:$0xff] %v11096_v37  ;;  %v11107_v53 = vrot.slane %v16214_v43, %v10015_v17  ;;  %v8246_v38 = vrot.slane %v2344_v40, 9  ;;  %v8244_v22 = vrot.slane %v2343_v9, 9  ;;  %v8180_v7 = vrot.slane %v2055_v1, 9  ;;  %5476 = vmatprep.subr.mxu0 %v8346_v56  ;;  %3107 = vrot.lane.b32.xlu1 %v11085_v15, %s8702_s15 }
 0x209   :  { %16215 = vst [vmem:[#allocation70_spill] sm:$0xff] %v11109_v26  ;;  %16216 = vst [vmem:[#allocation71_spill] sm:$0xff] %v11113_v47  ;;  %v16217_v48 = vcombine.low %v10895_v35, %v10898_v27  ;;  %3103 = vrot.lane.b32.xlu0 %v11096_v37, %s8702_s15  ;;  %v11123_v20 = vmax.f32 %v2306_v5, %v8237_v28  ;;  %v2361_v59 = vcombine.high %v2353_v54, %v2353_v54 }
 0x20a   :  { %v11126_v23 = vrot.slane %v10999_v51, 1  ;;  %v11128_v52 = vmax.f32 %v2308_v16, %v8238_v6  ;;  %v11131_v63 = vmax.f32 %v11057_v58, %v8239_v41  ;;  %v11134_v3 = vmax.f32 %v10595_v11, %v8207_v50  ;;  %v8345_v11 = vld [vmem:[%s15535_s5 + $0x400] sm:$0xff] }
 0x20b   :  { %v2371_v12 = vrot.slane %v16217_v48, %v10015_v17  ;;  %16218 = vst [vmem:[#allocation72_spill] sm:$0xff] %v11123_v20  ;;  %v2109_v48 = vcombine.high %v10443_v0, %v10443_v0  ;;  %v11138_v56 = vmax.f32 %v2342_v60, %v8245_v33  ;;  %v8247_v43 = vrot.slane %v2353_v54, 9  ;;  %v8344_v0 = vld [vmem:[%s15535_s5 + $0x3f8] sm:$0xff]  ;;  %5477 = vmatpush1.msra.mxu0 %v8345_v11 }
 0x20c   :  { %16219 = vst [vmem:[#allocation73_spill] sm:$0xff] %v11126_v23  ;;  %16220 = vst [vmem:[#allocation74_spill] sm:$0xff] %v11128_v52  ;;  %v8249_v5 = vrot.slane %v11066_v49, 9  ;;  %v8250_v28 = vrot.slane %v2362_v30, 9  ;;  %v11141_v37 = vmax.f32 %v2344_v40, %v8246_v38  ;;  %v11143_v15 = vmax.f32 %v2343_v9, %v8244_v22  ;;  %3109 = vrot.lane.b32.xlu1 %v11109_v26, %s8702_s15 }
 0x20d   :  { %16221 = vst [vmem:[#allocation75_spill] sm:$0xff] %v11131_v63  ;;  %16222 = vst [vmem:[#allocation76_spill] sm:$0xff] %v11134_v3  ;;  %v11145_v16 = vmax.f32 %v2055_v1, %v8180_v7  ;;  %v2163_v6 = vcombine.high %v10579_v46, %v10579_v46  ;;  %v16227_v60 = vcombine.high %v10895_v35, %v10898_v27  ;;  %3111 = vrot.lane.b32.xlu0 %v11113_v47, %s8702_s15  ;;  %v3933_v1 = vld [vmem:[%s15535_s5 + $0xf8] sm:$0xff]  ;;  %v8343_v35 = vld [vmem:[%s15535_s5 + $0x3f0] sm:$0xff] }
 0x20e   :  { %16223 = vst [vmem:[#allocation77_spill] sm:$0xff] %v11138_v56  ;;  %16224 = vst [vmem:[#allocation78_spill] sm:$0xff] %v11141_v37  ;;  %v8248_v46 = vrot.slane %v2361_v59, 9  ;;  %v8251_v22 = vrot.slane %v2371_v12, 9  ;;  %v2217_v9 = vcombine.high %v10742_v21, %v10742_v21  ;;  %v8192_v27 = vrot.slane %v2109_v48, 9  ;;  %5072 = vmatprep.subr.mxu1 %v3933_v1  ;;  %5478 = vmatprep.subr.mxu0 %v8344_v0 }
 0x20f   :  { %16225 = vst [vmem:[#allocation79_spill] sm:$0xff] %v11143_v15  ;;  %16226 = vst [vmem:[#allocation80_spill] sm:$0xff] %v11145_v16  ;;  %v11159_v40 = vrot.slane %v16227_v60, %v10015_v17  ;;  %v2271_v7 = vcombine.high %v10951_v32, %v10951_v32  ;;  %v2379_v41 = vcombine.high %v2371_v12, %v2371_v12  ;;  %v8342_v32 = vld [vmem:[%s15535_s5 + $0x3e8] sm:$0xff]  ;;  %v8204_v17 = vrot.slane %v2163_v6, 9 }
 0x210   :  { %v2325_v50 = vcombine.high %v11057_v58, %v11057_v58  ;;  %v11177_v21 = vmax.f32 %v2353_v54, %v8247_v43  ;;  %v11180_v33 = vmax.f32 %v11066_v49, %v8249_v5  ;;  %v11182_v38 = vmax.f32 %v2362_v30, %v8250_v28  ;;  %5479 = vmatpush1.msra.mxu0 %v8343_v35  ;;  %v8341_v49 = vld [vmem:[%s15535_s5 + $0x3e0] sm:$0xff] }
 0x211   :  { %v2002_v60 = vcombine.high %v10833_v2, %v10833_v2  ;;  %v8231_v58 = vrot.slane %v10957_v10, 9  ;;  %v8243_v11 = vrot.slane %v11031_v44, 9  ;;  %v8169_v54 = vrot.slane %v10833_v2, 9  ;;  %3113 = vrot.lane.b32.xlu1 %v11123_v20, %s8702_s15  ;;  %3115 = vrot.lane.b32.xlu0 %v11128_v52, %s8702_s15  ;;  %v8340_v20 = vld [vmem:[%s15535_s5 + $0x3d8] sm:$0xff] }
 0x212   :  { %16228 = vst [vmem:[#allocation81_spill] sm:$0xff] %v11177_v21  ;;  %16229 = vst [vmem:[#allocation82_spill] sm:$0xff] %v11180_v33  ;;  %v11199_v30 = vmax.f32 %v2361_v59, %v8248_v46  ;;  %v11201_v43 = vmax.f32 %v2371_v12, %v8251_v22  ;;  %v8216_v5 = vrot.slane %v2217_v9, 9  ;;  %v2056_v28 = vcombine.high %v10879_v39, %v10879_v39 }
 0x213   :  { %16230 = vst [vmem:[#allocation83_spill] sm:$0xff] %v11182_v38  ;;  %v11205_v0 = vmax.f32 %v2109_v48, %v8192_v27  ;;  %v8228_v1 = vrot.slane %v2271_v7, 9  ;;  %v8252_v35 = vrot.slane %v2379_v41, 9  ;;  %v8240_v47 = vrot.slane %v2325_v50, 9  ;;  %5480 = vmatprep.subr.mxu0 %v8342_v32  ;;  %v8339_v48 = vld [vmem:[%s15535_s5 + $0x3d0] sm:$0xff] }
 0x214   :  { %16231 = vst [vmem:[#allocation84_spill] sm:$0xff] %v11199_v30  ;;  %16232 = vst [vmem:[#allocation85_spill] sm:$0xff] %v11201_v43  ;;  %v8170_v26 = vrot.slane %v2002_v60, 9  ;;  %v8181_v59 = vrot.slane %v10879_v39, 9  ;;  %v2110_v12 = vcombine.high %v10932_v8, %v10932_v8  ;;  %v8193_v46 = vrot.slane %v10932_v8, 9  ;;  %5481 = vmatpush1.msra.mxu0 %v8341_v49 }
 0x215   :  { %16233 = vst [vmem:[#allocation86_spill] sm:$0xff] %v11205_v0  ;;  %v11217_v22 = vmax.f32 %v2163_v6, %v8204_v17  ;;  %v11220_v27 = vmax.f32 %v10957_v10, %v8231_v58  ;;  %v11223_v32 = vmax.f32 %v11031_v44, %v8243_v11  ;;  %v11226_v52 = vmax.f32 %v10833_v2, %v8169_v54  ;;  %v2962_v11 = vpop.permute.xlu0 %2961  ;;  %v2958_v54 = vpop.permute.xlu1 %2957 }
 0x216   :  { %5482 = vmatprep.subr.mxu0 %v8340_v20  ;;  %3129 = vrot.lane.b32.xlu1 %v11138_v56, %s8702_s15  ;;  %v11232_v49 = vmax.f32 %v2217_v9, %v8216_v5  ;;  %v8182_v17 = vrot.slane %v2056_v28, 9  ;;  %v2164_v10 = vcombine.high %v10981_v4, %v10981_v4  ;;  %v8205_v6 = vrot.slane %v10981_v4, 9 }
 0x217   :  { %16234 = vst [vmem:[#allocation87_spill] sm:$0xff] %v11217_v22  ;;  %16235 = vst [vmem:[#allocation88_spill] sm:$0xff] %v11220_v27  ;;  %3117 = vrot.lane.b32.xlu0 %v11131_v63, %s8702_s15  ;;  %v11237_v44 = vmax.f32 %v2271_v7, %v8228_v1  ;;  %v11239_v58 = vmax.f32 %v2379_v41, %v8252_v35  ;;  %v11241_v2 = vmax.f32 %v2325_v50, %v8240_v47 }
 0x218   :  { %16236 = vst [vmem:[#allocation89_spill] sm:$0xff] %v11223_v32  ;;  %16237 = vst [vmem:[#allocation90_spill] sm:$0xff] %v11226_v52  ;;  %v2218_v20 = vcombine.high %v11012_v31, %v11012_v31  ;;  %5483 = vmatpush1.msra.mxu0 %v8339_v48  ;;  %v11245_v9 = vmax.f32 %v2002_v60, %v8170_v26  ;;  %v11248_v5 = vmax.f32 %v10879_v39, %v8181_v59  ;;  %v16247_v48 = vld [vmem:[#allocation6_spill] sm:$0xff] }
 0x219   :  { %16238 = vst [vmem:[#allocation91_spill] sm:$0xff] %v11232_v49  ;;  %16239 = vst [vmem:[#allocation92_spill] sm:$0xff] %v11237_v44  ;;  %v8194_v63 = vrot.slane %v2110_v12, 9  ;;  %v11251_v56 = vmax.f32 %v10932_v8, %v8193_v46  ;;  %v3151_v7 = vrot.slane %v2962_v11, 2  ;;  %v3149_v41 = vrot.slane %v2958_v54, 2 }
 0x21a   :  { %16240 = vst [vmem:[#allocation93_spill] sm:$0xff] %v11239_v58  ;;  %16241 = vst [vmem:[#allocation94_spill] sm:$0xff] %v11241_v2  ;;  %v8217_v47 = vrot.slane %v11012_v31, 9  ;;  %v2272_v50 = vcombine.high %v11043_v42, %v11043_v42  ;;  %3131 = vrot.lane.b32.xlu1 %v11141_v37, %s8702_s15  ;;  %v11260_v26 = vmax.f32 %v2056_v28, %v8182_v17  ;;  %v8206_v39 = vrot.slane %v2164_v10, 9  ;;  %v8338_v28 = vld [vmem:[%s15535_s5 + $0x3c8] sm:$0xff]  ;;  %v2964_v37 = vpop.permute.xlu1 %2963 }
 0x21b   :  { %16242 = vst [vmem:[#allocation95_spill] sm:$0xff] %v11245_v9  ;;  %16243 = vst [vmem:[#allocation96_spill] sm:$0xff] %v11248_v5  ;;  %3127 = vrot.lane.b32.xlu0 %v11143_v15, %s8702_s15  ;;  %v11263_v60 = vmax.f32 %v10981_v4, %v8205_v6  ;;  %v2326_v8 = vcombine.high %v11107_v53, %v11107_v53  ;;  %v3248_v1 = vsel %vm3245_vm5, %v2962_v11, %v3151_v7  ;;  %v8337_v4 = vld [vmem:[%s15535_s5 + $0x3c0] sm:$0xff]  ;;  %v16248_v6 = vld [vmem:[#allocation9_spill] sm:$0xff]  ;;  %v2960_v11 = vpop.permute.xlu0 %2959 }
 0x21c   :  { %16244 = vst [vmem:[#allocation97_spill] sm:$0xff] %v11251_v56  ;;  %16245 = vst [vmem:[#allocation98_spill] sm:$0xff] %v11260_v26  ;;  %v3246_v35 = vsel %vm3245_vm5, %v2958_v54, %v3149_v41  ;;  %v8218_v59 = vrot.slane %v2218_v20, 9  ;;  %v2380_v46 = vcombine.high %v11159_v40, %v11159_v40  ;;  %v3440_v17 = vmax.f32 %v16247_v48, %v3248_v1 }
 0x21d   :  { %16246 = vst [vmem:[#allocation99_spill] sm:$0xff] %v11263_v60  ;;  %v3438_v15 = vmax.f32 %v16248_v6, %v3246_v35  ;;  %v11279_v7 = vmax.f32 %v2110_v12, %v8194_v63  ;;  %v8229_v54 = vrot.slane %v11043_v42, 9  ;;  %5484 = vmatprep.subr.mxu0 %v8338_v28  ;;  %v3152_v41 = vrot.slane %v2964_v37, 2 }
 0x21e   :  { %v3150_v60 = vrot.slane %v2960_v11, 2  ;;  %v11283_v56 = vmax.f32 %v11012_v31, %v8217_v47  ;;  %v8230_v5 = vrot.slane %v2272_v50, 9  ;;  %5485 = vmatpush1.msra.mxu0 %v8337_v4  ;;  %v3536_v26 = vmax.f32 %v3440_v17, 0.0  ;;  %3133 = vrot.lane.b32.xlu1 %v11177_v21, %s8702_s15  ;;  %v16251_v4 = vld [vmem:[#allocation8_spill] sm:$0xff]  ;;  %v16252_v17 = vld [vmem:[#allocation29_spill] sm:$0xff] }
 0x21f   :  { %16249 = vst [vmem:[#allocation6_spill] sm:$0xff] %v11279_v7  ;;  %v3534_v52 = vmax.f32 %v3438_v15, 0.0  ;;  %3137 = vrot.lane.b32.xlu0 %v11180_v33, %s8702_s15  ;;  %v8242_v63 = vrot.slane %v2326_v8, 9  ;;  %v8241_v12 = vrot.slane %v11107_v53, 9  ;;  %v3249_v1 = vsel %vm3245_vm5, %v2964_v37, %v3152_v41  ;;  %v2966_v33 = vpop.permute.xlu1 %2965  ;;  %v2968_v21 = vpop.permute.xlu0 %2967  ;;  %v8336_v37 = vld [vmem:[%s15535_s5 + $0x3b8] sm:$0xff] }
 0x220   :  { %16250 = vst [vmem:[#allocation9_spill] sm:$0xff] %v11283_v56  ;;  %v3247_v35 = vsel %vm3245_vm5, %v2960_v11, %v3150_v60  ;;  %v8254_v28 = vrot.slane %v2380_v46, 9  ;;  %v8253_v31 = vrot.slane %v11159_v40, 9  ;;  %v3672_v47 = vmul.f32 %v10802_v55, %v3536_v26  ;;  %5486 = vmatprep.subr.mxu0 %v8336_v37  ;;  %v8334_v26 = vld [vmem:[%s15535_s5 + $0x3a8] sm:$0xff] }
 0x221   :  { %v3670_v15 = vmul.f32 %v10750_v34, %v3534_v52  ;;  %v3441_v48 = vmax.f32 %v16251_v4, %v3249_v1  ;;  %v3439_v6 = vmax.f32 %v16252_v17, %v3247_v35  ;;  %v3153_v41 = vrot.slane %v2966_v33, 2  ;;  %v8335_v52 = vld [vmem:[%s15535_s5 + $0x3b0] sm:$0xff] }
 0x222   :  { %v3154_v60 = vrot.slane %v2968_v21, 2  ;;  %v11300_v11 = vmax.f32 %v2164_v10, %v8206_v39  ;;  %v11302_v56 = vmax.f32 %v2218_v20, %v8218_v59  ;;  %v3808_v1 = vadd.f32 %v10827_v14, %v3672_v47  ;;  %3139 = vrot.lane.b32.xlu1 %v11182_v38, %s8702_s15  ;;  %5487 = vmatpush1.msra.mxu0 %v8335_v52  ;;  %v8333_v47 = vld [vmem:[%s15535_s5 + $0x3a0] sm:$0xff]  ;;  %v8388_v52 = vld [vmem:[%s15535_s5 + $0x558] sm:$0xff]  ;;  %v16283_v38 = vld [vmem:[#allocation14_spill] sm:$0xff] }
 0x223   :  { %v3537_v35 = vmax.f32 %v3441_v48, 0.0  ;;  %v3535_v4 = vmax.f32 %v3439_v6, 0.0  ;;  %3135 = vrot.lane.b32.xlu0 %v11199_v30, %s8702_s15  ;;  %v11316_v10 = vmax.f32 %v11043_v42, %v8229_v54  ;;  %v3250_v20 = vsel %vm3245_vm5, %v2966_v33, %v3153_v41  ;;  %v2970_v6 = vpop.permute.xlu1 %2969  ;;  %v2972_v37 = vpop.permute.xlu0 %2971  ;;  %5488 = vmatprep.subr.mxu0 %v8334_v26 }
 0x224   :  { %16253 = vst [vmem:[#allocation8_spill] sm:$0xff] %v11300_v11  ;;  %16254 = vst [vmem:[#allocation29_spill] sm:$0xff] %v11302_v56  ;;  %v3251_v39 = vsel %vm3245_vm5, %v2968_v21, %v3154_v60  ;;  %v11320_v59 = vmax.f32 %v2272_v50, %v8230_v5  ;;  %v11323_v17 = vmax.f32 %v11107_v53, %v8241_v12  ;;  %v8390_v53 = vld [vmem:[%s15535_s5 + $0x568] sm:$0x3f]  ;;  %v16261_v50 = vld [vmem:[#allocation11_spill] sm:$0xff]  ;;  %5489 = vmatpush1.msra.mxu0 %v8333_v47 }
 0x225   :  { %16255 = vst [vmem:[#allocation100_spill] sm:$0xff] %v11316_v10  ;;  %v3806_v48 = vadd.f32 %v10789_v29, %v3670_v15  ;;  %v11329_v42 = vmax.f32 %v2326_v8, %v8242_v63  ;;  %v11331_v54 = vmax.f32 %v2380_v46, %v8254_v28  ;;  %v11334_v21 = vmax.f32 %v11159_v40, %v8253_v31  ;;  %v16262_v15 = vld [vmem:[#allocation10_spill] sm:$0xff]  ;;  %v8389_v8 = vld [vmem:[%s15535_s5 + $0x560] sm:$0x3f] }
 0x226   :  { %16256 = vst [vmem:[#allocation101_spill] sm:$0xff] %v11320_v59  ;;  %16257 = vst [vmem:[#allocation102_spill] sm:$0xff] %v11323_v17  ;;  %v3673_v33 = vmul.f32 %v10843_v45, %v3537_v35  ;;  %v3671_v5 = vmul.f32 %v10889_v36, %v3535_v4  ;;  %v3442_v12 = vmax.f32 %v16261_v50, %v3250_v20  ;;  %v16263_v40 = vld [vmem:[#allocation64_spill] sm:$0xff]  ;;  %v16265_v63 = vld [vmem:[#allocation22_spill] sm:$0xff]  ;;  %v3155_v31 = vrot.slane %v2970_v6, 2 }
 0x227   :  { %16258 = vst [vmem:[#allocation103_spill] sm:$0xff] %v11329_v42  ;;  %16259 = vst [vmem:[#allocation104_spill] sm:$0xff] %v11331_v54  ;;  %v3443_v41 = vmax.f32 %v16262_v15, %v3251_v39  ;;  %v11347_v46 = vrot.slane %v3808_v1, %v16263_v40  ;;  %v11350_v28 = vrot.slane %v3808_v1, %v16265_v63  ;;  %v3156_v60 = vrot.slane %v2972_v37, 2  ;;  %v2974_v15 = vpop.permute.xlu1 %2973  ;;  %v16290_v42 = vld [vmem:[#allocation59_spill] sm:$0xff]  ;;  %v16298_v10 = vld [vmem:[#allocation18_spill] sm:$0xff] }
 0x228   :  { %16260 = vst [vmem:[#allocation105_spill] sm:$0xff] %v11334_v21  ;;  %2975 = vrot.lane.b32.xlu1 %v11037_v13, %s8702_s15  ;;  %3141 = vrot.lane.b32.xlu0 %v11201_v43, %s8702_s15  ;;  %v3809_v26 = vadd.f32 %v10886_v25, %v3673_v33  ;;  %v3807_v35 = vadd.f32 %v10892_v19, %v3671_v5  ;;  %v3538_v4 = vmax.f32 %v3442_v12, 0.0  ;;  %v2984_v43 = vpop.permute.xlu0 %2983 }
 0x229   :  { %16264 = vst [vmem:[#allocation11_spill] sm:$0xff] %v11347_v46  ;;  %16266 = vst [vmem:[#allocation10_spill] sm:$0xff] %v11350_v28  ;;  %v3539_v20 = vmax.f32 %v3443_v41, 0.0  ;;  %8391 = vmatprep.subr.msk.mxu0 %vm711_vm4, %v8390_v53  ;;  %v4869_v1 = vrot.slane %v3806_v48, %v16263_v40  ;;  %v4873_v39 = vrot.slane %v3806_v48, %v16265_v63  ;;  %v8387_v48 = vld [vmem:[%s15535_s5 + $0x550] sm:$0xff]  ;;  %v16269_v41 = vld [vmem:[#allocation13_spill] sm:$0xff]  ;;  %v3162_v13 = vrot.slane %v2984_v43, 2 }
 0x22a   :  { %v3252_v47 = vsel %vm3245_vm5, %v2970_v6, %v3155_v31  ;;  %v3253_v50 = vsel %vm3245_vm5, %v2972_v37, %v3156_v60  ;;  %8392 = vmatpush2.msk.msra.mxu0 %vm711_vm4, %v8389_v8  ;;  %v11368_v33 = vrot.slane %v3809_v26, %v16263_v40  ;;  %v11371_v5 = vrot.slane %v3809_v26, %v16265_v63  ;;  %v16270_v31 = vld [vmem:[#allocation12_spill] sm:$0xff] }
 0x22b   :  { %v4086_v53 = vrot.slane %v3807_v35, %v16263_v40  ;;  %v4090_v12 = vrot.slane %v3807_v35, %v16265_v63  ;;  %5498 = vmatprep.subr.mxu0 %v8388_v52  ;;  %v3674_v6 = vmul.f32 %v10902_v18, %v3538_v4  ;;  %v3675_v37 = vmul.f32 %v10963_v62, %v3539_v20 }
 0x22c   :  { %16267 = vst [vmem:[#allocation64_spill] sm:$0xff] %v11368_v33  ;;  %16268 = vst [vmem:[#allocation106_spill] sm:$0xff] %v11371_v5  ;;  %v3444_v8 = vmax.f32 %v16269_v41, %v3252_v47  ;;  %v3445_v60 = vmax.f32 %v16270_v31, %v3253_v50  ;;  %3005 = vrot.lane.b32.xlu1 %v11050_v57, %s8702_s15  ;;  %v11387_v26 = vsel %vm4595_vm6, %v11368_v33, %v11347_v46  ;;  %v16274_v50 = vld [vmem:[#allocation60_spill] sm:$0xff] }
 0x22d   :  { %16271 = vst [vmem:[#allocation13_spill] sm:$0xff] %v11387_v26  ;;  %v11391_v52 = vsel %vm4595_vm6, %v11347_v46, %v4086_v53  ;;  %v11395_v35 = vsel %vm4595_vm6, %v11350_v28, %v4090_v12  ;;  %v11398_v4 = vsel %vm4595_vm6, %v4086_v53, %v4869_v1  ;;  %2981 = vrot.lane.b32.xlu0 %v11071_v24, %s8702_s15  ;;  %v2986_v46 = vpop.permute.xlu1 %2985  ;;  %v2988_v26 = vpop.permute.xlu0 %2987  ;;  %v3157_v28 = vrot.slane %v2974_v15, 2 }
 0x22e   :  { %16272 = vst [vmem:[#allocation12_spill] sm:$0xff] %v11398_v4  ;;  %v11403_v20 = vsel %vm4595_vm6, %v4090_v12, %v4873_v39  ;;  %v3810_v47 = vadd.f32 %v10921_v61, %v3674_v6  ;;  %v3811_v41 = vadd.f32 %v16274_v50, %v3675_v37  ;;  %v3540_v31 = vmax.f32 %v3444_v8, 0.0  ;;  %5499 = vmatpush2.msra.mxu0 %v8387_v48  ;;  %v16279_v6 = vld [vmem:[#allocation68_spill] sm:$0xff]  ;;  %v16281_v8 = vld [vmem:[#allocation63_spill] sm:$0xff] }
 0x22f   :  { %16273 = vst [vmem:[#allocation107_spill] sm:$0xff] %v11403_v20  ;;  %v3541_v57 = vmax.f32 %v3445_v60, 0.0  ;;  %v3163_v30 = vrot.slane %v2986_v46, 2  ;;  %v16280_v48 = vld [vmem:[#allocation56_spill] sm:$0xff]  ;;  %v3254_v4 = vsel %vm3245_vm5, %v2974_v15, %v3157_v28  ;;  %v3259_v20 = vsel %vm3245_vm5, %v2984_v43, %v3162_v13  ;;  %v16284_v15 = vld [vmem:[#allocation30_spill] sm:$0xff] }
 0x230   :  { %v11408_v1 = vrot.slane %v3810_v47, %v16263_v40  ;;  %v11411_v53 = vrot.slane %v3810_v47, %v16265_v63  ;;  %v11414_v39 = vrot.slane %v3811_v41, %v16263_v40  ;;  %v11417_v12 = vrot.slane %v3811_v41, %v16265_v63  ;;  %3029 = vrot.lane.b32.xlu1 %v16279_v6, %s8702_s15  ;;  %v8386_v47 = vld [vmem:[%s15535_s5 + $0x548] sm:$0xff]  ;;  %v16282_v41 = vld [vmem:[#allocation15_spill] sm:$0xff]  ;;  %v8385_v13 = vld [vmem:[%s15535_s5 + $0x540] sm:$0xff] }
 0x231   :  { %v3676_v37 = vmul.f32 %v16280_v48, %v3540_v31  ;;  %v3677_v60 = vmul.f32 %v16281_v8, %v3541_v57  ;;  %2999 = vrot.lane.b32.xlu0 %v11145_v16, %s8702_s15  ;;  %v3446_v24 = vmax.f32 %v16282_v41, %v3254_v4  ;;  %v3451_v6 = vmax.f32 %v16283_v38, %v3259_v20  ;;  %v2990_v57 = vpop.permute.xlu1 %2989  ;;  %v2992_v54 = vpop.permute.xlu0 %2991 }
 0x232   :  { %16275 = vst [vmem:[#allocation60_spill] sm:$0xff] %v11408_v1  ;;  %16276 = vst [vmem:[#allocation108_spill] sm:$0xff] %v11411_v53  ;;  %v3260_v31 = vsel %vm3245_vm5, %v2986_v46, %v3163_v30  ;;  %v3164_v21 = vrot.slane %v2988_v26, 2  ;;  %5500 = vmatprep.subr.mxu0 %v8386_v47  ;;  %v3165_v17 = vrot.slane %v2990_v57, 2  ;;  %v3166_v46 = vrot.slane %v2992_v54, 2 }
 0x233   :  { %16277 = vst [vmem:[#allocation109_spill] sm:$0xff] %v11414_v39  ;;  %16278 = vst [vmem:[#allocation110_spill] sm:$0xff] %v11417_v12  ;;  %v3812_v43 = vadd.f32 %v10999_v51, %v3676_v37  ;;  %v3813_v28 = vadd.f32 %v11126_v23, %v3677_v60  ;;  %v3452_v16 = vmax.f32 %v16284_v15, %v3260_v31  ;;  %5501 = vmatpush2.msra.mxu0 %v8385_v13 }
 0x234   :  { %v3542_v4 = vmax.f32 %v3446_v24, 0.0  ;;  %v3547_v38 = vmax.f32 %v3451_v6, 0.0  ;;  %v3261_v30 = vsel %vm3245_vm5, %v2988_v26, %v3164_v21  ;;  %3053 = vrot.lane.b32.xlu1 %v11134_v3, %s8702_s15  ;;  %v16289_v6 = vld [vmem:[#allocation31_spill] sm:$0xff]  ;;  %v3263_v15 = vsel %vm3245_vm5, %v2992_v54, %v3166_v46  ;;  %v16291_v54 = vld [vmem:[#allocation17_spill] sm:$0xff]  ;;  %v16292_v46 = vld [vmem:[#allocation16_spill] sm:$0xff] }
 0x235   :  { %v11443_v20 = vrot.slane %v3812_v43, %v16263_v40  ;;  %v11446_v47 = vrot.slane %v3812_v43, %v16265_v63  ;;  %v11449_v37 = vrot.slane %v3813_v28, %v16263_v40  ;;  %v11452_v60 = vrot.slane %v3813_v28, %v16265_v63  ;;  %3023 = vrot.lane.b32.xlu0 %v11205_v0, %s8702_s15  ;;  %v2994_v31 = vpop.permute.xlu1 %2993  ;;  %v2996_v13 = vpop.permute.xlu0 %2995  ;;  %v8384_v43 = vld [vmem:[%s15535_s5 + $0x538] sm:$0xff] }
 0x236   :  { %v3678_v24 = vmul.f32 %v10750_v34, %v3542_v4  ;;  %v3683_v21 = vmul.f32 %v10963_v62, %v3547_v38  ;;  %v3548_v26 = vmax.f32 %v3452_v16, 0.0  ;;  %v3453_v41 = vmax.f32 %v16289_v6, %v3261_v30  ;;  %5502 = vmatprep.subr.mxu0 %v8384_v43  ;;  %v8383_v4 = vld [vmem:[%s15535_s5 + $0x530] sm:$0xff] }
 0x237   :  { %16285 = vst [vmem:[#allocation15_spill] sm:$0xff] %v11443_v20  ;;  %16286 = vst [vmem:[#allocation14_spill] sm:$0xff] %v11446_v47  ;;  %v3262_v28 = vsel %vm3245_vm5, %v2990_v57, %v3165_v17  ;;  %v3167_v0 = vrot.slane %v2994_v31, 2  ;;  %v3168_v3 = vrot.slane %v2996_v13, 2  ;;  %5503 = vmatpush2.msra.mxu0 %v8383_v4  ;;  %v8382_v17 = vld [vmem:[%s15535_s5 + $0x528] sm:$0xff]  ;;  %v3455_v43 = vmax.f32 %v16292_v46, %v3263_v15 }
 0x238   :  { %16287 = vst [vmem:[#allocation30_spill] sm:$0xff] %v11449_v37  ;;  %16288 = vst [vmem:[#allocation111_spill] sm:$0xff] %v11452_v60  ;;  %v3814_v16 = vadd.f32 %v10789_v29, %v3678_v24  ;;  %v3819_v38 = vadd.f32 %v16274_v50, %v3683_v21  ;;  %v3684_v30 = vmul.f32 %v16280_v48, %v3548_v26  ;;  %v3549_v6 = vmax.f32 %v3453_v41, 0.0  ;;  %v8381_v26 = vld [vmem:[%s15535_s5 + $0x520] sm:$0xff]  ;;  %v8380_v41 = vld [vmem:[%s15535_s5 + $0x518] sm:$0xff] }
 0x239   :  { %3077 = vrot.lane.b32.xlu1 %v16290_v42, %s8702_s15  ;;  %v3454_v57 = vmax.f32 %v16291_v54, %v3262_v28  ;;  %v3264_v24 = vsel %vm3245_vm5, %v2994_v31, %v3167_v0  ;;  %v3265_v21 = vsel %vm3245_vm5, %v2996_v13, %v3168_v3  ;;  %3047 = vrot.lane.b32.xlu0 %v11217_v22, %s8702_s15  ;;  %v3010_v31 = vpop.permute.xlu1 %3009  ;;  %v11499_v13 = vpop.permute.xlu0 %2997  ;;  %v3551_v22 = vmax.f32 %v3455_v43, 0.0 }
 0x23a   :  { %v11488_v4 = vrot.slane %v3814_v16, %v16263_v40  ;;  %v11491_v28 = vrot.slane %v3814_v16, %v16265_v63  ;;  %v11494_v0 = vrot.slane %v3819_v38, %v16263_v40  ;;  %v11497_v3 = vrot.slane %v3819_v38, %v16265_v63  ;;  %5504 = vmatprep.subr.mxu0 %v8382_v17  ;;  %v16297_v16 = vld [vmem:[#allocation19_spill] sm:$0xff] }
 0x23b   :  { %v3820_v15 = vadd.f32 %v10999_v51, %v3684_v30  ;;  %v3685_v54 = vmul.f32 %v16281_v8, %v3549_v6  ;;  %v3550_v46 = vmax.f32 %v3454_v57, 0.0  ;;  %5505 = vmatpush2.msra.mxu0 %v8381_v26  ;;  %v3456_v42 = vmax.f32 %v16297_v16, %v3264_v24  ;;  %v8379_v30 = vld [vmem:[%s15535_s5 + $0x510] sm:$0xff] }
 0x23c   :  { %16293 = vst [vmem:[#allocation31_spill] sm:$0xff] %v11488_v4  ;;  %16294 = vst [vmem:[#allocation17_spill] sm:$0xff] %v11491_v28  ;;  %v3457_v59 = vmax.f32 %v16298_v10, %v3265_v21  ;;  %v4610_v38 = vsel %vm4597_vm7, %v11371_v5, %v11395_v35  ;;  %v3175_v56 = vrot.slane %v3010_v31, 2  ;;  %5506 = vmatprep.subr.mxu0 %v8380_v41  ;;  %v8378_v35 = vld [vmem:[%s15535_s5 + $0x508] sm:$0xff] }
 0x23d   :  { %16295 = vst [vmem:[#allocation16_spill] sm:$0xff] %v11494_v0  ;;  %16296 = vst [vmem:[#allocation112_spill] sm:$0xff] %v11497_v3  ;;  %3101 = vrot.lane.b32.xlu1 %v11220_v27, %s8702_s15  ;;  %v11514_v6 = vrot.slane %v3820_v15, %v16263_v40  ;;  %v11517_v17 = vrot.slane %v3820_v15, %v16265_v63  ;;  %v3821_v10 = vadd.f32 %v11126_v23, %v3685_v54  ;;  %v3012_v41 = vpop.permute.xlu1 %3011  ;;  %v3008_v15 = vpop.permute.xlu0 %3007 }
 0x23e   :  { %v3686_v57 = vmul.f32 %v10750_v34, %v3550_v46  ;;  %3071 = vrot.lane.b32.xlu0 %v11232_v49, %s8702_s15  ;;  %v3687_v43 = vmul.f32 %v10889_v36, %v3551_v22  ;;  %v3552_v24 = vmax.f32 %v3456_v42, 0.0  ;;  %v3553_v21 = vmax.f32 %v3457_v59, 0.0  ;;  %5507 = vmatpush2.msra.mxu0 %v8379_v30  ;;  %v8377_v59 = vld [vmem:[%s15535_s5 + $0x500] sm:$0xff] }
 0x23f   :  { %16299 = vst [vmem:[#allocation19_spill] sm:$0xff] %v11514_v6  ;;  %16300 = vst [vmem:[#allocation18_spill] sm:$0xff] %v11517_v17  ;;  %v4611_v26 = vsel %vm4599_vm8, %v11411_v53, %v4610_v38  ;;  %v11532_v54 = vsel %vm4595_vm6, %v11517_v17, %v11497_v3  ;;  %v11535_v46 = vrot.slane %v3821_v10, %v16263_v40  ;;  %5508 = vmatprep.subr.mxu0 %v8378_v35  ;;  %v16343_v53 = vld [vmem:[#allocation101_spill] sm:$0xff] }
 0x240   :  { %v11538_v16 = vrot.slane %v3821_v10, %v16265_v63  ;;  %v3822_v22 = vadd.f32 %v10789_v29, %v3686_v57  ;;  %v3823_v42 = vadd.f32 %v10892_v19, %v3687_v43  ;;  %v3688_v38 = vmul.f32 %v10802_v55, %v3552_v24  ;;  %5509 = vmatpush2.msra.mxu0 %v8377_v59 }
 0x241   :  { %16301 = vst [vmem:[#allocation113_spill] sm:$0xff] %v11535_v46  ;;  %v3689_v30 = vmul.f32 %v10843_v45, %v3553_v21  ;;  %v4612_v17 = vsel %vm4601_vm9, %v11417_v12, %v4611_v26  ;;  %3125 = vrot.lane.b32.xlu1 %v11223_v32, %s8702_s15  ;;  %v3272_v43 = vsel %vm3245_vm5, %v3010_v31, %v3175_v56  ;;  %v3016_v49 = vpop.permute.xlu0 %3015  ;;  %v16307_v56 = vld [vmem:[#allocation21_spill] sm:$0xff]  ;;  %v3169_v27 = vrot.slane %v11499_v13, 2 }
 0x242   :  { %16302 = vst [vmem:[#allocation114_spill] sm:$0xff] %v11538_v16  ;;  %v11552_v10 = vrot.slane %v3822_v22, %v16263_v40  ;;  %v11555_v57 = vrot.slane %v3822_v22, %v16265_v63  ;;  %v4613_v35 = vsel %vm4603_vm10, %v11446_v47, %v4612_v17  ;;  %3095 = vrot.lane.b32.xlu0 %v11237_v44, %s8702_s15  ;;  %v3014_v22 = vpop.permute.xlu1 %3013 }
 0x243   :  { %v11563_v24 = vrot.slane %v3823_v42, %v16263_v40  ;;  %v11566_v21 = vrot.slane %v3823_v42, %v16265_v63  ;;  %v3824_v26 = vadd.f32 %v10827_v14, %v3688_v38  ;;  %v3825_v32 = vadd.f32 %v10886_v25, %v3689_v30 }
 0x244   :  { %16303 = vst [vmem:[#allocation115_spill] sm:$0xff] %v11552_v10  ;;  %16304 = vst [vmem:[#allocation116_spill] sm:$0xff] %v11555_v57  ;;  %v4614_v17 = vsel %vm4605_vm11, %v11452_v60, %v4613_v35  ;;  %v3464_v31 = vmax.f32 %v16307_v56, %v3272_v43  ;;  %v4598_v44 = vsel %vm4597_vm7, %v11368_v33, %v11391_v52  ;;  %v16312_v56 = vld [vmem:[#allocation33_spill] sm:$0xff]  ;;  %v3176_v33 = vrot.slane %v3012_v41, 2 }
 0x245   :  { %16305 = vst [vmem:[#allocation117_spill] sm:$0xff] %v11563_v24  ;;  %16306 = vst [vmem:[#allocation118_spill] sm:$0xff] %v11566_v21  ;;  %v11578_v42 = vrot.slane %v3824_v26, %v16263_v40  ;;  %v11581_v38 = vrot.slane %v3824_v26, %v16265_v63  ;;  %v11584_v30 = vrot.slane %v3825_v32, %v16263_v40  ;;  %3143 = vrot.lane.b32.xlu1 %v11239_v58, %s8702_s15 }
 0x246   :  { %v11587_v59 = vrot.slane %v3825_v32, %v16265_v63  ;;  %v4615_v52 = vsel %vm4607_vm13, %v11491_v28, %v4614_v17  ;;  %v3560_v35 = vmax.f32 %v3464_v31, 0.0  ;;  %v4600_v43 = vsel %vm4599_vm8, %v11408_v1, %v4598_v44  ;;  %3119 = vrot.lane.b32.xlu0 %v11241_v2, %s8702_s15  ;;  %v3018_v17 = vpop.permute.xlu1 %3017  ;;  %v3020_v31 = vpop.permute.xlu0 %3019  ;;  %v8376_v44 = vld [vmem:[%s15535_s5 + $0x4f8] sm:$0xff] }
 0x247   :  { %16308 = vst [vmem:[#allocation21_spill] sm:$0xff] %v11578_v42  ;;  %16309 = vst [vmem:[#allocation119_spill] sm:$0xff] %v11581_v38  ;;  %v3266_v26 = vsel %vm3245_vm5, %v11499_v13, %v3169_v27  ;;  %8315 = vmatprep.mubr.msk.f32.mxu1 %vm4722_vm12, %v4615_v52  ;;  %v4602_v32 = vsel %vm4601_vm9, %v11414_v39, %v4600_v43  ;;  %v3174_v60 = vrot.slane %v3008_v15, 2  ;;  %v8375_v27 = vld [vmem:[%s15535_s5 + $0x4f0] sm:$0xff]  ;;  %v3177_v43 = vrot.slane %v3014_v22, 2 }
 0x248   :  { %16310 = vst [vmem:[#allocation120_spill] sm:$0xff] %v11584_v30  ;;  %16311 = vst [vmem:[#allocation121_spill] sm:$0xff] %v11587_v59  ;;  %v3458_v58 = vmax.f32 %v16312_v56, %v3266_v26  ;;  %v3696_v13 = vmul.f32 %v10802_v55, %v3560_v35  ;;  %v4604_v52 = vsel %vm4603_vm10, %v11443_v20, %v4602_v32  ;;  %v3178_v2 = vrot.slane %v3016_v49, 2  ;;  %v3932_v35 = vld [vmem:[%s15535_s5 + $0xf0] sm:$0xff]  ;;  %v16313_v20 = vld [vmem:[#allocation20_spill] sm:$0xff] }
 0x249   :  { %5510 = vmatprep.subr.mxu0 %v8376_v44  ;;  %v4606_v26 = vsel %vm4605_vm11, %v11449_v37, %v4604_v52  ;;  %v3273_v28 = vsel %vm3245_vm5, %v3012_v41, %v3176_v33  ;;  %v3271_v39 = vsel %vm3245_vm5, %v3008_v15, %v3174_v60  ;;  %2979 = vrot.lane.b32.xlu1 %v11245_v9, %s8702_s15  ;;  %v16315_v33 = vld [vmem:[#allocation90_spill] sm:$0xff] }
 0x24a   :  { %v3554_v56 = vmax.f32 %v3458_v58, 0.0  ;;  %5511 = vmatpush2.msra.mxu0 %v8375_v27  ;;  %v3832_v32 = vadd.f32 %v10827_v14, %v3696_v13  ;;  %v4608_v44 = vsel %vm4607_vm13, %v11488_v4, %v4606_v26  ;;  %v3465_v52 = vmax.f32 %v16313_v20, %v3273_v28  ;;  %v16314_v58 = vld [vmem:[#allocation32_spill] sm:$0xff]  ;;  %2977 = vrot.lane.b32.xlu0 %v16315_v33, %s8702_s15  ;;  %v11631_v9 = vpop.permute.xlu1 %3033  ;;  %v11633_v13 = vpop.permute.xlu0 %3021  ;;  %v3931_v20 = vld [vmem:[%s15535_s5 + $0xe8] sm:$0xff] }
 0x24b   :  { %v3463_v37 = vmax.f32 %v16314_v58, %v3271_v39  ;;  %4810 = vmatmul.mubr.f32.vlgmr.msra.gmra.mxu1 %v4608_v44  ;;  %v3274_v41 = vsel %vm3245_vm5, %v3014_v22, %v3177_v43  ;;  %v3275_v15 = vsel %vm3245_vm5, %v3016_v49, %v3178_v2  ;;  %v3179_v27 = vrot.slane %v3018_v17, 2  ;;  %v8374_v39 = vld [vmem:[%s15535_s5 + $0x4e8] sm:$0xff]  ;;  %v3930_v43 = vld [vmem:[%s15535_s5 + $0xe0] sm:$0xff]  ;;  %v16318_v44 = vld [vmem:[#allocation34_spill] sm:$0xff] }
 0x24c   :  { %v3690_v60 = vmul.f32 %v10902_v18, %v3554_v56  ;;  %v11642_v28 = vrot.slane %v3832_v32, %v16263_v40  ;;  %v11645_v22 = vrot.slane %v3832_v32, %v16265_v63  ;;  %v3561_v49 = vmax.f32 %v3465_v52, 0.0  ;;  %5073 = vmatpush1.msra.mxu1 %v3932_v35  ;;  %5512 = vmatprep.subr.mxu0 %v8374_v39  ;;  %v8373_v26 = vld [vmem:[%s15535_s5 + $0x4e0] sm:$0xff]  ;;  %v3929_v35 = vld [vmem:[%s15535_s5 + $0xd8] sm:$0xff] }
 0x24d   :  { %v3559_v2 = vmax.f32 %v3463_v37, 0.0  ;;  %v3466_v58 = vmax.f32 %v16318_v44, %v3274_v41  ;;  %v16319_v33 = vld [vmem:[#allocation36_spill] sm:$0xff]  ;;  %v3276_v32 = vsel %vm3245_vm5, %v3018_v17, %v3179_v27  ;;  %v16320_v37 = vld [vmem:[#allocation98_spill] sm:$0xff]  ;;  %v8372_v52 = vld [vmem:[%s15535_s5 + $0x4d8] sm:$0xff]  ;;  %5074 = vmatprep.subr.mxu1 %v3931_v20  ;;  %v4624_v47 = vsel %vm4597_vm7, %v11538_v16, %v11532_v54  ;;  %5513 = vmatpush2.msra.mxu0 %v8373_v26 }
 0x24e   :  { %16316 = vst [vmem:[#allocation33_spill] sm:$0xff] %v11642_v28  ;;  %16317 = vst [vmem:[#allocation20_spill] sm:$0xff] %v11645_v22  ;;  %v3826_v56 = vadd.f32 %v10921_v61, %v3690_v60  ;;  %v3467_v4 = vmax.f32 %v16319_v33, %v3275_v15  ;;  %3003 = vrot.lane.b32.xlu1 %v16320_v37, %s8702_s15  ;;  %v3697_v39 = vmul.f32 %v10843_v45, %v3561_v49  ;;  %v16321_v41 = vld [vmem:[#allocation35_spill] sm:$0xff]  ;;  %v16322_v17 = vld [vmem:[#allocation96_spill] sm:$0xff]  ;;  %v11676_v1 = vpop.permute.xlu1 %3035  ;;  %v11678_v49 = vpop.permute.xlu0 %3031 }
 0x24f   :  { %v3695_v60 = vmul.f32 %v10889_v36, %v3559_v2  ;;  %v3468_v44 = vmax.f32 %v16321_v41, %v3276_v32  ;;  %v3180_v33 = vrot.slane %v3020_v31, 2  ;;  %3001 = vrot.lane.b32.xlu0 %v16322_v17, %s8702_s15  ;;  %v3562_v27 = vmax.f32 %v3466_v58, 0.0  ;;  %5075 = vmatpush1.msra.mxu1 %v3930_v43  ;;  %v8371_v54 = vld [vmem:[%s15535_s5 + $0x4d0] sm:$0xff] }
 0x250   :  { %v11671_v15 = vrot.slane %v3826_v56, %v16265_v63  ;;  %v3563_v37 = vmax.f32 %v3467_v4, 0.0  ;;  %v3833_v2 = vadd.f32 %v10886_v25, %v3697_v39  ;;  %5076 = vmatprep.subr.mxu1 %v3929_v35  ;;  %v3928_v4 = vld [vmem:[%s15535_s5 + $0xd0] sm:$0xff]  ;;  %5514 = vmatprep.subr.mxu0 %v8372_v52  ;;  %v8370_v35 = vld [vmem:[%s15535_s5 + $0x4c8] sm:$0xff] }
 0x251   :  { %v3831_v32 = vadd.f32 %v10892_v19, %v3695_v60  ;;  %v3564_v20 = vmax.f32 %v3468_v44, 0.0  ;;  %v3277_v41 = vsel %vm3245_vm5, %v3020_v31, %v3180_v33  ;;  %v3698_v43 = vmul.f32 %v10902_v18, %v3562_v27  ;;  %v16324_v58 = vld [vmem:[#allocation38_spill] sm:$0xff]  ;;  %v3927_v31 = vld [vmem:[%s15535_s5 + $0xc8] sm:$0xff]  ;;  %5077 = vmatpush1.msra.mxu1 %v3928_v4  ;;  %5515 = vmatpush2.msra.mxu0 %v8371_v54  ;;  %v8369_v4 = vld [vmem:[%s15535_s5 + $0x4c0] sm:$0xff] }
 0x252   :  { %16323 = vst [vmem:[#allocation32_spill] sm:$0xff] %v11671_v15  ;;  %v3699_v26 = vmul.f32 %v10963_v62, %v3563_v37  ;;  %v3469_v39 = vmax.f32 %v16324_v58, %v3277_v41  ;;  %v4625_v60 = vsel %vm4599_vm8, %v11555_v57, %v4624_v47  ;;  %3027 = vrot.lane.b32.xlu1 %v11279_v7, %s8702_s15  ;;  %v16327_v33 = vld [vmem:[#allocation97_spill] sm:$0xff]  ;;  %v11719_v17 = vpop.permute.xlu1 %3037  ;;  %v16334_v57 = vld [vmem:[#allocation40_spill] sm:$0xff] }
 0x253   :  { %v11703_v52 = vrot.slane %v3833_v2, %v16263_v40  ;;  %v11706_v37 = vrot.slane %v3833_v2, %v16265_v63  ;;  %v11709_v44 = vrot.slane %v3831_v32, %v16263_v40  ;;  %v11712_v47 = vrot.slane %v3831_v32, %v16265_v63  ;;  %3025 = vrot.lane.b32.xlu0 %v16327_v33, %s8702_s15  ;;  %v11721_v2 = vpop.permute.xlu0 %3039 }
 0x254   :  { %v3834_v27 = vadd.f32 %v10921_v61, %v3698_v43  ;;  %v3835_v41 = vadd.f32 %v16274_v50, %v3699_v26  ;;  %v3700_v58 = vmul.f32 %v16280_v48, %v3564_v20  ;;  %v3565_v7 = vmax.f32 %v3469_v39, 0.0  ;;  %5078 = vmatprep.subr.mxu1 %v3927_v31  ;;  %v3926_v20 = vld [vmem:[%s15535_s5 + $0xc0] sm:$0xff]  ;;  %5516 = vmatprep.subr.mxu0 %v8370_v35  ;;  %v3925_v31 = vld [vmem:[%s15535_s5 + $0xb8] sm:$0xff] }
 0x255   :  { %16325 = vst [vmem:[#allocation34_spill] sm:$0xff] %v11703_v52  ;;  %16326 = vst [vmem:[#allocation36_spill] sm:$0xff] %v11706_v37  ;;  %v11726_v32 = vsel %vm4595_vm6, %v11645_v22, %v11712_v47  ;;  %v4626_v33 = vsel %vm4601_vm9, %v11566_v21, %v4625_v60  ;;  %v3187_v43 = vrot.slane %v11631_v9, 2  ;;  %v11732_v26 = vrot.slane %v3826_v56, %v16263_v40 }
 0x256   :  { %v11741_v54 = vrot.slane %v3834_v27, %v16263_v40  ;;  %v11744_v39 = vrot.slane %v3834_v27, %v16265_v63  ;;  %v11747_v60 = vrot.slane %v3835_v41, %v16263_v40  ;;  %v11750_v56 = vrot.slane %v3835_v41, %v16265_v63  ;;  %3051 = vrot.lane.b32.xlu1 %v11300_v11, %s8702_s15  ;;  %v16333_v41 = vld [vmem:[#allocation99_spill] sm:$0xff]  ;;  %v11772_v12 = vpop.permute.xlu1 %3041 }
 0x257   :  { %16328 = vst [vmem:[#allocation35_spill] sm:$0xff] %v11732_v26  ;;  %v3836_v35 = vadd.f32 %v10999_v51, %v3700_v58  ;;  %v3701_v22 = vmul.f32 %v16281_v8, %v3565_v7  ;;  %v4627_v27 = vsel %vm4603_vm10, %v11581_v38, %v4626_v33  ;;  %v3284_v21 = vsel %vm3245_vm5, %v11631_v9, %v3187_v43  ;;  %v11774_v33 = vpop.permute.xlu0 %3043 }
 0x258   :  { %16329 = vst [vmem:[#allocation38_spill] sm:$0xff] %v11741_v54  ;;  %16330 = vst [vmem:[#allocation122_spill] sm:$0xff] %v11744_v39  ;;  %3049 = vrot.lane.b32.xlu0 %v16333_v41, %s8702_s15  ;;  %v4628_v11 = vsel %vm4605_vm11, %v11587_v59, %v4627_v27  ;;  %v3476_v16 = vmax.f32 %v16334_v57, %v3284_v21  ;;  %v4616_v58 = vsel %vm4595_vm6, %v11514_v6, %v11494_v0  ;;  %v3924_v27 = vld [vmem:[%s15535_s5 + $0xb0] sm:$0xff]  ;;  %v3923_v41 = vld [vmem:[%s15535_s5 + $0xa8] sm:$0xff] }
 0x259   :  { %16331 = vst [vmem:[#allocation123_spill] sm:$0xff] %v11747_v60  ;;  %16332 = vst [vmem:[#allocation124_spill] sm:$0xff] %v11750_v56  ;;  %v3181_v7 = vrot.slane %v11633_v13, 2  ;;  %5079 = vmatpush1.msra.mxu1 %v3926_v20  ;;  %5517 = vmatpush2.msra.mxu0 %v8369_v4  ;;  %v11777_v9 = vrot.slane %v3836_v35, %v16263_v40  ;;  %v11780_v43 = vrot.slane %v3836_v35, %v16265_v63  ;;  %v8368_v20 = vld [vmem:[%s15535_s5 + $0x4b8] sm:$0xff]  ;;  %v3922_v59 = vld [vmem:[%s15535_s5 + $0xa0] sm:$0xff] }
 0x25a   :  { %v3837_v57 = vadd.f32 %v11126_v23, %v3701_v22  ;;  %v4629_v21 = vsel %vm4607_vm13, %v11671_v15, %v4628_v11  ;;  %5080 = vmatprep.subr.mxu1 %v3925_v31  ;;  %v3572_v4 = vmax.f32 %v3476_v16, 0.0  ;;  %v4617_v35 = vsel %vm4597_vm7, %v11535_v46, %v4616_v58  ;;  %v16337_v31 = vld [vmem:[#allocation29_spill] sm:$0xff]  ;;  %5518 = vmatprep.subr.mxu0 %v8368_v20 }
 0x25b   :  { %16335 = vst [vmem:[#allocation40_spill] sm:$0xff] %v11777_v9  ;;  %16336 = vst [vmem:[#allocation125_spill] sm:$0xff] %v11780_v43  ;;  %8316 = vmatprep.mubr.msk.f32.mxu1 %vm4722_vm12, %v4629_v21  ;;  %v3278_v22 = vsel %vm3245_vm5, %v11633_v13, %v3181_v7  ;;  %v3188_v11 = vrot.slane %v11676_v1, 2  ;;  %3075 = vrot.lane.b32.xlu1 %v16337_v31, %s8702_s15  ;;  %v8367_v21 = vld [vmem:[%s15535_s5 + $0x4b0] sm:$0xff]  ;;  %v4618_v13 = vsel %vm4599_vm8, %v11552_v10, %v4617_v35  ;;  %v16340_v7 = vld [vmem:[#allocation37_spill] sm:$0xff]  ;;  %v11825_v35 = vpop.permute.xlu1 %3057 }
 0x25c   :  { %v11806_v16 = vrot.slane %v3837_v57, %v16263_v40  ;;  %v11809_v58 = vrot.slane %v3837_v57, %v16265_v63  ;;  %v3470_v15 = vmax.f32 %v16340_v7, %v3278_v22  ;;  %v16341_v31 = vld [vmem:[#allocation9_spill] sm:$0xff]  ;;  %v3708_v38 = vmul.f32 %v16280_v48, %v3572_v4  ;;  %v11827_v22 = vpop.permute.xlu0 %3045  ;;  %5081 = vmatpush1.msra.mxu1 %v3924_v27  ;;  %v3921_v7 = vld [vmem:[%s15535_s5 + $0x98] sm:$0xff] }
 0x25d   :  { %3073 = vrot.lane.b32.xlu0 %v16341_v31, %s8702_s15  ;;  %v4619_v46 = vsel %vm4601_vm9, %v11563_v24, %v4618_v13  ;;  %v3285_v57 = vsel %vm3245_vm5, %v11676_v1, %v3188_v11  ;;  %v3186_v6 = vrot.slane %v11678_v49, 2  ;;  %v16342_v13 = vld [vmem:[#allocation39_spill] sm:$0xff]  ;;  %v3189_v1 = vrot.slane %v11719_v17, 2  ;;  %5082 = vmatprep.subr.mxu1 %v3923_v41 }
 0x25e   :  { %16338 = vst [vmem:[#allocation126_spill] sm:$0xff] %v11806_v16  ;;  %16339 = vst [vmem:[#allocation127_spill] sm:$0xff] %v11809_v58  ;;  %v4620_v4 = vsel %vm4603_vm10, %v11578_v42, %v4619_v46  ;;  %v3566_v31 = vmax.f32 %v3470_v15, 0.0  ;;  %v3477_v24 = vmax.f32 %v16342_v13, %v3285_v57  ;;  %5519 = vmatpush2.msra.mxu0 %v8367_v21  ;;  %v3190_v20 = vrot.slane %v11721_v2, 2  ;;  %v3920_v46 = vld [vmem:[%s15535_s5 + $0x90] sm:$0xff]  ;;  %v16345_v57 = vld [vmem:[#allocation100_spill] sm:$0xff] }
 0x25f   :  { %v3844_v11 = vadd.f32 %v10999_v51, %v3708_v38  ;;  %v4621_v27 = vsel %vm4605_vm11, %v11584_v30, %v4620_v4  ;;  %v3283_v10 = vsel %vm3245_vm5, %v11678_v49, %v3186_v6  ;;  %3099 = vrot.lane.b32.xlu1 %v16343_v53, %s8702_s15  ;;  %5083 = vmatpush1.msra.mxu1 %v3922_v59  ;;  %v8366_v38 = vld [vmem:[%s15535_s5 + $0x4a8] sm:$0xff]  ;;  %v16344_v49 = vld [vmem:[#allocation42_spill] sm:$0xff] }
 0x260   :  { %v4622_v15 = vsel %vm4607_vm13, %v11732_v26, %v4621_v27  ;;  %v3702_v41 = vmul.f32 %v10750_v34, %v3566_v31  ;;  %v3573_v6 = vmax.f32 %v3477_v24, 0.0  ;;  %v3475_v21 = vmax.f32 %v16344_v49, %v3283_v10  ;;  %5084 = vmatprep.subr.mxu1 %v3921_v7  ;;  %v3919_v59 = vld [vmem:[%s15535_s5 + $0x88] sm:$0xff]  ;;  %v11869_v31 = vpop.permute.xlu1 %3059  ;;  %v11871_v7 = vpop.permute.xlu0 %3055  ;;  %v3918_v27 = vld [vmem:[%s15535_s5 + $0x80] sm:$0xff]  ;;  %5520 = vmatprep.subr.mxu0 %v8366_v38  ;;  %v3916_v38 = vld [vmem:[%s15535_s5 + $0x70] sm:$0xff] }
 0x261   :  { %3097 = vrot.lane.b32.xlu0 %v16345_v57, %s8702_s15  ;;  %v11860_v4 = vrot.slane %v3844_v11, %v16263_v40  ;;  %v11863_v13 = vrot.slane %v3844_v11, %v16265_v63  ;;  %4816 = vmatmul.mubr.f32.gmra.mxu1 %v4622_v15  ;;  %v3286_v24 = vsel %vm3245_vm5, %v11719_v17, %v3189_v1  ;;  %v16348_v57 = vld [vmem:[#allocation41_spill] sm:$0xff]  ;;  %v3917_v17 = vld [vmem:[%s15535_s5 + $0x78] sm:$0xff]  ;;  %v16349_v1 = vld [vmem:[#allocation44_spill] sm:$0xff]  ;;  %v3192_v26 = vrot.slane %v11774_v33, 2 }
 0x262   :  { %v3287_v10 = vsel %vm3245_vm5, %v11721_v2, %v3190_v20  ;;  %v11877_v49 = vadd.f32 %v10789_v29, %v3702_v41  ;;  %v3709_v11 = vmul.f32 %v16281_v8, %v3573_v6  ;;  %v3571_v15 = vmax.f32 %v3475_v21, 0.0  ;;  %5085 = vmatpush1.msra.mxu1 %v3920_v46  ;;  %v8365_v2 = vld [vmem:[%s15535_s5 + $0x4a0] sm:$0xff]  ;;  %v16350_v46 = vld [vmem:[#allocation103_spill] sm:$0xff] }
 0x263   :  { %16346 = vst [vmem:[#allocation37_spill] sm:$0xff] %v11860_v4  ;;  %16347 = vst [vmem:[#allocation39_spill] sm:$0xff] %v11863_v13  ;;  %v3478_v53 = vmax.f32 %v16348_v57, %v3286_v24  ;;  %v3479_v20 = vmax.f32 %v16349_v1, %v3287_v10  ;;  %v3191_v41 = vrot.slane %v11772_v12, 2  ;;  %v4638_v6 = vsel %vm4597_vm7, %v11706_v37, %v11726_v32  ;;  %v16352_v1 = vld [vmem:[#allocation102_spill] sm:$0xff] }
 0x264   :  { %3123 = vrot.lane.b32.xlu1 %v16350_v46, %s8702_s15  ;;  %5086 = vmatprep.subr.mxu1 %v3919_v59  ;;  %v11900_v21 = vrot.slane %v11877_v49, %v16265_v63  ;;  %v3845_v57 = vadd.f32 %v11126_v23, %v3709_v11  ;;  %v3707_v24 = vmul.f32 %v10963_v62, %v3571_v15  ;;  %v11912_v30 = vpop.permute.xlu1 %3061  ;;  %v11914_v11 = vpop.permute.xlu0 %3063 }
 0x265   :  { %v3574_v10 = vmax.f32 %v3478_v53, 0.0  ;;  %3121 = vrot.lane.b32.xlu0 %v16352_v1, %s8702_s15  ;;  %5087 = vmatpush1.msra.mxu1 %v3918_v27  ;;  %v3575_v32 = vmax.f32 %v3479_v20, 0.0  ;;  %v3288_v59 = vsel %vm3245_vm5, %v11772_v12, %v3191_v41  ;;  %v3289_v46 = vsel %vm3245_vm5, %v11774_v33, %v3192_v26  ;;  %v3915_v26 = vld [vmem:[%s15535_s5 + $0x68] sm:$0xff]  ;;  %v8500_v33 = vld [vmem:[%s15535_s5 + $0x838] sm:$0xff]  ;;  %v16356_v41 = vld [vmem:[#allocation46_spill] sm:$0xff] }
 0x266   :  { %16351 = vst [vmem:[#allocation42_spill] sm:$0xff] %v11900_v21  ;;  %v4639_v37 = vsel %vm4599_vm8, %v11744_v39, %v4638_v6  ;;  %5088 = vmatprep.subr.mxu1 %v3917_v17  ;;  %5521 = vmatpush2.msra.mxu0 %v8365_v2  ;;  %v11917_v53 = vrot.slane %v3845_v57, %v16263_v40  ;;  %v16355_v2 = vld [vmem:[#allocation43_spill] sm:$0xff] }
 0x267   :  { %v11920_v27 = vrot.slane %v3845_v57, %v16265_v63  ;;  %v3843_v12 = vadd.f32 %v16274_v50, %v3707_v24  ;;  %v3710_v15 = vmul.f32 %v10750_v34, %v3574_v10  ;;  %5089 = vmatpush1.msra.mxu1 %v3916_v38  ;;  %v3711_v17 = vmul.f32 %v10889_v36, %v3575_v32  ;;  %v16357_v24 = vld [vmem:[#allocation104_spill] sm:$0xff] }
 0x268   :  { %16353 = vst [vmem:[#allocation41_spill] sm:$0xff] %v11917_v53  ;;  %v3480_v20 = vmax.f32 %v16355_v2, %v3288_v59  ;;  %v3481_v6 = vmax.f32 %v16356_v41, %v3289_v46  ;;  %v4640_v57 = vsel %vm4601_vm9, %v11750_v56, %v4639_v37  ;;  %3147 = vrot.lane.b32.xlu1 %v16357_v24, %s8702_s15  ;;  %v3914_v38 = vld [vmem:[%s15535_s5 + $0x60] sm:$0xff]  ;;  %v16360_v37 = vld [vmem:[#allocation105_spill] sm:$0xff]  ;;  %v11954_v56 = vpop.permute.xlu1 %3065  ;;  %v11956_v39 = vpop.permute.xlu0 %3067 }
 0x269   :  { %16354 = vst [vmem:[#allocation44_spill] sm:$0xff] %v11920_v27  ;;  %v11941_v10 = vrot.slane %v3843_v12, %v16263_v40  ;;  %v11944_v1 = vrot.slane %v3843_v12, %v16265_v63  ;;  %v3846_v32 = vadd.f32 %v10789_v29, %v3710_v15  ;;  %v4641_v46 = vsel %vm4603_vm10, %v11780_v43, %v4640_v57  ;;  %v3913_v12 = vld [vmem:[%s15535_s5 + $0x58] sm:$0xff] }
 0x26a   :  { %3145 = vrot.lane.b32.xlu0 %v16360_v37, %s8702_s15  ;;  %v3847_v59 = vadd.f32 %v10892_v19, %v3711_v17  ;;  %v3576_v2 = vmax.f32 %v3480_v20, 0.0  ;;  %v3577_v41 = vmax.f32 %v3481_v6, 0.0  ;;  %v4642_v24 = vsel %vm4605_vm11, %v11809_v58, %v4641_v46  ;;  %5090 = vmatprep.subr.mxu1 %v3915_v26  ;;  %v3912_v26 = vld [vmem:[%s15535_s5 + $0x50] sm:$0xff] }
 0x26b   :  { %16358 = vst [vmem:[#allocation43_spill] sm:$0xff] %v11941_v10  ;;  %16359 = vst [vmem:[#allocation46_spill] sm:$0xff] %v11944_v1  ;;  %6262 = vmatprep.subr.mxu0 %v8500_v33  ;;  %v11964_v15 = vsel %vm4595_vm6, %v11863_v13, %v11944_v1  ;;  %v11967_v17 = vrot.slane %v3846_v32, %v16263_v40  ;;  %v11970_v20 = vrot.slane %v3846_v32, %v16265_v63  ;;  %v16372_v1 = vld [vmem:[#allocation27_spill] sm:$0xff] }
 0x26c   :  { %v4643_v6 = vsel %vm4607_vm13, %v11900_v21, %v4642_v24  ;;  %5091 = vmatpush1.msra.mxu1 %v3914_v38  ;;  %v11978_v33 = vrot.slane %v3847_v59, %v16263_v40  ;;  %v11981_v57 = vrot.slane %v3847_v59, %v16265_v63  ;;  %v3712_v46 = vmul.f32 %v10802_v55, %v3576_v2  ;;  %v3911_v24 = vld [vmem:[%s15535_s5 + $0x48] sm:$0xff]  ;;  %v12006_v58 = vpop.permute.xlu1 %3081  ;;  %v12008_v43 = vpop.permute.xlu0 %3069 }
 0x26d   :  { %16361 = vst [vmem:[#allocation128_spill] sm:$0xff] %v11967_v17  ;;  %16362 = vst [vmem:[#allocation129_spill] sm:$0xff] %v11970_v20  ;;  %v3713_v37 = vmul.f32 %v10843_v45, %v3577_v41  ;;  %8317 = vmatprep.mubr.msk.f32.mxu1 %vm4722_vm12, %v4643_v6  ;;  %v3199_v38 = vrot.slane %v11825_v35, 2  ;;  %v11992_v32 = vrot.slane %v11877_v49, %v16263_v40  ;;  %v3193_v2 = vrot.slane %v11827_v22, 2  ;;  %v3910_v41 = vld [vmem:[%s15535_s5 + $0x40] sm:$0xff] }
 0x26e   :  { %16363 = vst [vmem:[#allocation130_spill] sm:$0xff] %v11978_v33  ;;  %16364 = vst [vmem:[#allocation131_spill] sm:$0xff] %v11981_v57  ;;  %v4630_v59 = vsel %vm4595_vm6, %v11642_v28, %v11709_v44  ;;  %5092 = vmatprep.subr.mxu1 %v3913_v12  ;;  %v3848_v6 = vadd.f32 %v10827_v14, %v3712_v46  ;;  %v3200_v49 = vrot.slane %v11869_v31, 2  ;;  %v3909_v12 = vld [vmem:[%s15535_s5 + $0x38] sm:$0xff] }
 0x26f   :  { %16365 = vst [vmem:[#allocation132_spill] sm:$0xff] %v11992_v32  ;;  %v3849_v13 = vadd.f32 %v10886_v25, %v3713_v37  ;;  %v4631_v21 = vsel %vm4597_vm7, %v11703_v52, %v4630_v59  ;;  %5093 = vmatpush1.msra.mxu1 %v3912_v26  ;;  %v3296_v28 = vsel %vm3245_vm5, %v11825_v35, %v3199_v38  ;;  %v3198_v59 = vrot.slane %v11871_v7, 2  ;;  %v3908_v26 = vld [vmem:[%s15535_s5 + $0x30] sm:$0xff] }
 0x270   :  { %v4632_v37 = vsel %vm4599_vm8, %v11741_v54, %v4631_v21  ;;  %v3290_v46 = vsel %vm3245_vm5, %v11827_v22, %v3193_v2  ;;  %5094 = vmatprep.subr.mxu1 %v3911_v24  ;;  %v12024_v52 = vrot.slane %v3848_v6, %v16263_v40  ;;  %v12027_v42 = vrot.slane %v3848_v6, %v16265_v63  ;;  %v3907_v22 = vld [vmem:[%s15535_s5 + $0x28] sm:$0xff]  ;;  %v16370_v24 = vld [vmem:[#allocation23_spill] sm:$0xff] }
 0x271   :  { %v12030_v35 = vrot.slane %v3849_v13, %v16263_v40  ;;  %v12033_v21 = vrot.slane %v3849_v13, %v16265_v63  ;;  %5095 = vmatpush1.msra.mxu1 %v3910_v41  ;;  %v3488_v38 = vmax.f32 %v16370_v24, %v3296_v28  ;;  %v4633_v2 = vsel %vm4601_vm9, %v11747_v60, %v4632_v37  ;;  %v16371_v54 = vld [vmem:[#allocation45_spill] sm:$0xff]  ;;  %v3906_v13 = vld [vmem:[%s15535_s5 + $0x20] sm:$0xff]  ;;  %v12053_v24 = vpop.permute.xlu1 %3083  ;;  %v16383_v60 = vld [vmem:[#allocation54_spill] sm:$0xff] }
 0x272   :  { %16366 = vst [vmem:[#allocation133_spill] sm:$0xff] %v12024_v52  ;;  %16367 = vst [vmem:[#allocation134_spill] sm:$0xff] %v12027_v42  ;;  %v3482_v5 = vmax.f32 %v16371_v54, %v3290_v46  ;;  %v3297_v6 = vsel %vm3245_vm5, %v11869_v31, %v3200_v49  ;;  %5096 = vmatprep.subr.mxu1 %v3909_v12  ;;  %v4634_v41 = vsel %vm4603_vm10, %v11777_v9, %v4633_v2  ;;  %v12055_v54 = vpop.permute.xlu0 %3079  ;;  %v3905_v31 = vld [vmem:[%s15535_s5 + $0x18] sm:$0xff] }
 0x273   :  { %16368 = vst [vmem:[#allocation135_spill] sm:$0xff] %v12030_v35  ;;  %16369 = vst [vmem:[#allocation136_spill] sm:$0xff] %v12033_v21  ;;  %v3489_v3 = vmax.f32 %v16372_v1, %v3297_v6  ;;  %v3295_v28 = vsel %vm3245_vm5, %v11871_v7, %v3198_v59  ;;  %v3201_v37 = vrot.slane %v11912_v30, 2  ;;  %5097 = vmatpush1.msra.mxu1 %v3908_v26  ;;  %v3584_v49 = vmax.f32 %v3488_v38, 0.0  ;;  %v16373_v1 = vld [vmem:[#allocation47_spill] sm:$0xff]  ;;  %v3904_v7 = vld [vmem:[%s15535_s5 + $0x10] sm:$0xff] }
 0x274   :  { %v4635_v12 = vsel %vm4605_vm11, %v11806_v16, %v4634_v41  ;;  %v3578_v46 = vmax.f32 %v3482_v5, 0.0  ;;  %v3487_v2 = vmax.f32 %v16373_v1, %v3295_v28  ;;  %5098 = vmatprep.subr.mxu1 %v3907_v22  ;;  %v3202_v38 = vrot.slane %v11914_v11, 2  ;;  %v3903_v5 = vld [vmem:[%s15535_s5 + $0x8] sm:$0xff]  ;;  %v16374_v1 = vld [vmem:[#allocation48_spill] sm:$0xff] }
 0x275   :  { %v4636_v59 = vsel %vm4607_vm13, %v11992_v32, %v4635_v12  ;;  %v3585_v26 = vmax.f32 %v3489_v3, 0.0  ;;  %v3298_v6 = vsel %vm3245_vm5, %v11912_v30, %v3201_v37  ;;  %5099 = vmatpush1.msra.mxu1 %v3906_v13  ;;  %v3720_v22 = vmul.f32 %v10802_v55, %v3584_v49  ;;  %v3902_v3 = vld [vmem:[%s15535_s5] sm:$0xff]  ;;  %v12085_v12 = vpop.permute.xlu1 %3085 }
 0x276   :  { %4822 = vmatmul.mubr.f32.gmra.mxu1 %v4636_v59  ;;  %v3714_v41 = vmul.f32 %v10902_v18, %v3578_v46  ;;  %v3583_v28 = vmax.f32 %v3487_v2, 0.0  ;;  %v3490_v16 = vmax.f32 %v16374_v1, %v3298_v6  ;;  %5100 = vmatprep.subr.mxu1 %v3905_v31  ;;  %v3299_v13 = vsel %vm3245_vm5, %v11914_v11, %v3202_v38  ;;  %v12087_v46 = vpop.permute.xlu0 %3087  ;;  %v3959_v31 = vld [vmem:[%s15535_s5 + $0x1c8] sm:$0x3f]  ;;  %v3958_v6 = vld [vmem:[%s15535_s5 + $0x1c0] sm:$0x3f] }
 0x277   :  { %v3721_v30 = vmul.f32 %v10843_v45, %v3585_v26  ;;  %v3203_v37 = vrot.slane %v11954_v56, 2  ;;  %v3204_v49 = vrot.slane %v11956_v39, 2  ;;  %5101 = vmatpush1.msra.mxu1 %v3904_v7  ;;  %v3856_v2 = vadd.f32 %v10827_v14, %v3720_v22  ;;  %v16375_v1 = vld [vmem:[#allocation49_spill] sm:$0xff] }
 0x278   :  { %v3850_v59 = vadd.f32 %v10921_v61, %v3714_v41  ;;  %v3719_v26 = vmul.f32 %v10889_v36, %v3583_v28  ;;  %v3586_v11 = vmax.f32 %v3490_v16, 0.0  ;;  %5102 = vmatprep.subr.mxu1 %v3903_v5  ;;  %v3491_v7 = vmax.f32 %v16375_v1, %v3299_v13  ;;  %v3957_v16 = vld [vmem:[%s15535_s5 + $0x1b8] sm:$0xff]  ;;  %v16382_v1 = vld [vmem:[#allocation50_spill] sm:$0xff] }
 0x279   :  { %v3857_v38 = vadd.f32 %v10886_v25, %v3721_v30  ;;  %v3300_v32 = vsel %vm3245_vm5, %v11954_v56, %v3203_v37  ;;  %v3301_v22 = vsel %vm3245_vm5, %v11956_v39, %v3204_v49  ;;  %5103 = vmatpush1.msra.mxu1 %v3902_v3  ;;  %v12108_v5 = vrot.slane %v3856_v2, %v16263_v40  ;;  %v3956_v39 = vld [vmem:[%s15535_s5 + $0x1b0] sm:$0xff]  ;;  %v12131_v49 = vpop.permute.xlu1 %3089 }
 0x27a   :  { %v12111_v41 = vrot.slane %v3856_v2, %v16265_v63  ;;  %v12114_v28 = vrot.slane %v3850_v59, %v16263_v40  ;;  %v12117_v30 = vrot.slane %v3850_v59, %v16265_v63  ;;  %8323 = vmatprep.subr.msk.mxu1 %vm711_vm4, %v3959_v31  ;;  %v3855_v13 = vadd.f32 %v10892_v19, %v3719_v26  ;;  %v12133_v2 = vpop.permute.xlu0 %3091  ;;  %v3955_v31 = vld [vmem:[%s15535_s5 + $0x1a8] sm:$0xff] }
 0x27b   :  { %16376 = vst [vmem:[#allocation23_spill] sm:$0xff] %v12108_v5  ;;  %v12124_v56 = vrot.slane %v3857_v38, %v16263_v40  ;;  %v12127_v3 = vrot.slane %v3857_v38, %v16265_v63  ;;  %v3722_v37 = vmul.f32 %v10902_v18, %v3586_v11  ;;  %8324 = vmatpush2.msk.msra.mxu1 %vm711_vm4, %v3958_v6  ;;  %v3587_v59 = vmax.f32 %v3491_v7, 0.0  ;;  %v3954_v11 = vld [vmem:[%s15535_s5 + $0x1a0] sm:$0xff] }
 0x27c   :  { %16377 = vst [vmem:[#allocation45_spill] sm:$0xff] %v12111_v41  ;;  %16378 = vst [vmem:[#allocation27_spill] sm:$0xff] %v12114_v28  ;;  %v3492_v9 = vmax.f32 %v16382_v1, %v3300_v32  ;;  %v3493_v38 = vmax.f32 %v16383_v60, %v3301_v22  ;;  %v4652_v26 = vsel %vm4597_vm7, %v11920_v27, %v11964_v15  ;;  %5112 = vmatprep.subr.mxu1 %v3957_v16  ;;  %v3953_v15 = vld [vmem:[%s15535_s5 + $0x198] sm:$0xff] }
 0x27d   :  { %16379 = vst [vmem:[#allocation47_spill] sm:$0xff] %v12117_v30  ;;  %16380 = vst [vmem:[#allocation48_spill] sm:$0xff] %v12124_v56  ;;  %v12148_v6 = vrot.slane %v3855_v13, %v16263_v40  ;;  %v12151_v0 = vrot.slane %v3855_v13, %v16265_v63  ;;  %v3858_v7 = vadd.f32 %v10921_v61, %v3722_v37  ;;  %5113 = vmatpush2.msra.mxu1 %v3956_v39  ;;  %v3952_v13 = vld [vmem:[%s15535_s5 + $0x190] sm:$0xff] }
 0x27e   :  { %16381 = vst [vmem:[#allocation49_spill] sm:$0xff] %v12127_v3  ;;  %v4653_v60 = vsel %vm4599_vm8, %v11970_v20, %v4652_v26  ;;  %v3723_v32 = vmul.f32 %v10963_v62, %v3587_v59  ;;  %v3588_v22 = vmax.f32 %v3492_v9, 0.0  ;;  %v3589_v16 = vmax.f32 %v3493_v38, 0.0  ;;  %5114 = vmatprep.subr.mxu1 %v3955_v31  ;;  %v12181_v31 = vpop.permute.xlu1 %3105  ;;  %v12183_v38 = vpop.permute.xlu0 %3093  ;;  %v3951_v26 = vld [vmem:[%s15535_s5 + $0x188] sm:$0xff] }
 0x27f   :  { %16384 = vst [vmem:[#allocation50_spill] sm:$0xff] %v12148_v6  ;;  %16385 = vst [vmem:[#allocation54_spill] sm:$0xff] %v12151_v0  ;;  %v4654_v1 = vsel %vm4601_vm9, %v11981_v57, %v4653_v60  ;;  %v12168_v39 = vsel %vm4595_vm6, %v12108_v5, %v12148_v6  ;;  %v12173_v37 = vsel %vm4595_vm6, %v12111_v41, %v12151_v0  ;;  %5115 = vmatpush2.msra.mxu1 %v3954_v11 }
 0x280   :  { %v12176_v9 = vrot.slane %v3858_v7, %v16263_v40  ;;  %v12179_v59 = vrot.slane %v3858_v7, %v16265_v63  ;;  %v3859_v60 = vadd.f32 %v16274_v50, %v3723_v32  ;;  %v3724_v5 = vmul.f32 %v16280_v48, %v3588_v22  ;;  %5116 = vmatprep.subr.mxu1 %v3953_v15  ;;  %v3950_v7 = vld [vmem:[%s15535_s5 + $0x180] sm:$0xff] }
 0x281   :  { %v3725_v41 = vmul.f32 %v16281_v8, %v3589_v16  ;;  %v4655_v57 = vsel %vm4603_vm10, %v12027_v42, %v4654_v1  ;;  %v3211_v20 = vrot.slane %v12006_v58, 2  ;;  %v4644_v32 = vsel %vm4595_vm6, %v11860_v4, %v11941_v10  ;;  %5117 = vmatpush2.msra.mxu1 %v3952_v13 }
 0x282   :  { %16386 = vst [vmem:[#allocation137_spill] sm:$0xff] %v12176_v9  ;;  %16387 = vst [vmem:[#allocation138_spill] sm:$0xff] %v12179_v59  ;;  %v4656_v11 = vsel %vm4605_vm11, %v12033_v21, %v4655_v57  ;;  %v3205_v22 = vrot.slane %v12008_v43, 2  ;;  %v12204_v16 = vrot.slane %v3859_v60, %v16263_v40  ;;  %v12207_v15 = vrot.slane %v3859_v60, %v16265_v63  ;;  %v3949_v57 = vld [vmem:[%s15535_s5 + $0x178] sm:$0xff] }
 0x283   :  { %v3860_v1 = vadd.f32 %v10999_v51, %v3724_v5  ;;  %v3861_v42 = vadd.f32 %v11126_v23, %v3725_v41  ;;  %5118 = vmatprep.subr.mxu1 %v3951_v26  ;;  %v4657_v4 = vsel %vm4607_vm13, %v12117_v30, %v4656_v11  ;;  %v3308_v13 = vsel %vm3245_vm5, %v12006_v58, %v3211_v20  ;;  %v3948_v5 = vld [vmem:[%s15535_s5 + $0x170] sm:$0xff]  ;;  %v12240_v20 = vpop.permute.xlu0 %3103  ;;  %v16395_v30 = vld [vmem:[#allocation51_spill] sm:$0xff] }
 0x284   :  { %16388 = vst [vmem:[#allocation139_spill] sm:$0xff] %v12204_v16  ;;  %16389 = vst [vmem:[#allocation140_spill] sm:$0xff] %v12207_v15  ;;  %v4645_v21 = vsel %vm4597_vm7, %v11917_v53, %v4644_v32  ;;  %v3302_v60 = vsel %vm3245_vm5, %v12008_v43, %v3205_v22  ;;  %5119 = vmatpush2.msra.mxu1 %v3950_v7  ;;  %8318 = vmatprep.mubr.msk.f32.mxu1 %vm4722_vm12, %v4657_v4  ;;  %v12238_v43 = vpop.permute.xlu1 %3107  ;;  %v3947_v7 = vld [vmem:[%s15535_s5 + $0x168] sm:$0xff]  ;;  %v16394_v32 = vld [vmem:[#allocation52_spill] sm:$0xff]  ;;  %v3210_v0 = vrot.slane %v12055_v54, 2 }
 0x285   :  { %v12226_v41 = vrot.slane %v3860_v1, %v16263_v40  ;;  %v12229_v26 = vrot.slane %v3860_v1, %v16265_v63  ;;  %v12232_v11 = vrot.slane %v3861_v42, %v16263_v40  ;;  %v12235_v58 = vrot.slane %v3861_v42, %v16265_v63  ;;  %5120 = vmatprep.subr.mxu1 %v3949_v57  ;;  %v3946_v4 = vld [vmem:[%s15535_s5 + $0x160] sm:$0xff] }
 0x286   :  { %v3500_v22 = vmax.f32 %v16394_v32, %v3308_v13  ;;  %v4646_v1 = vsel %vm4599_vm8, %v11967_v17, %v4645_v21  ;;  %v3494_v53 = vmax.f32 %v16395_v30, %v3302_v60  ;;  %v3212_v42 = vrot.slane %v12053_v24, 2  ;;  %5121 = vmatpush2.msra.mxu1 %v3948_v5  ;;  %v3945_v21 = vld [vmem:[%s15535_s5 + $0x158] sm:$0xff] }
 0x287   :  { %16390 = vst [vmem:[#allocation141_spill] sm:$0xff] %v12226_v41  ;;  %16391 = vst [vmem:[#allocation142_spill] sm:$0xff] %v12229_v26  ;;  %v4647_v27 = vsel %vm4601_vm9, %v11978_v33, %v4646_v1  ;;  %v3213_v6 = vrot.slane %v12085_v12, 2  ;;  %v3214_v13 = vrot.slane %v12087_v46, 2  ;;  %5122 = vmatprep.subr.mxu1 %v3947_v7  ;;  %v16396_v33 = vld [vmem:[#allocation53_spill] sm:$0xff]  ;;  %v3307_v5 = vsel %vm3245_vm5, %v12055_v54, %v3210_v0 }
 0x288   :  { %16392 = vst [vmem:[#allocation143_spill] sm:$0xff] %v12232_v11  ;;  %16393 = vst [vmem:[#allocation144_spill] sm:$0xff] %v12235_v58  ;;  %v3596_v30 = vmax.f32 %v3500_v22, 0.0  ;;  %v4648_v57 = vsel %vm4603_vm10, %v12024_v52, %v4647_v27  ;;  %v3590_v60 = vmax.f32 %v3494_v53, 0.0  ;;  %v3309_v32 = vsel %vm3245_vm5, %v12053_v24, %v3212_v42  ;;  %5123 = vmatpush2.msra.mxu1 %v3946_v4  ;;  %v3944_v53 = vld [vmem:[%s15535_s5 + $0x150] sm:$0xff]  ;;  %v16397_v22 = vld [vmem:[#allocation55_spill] sm:$0xff] }
 0x289   :  { %v4649_v1 = vsel %vm4605_vm11, %v12030_v35, %v4648_v57  ;;  %v3501_v17 = vmax.f32 %v16396_v33, %v3309_v32  ;;  %v3310_v10 = vsel %vm3245_vm5, %v12085_v12, %v3213_v6  ;;  %v3499_v33 = vmax.f32 %v16397_v22, %v3307_v5  ;;  %5124 = vmatprep.subr.mxu1 %v3945_v21  ;;  %v3943_v0 = vld [vmem:[%s15535_s5 + $0x148] sm:$0xff]  ;;  %v12289_v57 = vpop.permute.xlu0 %3111  ;;  %v3942_v21 = vld [vmem:[%s15535_s5 + $0x140] sm:$0xff] }
 0x28a   :  { %v3732_v27 = vmul.f32 %v16280_v48, %v3596_v30  ;;  %v4650_v24 = vsel %vm4607_vm13, %v12114_v28, %v4649_v1  ;;  %v3726_v7 = vmul.f32 %v10750_v34, %v3590_v60  ;;  %v16398_v12 = vld [vmem:[#allocation57_spill] sm:$0xff]  ;;  %v3311_v42 = vsel %vm3245_vm5, %v12087_v46, %v3214_v13  ;;  %v12287_v30 = vpop.permute.xlu1 %3109  ;;  %v16399_v1 = vld [vmem:[#allocation58_spill] sm:$0xff]  ;;  %5125 = vmatpush2.msra.mxu1 %v3944_v53  ;;  %v3941_v46 = vld [vmem:[%s15535_s5 + $0x138] sm:$0xff] }
 0x28b   :  { %4828 = vmatmul.mubr.f32.gmra.mxu1 %v4650_v24  ;;  %v3597_v54 = vmax.f32 %v3501_v17, 0.0  ;;  %v3502_v6 = vmax.f32 %v16398_v12, %v3310_v10  ;;  %v3215_v4 = vrot.slane %v12131_v49, 2  ;;  %v3595_v17 = vmax.f32 %v3499_v33, 0.0  ;;  %5126 = vmatprep.subr.mxu1 %v3943_v0  ;;  %v16407_v28 = vld [vmem:[#allocation25_spill] sm:$0xff] }
 0x28c   :  { %v3868_v60 = vadd.f32 %v10999_v51, %v3732_v27  ;;  %v3862_v32 = vadd.f32 %v10789_v29, %v3726_v7  ;;  %v3503_v10 = vmax.f32 %v16399_v1, %v3311_v42  ;;  %v3216_v22 = vrot.slane %v12133_v2, 2  ;;  %v3940_v27 = vld [vmem:[%s15535_s5 + $0x130] sm:$0xff]  ;;  %5127 = vmatpush2.msra.mxu1 %v3942_v21 }
 0x28d   :  { %v3733_v13 = vmul.f32 %v16281_v8, %v3597_v54  ;;  %v3598_v5 = vmax.f32 %v3502_v6, 0.0  ;;  %v3312_v24 = vsel %vm3245_vm5, %v12131_v49, %v3215_v4  ;;  %v3939_v49 = vld [vmem:[%s15535_s5 + $0x128] sm:$0xff]  ;;  %v3731_v12 = vmul.f32 %v10963_v62, %v3595_v17  ;;  %5128 = vmatprep.subr.mxu1 %v3941_v46  ;;  %v3938_v4 = vld [vmem:[%s15535_s5 + $0x120] sm:$0xff]  ;;  %v3937_v17 = vld [vmem:[%s15535_s5 + $0x118] sm:$0xff] }
 0x28e   :  { %v12308_v7 = vrot.slane %v3868_v60, %v16263_v40  ;;  %v12311_v53 = vrot.slane %v3868_v60, %v16265_v63  ;;  %v12314_v33 = vrot.slane %v3862_v32, %v16263_v40  ;;  %v12317_v54 = vrot.slane %v3862_v32, %v16265_v63  ;;  %v16404_v60 = vld [vmem:[#allocation61_spill] sm:$0xff]  ;;  %5129 = vmatpush2.msra.mxu1 %v3940_v27 }
 0x28f   :  { %v3869_v0 = vadd.f32 %v11126_v23, %v3733_v13  ;;  %v3734_v6 = vmul.f32 %v10750_v34, %v3598_v5  ;;  %v3599_v42 = vmax.f32 %v3503_v10, 0.0  ;;  %v3504_v32 = vmax.f32 %v16404_v60, %v3312_v24  ;;  %v12346_v24 = vpop.permute.xlu1 %3113  ;;  %5130 = vmatprep.subr.mxu1 %v3939_v49 }
 0x290   :  { %16400 = vst [vmem:[#allocation52_spill] sm:$0xff] %v12308_v7  ;;  %16401 = vst [vmem:[#allocation51_spill] sm:$0xff] %v12311_v53  ;;  %v3313_v21 = vsel %vm3245_vm5, %v12133_v2, %v3216_v22  ;;  %v4666_v1 = vsel %vm4597_vm7, %v12127_v3, %v12173_v37  ;;  %v3223_v13 = vrot.slane %v12181_v31, 2  ;;  %v3867_v5 = vadd.f32 %v16274_v50, %v3731_v12  ;;  %v12348_v37 = vpop.permute.xlu0 %3115  ;;  %v3936_v22 = vld [vmem:[%s15535_s5 + $0x110] sm:$0xff]  ;;  %v3935_v12 = vld [vmem:[%s15535_s5 + $0x108] sm:$0xff] }
 0x291   :  { %16402 = vst [vmem:[#allocation53_spill] sm:$0xff] %v12314_v33  ;;  %16403 = vst [vmem:[#allocation55_spill] sm:$0xff] %v12317_v54  ;;  %v12339_v10 = vrot.slane %v3869_v0, %v16263_v40  ;;  %v12342_v46 = vrot.slane %v3869_v0, %v16265_v63  ;;  %v3870_v2 = vadd.f32 %v10789_v29, %v3734_v6  ;;  %v3600_v60 = vmax.f32 %v3504_v32, 0.0 }
 0x292   :  { %v3735_v27 = vmul.f32 %v10889_v36, %v3599_v42  ;;  %v3505_v3 = vmax.f32 %v16407_v28, %v3313_v21  ;;  %v4667_v0 = vsel %vm4599_vm8, %v12179_v59, %v4666_v1  ;;  %5131 = vmatpush2.msra.mxu1 %v3938_v4  ;;  %v12361_v6 = vrot.slane %v3867_v5, %v16263_v40  ;;  %v3934_v28 = vld [vmem:[%s15535_s5 + $0x100] sm:$0xff] }
 0x293   :  { %16405 = vst [vmem:[#allocation57_spill] sm:$0xff] %v12339_v10  ;;  %16406 = vst [vmem:[#allocation58_spill] sm:$0xff] %v12342_v46  ;;  %v12364_v49 = vrot.slane %v3867_v5, %v16265_v63  ;;  %v12367_v35 = vrot.slane %v3870_v2, %v16263_v40  ;;  %v12370_v42 = vrot.slane %v3870_v2, %v16265_v63  ;;  %5132 = vmatprep.subr.mxu1 %v3937_v17  ;;  %v8432_v5 = vld [vmem:[%s15535_s5 + $0x668] sm:$0xff] }
 0x294   :  { %v3871_v4 = vadd.f32 %v10892_v19, %v3735_v27  ;;  %v3736_v32 = vmul.f32 %v10802_v55, %v3600_v60  ;;  %v3601_v21 = vmax.f32 %v3505_v3, 0.0  ;;  %v4668_v1 = vsel %vm4601_vm9, %v12207_v15, %v4667_v0  ;;  %5133 = vmatpush2.msra.mxu1 %v3936_v22  ;;  %v16412_v15 = vld [vmem:[#allocation65_spill] sm:$0xff] }
 0x295   :  { %16408 = vst [vmem:[#allocation61_spill] sm:$0xff] %v12367_v35  ;;  %16409 = vst [vmem:[#allocation25_spill] sm:$0xff] %v12370_v42  ;;  %v12385_v17 = vsel %vm4595_vm6, %v12308_v7, %v12361_v6  ;;  %v4679_v2 = vsel %vm4595_vm6, %v12311_v53, %v12364_v49  ;;  %v4669_v3 = vsel %vm4603_vm10, %v12229_v26, %v4668_v1  ;;  %5134 = vmatprep.subr.mxu1 %v3935_v12  ;;  %v12409_v12 = vpop.permute.xlu1 %3129 }
 0x296   :  { %v3320_v27 = vsel %vm3245_vm5, %v12181_v31, %v3223_v13  ;;  %v12395_v22 = vrot.slane %v3871_v4, %v16263_v40  ;;  %v12398_v60 = vrot.slane %v3871_v4, %v16265_v63  ;;  %v3872_v0 = vadd.f32 %v10827_v14, %v3736_v32  ;;  %5135 = vmatpush2.msra.mxu1 %v3934_v28  ;;  %v12411_v4 = vpop.permute.xlu0 %3117 }
 0x297   :  { %v3737_v7 = vmul.f32 %v10843_v45, %v3601_v21  ;;  %v4670_v53 = vsel %vm4605_vm11, %v12235_v58, %v4669_v3  ;;  %v3512_v1 = vmax.f32 %v16412_v15, %v3320_v27  ;;  %v4659_v31 = vsel %vm4597_vm7, %v12124_v56, %v12168_v39  ;;  %5860 = vmatprep.subr.mxu1 %v8432_v5 }
 0x298   :  { %16410 = vst [vmem:[#allocation145_spill] sm:$0xff] %v12395_v22  ;;  %16411 = vst [vmem:[#allocation146_spill] sm:$0xff] %v12398_v60  ;;  %v3217_v13 = vrot.slane %v12183_v38, 2  ;;  %v12414_v32 = vrot.slane %v3872_v0, %v16263_v40  ;;  %v12417_v28 = vrot.slane %v3872_v0, %v16265_v63  ;;  %v4671_v15 = vsel %vm4607_vm13, %v12317_v54, %v4670_v53  ;;  %v16417_v53 = vld [vmem:[#allocation7_spill] sm:$0xff] }
 0x299   :  { %v3873_v21 = vadd.f32 %v10886_v25, %v3737_v7  ;;  %8319 = vmatprep.mubr.msk.f32.mxu1 %vm4722_vm12, %v4671_v15  ;;  %v3608_v39 = vmax.f32 %v3512_v1, 0.0  ;;  %v4660_v3 = vsel %vm4599_vm8, %v12176_v9, %v4659_v31  ;;  %v3224_v27 = vrot.slane %v12238_v43, 2  ;;  %v16418_v9 = vld [vmem:[#allocation67_spill] sm:$0xff] }
 0x29a   :  { %16413 = vst [vmem:[#allocation65_spill] sm:$0xff] %v12414_v32  ;;  %16414 = vst [vmem:[#allocation147_spill] sm:$0xff] %v12417_v28  ;;  %v3314_v5 = vsel %vm3245_vm5, %v12183_v38, %v3217_v13  ;;  %v4661_v7 = vsel %vm4601_vm9, %v12204_v16, %v4660_v3  ;;  %v3222_v13 = vrot.slane %v12240_v20, 2  ;;  %v3225_v3 = vrot.slane %v12287_v30, 2 }
 0x29b   :  { %v12429_v56 = vrot.slane %v3873_v21, %v16263_v40  ;;  %v12432_v0 = vrot.slane %v3873_v21, %v16265_v63  ;;  %v3506_v15 = vmax.f32 %v16417_v53, %v3314_v5  ;;  %v3744_v1 = vmul.f32 %v10802_v55, %v3608_v39  ;;  %v12455_v53 = vpop.permute.xlu0 %3127 }
 0x29c   :  { %v4662_v31 = vsel %vm4603_vm10, %v12226_v41, %v4661_v7  ;;  %v3321_v38 = vsel %vm3245_vm5, %v12238_v43, %v3224_v27  ;;  %v3319_v7 = vsel %vm3245_vm5, %v12240_v20, %v3222_v13  ;;  %v3226_v43 = vrot.slane %v12289_v57, 2  ;;  %v12453_v27 = vpop.permute.xlu1 %3131  ;;  %v16422_v13 = vld [vmem:[#allocation70_spill] sm:$0xff] }
 0x29d   :  { %16415 = vst [vmem:[#allocation148_spill] sm:$0xff] %v12429_v56  ;;  %16416 = vst [vmem:[#allocation149_spill] sm:$0xff] %v12432_v0  ;;  %v4663_v54 = vsel %vm4605_vm11, %v12232_v11, %v4662_v31  ;;  %v3602_v21 = vmax.f32 %v3506_v15, 0.0  ;;  %v3513_v58 = vmax.f32 %v16418_v9, %v3321_v38  ;;  %v3880_v5 = vadd.f32 %v10827_v14, %v3744_v1  ;;  %v16419_v31 = vld [vmem:[#allocation69_spill] sm:$0xff] }
 0x29e   :  { %v4664_v39 = vsel %vm4607_vm13, %v12314_v33, %v4663_v54  ;;  %v3511_v38 = vmax.f32 %v16419_v31, %v3319_v7  ;;  %v3322_v1 = vsel %vm3245_vm5, %v12287_v30, %v3225_v3  ;;  %v3323_v11 = vsel %vm3245_vm5, %v12289_v57, %v3226_v43  ;;  %v16423_v7 = vld [vmem:[#allocation71_spill] sm:$0xff] }
 0x29f   :  { %4834 = vmatmul.mubr.f32.gmra.mxu1 %v4664_v39  ;;  %v3738_v15 = vmul.f32 %v10902_v18, %v3602_v21  ;;  %v3609_v9 = vmax.f32 %v3513_v58, 0.0  ;;  %v12462_v54 = vrot.slane %v3880_v5, %v16263_v40  ;;  %v12465_v20 = vrot.slane %v3880_v5, %v16265_v63 }
 0x2a0   :  { %v3514_v33 = vmax.f32 %v16422_v13, %v3322_v1  ;;  %v3607_v21 = vmax.f32 %v3511_v38, 0.0  ;;  %v3515_v31 = vmax.f32 %v16423_v7, %v3323_v11  ;;  %v3227_v30 = vrot.slane %v12346_v24, 2  ;;  %v12492_v13 = vpop.permute.xlu0 %3137 }
 0x2a1   :  { %16420 = vst [vmem:[#allocation7_spill] sm:$0xff] %v12462_v54  ;;  %16421 = vst [vmem:[#allocation67_spill] sm:$0xff] %v12465_v20  ;;  %v3874_v39 = vadd.f32 %v10921_v61, %v3738_v15  ;;  %v3745_v58 = vmul.f32 %v10843_v45, %v3609_v9  ;;  %v3228_v3 = vrot.slane %v12348_v37, 2  ;;  %v4680_v5 = vsel %vm4597_vm7, %v12342_v46, %v4679_v2  ;;  %v12490_v2 = vpop.permute.xlu1 %3133 }
 0x2a2   :  { %v3610_v41 = vmax.f32 %v3514_v33, 0.0  ;;  %v3743_v15 = vmul.f32 %v10889_v36, %v3607_v21  ;;  %v3611_v33 = vmax.f32 %v3515_v31, 0.0  ;;  %v3324_v9 = vsel %vm3245_vm5, %v12346_v24, %v3227_v30  ;;  %v16429_v30 = vld [vmem:[#allocation74_spill] sm:$0xff] }
 0x2a3   :  { %v12478_v1 = vrot.slane %v3874_v39, %v16263_v40  ;;  %v12481_v57 = vrot.slane %v3874_v39, %v16265_v63  ;;  %v3881_v43 = vadd.f32 %v10886_v25, %v3745_v58  ;;  %v3325_v38 = vsel %vm3245_vm5, %v12348_v37, %v3228_v3 }
 0x2a4   :  { %v3746_v11 = vmul.f32 %v10902_v18, %v3610_v41  ;;  %v3879_v21 = vadd.f32 %v10892_v19, %v3743_v15  ;;  %v16428_v41 = vld [vmem:[#allocation72_spill] sm:$0xff]  ;;  %v3747_v24 = vmul.f32 %v10963_v62, %v3611_v33  ;;  %v3517_v37 = vmax.f32 %v16429_v30, %v3325_v38 }
 0x2a5   :  { %16424 = vst [vmem:[#allocation69_spill] sm:$0xff] %v12478_v1  ;;  %16425 = vst [vmem:[#allocation70_spill] sm:$0xff] %v12481_v57  ;;  %v12495_v39 = vrot.slane %v3881_v43, %v16263_v40  ;;  %v12498_v58 = vrot.slane %v3881_v43, %v16265_v63  ;;  %v3516_v7 = vmax.f32 %v16428_v41, %v3324_v9 }
 0x2a6   :  { %v3882_v31 = vadd.f32 %v10921_v61, %v3746_v11  ;;  %v4681_v3 = vsel %vm4599_vm8, %v12370_v42, %v4680_v5  ;;  %v12508_v46 = vrot.slane %v3879_v21, %v16263_v40  ;;  %v12511_v16 = vrot.slane %v3879_v21, %v16265_v63 }
 0x2a7   :  { %16426 = vst [vmem:[#allocation71_spill] sm:$0xff] %v12495_v39  ;;  %16427 = vst [vmem:[#allocation150_spill] sm:$0xff] %v12498_v58  ;;  %v3612_v43 = vmax.f32 %v3516_v7, 0.0  ;;  %v4682_v15 = vsel %vm4601_vm9, %v12398_v60, %v4681_v3  ;;  %v3883_v33 = vadd.f32 %v16274_v50, %v3747_v24  ;;  %v3613_v38 = vmax.f32 %v3517_v37, 0.0  ;;  %v3140_v3 = vpop.permute.xlu1 %3139  ;;  %v16439_v60 = vld [vmem:[#allocation75_spill] sm:$0xff] }
 0x2a8   :  { %v12516_v9 = vrot.slane %v3882_v31, %v16263_v40  ;;  %v12519_v11 = vrot.slane %v3882_v31, %v16265_v63  ;;  %v12525_v5 = vsel %vm4595_vm6, %v12462_v54, %v12508_v46  ;;  %v12530_v21 = vsel %vm4595_vm6, %v12465_v20, %v12511_v16  ;;  %v3136_v54 = vpop.permute.xlu0 %3135 }
 0x2a9   :  { %v3748_v41 = vmul.f32 %v16280_v48, %v3612_v43  ;;  %v4683_v7 = vsel %vm4603_vm10, %v12417_v28, %v4682_v15  ;;  %v12536_v31 = vrot.slane %v3883_v33, %v16263_v40  ;;  %v12539_v24 = vrot.slane %v3883_v33, %v16265_v63 }
 0x2aa   :  { %16430 = vst [vmem:[#allocation72_spill] sm:$0xff] %v12516_v9  ;;  %16431 = vst [vmem:[#allocation74_spill] sm:$0xff] %v12519_v11  ;;  %v3749_v30 = vmul.f32 %v16281_v8, %v3613_v38  ;;  %v4684_v37 = vsel %vm4605_vm11, %v12432_v0, %v4683_v7  ;;  %v3235_v15 = vrot.slane %v12409_v12, 2  ;;  %v4673_v28 = vsel %vm4597_vm7, %v12339_v10, %v12385_v17 }
 0x2ab   :  { %16432 = vst [vmem:[#allocation151_spill] sm:$0xff] %v12536_v31  ;;  %16433 = vst [vmem:[#allocation152_spill] sm:$0xff] %v12539_v24  ;;  %v3884_v20 = vadd.f32 %v10999_v51, %v3748_v41  ;;  %v4685_v43 = vsel %vm4607_vm13, %v12481_v57, %v4684_v37  ;;  %v4674_v38 = vsel %vm4599_vm8, %v12367_v35, %v4673_v28  ;;  %v3229_v7 = vrot.slane %v12411_v4, 2  ;;  %v16438_v35 = vld [vmem:[#allocation77_spill] sm:$0xff] }
 0x2ac   :  { %v3885_v33 = vadd.f32 %v11126_v23, %v3749_v30  ;;  %8320 = vmatprep.mubr.msk.f32.mxu1 %vm4722_vm12, %v4685_v43  ;;  %v3236_v41 = vrot.slane %v12453_v27, 2  ;;  %v3332_v17 = vsel %vm3245_vm5, %v12409_v12, %v3235_v15  ;;  %v4675_v30 = vsel %vm4601_vm9, %v12395_v22, %v4674_v38 }
 0x2ad   :  { %v12558_v0 = vrot.slane %v3884_v20, %v16263_v40  ;;  %v12561_v37 = vrot.slane %v3884_v20, %v16265_v63  ;;  %v3524_v57 = vmax.f32 %v16438_v35, %v3332_v17  ;;  %v4676_v10 = vsel %vm4603_vm10, %v12414_v32, %v4675_v30  ;;  %v16440_v17 = vld [vmem:[#allocation78_spill] sm:$0xff]  ;;  %v2976_v30 = vpop.permute.xlu1 %2975  ;;  %v12587_v32 = vpop.permute.xlu0 %3141 }
 0x2ae   :  { %v12568_v43 = vrot.slane %v3885_v33, %v16263_v40  ;;  %v12571_v28 = vrot.slane %v3885_v33, %v16265_v63  ;;  %v4677_v20 = vsel %vm4605_vm11, %v12429_v56, %v4676_v10  ;;  %v3326_v12 = vsel %vm3245_vm5, %v12411_v4, %v3229_v7 }
 0x2af   :  { %16434 = vst [vmem:[#allocation153_spill] sm:$0xff] %v12558_v0  ;;  %16435 = vst [vmem:[#allocation154_spill] sm:$0xff] %v12561_v37  ;;  %v3333_v15 = vsel %vm3245_vm5, %v12453_v27, %v3236_v41  ;;  %v3234_v38 = vrot.slane %v12455_v53, 2  ;;  %v3620_v22 = vmax.f32 %v3524_v57, 0.0  ;;  %v4678_v33 = vsel %vm4607_vm13, %v12478_v1, %v4677_v20  ;;  %v16441_v1 = vld [vmem:[#allocation79_spill] sm:$0xff] }
 0x2b0   :  { %16436 = vst [vmem:[#allocation155_spill] sm:$0xff] %v12568_v43  ;;  %16437 = vst [vmem:[#allocation156_spill] sm:$0xff] %v12571_v28  ;;  %v3518_v35 = vmax.f32 %v16439_v60, %v3326_v12  ;;  %v3525_v42 = vmax.f32 %v16440_v17, %v3333_v15  ;;  %4840 = vmatmul.mubr.f32.gmra.mxu1 %v4678_v33  ;;  %v3237_v4 = vrot.slane %v12490_v2, 2  ;;  %v3239_v27 = vrot.slane %v12492_v13, 2 }
 0x2b1   :  { %v3331_v10 = vsel %vm3245_vm5, %v12455_v53, %v3234_v38  ;;  %v3240_v7 = vrot.slane %v3140_v3, 2  ;;  %v3756_v57 = vmul.f32 %v16280_v48, %v3620_v22  ;;  %v3238_v53 = vrot.slane %v3136_v54, 2  ;;  %v16443_v48 = vld [vmem:[#allocation82_spill] sm:$0xff] }
 0x2b2   :  { %v3614_v41 = vmax.f32 %v3518_v35, 0.0  ;;  %v3621_v20 = vmax.f32 %v3525_v42, 0.0  ;;  %v3523_v60 = vmax.f32 %v16441_v1, %v3331_v10  ;;  %v3334_v12 = vsel %vm3245_vm5, %v12490_v2, %v3237_v4  ;;  %v16442_v35 = vld [vmem:[#allocation81_spill] sm:$0xff]  ;;  %v16444_v10 = vld [vmem:[#allocation83_spill] sm:$0xff] }
 0x2b3   :  { %v3336_v15 = vsel %vm3245_vm5, %v12492_v13, %v3239_v27  ;;  %v3337_v33 = vsel %vm3245_vm5, %v3140_v3, %v3240_v7  ;;  %v3892_v38 = vadd.f32 %v10999_v51, %v3756_v57  ;;  %v3526_v42 = vmax.f32 %v16442_v35, %v3334_v12  ;;  %v3006_v7 = vpop.permute.xlu1 %3005  ;;  %v12615_v57 = vpop.permute.xlu0 %2981 }
 0x2b4   :  { %v3750_v17 = vmul.f32 %v10750_v34, %v3614_v41  ;;  %v3757_v56 = vmul.f32 %v16281_v8, %v3621_v20  ;;  %v3619_v22 = vmax.f32 %v3523_v60, 0.0  ;;  %v3528_v1 = vmax.f32 %v16443_v48, %v3336_v15  ;;  %v16488_v8 = vld [vmem:[#allocation17_spill] sm:$0xff] }
 0x2b5   :  { %v3529_v26 = vmax.f32 %v16444_v10, %v3337_v33  ;;  %v3335_v2 = vsel %vm3245_vm5, %v3136_v54, %v3238_v53  ;;  %v12608_v13 = vrot.slane %v3892_v38, %v16263_v40  ;;  %v12611_v3 = vrot.slane %v3892_v38, %v16265_v63 }
 0x2b6   :  { %v3886_v4 = vadd.f32 %v10789_v29, %v3750_v17  ;;  %v3893_v27 = vadd.f32 %v11126_v23, %v3757_v56  ;;  %v3755_v41 = vmul.f32 %v10963_v62, %v3619_v22  ;;  %v3622_v48 = vmax.f32 %v3526_v42, 0.0  ;;  %v16451_v17 = vld [vmem:[#allocation84_spill] sm:$0xff] }
 0x2b7   :  { %16445 = vst [vmem:[#allocation77_spill] sm:$0xff] %v12608_v13  ;;  %16446 = vst [vmem:[#allocation75_spill] sm:$0xff] %v12611_v3  ;;  %v3624_v20 = vmax.f32 %v3528_v1, 0.0  ;;  %v3625_v60 = vmax.f32 %v3529_v26, 0.0  ;;  %v3527_v22 = vmax.f32 %v16451_v17, %v3335_v2  ;;  %v4694_v35 = vsel %vm4597_vm7, %v12498_v58, %v12530_v21 }
 0x2b8   :  { %v12619_v54 = vrot.slane %v3886_v4, %v16263_v40  ;;  %v12622_v12 = vrot.slane %v3886_v4, %v16265_v63  ;;  %v12625_v15 = vrot.slane %v3893_v27, %v16263_v40  ;;  %v12628_v33 = vrot.slane %v3893_v27, %v16265_v63 }
 0x2b9   :  { %v3891_v56 = vadd.f32 %v16274_v50, %v3755_v41  ;;  %v3758_v53 = vmul.f32 %v10750_v34, %v3622_v48  ;;  %v3760_v38 = vmul.f32 %v10802_v55, %v3624_v20  ;;  %v3761_v26 = vmul.f32 %v10843_v45, %v3625_v60  ;;  %v3030_v60 = vpop.permute.xlu1 %3029 }
 0x2ba   :  { %16447 = vst [vmem:[#allocation78_spill] sm:$0xff] %v12619_v54  ;;  %16448 = vst [vmem:[#allocation79_spill] sm:$0xff] %v12622_v12  ;;  %v3158_v42 = vrot.slane %v2976_v30, 2  ;;  %v4687_v1 = vsel %vm4597_vm7, %v12495_v39, %v12525_v5  ;;  %v3623_v48 = vmax.f32 %v3527_v22, 0.0  ;;  %v4695_v21 = vsel %vm4599_vm8, %v12519_v11, %v4694_v35  ;;  %v3000_v5 = vpop.permute.xlu0 %2999 }
 0x2bb   :  { %16449 = vst [vmem:[#allocation81_spill] sm:$0xff] %v12625_v15  ;;  %16450 = vst [vmem:[#allocation82_spill] sm:$0xff] %v12628_v33  ;;  %v12642_v10 = vrot.slane %v3891_v56, %v16263_v40  ;;  %v12645_v4 = vrot.slane %v3891_v56, %v16265_v63  ;;  %v3894_v27 = vadd.f32 %v10789_v29, %v3758_v53  ;;  %v3241_v58 = vrot.slane %v12587_v32, 2 }
 0x2bc   :  { %v3896_v41 = vadd.f32 %v10827_v14, %v3760_v38  ;;  %v3897_v2 = vadd.f32 %v10886_v25, %v3761_v26  ;;  %v3255_v20 = vsel %vm3245_vm5, %v2976_v30, %v3158_v42  ;;  %v3759_v42 = vmul.f32 %v10889_v36, %v3623_v48 }
 0x2bd   :  { %v12656_v17 = vsel %vm4595_vm6, %v12608_v13, %v12642_v10  ;;  %v12661_v56 = vsel %vm4595_vm6, %v12611_v3, %v12645_v4  ;;  %v12664_v53 = vrot.slane %v3894_v27, %v16263_v40  ;;  %v12667_v38 = vrot.slane %v3894_v27, %v16265_v63  ;;  %v16457_v3 = vld [vmem:[#allocation5_spill] sm:$0xff] }
 0x2be   :  { %v12670_v30 = vrot.slane %v3896_v41, %v16263_v40  ;;  %v12673_v26 = vrot.slane %v3896_v41, %v16265_v63  ;;  %v12676_v22 = vrot.slane %v3897_v2, %v16263_v40  ;;  %v12679_v35 = vrot.slane %v3897_v2, %v16265_v63 }
 0x2bf   :  { %16452 = vst [vmem:[#allocation83_spill] sm:$0xff] %v12664_v53  ;;  %16453 = vst [vmem:[#allocation84_spill] sm:$0xff] %v12667_v38  ;;  %v4696_v13 = vsel %vm4601_vm9, %v12539_v24, %v4695_v21  ;;  %v3447_v27 = vmax.f32 %v16457_v3, %v3255_v20  ;;  %v4688_v39 = vsel %vm4599_vm8, %v12516_v9, %v4687_v1  ;;  %v3173_v2 = vrot.slane %v3006_v7, 2 }
 0x2c0   :  { %16454 = vst [vmem:[#allocation157_spill] sm:$0xff] %v12673_v26  ;;  %16455 = vst [vmem:[#allocation158_spill] sm:$0xff] %v12676_v22  ;;  %v4697_v41 = vsel %vm4603_vm10, %v12561_v37, %v4696_v13  ;;  %v4689_v11 = vsel %vm4601_vm9, %v12536_v31, %v4688_v39  ;;  %v3895_v51 = vadd.f32 %v10892_v19, %v3759_v42  ;;  %v3054_v31 = vpop.permute.xlu1 %3053  ;;  %v3024_v42 = vpop.permute.xlu0 %3023 }
 0x2c1   :  { %16456 = vst [vmem:[#allocation159_spill] sm:$0xff] %v12679_v35  ;;  %v4698_v48 = vsel %vm4605_vm11, %v12571_v28, %v4697_v41  ;;  %v3543_v21 = vmax.f32 %v3447_v27, 0.0  ;;  %v4690_v3 = vsel %vm4603_vm10, %v12558_v0, %v4689_v11  ;;  %v3338_v39 = vsel %vm3245_vm5, %v12587_v32, %v3241_v58  ;;  %v16461_v58 = vld [vmem:[#allocation26_spill] sm:$0xff] }
 0x2c2   :  { %v4699_v1 = vsel %vm4607_vm13, %v12622_v12, %v4698_v48  ;;  %v4691_v13 = vsel %vm4605_vm11, %v12568_v43, %v4690_v3  ;;  %v3270_v20 = vsel %vm3245_vm5, %v3006_v7, %v3173_v2  ;;  %v12705_v9 = vrot.slane %v3895_v51, %v16263_v40  ;;  %v16460_v48 = vld [vmem:[#allocation85_spill] sm:$0xff] }
 0x2c3   :  { %v12708_v27 = vrot.slane %v3895_v51, %v16265_v63  ;;  %8321 = vmatprep.mubr.msk.f32.mxu1 %vm4722_vm12, %v4699_v1  ;;  %v3679_v11 = vmul.f32 %v10889_v36, %v3543_v21  ;;  %v4692_v41 = vsel %vm4607_vm13, %v12619_v54, %v4691_v13  ;;  %v3530_v32 = vmax.f32 %v16460_v48, %v3338_v39  ;;  %v16463_v39 = vld [vmem:[#allocation66_spill] sm:$0xff]  ;;  %v16464_v48 = vld [vmem:[#allocation68_spill] sm:$0xff] }
 0x2c4   :  { %16458 = vst [vmem:[#allocation5_spill] sm:$0xff] %v12705_v9  ;;  %4846 = vmatmul.mubr.f32.gmra.mxu1 %v4692_v41  ;;  %v3462_v7 = vmax.f32 %v16461_v58, %v3270_v20  ;;  %v3161_v2 = vrot.slane %v12615_v57, 2  ;;  %v3185_v3 = vrot.slane %v3030_v60, 2  ;;  %v3170_v0 = vrot.slane %v3000_v5, 2 }
 0x2c5   :  { %16459 = vst [vmem:[#allocation160_spill] sm:$0xff] %v12708_v27  ;;  %v3815_v43 = vadd.f32 %v10892_v19, %v3679_v11  ;;  %v3197_v51 = vrot.slane %v3054_v31, 2  ;;  %v3182_v12 = vrot.slane %v3024_v42, 2  ;;  %v3626_v28 = vmax.f32 %v3530_v32, 0.0  ;;  %v16465_v32 = vld [vmem:[#allocation80_spill] sm:$0xff] }
 0x2c6   :  { %v3558_v1 = vmax.f32 %v3462_v7, 0.0  ;;  %v3258_v21 = vsel %vm3245_vm5, %v12615_v57, %v3161_v2  ;;  %v3282_v13 = vsel %vm3245_vm5, %v3030_v60, %v3185_v3  ;;  %v3267_v54 = vsel %vm3245_vm5, %v3000_v5, %v3170_v0  ;;  %v16466_v60 = vld [vmem:[#allocation76_spill] sm:$0xff]  ;;  %v16467_v0 = vld [vmem:[#allocation86_spill] sm:$0xff] }
 0x2c7   :  { %v12722_v41 = vrot.slane %v3815_v43, %v16263_v40  ;;  %v3450_v20 = vmax.f32 %v16463_v39, %v3258_v21  ;;  %v3474_v58 = vmax.f32 %v16464_v48, %v3282_v13  ;;  %v3762_v11 = vmul.f32 %v10902_v18, %v3626_v28 }
 0x2c8   :  { %v3694_v37 = vmul.f32 %v10750_v34, %v3558_v1  ;;  %v3459_v7 = vmax.f32 %v16465_v32, %v3267_v54  ;;  %v3294_v24 = vsel %vm3245_vm5, %v3054_v31, %v3197_v51  ;;  %v3279_v23 = vsel %vm3245_vm5, %v3024_v42, %v3182_v12 }
 0x2c9   :  { %16462 = vst [vmem:[#allocation85_spill] sm:$0xff] %v12722_v41  ;;  %v3546_v57 = vmax.f32 %v3450_v20, 0.0  ;;  %v3570_v2 = vmax.f32 %v3474_v58, 0.0  ;;  %v3486_v3 = vmax.f32 %v16466_v60, %v3294_v24  ;;  %v3898_v21 = vadd.f32 %v10921_v61, %v3762_v11 }
 0x2ca   :  { %v3830_v13 = vadd.f32 %v10789_v29, %v3694_v37  ;;  %v3555_v39 = vmax.f32 %v3459_v7, 0.0  ;;  %v3471_v5 = vmax.f32 %v16467_v0, %v3279_v23  ;;  %v4708_v31 = vsel %vm4597_vm7, %v12628_v33, %v12661_v56 }
 0x2cb   :  { %v3682_v28 = vmul.f32 %v10902_v18, %v3546_v57  ;;  %v3706_v1 = vmul.f32 %v10902_v18, %v3570_v2  ;;  %v3582_v54 = vmax.f32 %v3486_v3, 0.0  ;;  %v12742_v24 = vrot.slane %v3898_v21, %v16263_v40  ;;  %v3078_v3 = vpop.permute.xlu1 %3077 }
 0x2cc   :  { %v12745_v12 = vrot.slane %v3898_v21, %v16265_v63  ;;  %v4885_v37 = vrot.slane %v3830_v13, %v16263_v40  ;;  %v4889_v42 = vrot.slane %v3830_v13, %v16265_v63  ;;  %v3691_v20 = vmul.f32 %v10963_v62, %v3555_v39  ;;  %v16470_v39 = vld [vmem:[#allocation16_spill] sm:$0xff] }
 0x2cd   :  { %16468 = vst [vmem:[#allocation26_spill] sm:$0xff] %v12742_v24  ;;  %v3818_v23 = vadd.f32 %v10921_v61, %v3682_v28  ;;  %v3842_v51 = vadd.f32 %v10921_v61, %v3706_v1  ;;  %v3718_v48 = vmul.f32 %v10750_v34, %v3582_v54  ;;  %v3567_v11 = vmax.f32 %v3471_v5, 0.0  ;;  %v16471_v5 = vld [vmem:[#allocation112_spill] sm:$0xff]  ;;  %v16472_v1 = vld [vmem:[#allocation43_spill] sm:$0xff] }
 0x2ce   :  { %16469 = vst [vmem:[#allocation66_spill] sm:$0xff] %v12745_v12  ;;  %v12755_v56 = vsel %vm4595_vm6, %v11709_v44, %v4885_v37  ;;  %v12759_v58 = vsel %vm4595_vm6, %v11712_v47, %v4889_v42  ;;  %v4709_v32 = vsel %vm4599_vm8, %v12667_v38, %v4708_v31  ;;  %v12768_v44 = vadd.f32 %v16274_v50, %v3691_v20  ;;  %v16473_v31 = vld [vmem:[#allocation46_spill] sm:$0xff] }
 0x2cf   :  { %v4877_v7 = vrot.slane %v3818_v23, %v16263_v40  ;;  %v4881_v57 = vrot.slane %v3818_v23, %v16265_v63  ;;  %v4893_v2 = vrot.slane %v3842_v51, %v16263_v40  ;;  %v4897_v60 = vrot.slane %v3842_v51, %v16265_v63 }
 0x2d0   :  { %v3854_v21 = vadd.f32 %v10789_v29, %v3718_v48  ;;  %v3703_v47 = vmul.f32 %v10889_v36, %v3567_v11  ;;  %v4710_v13 = vsel %vm4601_vm9, %v12708_v27, %v4709_v32  ;;  %v3048_v48 = vpop.permute.xlu0 %3047  ;;  %v12800_v32 = vrot.slane %v3815_v43, %v16265_v63 }
 0x2d1   :  { %v12776_v0 = vsel %vm4595_vm6, %v16470_v39, %v4877_v7  ;;  %v12780_v28 = vsel %vm4595_vm6, %v16471_v5, %v4881_v57  ;;  %v12784_v54 = vsel %vm4595_vm6, %v16472_v1, %v4893_v2  ;;  %v12788_v37 = vsel %vm4595_vm6, %v16473_v31, %v4897_v60  ;;  %v16475_v7 = vld [vmem:[#allocation10_spill] sm:$0xff]  ;;  %v16479_v1 = vld [vmem:[#allocation108_spill] sm:$0xff] }
 0x2d2   :  { %v4901_v42 = vrot.slane %v3854_v21, %v16263_v40  ;;  %v4905_v23 = vrot.slane %v3854_v21, %v16265_v63  ;;  %v12793_v51 = vadd.f32 %v10892_v19, %v3703_v47  ;;  %v4711_v20 = vsel %vm4603_vm10, %v12673_v26, %v4710_v13  ;;  %16474 = vst [vmem:[#allocation68_spill] sm:$0xff] %v12800_v32  ;;  %v16476_v57 = vld [vmem:[#allocation106_spill] sm:$0xff]  ;;  %v3102_v26 = vpop.permute.xlu1 %3101 }
 0x2d3   :  { %v4712_v11 = vsel %vm4605_vm11, %v12679_v35, %v4711_v20  ;;  %v5323_v2 = vsel %vm4595_vm6, %v16476_v57, %v16475_v7  ;;  %v3209_v60 = vrot.slane %v3078_v3, 2  ;;  %v16477_v39 = vld [vmem:[#allocation50_spill] sm:$0xff]  ;;  %v3194_v33 = vrot.slane %v3048_v48, 2 }
 0x2d4   :  { %v12807_v21 = vsel %vm4595_vm6, %v16477_v39, %v4901_v42  ;;  %v16478_v47 = vld [vmem:[#allocation54_spill] sm:$0xff]  ;;  %v4713_v13 = vsel %vm4607_vm13, %v12745_v12, %v4712_v11  ;;  %v5324_v43 = vsel %vm4597_vm7, %v16479_v1, %v5323_v2  ;;  %v4701_v42 = vsel %vm4597_vm7, %v12625_v15, %v12656_v17  ;;  %v16481_v39 = vld [vmem:[#allocation13_spill] sm:$0xff]  ;;  %v16484_v2 = vld [vmem:[#allocation59_spill] sm:$0xff] }
 0x2d5   :  { %v12811_v5 = vsel %vm4595_vm6, %v16478_v47, %v4905_v23  ;;  %8322 = vmatprep.mubr.msk.f32.mxu1 %vm4722_vm12, %v4713_v13  ;;  %v16480_v31 = vld [vmem:[#allocation110_spill] sm:$0xff]  ;;  %v3306_v35 = vsel %vm3245_vm5, %v3078_v3, %v3209_v60  ;;  %v16482_v23 = vld [vmem:[#allocation60_spill] sm:$0xff]  ;;  %v4702_v13 = vsel %vm4599_vm8, %v12664_v53, %v4701_v42  ;;  %v16486_v60 = vld [vmem:[#allocation111_spill] sm:$0xff]  ;;  %v3072_v53 = vpop.permute.xlu0 %3071 }
 0x2d6   :  { %v5325_v20 = vsel %vm4599_vm8, %v16480_v31, %v5324_v43  ;;  %v5317_v47 = vsel %vm4597_vm7, %v16482_v23, %v16481_v39  ;;  %v16483_v11 = vld [vmem:[#allocation14_spill] sm:$0xff]  ;;  %v3498_v27 = vmax.f32 %v16484_v2, %v3306_v35  ;;  %v16485_v43 = vld [vmem:[#allocation109_spill] sm:$0xff]  ;;  %v4703_v17 = vsel %vm4601_vm9, %v12705_v9, %v4702_v13  ;;  %v16487_v15 = vld [vmem:[#allocation15_spill] sm:$0xff] }
 0x2d7   :  { %v5326_v12 = vsel %vm4601_vm9, %v16483_v11, %v5325_v20  ;;  %v5318_v3 = vsel %vm4599_vm8, %v16485_v43, %v5317_v47  ;;  %v4704_v42 = vsel %vm4603_vm10, %v12670_v30, %v4703_v17  ;;  %v16489_v2 = vld [vmem:[#allocation30_spill] sm:$0xff]  ;;  %v16490_v9 = vld [vmem:[#allocation31_spill] sm:$0xff] }
 0x2d8   :  { %v5327_v38 = vsel %vm4603_vm10, %v16486_v60, %v5326_v12  ;;  %v5319_v39 = vsel %vm4601_vm9, %v16487_v15, %v5318_v3  ;;  %v3594_v35 = vmax.f32 %v3498_v27, 0.0  ;;  %v4705_v13 = vsel %vm4605_vm11, %v12676_v22, %v4704_v42  ;;  %v16491_v42 = vld [vmem:[#allocation87_spill] sm:$0xff] }
 0x2d9   :  { %v5328_v20 = vsel %vm4605_vm11, %v16488_v8, %v5327_v38  ;;  %v5320_v47 = vsel %vm4603_vm10, %v16489_v2, %v5319_v39  ;;  %v8499_v38 = vld [vmem:[%s15535_s5 + $0x830] sm:$0xff]  ;;  %v3291_v27 = vsel %vm3245_vm5, %v3048_v48, %v3194_v33  ;;  %v4706_v39 = vsel %vm4607_vm13, %v12742_v24, %v4705_v13  ;;  %v8497_v48 = vld [vmem:[%s15535_s5 + $0x820] sm:$0xff]  ;;  %v16494_v13 = vld [vmem:[#allocation11_spill] sm:$0xff] }
 0x2da   :  { %v5329_v12 = vsel %vm4607_vm13, %v12800_v32, %v5328_v20  ;;  %v5321_v3 = vsel %vm4605_vm11, %v16490_v9, %v5320_v47  ;;  %v3730_v17 = vmul.f32 %v10902_v18, %v3594_v35  ;;  %v3483_v32 = vmax.f32 %v16491_v42, %v3291_v27  ;;  %v8498_v47 = vld [vmem:[%s15535_s5 + $0x828] sm:$0xff]  ;;  %4852 = vmatmul.mubr.f32.gmra.mxu1 %v4706_v39  ;;  %v16492_v9 = vld [vmem:[#allocation107_spill] sm:$0xff]  ;;  %v3126_v42 = vpop.permute.xlu1 %3125 }
 0x2db   :  { %8393 = vmatprep.mubr.msk.f32.mxu0 %vm4722_vm12, %v5329_v12  ;;  %v5322_v20 = vsel %vm4607_vm13, %v12722_v41, %v5321_v3  ;;  %v4938_v33 = vsel %vm4597_vm7, %v16475_v7, %v16492_v9  ;;  %v3221_v35 = vrot.slane %v3102_v26, 2  ;;  %v16493_v12 = vld [vmem:[#allocation12_spill] sm:$0xff]  ;;  %v3206_v27 = vrot.slane %v3072_v53, 2  ;;  %v8496_v9 = vld [vmem:[%s15535_s5 + $0x818] sm:$0xff] }
 0x2dc   :  { %5523 = vmatmul.mubr.f32.vlgmr.msra.gmra.mxu0 %v5322_v20  ;;  %v4931_v3 = vsel %vm4597_vm7, %v16494_v13, %v16493_v12  ;;  %v3866_v41 = vadd.f32 %v10921_v61, %v3730_v17  ;;  %v3579_v39 = vmax.f32 %v3483_v32, 0.0  ;;  %v4939_v20 = vsel %vm4599_vm8, %v16476_v57, %v4938_v33  ;;  %v16495_v7 = vld [vmem:[#allocation64_spill] sm:$0xff]  ;;  %v8495_v32 = vld [vmem:[%s15535_s5 + $0x810] sm:$0xff]  ;;  %v16505_v57 = vld [vmem:[#allocation119_spill] sm:$0xff] }
 0x2dd   :  { %6263 = vmatpush1.msra.mxu0 %v8499_v38  ;;  %v4932_v8 = vsel %vm4599_vm8, %v16495_v7, %v4931_v3  ;;  %v4940_v24 = vsel %vm4601_vm9, %v16479_v1, %v4939_v20  ;;  %v3318_v12 = vsel %vm3245_vm5, %v3102_v26, %v3221_v35  ;;  %v3303_v17 = vsel %vm3245_vm5, %v3072_v53, %v3206_v27  ;;  %v16496_v35 = vld [vmem:[#allocation88_spill] sm:$0xff] }
 0x2de   :  { %6264 = vmatprep.subr.mxu0 %v8498_v47  ;;  %v4933_v38 = vsel %vm4601_vm9, %v16482_v23, %v4932_v8  ;;  %v4909_v33 = vrot.slane %v3866_v41, %v16263_v40  ;;  %v4913_v13 = vrot.slane %v3866_v41, %v16265_v63  ;;  %v3715_v3 = vmul.f32 %v10963_v62, %v3579_v39  ;;  %v8494_v8 = vld [vmem:[%s15535_s5 + $0x808] sm:$0xff]  ;;  %v16497_v41 = vld [vmem:[#allocation91_spill] sm:$0xff] }
 0x2df   :  { %v4941_v47 = vsel %vm4603_vm10, %v16480_v31, %v4940_v24  ;;  %6265 = vmatpush1.msra.mxu0 %v8497_v48  ;;  %v3510_v53 = vmax.f32 %v16496_v35, %v3318_v12  ;;  %v4934_v27 = vsel %vm4603_vm10, %v16485_v43, %v4933_v38  ;;  %v3495_v20 = vmax.f32 %v16497_v41, %v3303_v17  ;;  %v8493_v24 = vld [vmem:[%s15535_s5 + $0x800] sm:$0xff]  ;;  %v8492_v38 = vld [vmem:[%s15535_s5 + $0x7f8] sm:$0xff]  ;;  %v3096_v17 = vpop.permute.xlu0 %3095  ;;  %v16502_v43 = vld [vmem:[#allocation118_spill] sm:$0xff] }
 0x2e0   :  { %v4942_v26 = vsel %vm4605_vm11, %v16483_v11, %v4941_v47  ;;  %6266 = vmatprep.subr.mxu0 %v8496_v9  ;;  %v12911_v48 = vsel %vm4595_vm6, %v12361_v6, %v4909_v33  ;;  %v12915_v39 = vsel %vm4595_vm6, %v12364_v49, %v4913_v13  ;;  %v12918_v9 = vadd.f32 %v16274_v50, %v3715_v3  ;;  %v8431_v49 = vld [vmem:[%s15535_s5 + $0x660] sm:$0xff]  ;;  %v8491_v3 = vld [vmem:[%s15535_s5 + $0x7f0] sm:$0xff]  ;;  %v12938_v47 = vpop.permute.xlu1 %3143  ;;  %v8430_v35 = vld [vmem:[%s15535_s5 + $0x658] sm:$0xff] }
 0x2e1   :  { %v4943_v12 = vsel %vm4607_vm13, %v16486_v60, %v4942_v26  ;;  %6267 = vmatpush1.msra.mxu0 %v8495_v32  ;;  %v3606_v6 = vmax.f32 %v3510_v53, 0.0  ;;  %v4935_v33 = vsel %vm4605_vm11, %v16487_v15, %v4934_v27  ;;  %v3591_v13 = vmax.f32 %v3495_v20, 0.0  ;;  %v16498_v53 = vld [vmem:[#allocation18_spill] sm:$0xff]  ;;  %v16507_v11 = vld [vmem:[#allocation121_spill] sm:$0xff] }
 0x2e2   :  { %8325 = vmatprep.mubr.msk.f32.mxu1 %vm4722_vm12, %v4943_v12  ;;  %6268 = vmatprep.subr.mxu0 %v8494_v8  ;;  %v12933_v32 = vrot.slane %v12768_v44, %v16265_v63  ;;  %v4936_v26 = vsel %vm4607_vm13, %v16489_v2, %v4935_v33  ;;  %v16499_v8 = vld [vmem:[#allocation114_spill] sm:$0xff]  ;;  %v3233_v41 = vrot.slane %v3126_v42, 2  ;;  %v12950_v20 = vrot.slane %v12768_v44, %v16263_v40  ;;  %v16501_v2 = vld [vmem:[#allocation116_spill] sm:$0xff] }
 0x2e3   :  { %6269 = vmatpush1.msra.mxu0 %v8493_v24  ;;  %v5337_v27 = vsel %vm4595_vm6, %v16499_v8, %v16498_v53  ;;  %v3742_v12 = vmul.f32 %v10750_v34, %v3606_v6  ;;  %5137 = vmatmul.mubr.f32.vlgmr.msra.gmra.mxu1 %v4936_v26  ;;  %v3727_v7 = vmul.f32 %v10889_v36, %v3591_v13  ;;  %v8429_v33 = vld [vmem:[%s15535_s5 + $0x650] sm:$0xff]  ;;  %v3218_v15 = vrot.slane %v3096_v17, 2  ;;  %v8428_v34 = vld [vmem:[%s15535_s5 + $0x648] sm:$0xff]  ;;  %v16503_v6 = vld [vmem:[#allocation19_spill] sm:$0xff] }
 0x2e4   :  { %16500 = vst [vmem:[#allocation80_spill] sm:$0xff] %v12950_v20  ;;  %v5338_v24 = vsel %vm4597_vm7, %v16501_v2, %v5337_v27  ;;  %6270 = vmatprep.subr.mxu0 %v8492_v38  ;;  %5861 = vmatpush1.msra.mxu1 %v8431_v49  ;;  %v3330_v44 = vsel %vm3245_vm5, %v3126_v42, %v3233_v41  ;;  %v16504_v13 = vld [vmem:[#allocation113_spill] sm:$0xff]  ;;  %v16508_v49 = vld [vmem:[#allocation115_spill] sm:$0xff] }
 0x2e5   :  { %v5339_v23 = vsel %vm4599_vm8, %v16502_v43, %v5338_v24  ;;  %v5330_v26 = vsel %vm4595_vm6, %v16504_v13, %v16503_v6  ;;  %6271 = vmatpush1.msra.mxu0 %v8491_v3  ;;  %v8490_v38 = vld [vmem:[%s15535_s5 + $0x7e8] sm:$0xff]  ;;  %v3878_v27 = vadd.f32 %v10789_v29, %v3742_v12  ;;  %v12974_v24 = vadd.f32 %v10892_v19, %v3727_v7  ;;  %v8427_v3 = vld [vmem:[%s15535_s5 + $0x640] sm:$0xff] }
 0x2e6   :  { %5862 = vmatprep.subr.mxu1 %v8430_v35  ;;  %v5340_v42 = vsel %vm4601_vm9, %v16505_v57, %v5339_v23  ;;  %v16506_v41 = vld [vmem:[#allocation89_spill] sm:$0xff]  ;;  %v5331_v29 = vsel %vm4597_vm7, %v16508_v49, %v5330_v26  ;;  %v3315_v7 = vsel %vm3245_vm5, %v3096_v17, %v3218_v15  ;;  %v4952_v35 = vsel %vm4597_vm7, %v16498_v53, %v12780_v28  ;;  %v8489_v15 = vld [vmem:[%s15535_s5 + $0x7e0] sm:$0xff] }
 0x2e7   :  { %v3522_v60 = vmax.f32 %v16506_v41, %v3330_v44  ;;  %5863 = vmatpush1.msra.mxu1 %v8429_v33  ;;  %v5341_v22 = vsel %vm4603_vm10, %v16507_v11, %v5340_v42  ;;  %v4917_v23 = vrot.slane %v3878_v27, %v16263_v40  ;;  %v4921_v12 = vrot.slane %v3878_v27, %v16265_v63  ;;  %v16509_v44 = vld [vmem:[#allocation32_spill] sm:$0xff]  ;;  %v8426_v42 = vld [vmem:[%s15535_s5 + $0x638] sm:$0xff]  ;;  %v16510_v17 = vld [vmem:[#allocation117_spill] sm:$0xff] }
 0x2e8   :  { %v5342_v41 = vsel %vm4605_vm11, %v16509_v44, %v5341_v22  ;;  %5864 = vmatprep.subr.mxu1 %v8428_v34  ;;  %6272 = vmatprep.subr.mxu0 %v8490_v38  ;;  %v5332_v53 = vsel %vm4599_vm8, %v16510_v17, %v5331_v29  ;;  %v16511_v26 = vld [vmem:[#allocation92_spill] sm:$0xff]  ;;  %v8425_v34 = vld [vmem:[%s15535_s5 + $0x630] sm:$0xff]  ;;  %v16512_v29 = vld [vmem:[#allocation21_spill] sm:$0xff] }
 0x2e9   :  { %v3618_v33 = vmax.f32 %v3522_v60, 0.0  ;;  %v5343_v28 = vsel %vm4607_vm13, %v12933_v32, %v5342_v41  ;;  %5865 = vmatpush1.msra.mxu1 %v8427_v3  ;;  %v3507_v22 = vmax.f32 %v16511_v26, %v3315_v7  ;;  %v4953_v60 = vsel %vm4599_vm8, %v16499_v8, %v4952_v35  ;;  %v8424_v35 = vld [vmem:[%s15535_s5 + $0x628] sm:$0xff]  ;;  %v16513_v41 = vld [vmem:[#allocation120_spill] sm:$0xff]  ;;  %6273 = vmatpush1.msra.mxu0 %v8489_v15 }
 0x2ea   :  { %v13012_v38 = vsel %vm4595_vm6, %v12508_v46, %v4917_v23  ;;  %v13016_v27 = vsel %vm4595_vm6, %v12511_v16, %v4921_v12  ;;  %8394 = vmatprep.mubr.msk.f32.mxu0 %vm4722_vm12, %v5343_v28  ;;  %v5333_v7 = vsel %vm4601_vm9, %v16512_v29, %v5332_v53  ;;  %v4954_v23 = vsel %vm4601_vm9, %v16501_v2, %v4953_v60  ;;  %v16514_v12 = vld [vmem:[#allocation35_spill] sm:$0xff] }
 0x2eb   :  { %v3754_v3 = vmul.f32 %v10902_v18, %v3618_v33  ;;  %v5334_v26 = vsel %vm4603_vm10, %v16513_v41, %v5333_v7  ;;  %v3603_v46 = vmax.f32 %v3507_v22, 0.0  ;;  %5866 = vmatprep.subr.mxu1 %v8426_v42  ;;  %v4945_v16 = vsel %vm4597_vm7, %v16503_v6, %v12776_v0  ;;  %v8488_v6 = vld [vmem:[%s15535_s5 + $0x7d8] sm:$0xff] }
 0x2ec   :  { %v5335_v33 = vsel %vm4605_vm11, %v16514_v12, %v5334_v26  ;;  %v4955_v28 = vsel %vm4603_vm10, %v16502_v43, %v4954_v23  ;;  %v4946_v53 = vsel %vm4599_vm8, %v16504_v13, %v4945_v16  ;;  %5867 = vmatpush1.msra.mxu1 %v8425_v34  ;;  %v16515_v26 = vld [vmem:[#allocation20_spill] sm:$0xff]  ;;  %v13066_v23 = vrot.slane %v12793_v51, %v16265_v63  ;;  %v16526_v12 = vld [vmem:[#allocation38_spill] sm:$0xff] }
 0x2ed   :  { %v3890_v18 = vadd.f32 %v10921_v61, %v3754_v3  ;;  %v5336_v42 = vsel %vm4607_vm13, %v12950_v20, %v5335_v33  ;;  %v3739_v22 = vmul.f32 %v10963_v62, %v3603_v46  ;;  %v4956_v0 = vsel %vm4605_vm11, %v16505_v57, %v4955_v28  ;;  %5868 = vmatprep.subr.mxu1 %v8424_v35  ;;  %v8423_v16 = vld [vmem:[%s15535_s5 + $0x620] sm:$0xff] }
 0x2ee   :  { %v4947_v61 = vsel %vm4601_vm9, %v16508_v49, %v4946_v53  ;;  %5529 = vmatmul.mubr.f32.gmra.mxu0 %v5336_v42  ;;  %v4957_v34 = vsel %vm4607_vm13, %v16507_v11, %v4956_v0  ;;  %v4966_v46 = vsel %vm4597_vm7, %v16515_v26, %v12759_v58  ;;  %16516 = vst [vmem:[#allocation76_spill] sm:$0xff] %v13066_v23  ;;  %v16517_v58 = vld [vmem:[#allocation36_spill] sm:$0xff]  ;;  %v8487_v42 = vld [vmem:[%s15535_s5 + $0x7d0] sm:$0xff] }
 0x2ef   :  { %v4925_v15 = vrot.slane %v3890_v18, %v16263_v40  ;;  %v4929_v60 = vrot.slane %v3890_v18, %v16265_v63  ;;  %v4948_v3 = vsel %vm4603_vm10, %v16510_v17, %v4947_v61  ;;  %v13056_v7 = vadd.f32 %v16274_v50, %v3739_v22  ;;  %8326 = vmatprep.mubr.msk.f32.mxu1 %vm4722_vm12, %v4957_v34  ;;  %v3120_v22 = vpop.permute.xlu0 %3119  ;;  %v16518_v0 = vld [vmem:[#allocation122_spill] sm:$0xff]  ;;  %v8486_v34 = vld [vmem:[%s15535_s5 + $0x7c8] sm:$0xff] }
 0x2f0   :  { %v4949_v35 = vsel %vm4605_vm11, %v16512_v29, %v4948_v3  ;;  %v4967_v53 = vsel %vm4599_vm8, %v16517_v58, %v4966_v46  ;;  %6274 = vmatprep.subr.mxu0 %v8488_v6  ;;  %v5351_v61 = vsel %vm4595_vm6, %v16517_v58, %v16515_v26  ;;  %v8421_v3 = vld [vmem:[%s15535_s5 + $0x610] sm:$0xff]  ;;  %5869 = vmatpush1.msra.mxu1 %v8423_v16  ;;  %v16525_v58 = vld [vmem:[#allocation125_spill] sm:$0xff] }
 0x2f1   :  { %v13073_v18 = vsel %vm4595_vm6, %v12642_v10, %v4925_v15  ;;  %v13077_v33 = vsel %vm4595_vm6, %v12645_v4, %v4929_v60  ;;  %v4950_v28 = vsel %vm4607_vm13, %v16513_v41, %v4949_v35  ;;  %v8422_v10 = vld [vmem:[%s15535_s5 + $0x618] sm:$0xff]  ;;  %v4968_v4 = vsel %vm4601_vm9, %v16518_v0, %v4967_v53  ;;  %v16521_v35 = vld [vmem:[#allocation124_spill] sm:$0xff]  ;;  %v16523_v53 = vld [vmem:[#allocation33_spill] sm:$0xff]  ;;  %6275 = vmatpush1.msra.mxu0 %v8487_v42 }
 0x2f2   :  { %5143 = vmatmul.mubr.f32.gmra.mxu1 %v4950_v28  ;;  %v16519_v15 = vrot.slane %v12938_v47, 2  ;;  %v13100_v60 = vrot.slane %v12793_v51, %v16263_v40  ;;  %v4969_v26 = vsel %vm4603_vm10, %v16521_v35, %v4968_v4  ;;  %v5352_v46 = vsel %vm4597_vm7, %v16518_v0, %v5351_v61  ;;  %v16522_v28 = vld [vmem:[#allocation93_spill] sm:$0xff]  ;;  %5870 = vmatprep.subr.mxu1 %v8422_v10  ;;  %v8485_v61 = vld [vmem:[%s15535_s5 + $0x7c0] sm:$0xff]  ;;  %v16528_v0 = vld [vmem:[#allocation123_spill] sm:$0xff] }
 0x2f3   :  { %v4970_v13 = vsel %vm4605_vm11, %v16525_v58, %v4969_v26  ;;  %v5353_v20 = vsel %vm4599_vm8, %v16521_v35, %v5352_v46  ;;  %v3230_v4 = vrot.slane %v3120_v22, 2  ;;  %6276 = vmatprep.subr.mxu0 %v8486_v34  ;;  %5871 = vmatpush1.msra.mxu1 %v8421_v3  ;;  %v8420_v42 = vld [vmem:[%s15535_s5 + $0x608] sm:$0xff]  ;;  %v8484_v34 = vld [vmem:[%s15535_s5 + $0x7b8] sm:$0xff]  ;;  %v16530_v3 = vld [vmem:[#allocation42_spill] sm:$0xff] }
 0x2f4   :  { %v3339_v6 = vsel %vm3245_vm5, %v12938_v47, %v16519_v15  ;;  %16520 = vst [vmem:[#allocation86_spill] sm:$0xff] %v13100_v60  ;;  %v16524_v15 = vld [vmem:[#allocation34_spill] sm:$0xff]  ;;  %v5354_v16 = vsel %vm4601_vm9, %v16525_v58, %v5353_v20  ;;  %6277 = vmatpush1.msra.mxu0 %v8485_v61  ;;  %v16534_v35 = vld [vmem:[#allocation39_spill] sm:$0xff]  ;;  %5872 = vmatprep.subr.mxu1 %v8420_v42 }
 0x2f5   :  { %v3531_v47 = vmax.f32 %v16522_v28, %v3339_v6  ;;  %v5344_v51 = vsel %vm4595_vm6, %v16524_v15, %v16523_v53  ;;  %v16527_v6 = vld [vmem:[#allocation127_spill] sm:$0xff]  ;;  %v3327_v20 = vsel %vm3245_vm5, %v3120_v22, %v3230_v4  ;;  %v16531_v58 = vld [vmem:[#allocation126_spill] sm:$0xff]  ;;  %v16533_v4 = vld [vmem:[#allocation132_spill] sm:$0xff]  ;;  %6278 = vmatprep.subr.mxu0 %v8484_v34 }
 0x2f6   :  { %v5345_v41 = vsel %vm4597_vm7, %v16526_v12, %v5344_v51  ;;  %v4971_v28 = vsel %vm4607_vm13, %v16527_v6, %v4970_v13  ;;  %v5355_v10 = vsel %vm4603_vm10, %v16527_v6, %v5354_v16  ;;  %v16529_v51 = vld [vmem:[#allocation40_spill] sm:$0xff]  ;;  %v16532_v6 = vld [vmem:[#allocation94_spill] sm:$0xff]  ;;  %v8418_v42 = vld [vmem:[%s15535_s5 + $0x5f8] sm:$0xff] }
 0x2f7   :  { %v3627_v26 = vmax.f32 %v3531_v47, 0.0  ;;  %v5346_v46 = vsel %vm4599_vm8, %v16528_v0, %v5345_v41  ;;  %8327 = vmatprep.mubr.msk.f32.mxu1 %vm4722_vm12, %v4971_v28  ;;  %v4959_v41 = vsel %vm4597_vm7, %v16523_v53, %v12755_v56  ;;  %v5356_v47 = vsel %vm4605_vm11, %v16530_v3, %v5355_v10 }
 0x2f8   :  { %v5347_v13 = vsel %vm4601_vm9, %v16529_v51, %v5346_v46  ;;  %v3519_v46 = vmax.f32 %v16532_v6, %v3327_v20  ;;  %v5357_v22 = vsel %vm4607_vm13, %v13066_v23, %v5356_v47  ;;  %v4960_v53 = vsel %vm4599_vm8, %v16524_v15, %v4959_v41  ;;  %v2980_v20 = vpop.permute.xlu1 %2979  ;;  %v16535_v41 = vld [vmem:[#allocation44_spill] sm:$0xff] }
 0x2f9   :  { %v3763_v28 = vmul.f32 %v10963_v62, %v3627_v26  ;;  %v5348_v16 = vsel %vm4603_vm10, %v16531_v58, %v5347_v13  ;;  %v4980_v10 = vsel %vm4597_vm7, %v16534_v35, %v12788_v37  ;;  %v8419_v62 = vld [vmem:[%s15535_s5 + $0x600] sm:$0xff]  ;;  %8395 = vmatprep.mubr.msk.f32.mxu0 %vm4722_vm12, %v5357_v22  ;;  %v4961_v13 = vsel %vm4601_vm9, %v16526_v12, %v4960_v53  ;;  %v8483_v37 = vld [vmem:[%s15535_s5 + $0x7b0] sm:$0xff]  ;;  %v16537_v22 = vld [vmem:[#allocation129_spill] sm:$0xff] }
 0x2fa   :  { %v5349_v56 = vsel %vm4605_vm11, %v16533_v4, %v5348_v16  ;;  %v3615_v26 = vmax.f32 %v3519_v46, 0.0  ;;  %v4981_v47 = vsel %vm4599_vm8, %v16535_v41, %v4980_v10  ;;  %v5365_v34 = vsel %vm4595_vm6, %v16535_v41, %v16534_v35  ;;  %5873 = vmatpush1.msra.mxu1 %v8419_v62  ;;  %v8482_v10 = vld [vmem:[%s15535_s5 + $0x7a8] sm:$0xff]  ;;  %v16538_v35 = vld [vmem:[#allocation131_spill] sm:$0xff]  ;;  %6279 = vmatpush1.msra.mxu0 %v8483_v37  ;;  %v8417_v62 = vld [vmem:[%s15535_s5 + $0x5f0] sm:$0xff] }
 0x2fb   :  { %v13166_v61 = vadd.f32 %v16274_v50, %v3763_v28  ;;  %v5350_v6 = vsel %vm4607_vm13, %v13100_v60, %v5349_v56  ;;  %v4962_v50 = vsel %vm4603_vm10, %v16528_v0, %v4961_v13  ;;  %v13184_v28 = vrot.slane %v12918_v9, %v16265_v63  ;;  %5874 = vmatprep.subr.mxu1 %v8418_v42  ;;  %v8481_v37 = vld [vmem:[%s15535_s5 + $0x7a0] sm:$0xff]  ;;  %v16613_v12 = vld [vmem:[#allocation99_spill] sm:$0xff] }
 0x2fc   :  { %5535 = vmatmul.mubr.f32.gmra.mxu0 %v5350_v6  ;;  %v3751_v16 = vmul.f32 %v10889_v36, %v3615_v26  ;;  %v4963_v46 = vsel %vm4605_vm11, %v16529_v51, %v4962_v50  ;;  %v4982_v56 = vsel %vm4601_vm9, %v16537_v22, %v4981_v47  ;;  %v5366_v53 = vsel %vm4597_vm7, %v16537_v22, %v5365_v34  ;;  %v2978_v50 = vpop.permute.xlu0 %2977  ;;  %v16539_v34 = vld [vmem:[#allocation134_spill] sm:$0xff]  ;;  %v16541_v42 = vld [vmem:[#allocation136_spill] sm:$0xff]  ;;  %v3004_v60 = vpop.permute.xlu1 %3003 }
 0x2fd   :  { %16536 = vst [vmem:[#allocation16_spill] sm:$0xff] %v13184_v28  ;;  %v4964_v6 = vsel %vm4607_vm13, %v16531_v58, %v4963_v46  ;;  %v4983_v36 = vsel %vm4603_vm10, %v16538_v35, %v4982_v56  ;;  %v5367_v26 = vsel %vm4599_vm8, %v16538_v35, %v5366_v53  ;;  %v3160_v13 = vrot.slane %v2980_v20, 2  ;;  %6280 = vmatprep.subr.mxu0 %v8482_v10  ;;  %v16546_v22 = vld [vmem:[#allocation128_spill] sm:$0xff]  ;;  %v8480_v10 = vld [vmem:[%s15535_s5 + $0x798] sm:$0xff] }
 0x2fe   :  { %v13209_v47 = vadd.f32 %v10892_v19, %v3751_v16  ;;  %5149 = vmatmul.mubr.f32.gmra.mxu1 %v4964_v6  ;;  %v4984_v46 = vsel %vm4605_vm11, %v16539_v34, %v4983_v36  ;;  %v5368_v56 = vsel %vm4601_vm9, %v16539_v34, %v5367_v26  ;;  %v13217_v53 = vrot.slane %v12918_v9, %v16263_v40  ;;  %v16542_v6 = vld [vmem:[#allocation37_spill] sm:$0xff]  ;;  %v16544_v34 = vld [vmem:[#allocation47_spill] sm:$0xff] }
 0x2ff   :  { %v4985_v41 = vsel %vm4607_vm13, %v16541_v42, %v4984_v46  ;;  %v5369_v19 = vsel %vm4603_vm10, %v16541_v42, %v5368_v56  ;;  %v3257_v16 = vsel %vm3245_vm5, %v2980_v20, %v3160_v13  ;;  %v16543_v36 = vld [vmem:[#allocation41_spill] sm:$0xff]  ;;  %v16545_v46 = vld [vmem:[#allocation95_spill] sm:$0xff]  ;;  %v3159_v20 = vrot.slane %v2978_v50, 2  ;;  %5875 = vmatpush1.msra.mxu1 %v8417_v62  ;;  %v16547_v42 = vld [vmem:[#allocation130_spill] sm:$0xff]  ;;  %6281 = vmatpush1.msra.mxu0 %v8481_v37 }
 0x300   :  { %16540 = vst [vmem:[#allocation112_spill] sm:$0xff] %v13217_v53  ;;  %v5358_v26 = vsel %vm4595_vm6, %v16543_v36, %v16542_v6  ;;  %v8416_v9 = vld [vmem:[%s15535_s5 + $0x5e8] sm:$0xff]  ;;  %8328 = vmatprep.mubr.msk.f32.mxu1 %vm4722_vm12, %v4985_v41  ;;  %v5370_v15 = vsel %vm4605_vm11, %v16544_v34, %v5369_v19  ;;  %v3449_v35 = vmax.f32 %v16545_v46, %v3257_v16  ;;  %v8415_v62 = vld [vmem:[%s15535_s5 + $0x5e0] sm:$0xff]  ;;  %v8414_v37 = vld [vmem:[%s15535_s5 + $0x5d8] sm:$0xff] }
 0x301   :  { %v5359_v56 = vsel %vm4597_vm7, %v16546_v22, %v5358_v26  ;;  %v5371_v13 = vsel %vm4607_vm13, %v13184_v28, %v5370_v15  ;;  %v4973_v19 = vsel %vm4597_vm7, %v16542_v6, %v12784_v54  ;;  %v16548_v16 = vld [vmem:[#allocation45_spill] sm:$0xff]  ;;  %5876 = vmatprep.subr.mxu1 %v8416_v9  ;;  %v16549_v6 = vld [vmem:[#allocation135_spill] sm:$0xff]  ;;  %6282 = vmatprep.subr.mxu0 %v8480_v10 }
 0x302   :  { %v5360_v41 = vsel %vm4599_vm8, %v16547_v42, %v5359_v56  ;;  %v4994_v26 = vsel %vm4597_vm7, %v16548_v16, %v12811_v5  ;;  %8396 = vmatprep.mubr.msk.f32.mxu0 %vm4722_vm12, %v5371_v13  ;;  %v3545_v46 = vmax.f32 %v3449_v35, 0.0  ;;  %v3256_v56 = vsel %vm3245_vm5, %v2978_v50, %v3159_v20  ;;  %v8479_v5 = vld [vmem:[%s15535_s5 + $0x790] sm:$0xff]  ;;  %v16551_v20 = vld [vmem:[#allocation49_spill] sm:$0xff]  ;;  %5877 = vmatpush1.msra.mxu1 %v8415_v62 }
 0x303   :  { %v5361_v15 = vsel %vm4601_vm9, %v12024_v52, %v5360_v41  ;;  %v4974_v54 = vsel %vm4599_vm8, %v16543_v36, %v4973_v19  ;;  %v16550_v13 = vld [vmem:[#allocation90_spill] sm:$0xff]  ;;  %v4995_v41 = vsel %vm4599_vm8, %v16551_v20, %v4994_v26  ;;  %v16552_v19 = vld [vmem:[#allocation27_spill] sm:$0xff]  ;;  %6283 = vmatpush1.msra.mxu0 %v8479_v5  ;;  %5878 = vmatprep.subr.mxu1 %v8414_v37  ;;  %v16556_v5 = vld [vmem:[#allocation144_spill] sm:$0xff] }
 0x304   :  { %v5362_v35 = vsel %vm4603_vm10, %v16549_v6, %v5361_v15  ;;  %v3448_v28 = vmax.f32 %v16550_v13, %v3256_v56  ;;  %v4975_v50 = vsel %vm4601_vm9, %v16546_v22, %v4974_v54  ;;  %v3681_v9 = vmul.f32 %v10843_v45, %v3545_v46  ;;  %v8478_v56 = vld [vmem:[%s15535_s5 + $0x788] sm:$0xff]  ;;  %v16553_v54 = vld [vmem:[#allocation140_spill] sm:$0xff] }
 0x305   :  { %v5363_v36 = vsel %vm4605_vm11, %v16552_v19, %v5362_v35  ;;  %v4976_v34 = vsel %vm4603_vm10, %v16547_v42, %v4975_v50  ;;  %v4996_v15 = vsel %vm4601_vm9, %v12179_v59, %v4995_v41  ;;  %v16554_v50 = vld [vmem:[#allocation142_spill] sm:$0xff]  ;;  %6284 = vmatprep.subr.mxu0 %v8478_v56  ;;  %v16558_v56 = vld [vmem:[#allocation23_spill] sm:$0xff] }
 0x306   :  { %v5364_v10 = vsel %vm4607_vm13, %v13217_v53, %v5363_v36  ;;  %v3544_v26 = vmax.f32 %v3448_v28, 0.0  ;;  %v4977_v46 = vsel %vm4605_vm11, %v12024_v52, %v4976_v34  ;;  %v4997_v35 = vsel %vm4603_vm10, %v16553_v54, %v4996_v15  ;;  %v8413_v34 = vld [vmem:[%s15535_s5 + $0x5d0] sm:$0xff]  ;;  %v8476_v53 = vld [vmem:[%s15535_s5 + $0x778] sm:$0xff] }
 0x307   :  { %v13291_v13 = vadd.f32 %v10886_v25, %v3681_v9  ;;  %5541 = vmatmul.mubr.f32.gmra.mxu0 %v5364_v10  ;;  %v4978_v62 = vsel %vm4607_vm13, %v16549_v6, %v4977_v46  ;;  %v4998_v41 = vsel %vm4605_vm11, %v16554_v50, %v4997_v35  ;;  %v13299_v28 = vrot.slane %v12974_v24, %v16265_v63  ;;  %v3002_v10 = vpop.permute.xlu0 %3001  ;;  %v8477_v46 = vld [vmem:[%s15535_s5 + $0x780] sm:$0xff]  ;;  %v8412_v35 = vld [vmem:[%s15535_s5 + $0x5c8] sm:$0xff]  ;;  %v8475_v6 = vld [vmem:[%s15535_s5 + $0x770] sm:$0xff] }
 0x308   :  { %v3680_v36 = vmul.f32 %v10802_v55, %v3544_v26  ;;  %5155 = vmatmul.mubr.f32.gmra.mxu1 %v4978_v62  ;;  %v4999_v37 = vsel %vm4607_vm13, %v16556_v5, %v4998_v41  ;;  %v5379_v9 = vsel %vm4595_vm6, %v16551_v20, %v16548_v16  ;;  %v3172_v15 = vrot.slane %v3004_v60, 2  ;;  %v16559_v41 = vld [vmem:[#allocation48_spill] sm:$0xff]  ;;  %v16561_v52 = vld [vmem:[#allocation98_spill] sm:$0xff]  ;;  %6285 = vmatpush1.msra.mxu0 %v8477_v46 }
 0x309   :  { %16555 = vst [vmem:[#allocation43_spill] sm:$0xff] %v13299_v28  ;;  %8329 = vmatprep.mubr.msk.f32.mxu1 %vm4722_vm12, %v4999_v37  ;;  %v5380_v62 = vsel %vm4597_vm7, %v12179_v59, %v5379_v9  ;;  %v13323_v16 = vrot.slane %v12974_v24, %v16263_v40  ;;  %v5372_v20 = vsel %vm4595_vm6, %v16559_v41, %v16558_v56  ;;  %v16560_v9 = vld [vmem:[#allocation137_spill] sm:$0xff]  ;;  %v8411_v24 = vld [vmem:[%s15535_s5 + $0x5c0] sm:$0xff] }
 0x30a   :  { %v3816_v19 = vadd.f32 %v10827_v14, %v3680_v36  ;;  %v5381_v37 = vsel %vm4599_vm8, %v16553_v54, %v5380_v62  ;;  %v3269_v26 = vsel %vm3245_vm5, %v3004_v60, %v3172_v15  ;;  %v5373_v59 = vsel %vm4597_vm7, %v16560_v9, %v5372_v20  ;;  %5879 = vmatpush1.msra.mxu1 %v8413_v34  ;;  %v16562_v62 = vld [vmem:[#allocation139_spill] sm:$0xff] }
 0x30b   :  { %16557 = vst [vmem:[#allocation46_spill] sm:$0xff] %v13323_v16  ;;  %v5382_v36 = vsel %vm4601_vm9, %v16554_v50, %v5381_v37  ;;  %v3461_v42 = vmax.f32 %v16561_v52, %v3269_v26  ;;  %v5374_v60 = vsel %vm4599_vm8, %v16562_v62, %v5373_v59  ;;  %v3171_v15 = vrot.slane %v3002_v10, 2  ;;  %5880 = vmatprep.subr.mxu1 %v8412_v35  ;;  %v8410_v20 = vld [vmem:[%s15535_s5 + $0x5b8] sm:$0xff]  ;;  %v16563_v52 = vld [vmem:[#allocation141_spill] sm:$0xff] }
 0x30c   :  { %v13352_v34 = vrot.slane %v3816_v19, %v16263_v40  ;;  %v13355_v54 = vrot.slane %v3816_v19, %v16265_v63  ;;  %v5383_v37 = vsel %vm4603_vm10, %v16556_v5, %v5382_v36  ;;  %v5375_v26 = vsel %vm4601_vm9, %v16563_v52, %v5374_v60  ;;  %6286 = vmatprep.subr.mxu0 %v8476_v53  ;;  %v16564_v59 = vld [vmem:[#allocation55_spill] sm:$0xff]  ;;  %v8474_v19 = vld [vmem:[%s15535_s5 + $0x768] sm:$0xff]  ;;  %v16567_v5 = vld [vmem:[#allocation96_spill] sm:$0xff] }
 0x30d   :  { %v5384_v46 = vsel %vm4605_vm11, %v16564_v59, %v5383_v37  ;;  %v3557_v35 = vmax.f32 %v3461_v42, 0.0  ;;  %v16565_v50 = vld [vmem:[#allocation143_spill] sm:$0xff]  ;;  %v3268_v4 = vsel %vm3245_vm5, %v3002_v10, %v3171_v15  ;;  %5881 = vmatpush1.msra.mxu1 %v8411_v24  ;;  %6287 = vmatpush1.msra.mxu0 %v8475_v6  ;;  %v16566_v60 = vld [vmem:[#allocation53_spill] sm:$0xff]  ;;  %v4987_v42 = vsel %vm4597_vm7, %v16558_v56, %v12807_v21  ;;  %v8409_v6 = vld [vmem:[%s15535_s5 + $0x5b0] sm:$0xff] }
 0x30e   :  { %v5376_v22 = vsel %vm4603_vm10, %v16565_v50, %v5375_v26  ;;  %v5385_v36 = vsel %vm4607_vm13, %v13299_v28, %v5384_v46  ;;  %v3460_v37 = vmax.f32 %v16567_v5, %v3268_v4  ;;  %5882 = vmatprep.subr.mxu1 %v8410_v20  ;;  %v16568_v10 = vld [vmem:[#allocation63_spill] sm:$0xff]  ;;  %v8473_v21 = vld [vmem:[%s15535_s5 + $0x760] sm:$0xff]  ;;  %v16570_v26 = vld [vmem:[#allocation58_spill] sm:$0xff]  ;;  %6288 = vmatprep.subr.mxu0 %v8474_v19 }
 0x30f   :  { %v5377_v53 = vsel %vm4605_vm11, %v16566_v60, %v5376_v22  ;;  %8397 = vmatprep.mubr.msk.f32.mxu0 %vm4722_vm12, %v5385_v36  ;;  %v3693_v24 = vmul.f32 %v16568_v10, %v3557_v35  ;;  %v4988_v22 = vsel %vm4599_vm8, %v16559_v41, %v4987_v42  ;;  %v16569_v4 = vld [vmem:[#allocation51_spill] sm:$0xff]  ;;  %v13398_v35 = vrot.slane %v13056_v7, %v16265_v63  ;;  %v3028_v36 = vpop.permute.xlu1 %3027  ;;  %v16574_v41 = vld [vmem:[#allocation56_spill] sm:$0xff] }
 0x310   :  { %v5378_v15 = vsel %vm4607_vm13, %v13323_v16, %v5377_v53  ;;  %v5008_v5 = vsel %vm4597_vm7, %v16569_v4, %v12915_v39  ;;  %v3556_v56 = vmax.f32 %v3460_v37, 0.0  ;;  %v4989_v20 = vsel %vm4601_vm9, %v16560_v9, %v4988_v22  ;;  %v8408_v39 = vld [vmem:[%s15535_s5 + $0x5a8] sm:$0xff]  ;;  %v8472_v53 = vld [vmem:[%s15535_s5 + $0x758] sm:$0xff]  ;;  %5883 = vmatpush1.msra.mxu1 %v8409_v6  ;;  %v16575_v9 = vld [vmem:[#allocation146_spill] sm:$0xff]  ;;  %6289 = vmatpush1.msra.mxu0 %v8473_v21 }
 0x311   :  { %5547 = vmatmul.mubr.f32.gmra.mxu0 %v5378_v15  ;;  %v5009_v46 = vsel %vm4599_vm8, %v16570_v26, %v5008_v5  ;;  %16571 = vst [vmem:[#allocation10_spill] sm:$0xff] %v13398_v35  ;;  %v16572_v37 = vld [vmem:[#allocation73_spill] sm:$0xff]  ;;  %v4990_v15 = vsel %vm4603_vm10, %v16562_v62, %v4989_v20  ;;  %v5393_v19 = vsel %vm4595_vm6, %v16570_v26, %v16569_v4  ;;  %v3026_v20 = vpop.permute.xlu0 %3025  ;;  %v16576_v4 = vld [vmem:[#allocation147_spill] sm:$0xff]  ;;  %v3184_v26 = vrot.slane %v3028_v36, 2  ;;  %v8471_v21 = vld [vmem:[%s15535_s5 + $0x750] sm:$0xff] }
 0x312   :  { %v13407_v42 = vadd.f32 %v16572_v37, %v3693_v24  ;;  %v16573_v22 = vld [vmem:[#allocation25_spill] sm:$0xff]  ;;  %v3692_v16 = vmul.f32 %v16574_v41, %v3556_v56  ;;  %v4991_v60 = vsel %vm4605_vm11, %v16563_v52, %v4990_v15  ;;  %5884 = vmatprep.subr.mxu1 %v8408_v39  ;;  %6290 = vmatprep.subr.mxu0 %v8472_v53  ;;  %v16580_v53 = vld [vmem:[#allocation52_spill] sm:$0xff] }
 0x313   :  { %v5010_v5 = vsel %vm4601_vm9, %v16573_v22, %v5009_v46  ;;  %v5394_v28 = vsel %vm4597_vm7, %v16573_v22, %v5393_v19  ;;  %v8407_v46 = vld [vmem:[%s15535_s5 + $0x5a0] sm:$0xff]  ;;  %v4992_v6 = vsel %vm4607_vm13, %v16565_v50, %v4991_v60  ;;  %v16578_v22 = vld [vmem:[#allocation149_spill] sm:$0xff]  ;;  %v3281_v39 = vsel %vm3245_vm5, %v3028_v36, %v3184_v26  ;;  %v16583_v26 = vld [vmem:[#allocation6_spill] sm:$0xff]  ;;  %6291 = vmatpush1.msra.mxu0 %v8471_v21 }
 0x314   :  { %v5011_v24 = vsel %vm4603_vm10, %v16575_v9, %v5010_v5  ;;  %v5395_v15 = vsel %vm4599_vm8, %v16575_v9, %v5394_v28  ;;  %v16577_v5 = vld [vmem:[#allocation62_spill] sm:$0xff]  ;;  %5161 = vmatmul.mubr.f32.gmra.mxu1 %v4992_v6  ;;  %v8406_v28 = vld [vmem:[%s15535_s5 + $0x598] sm:$0xff]  ;;  %v16581_v6 = vld [vmem:[#allocation57_spill] sm:$0xff]  ;;  %v3473_v36 = vmax.f32 %v16583_v26, %v3281_v39 }
 0x315   :  { %v5012_v56 = vsel %vm4605_vm11, %v16576_v4, %v5011_v24  ;;  %v3828_v19 = vadd.f32 %v16577_v5, %v3692_v16  ;;  %v5396_v60 = vsel %vm4601_vm9, %v16576_v4, %v5395_v15  ;;  %v13442_v24 = vrot.slane %v13056_v7, %v16263_v40  ;;  %5885 = vmatpush1.msra.mxu1 %v8407_v46  ;;  %v8470_v7 = vld [vmem:[%s15535_s5 + $0x748] sm:$0xff]  ;;  %v16582_v9 = vld [vmem:[#allocation70_spill] sm:$0xff]  ;;  %v8469_v21 = vld [vmem:[%s15535_s5 + $0x740] sm:$0xff] }
 0x316   :  { %v5013_v52 = vsel %vm4607_vm13, %v16578_v22, %v5012_v56  ;;  %v5397_v16 = vsel %vm4603_vm10, %v16578_v22, %v5396_v60  ;;  %v5386_v56 = vsel %vm4595_vm6, %v16581_v6, %v16580_v53  ;;  %v3183_v15 = vrot.slane %v3026_v20, 2  ;;  %v8405_v46 = vld [vmem:[%s15535_s5 + $0x590] sm:$0xff]  ;;  %v16584_v50 = vld [vmem:[#allocation61_spill] sm:$0xff]  ;;  %5886 = vmatprep.subr.mxu1 %v8406_v28  ;;  %6292 = vmatprep.subr.mxu0 %v8470_v7  ;;  %v8403_v7 = vld [vmem:[%s15535_s5 + $0x580] sm:$0xff] }
 0x317   :  { %16579 = vst [vmem:[#allocation50_spill] sm:$0xff] %v13442_v24  ;;  %8330 = vmatprep.mubr.msk.f32.mxu1 %vm4722_vm12, %v5013_v52  ;;  %v13458_v4 = vrot.slane %v3828_v19, %v16263_v40  ;;  %v13461_v52 = vrot.slane %v3828_v19, %v16265_v63  ;;  %v5398_v60 = vsel %vm4605_vm11, %v16582_v9, %v5397_v16  ;;  %v8404_v16 = vld [vmem:[%s15535_s5 + $0x588] sm:$0xff]  ;;  %v3569_v39 = vmax.f32 %v3473_v36, 0.0  ;;  %v16588_v36 = vld [vmem:[#allocation67_spill] sm:$0xff]  ;;  %v16592_v9 = vld [vmem:[#allocation150_spill] sm:$0xff] }
 0x318   :  { %v5399_v22 = vsel %vm4607_vm13, %v13398_v35, %v5398_v60  ;;  %v5387_v62 = vsel %vm4597_vm7, %v16584_v50, %v5386_v56  ;;  %v3280_v59 = vsel %vm3245_vm5, %v3026_v20, %v3183_v15  ;;  %v5001_v19 = vsel %vm4597_vm7, %v16580_v53, %v12911_v48  ;;  %v16585_v60 = vld [vmem:[#allocation145_spill] sm:$0xff]  ;;  %5887 = vmatpush1.msra.mxu1 %v8405_v46 }
 0x319   :  { %8398 = vmatprep.mubr.msk.f32.mxu0 %vm4722_vm12, %v5399_v22  ;;  %v5388_v56 = vsel %vm4599_vm8, %v16585_v60, %v5387_v62  ;;  %v16586_v20 = vld [vmem:[#allocation97_spill] sm:$0xff]  ;;  %v5002_v48 = vsel %vm4599_vm8, %v16581_v6, %v5001_v19  ;;  %v5022_v62 = vsel %vm4597_vm7, %v16588_v36, %v13016_v27  ;;  %v3705_v19 = vmul.f32 %v10843_v45, %v3569_v39 }
 0x31a   :  { %v3472_v15 = vmax.f32 %v16586_v20, %v3280_v59  ;;  %v8526_v28 = vld [vmem:[%s15535_s5 + $0x908] sm:$0x3f]  ;;  %v5003_v22 = vsel %vm4601_vm9, %v16584_v50, %v5002_v48  ;;  %v13501_v59 = vrot.slane %v13209_v47, %v16265_v63  ;;  %v16590_v20 = vld [vmem:[#allocation148_spill] sm:$0xff]  ;;  %v3052_v50 = vpop.permute.xlu1 %3051  ;;  %6293 = vmatpush1.msra.mxu0 %v8469_v21  ;;  %5888 = vmatprep.subr.mxu1 %v8404_v16 }
 0x31b   :  { %v16587_v53 = vld [vmem:[#allocation65_spill] sm:$0xff]  ;;  %v5004_v48 = vsel %vm4603_vm10, %v16585_v60, %v5003_v22  ;;  %v5023_v58 = vsel %vm4599_vm8, %v16592_v9, %v5022_v62  ;;  %v5407_v39 = vsel %vm4595_vm6, %v16592_v9, %v16588_v36  ;;  %8527 = vmatprep.subr.msk.mxu0 %vm711_vm4, %v8526_v28  ;;  %v8525_v21 = vld [vmem:[%s15535_s5 + $0x900] sm:$0x3f]  ;;  %v13525_v16 = vadd.f32 %v10886_v25, %v3705_v19  ;;  %v8402_v28 = vld [vmem:[%s15535_s5 + $0x578] sm:$0xff]  ;;  %v3050_v9 = vpop.permute.xlu0 %3049 }
 0x31c   :  { %v5389_v26 = vsel %vm4601_vm9, %v16587_v53, %v5388_v56  ;;  %16589 = vst [vmem:[#allocation54_spill] sm:$0xff] %v13501_v59  ;;  %v3568_v6 = vmax.f32 %v3472_v15, 0.0  ;;  %v16591_v27 = vld [vmem:[#allocation69_spill] sm:$0xff]  ;;  %v5005_v46 = vsel %vm4605_vm11, %v16587_v53, %v5004_v48  ;;  %5889 = vmatpush1.msra.mxu1 %v8403_v7  ;;  %v16593_v36 = vld [vmem:[#allocation74_spill] sm:$0xff]  ;;  %v16595_v48 = vld [vmem:[#allocation152_spill] sm:$0xff]  ;;  %8528 = vmatpush2.msk.msra.mxu0 %vm711_vm4, %v8525_v21 }
 0x31d   :  { %v5390_v56 = vsel %vm4603_vm10, %v16590_v20, %v5389_v26  ;;  %v5006_v22 = vsel %vm4607_vm13, %v16590_v20, %v5005_v46  ;;  %v5024_v62 = vsel %vm4601_vm9, %v16593_v36, %v5023_v58  ;;  %v5408_v19 = vsel %vm4597_vm7, %v16593_v36, %v5407_v39  ;;  %v16598_v36 = vld [vmem:[#allocation154_spill] sm:$0xff]  ;;  %5890 = vmatprep.subr.mxu1 %v8402_v28  ;;  %v8458_v28 = vld [vmem:[%s15535_s5 + $0x738] sm:$0x3f] }
 0x31e   :  { %v5391_v35 = vsel %vm4605_vm11, %v16591_v27, %v5390_v56  ;;  %v3704_v26 = vmul.f32 %v10802_v55, %v3568_v6  ;;  %5167 = vmatmul.mubr.f32.gmra.mxu1 %v5006_v22  ;;  %v3196_v56 = vrot.slane %v3052_v50, 2  ;;  %v8524_v6 = vld [vmem:[%s15535_s5 + $0x8f8] sm:$0xff]  ;;  %v5025_v46 = vsel %vm4603_vm10, %v16595_v48, %v5024_v62  ;;  %v8523_v21 = vld [vmem:[%s15535_s5 + $0x8f0] sm:$0xff] }
 0x31f   :  { %v5392_v15 = vsel %vm4607_vm13, %v13442_v24, %v5391_v35  ;;  %v13541_v35 = vrot.slane %v13209_v47, %v16263_v40  ;;  %v5409_v58 = vsel %vm4599_vm8, %v16595_v48, %v5408_v19  ;;  %v16597_v22 = vld [vmem:[#allocation71_spill] sm:$0xff]  ;;  %v8401_v47 = vld [vmem:[%s15535_s5 + $0x570] sm:$0xff]  ;;  %v16599_v19 = vld [vmem:[#allocation72_spill] sm:$0xff]  ;;  %6302 = vmatprep.subr.mxu0 %v8524_v6 }
 0x320   :  { %5553 = vmatmul.mubr.f32.gmra.mxu0 %v5392_v15  ;;  %v3840_v7 = vadd.f32 %v10827_v14, %v3704_v26  ;;  %v16596_v15 = vld [vmem:[#allocation7_spill] sm:$0xff]  ;;  %v5026_v26 = vsel %vm4605_vm11, %v16598_v36, %v5025_v46  ;;  %v5410_v62 = vsel %vm4601_vm9, %v16598_v36, %v5409_v58  ;;  %v3293_v24 = vsel %vm3245_vm5, %v3052_v50, %v3196_v56  ;;  %v16602_v46 = vld [vmem:[#allocation156_spill] sm:$0xff]  ;;  %v8522_v6 = vld [vmem:[%s15535_s5 + $0x8e8] sm:$0xff] }
 0x321   :  { %16594 = vst [vmem:[#allocation108_spill] sm:$0xff] %v13541_v35  ;;  %v5400_v39 = vsel %vm4595_vm6, %v16597_v22, %v16596_v15  ;;  %v5027_v53 = vsel %vm4607_vm13, %v16602_v46, %v5026_v26  ;;  %v5411_v50 = vsel %vm4603_vm10, %v16602_v46, %v5410_v62  ;;  %v16603_v56 = vld [vmem:[#allocation79_spill] sm:$0xff]  ;;  %5891 = vmatpush1.msra.mxu1 %v8401_v47  ;;  %v16606_v62 = vld [vmem:[#allocation153_spill] sm:$0xff]  ;;  %v8457_v47 = vld [vmem:[%s15535_s5 + $0x730] sm:$0x3f] }
 0x322   :  { %v5401_v48 = vsel %vm4597_vm7, %v16599_v19, %v5400_v39  ;;  %v13569_v27 = vrot.slane %v3840_v7, %v16263_v40  ;;  %v13572_v20 = vrot.slane %v3840_v7, %v16265_v63  ;;  %8331 = vmatprep.mubr.msk.f32.mxu1 %vm4722_vm12, %v5027_v53  ;;  %v5412_v58 = vsel %vm4605_vm11, %v16603_v56, %v5411_v50  ;;  %v16604_v39 = vld [vmem:[#allocation8_spill] sm:$0xff]  ;;  %v16605_v7 = vld [vmem:[#allocation151_spill] sm:$0xff] }
 0x323   :  { %v3485_v36 = vmax.f32 %v16604_v39, %v3293_v24  ;;  %v5402_v60 = vsel %vm4599_vm8, %v16605_v7, %v5401_v48  ;;  %v5413_v26 = vsel %vm4607_vm13, %v13501_v59, %v5412_v58  ;;  %v13596_v50 = vrot.slane %v13166_v61, %v16265_v63  ;;  %v16608_v24 = vld [vmem:[#allocation75_spill] sm:$0xff]  ;;  %v16609_v39 = vld [vmem:[#allocation82_spill] sm:$0xff]  ;;  %6303 = vmatpush2.msra.mxu0 %v8523_v21  ;;  %v16611_v46 = vld [vmem:[#allocation84_spill] sm:$0xff] }
 0x324   :  { %16600 = vst [vmem:[#allocation110_spill] sm:$0xff] %v13569_v27  ;;  %16601 = vst [vmem:[#allocation13_spill] sm:$0xff] %v13572_v20  ;;  %v3195_v27 = vrot.slane %v3050_v9, 2  ;;  %v5403_v53 = vsel %vm4601_vm9, %v16606_v62, %v5402_v60  ;;  %v5421_v48 = vsel %vm4595_vm6, %v16609_v39, %v16608_v24  ;;  %8399 = vmatprep.mubr.msk.f32.mxu0 %vm4722_vm12, %v5413_v26  ;;  %v16610_v58 = vld [vmem:[#allocation155_spill] sm:$0xff]  ;;  %8459 = vmatprep.subr.msk.mxu1 %vm711_vm4, %v8458_v28  ;;  %v8456_v21 = vld [vmem:[%s15535_s5 + $0x728] sm:$0xff] }
 0x325   :  { %16607 = vst [vmem:[#allocation59_spill] sm:$0xff] %v13596_v50  ;;  %v3581_v56 = vmax.f32 %v3485_v36, 0.0  ;;  %v5404_v59 = vsel %vm4603_vm10, %v16610_v58, %v5403_v53  ;;  %v5422_v51 = vsel %vm4597_vm7, %v16611_v46, %v5421_v48  ;;  %v16612_v20 = vld [vmem:[#allocation78_spill] sm:$0xff]  ;;  %v16614_v36 = vld [vmem:[#allocation160_spill] sm:$0xff]  ;;  %v3074_v53 = vpop.permute.xlu0 %3073  ;;  %6304 = vmatprep.subr.mxu0 %v8522_v6  ;;  %8460 = vmatpush2.msk.msra.mxu1 %vm711_vm4, %v8457_v47  ;;  %v16616_v6 = vld [vmem:[#allocation159_spill] sm:$0xff] }
 0x326   :  { %v3292_v60 = vsel %vm3245_vm5, %v3050_v9, %v3195_v27  ;;  %v5405_v0 = vsel %vm4605_vm11, %v16612_v20, %v5404_v59  ;;  %v5423_v23 = vsel %vm4599_vm8, %v16614_v36, %v5422_v51  ;;  %v5015_v9 = vsel %vm4597_vm7, %v16596_v15, %v13012_v38  ;;  %v3076_v27 = vpop.permute.xlu1 %3075  ;;  %v8521_v28 = vld [vmem:[%s15535_s5 + $0x8e0] sm:$0xff]  ;;  %v8520_v38 = vld [vmem:[%s15535_s5 + $0x8d8] sm:$0xff]  ;;  %5900 = vmatprep.subr.mxu1 %v8456_v21  ;;  %v16626_v20 = vld [vmem:[#allocation14_spill] sm:$0xff] }
 0x327   :  { %v3484_v26 = vmax.f32 %v16613_v12, %v3292_v60  ;;  %v3717_v48 = vmul.f32 %v16568_v10, %v3581_v56  ;;  %v5406_v59 = vsel %vm4607_vm13, %v13541_v35, %v5405_v0  ;;  %v16615_v12 = vld [vmem:[#allocation157_spill] sm:$0xff]  ;;  %v5016_v51 = vsel %vm4599_vm8, %v16597_v22, %v5015_v9  ;;  %v8455_v47 = vld [vmem:[%s15535_s5 + $0x720] sm:$0xff]  ;;  %6305 = vmatpush2.msra.mxu0 %v8521_v28  ;;  %v8454_v28 = vld [vmem:[%s15535_s5 + $0x718] sm:$0xff] }
 0x328   :  { %v5424_v60 = vsel %vm4601_vm9, %v16615_v12, %v5423_v23  ;;  %5559 = vmatmul.mubr.f32.gmra.mxu0 %v5406_v59  ;;  %v5017_v0 = vsel %vm4601_vm9, %v16599_v19, %v5016_v51  ;;  %v5036_v23 = vsel %vm4597_vm7, %v16608_v24, %v13077_v33  ;;  %v16617_v59 = vld [vmem:[#allocation66_spill] sm:$0xff]  ;;  %6306 = vmatprep.subr.mxu0 %v8520_v38 }
 0x329   :  { %v3580_v15 = vmax.f32 %v3484_v26, 0.0  ;;  %v5425_v56 = vsel %vm4603_vm10, %v16616_v6, %v5424_v60  ;;  %v13647_v9 = vadd.f32 %v16572_v37, %v3717_v48  ;;  %v5018_v60 = vsel %vm4603_vm10, %v16605_v7, %v5017_v0  ;;  %v8519_v33 = vld [vmem:[%s15535_s5 + $0x8d0] sm:$0xff]  ;;  %5901 = vmatpush2.msra.mxu1 %v8455_v47 }
 0x32a   :  { %v5426_v26 = vsel %vm4605_vm11, %v16617_v59, %v5425_v56  ;;  %v5037_v51 = vsel %vm4599_vm8, %v16609_v39, %v5036_v23  ;;  %v5019_v48 = vsel %vm4605_vm11, %v16606_v62, %v5018_v60  ;;  %v3208_v23 = vrot.slane %v3076_v27, 2  ;;  %v13683_v59 = vpop.permute.xlu0 %3097  ;;  %6307 = vmatpush2.msra.mxu0 %v8519_v33  ;;  %5902 = vmatprep.subr.mxu1 %v8454_v28  ;;  %v8453_v33 = vld [vmem:[%s15535_s5 + $0x710] sm:$0xff]  ;;  %v16628_v62 = vld [vmem:[#allocation111_spill] sm:$0xff] }
 0x32b   :  { %v3716_v24 = vmul.f32 %v16574_v41, %v3580_v15  ;;  %v5427_v21 = vsel %vm4607_vm13, %v13596_v50, %v5426_v26  ;;  %v5038_v56 = vsel %vm4601_vm9, %v16611_v46, %v5037_v51  ;;  %v5020_v0 = vsel %vm4607_vm13, %v16610_v58, %v5019_v48  ;;  %v16619_v51 = vld [vmem:[#allocation77_spill] sm:$0xff]  ;;  %v3100_v50 = vpop.permute.xlu1 %3099  ;;  %5903 = vmatpush2.msra.mxu1 %v8453_v33  ;;  %v16629_v7 = vld [vmem:[#allocation106_spill] sm:$0xff] }
 0x32c   :  { %8400 = vmatprep.mubr.msk.f32.mxu0 %vm4722_vm12, %v5427_v21  ;;  %v5039_v15 = vsel %vm4603_vm10, %v16614_v36, %v5038_v56  ;;  %v13675_v26 = vrot.slane %v13166_v61, %v16263_v40  ;;  %5173 = vmatmul.mubr.f32.gmra.mxu1 %v5020_v0  ;;  %v16620_v21 = vld [vmem:[#allocation81_spill] sm:$0xff]  ;;  %v3207_v48 = vrot.slane %v3074_v53, 2  ;;  %v16621_v56 = vld [vmem:[#allocation83_spill] sm:$0xff] }
 0x32d   :  { %v3852_v38 = vadd.f32 %v16577_v5, %v3716_v24  ;;  %v5040_v60 = vsel %vm4605_vm11, %v16615_v12, %v5039_v15  ;;  %v5414_v39 = vsel %vm4595_vm6, %v16620_v21, %v16619_v51  ;;  %v8518_v61 = vld [vmem:[%s15535_s5 + $0x8c8] sm:$0xff]  ;;  %v3305_v24 = vsel %vm3245_vm5, %v3076_v27, %v3208_v23  ;;  %v8517_v12 = vld [vmem:[%s15535_s5 + $0x8c0] sm:$0xff] }
 0x32e   :  { %16618 = vst [vmem:[#allocation87_spill] sm:$0xff] %v13675_v26  ;;  %v5041_v47 = vsel %vm4607_vm13, %v16616_v6, %v5040_v60  ;;  %v5415_v0 = vsel %vm4597_vm7, %v16621_v56, %v5414_v39  ;;  %v6063_v15 = vrot.slane %v13291_v13, %v16265_v63  ;;  %v16622_v39 = vld [vmem:[#allocation29_spill] sm:$0xff]  ;;  %v3304_v46 = vsel %vm3245_vm5, %v3074_v53, %v3207_v48 }
 0x32f   :  { %v13702_v22 = vrot.slane %v3852_v38, %v16263_v40  ;;  %v13705_v27 = vrot.slane %v3852_v38, %v16265_v63  ;;  %8332 = vmatprep.mubr.msk.f32.mxu1 %vm4722_vm12, %v5041_v47  ;;  %v3497_v23 = vmax.f32 %v16622_v39, %v3305_v24  ;;  %v16623_v60 = vld [vmem:[#allocation5_spill] sm:$0xff]  ;;  %v6127_v38 = vsel %vm4595_vm6, %v16480_v31, %v16479_v1  ;;  %v8516_v24 = vld [vmem:[%s15535_s5 + $0x8b8] sm:$0xff] }
 0x330   :  { %v5416_v28 = vsel %vm4599_vm8, %v16623_v60, %v5415_v0  ;;  %v8452_v6 = vld [vmem:[%s15535_s5 + $0x708] sm:$0xff]  ;;  %v5029_v47 = vsel %vm4597_vm7, %v16619_v51, %v13073_v18  ;;  %6308 = vmatprep.subr.mxu0 %v8518_v61  ;;  %v8451_v0 = vld [vmem:[%s15535_s5 + $0x700] sm:$0xff]  ;;  %v6128_v58 = vsel %vm4597_vm7, %v16626_v20, %v6127_v38  ;;  %v8450_v18 = vld [vmem:[%s15535_s5 + $0x6f8] sm:$0xff] }
 0x331   :  { %v5417_v36 = vsel %vm4601_vm9, %v12670_v30, %v5416_v28  ;;  %v3593_v39 = vmax.f32 %v3497_v23, 0.0  ;;  %v16624_v28 = vld [vmem:[#allocation158_spill] sm:$0xff]  ;;  %v16625_v48 = vld [vmem:[#allocation9_spill] sm:$0xff]  ;;  %6309 = vmatpush2.msra.mxu0 %v8517_v12  ;;  %v6129_v23 = vsel %vm4599_vm8, %v16628_v62, %v6128_v58  ;;  %5904 = vmatprep.subr.mxu1 %v8452_v6 }
 0x332   :  { %v5418_v53 = vsel %vm4603_vm10, %v16624_v28, %v5417_v36  ;;  %v3496_v35 = vmax.f32 %v16625_v48, %v3304_v46  ;;  %v16627_v51 = vld [vmem:[#allocation26_spill] sm:$0xff]  ;;  %v5030_v36 = vsel %vm4599_vm8, %v16620_v21, %v5029_v47  ;;  %v5725_v46 = vsel %vm4595_vm6, %v16479_v1, %v16629_v7  ;;  %v16630_v48 = vld [vmem:[#allocation17_spill] sm:$0xff]  ;;  %v3122_v47 = vpop.permute.xlu0 %3121  ;;  %6310 = vmatprep.subr.mxu0 %v8516_v24  ;;  %v16631_v7 = vld [vmem:[#allocation68_spill] sm:$0xff] }
 0x333   :  { %v5419_v61 = vsel %vm4605_vm11, %v16627_v51, %v5418_v53  ;;  %v8515_v12 = vld [vmem:[%s15535_s5 + $0x8b0] sm:$0xff]  ;;  %v3729_v33 = vmul.f32 %v10843_v45, %v3593_v39  ;;  %v6130_v58 = vsel %vm4601_vm9, %v16630_v48, %v6129_v23  ;;  %v3124_v51 = vpop.permute.xlu1 %3123  ;;  %5905 = vmatpush2.msra.mxu1 %v8451_v0  ;;  %v8514_v1 = vld [vmem:[%s15535_s5 + $0x8a8] sm:$0xff]  ;;  %v5031_v39 = vsel %vm4601_vm9, %v16621_v56, %v5030_v36  ;;  %v8513_v36 = vld [vmem:[%s15535_s5 + $0x8a0] sm:$0xff] }
 0x334   :  { %v5420_v38 = vsel %vm4607_vm13, %v13675_v26, %v5419_v61  ;;  %v3592_v53 = vmax.f32 %v3496_v35, 0.0  ;;  %v6131_v6 = vsel %vm4603_vm10, %v16631_v7, %v6130_v58  ;;  %v5726_v35 = vsel %vm4597_vm7, %v16480_v31, %v5725_v46  ;;  %5906 = vmatprep.subr.mxu1 %v8450_v18  ;;  %6311 = vmatpush2.msra.mxu0 %v8515_v12  ;;  %v8512_v12 = vld [vmem:[%s15535_s5 + $0x898] sm:$0xff] }
 0x335   :  { %5565 = vmatmul.mubr.f32.gmra.mxu0 %v5420_v38  ;;  %v3220_v61 = vrot.slane %v3100_v50, 2  ;;  %v13764_v23 = vadd.f32 %v10886_v25, %v3729_v33  ;;  %v6132_v0 = vsel %vm4605_vm11, %v13355_v54, %v6131_v6  ;;  %v5032_v38 = vsel %vm4603_vm10, %v16623_v60, %v5031_v39  ;;  %6312 = vmatprep.subr.mxu0 %v8514_v1  ;;  %v8448_v6 = vld [vmem:[%s15535_s5 + $0x6e8] sm:$0xff] }
 0x336   :  { %v3728_v24 = vmul.f32 %v10802_v55, %v3592_v53  ;;  %v6133_v31 = vsel %vm4607_vm13, %v6063_v15, %v6132_v0  ;;  %v5033_v18 = vsel %vm4605_vm11, %v12670_v30, %v5032_v38  ;;  %v5727_v46 = vsel %vm4599_vm8, %v16626_v20, %v5726_v35  ;;  %v8449_v53 = vld [vmem:[%s15535_s5 + $0x6f0] sm:$0xff]  ;;  %6313 = vmatpush2.msra.mxu0 %v8513_v36 }
 0x337   :  { %v3317_v33 = vsel %vm3245_vm5, %v3100_v50, %v3220_v61  ;;  %8529 = vmatprep.mubr.msk.f32.mxu0 %vm4722_vm12, %v6133_v31  ;;  %v5034_v15 = vsel %vm4607_vm13, %v16624_v28, %v5033_v18  ;;  %v5728_v20 = vsel %vm4601_vm9, %v16628_v62, %v5727_v46  ;;  %v16632_v50 = vld [vmem:[#allocation101_spill] sm:$0xff]  ;;  %v3219_v35 = vrot.slane %v13683_v59, 2  ;;  %v3148_v18 = vpop.permute.xlu1 %3147  ;;  %5907 = vmatpush2.msra.mxu1 %v8449_v53  ;;  %v3146_v46 = vpop.permute.xlu0 %3145  ;;  %v8511_v36 = vld [vmem:[%s15535_s5 + $0x890] sm:$0xff] }
 0x338   :  { %v3864_v58 = vadd.f32 %v10827_v14, %v3728_v24  ;;  %v3509_v1 = vmax.f32 %v16632_v50, %v3317_v33  ;;  %5179 = vmatmul.mubr.f32.gmra.mxu1 %v5034_v15  ;;  %v5729_v39 = vsel %vm4603_vm10, %v16630_v48, %v5728_v20  ;;  %v3232_v61 = vrot.slane %v3124_v51, 2  ;;  %6314 = vmatprep.subr.mxu0 %v8512_v12  ;;  %v8447_v48 = vld [vmem:[%s15535_s5 + $0x6e0] sm:$0xff]  ;;  %v8446_v12 = vld [vmem:[%s15535_s5 + $0x6d8] sm:$0xff]  ;;  %v8510_v15 = vld [vmem:[%s15535_s5 + $0x888] sm:$0xff] }
 0x339   :  { %v3231_v24 = vrot.slane %v3122_v47, 2  ;;  %v5730_v38 = vsel %vm4605_vm11, %v16631_v7, %v5729_v39  ;;  %5908 = vmatprep.subr.mxu1 %v8448_v6  ;;  %v16633_v20 = vld [vmem:[#allocation100_spill] sm:$0xff]  ;;  %6315 = vmatpush2.msra.mxu0 %v8511_v36 }
 0x33a   :  { %v13800_v0 = vrot.slane %v3864_v58, %v16263_v40  ;;  %v13803_v62 = vrot.slane %v3864_v58, %v16265_v63  ;;  %v3605_v31 = vmax.f32 %v3509_v1, 0.0  ;;  %v5731_v33 = vsel %vm4607_vm13, %v13355_v54, %v5730_v38  ;;  %v8509_v6 = vld [vmem:[%s15535_s5 + $0x880] sm:$0xff]  ;;  %5909 = vmatpush2.msra.mxu1 %v8447_v48  ;;  %6316 = vmatprep.subr.mxu0 %v8510_v15  ;;  %v8508_v48 = vld [vmem:[%s15535_s5 + $0x878] sm:$0xff] }
 0x33b   :  { %v3316_v58 = vsel %vm3245_vm5, %v13683_v59, %v3219_v35  ;;  %v3329_v7 = vsel %vm3245_vm5, %v3124_v51, %v3232_v61  ;;  %v3328_v53 = vsel %vm3245_vm5, %v3122_v47, %v3231_v24  ;;  %8461 = vmatprep.mubr.msk.f32.mxu1 %vm4722_vm12, %v5731_v33  ;;  %v16634_v59 = vld [vmem:[#allocation103_spill] sm:$0xff]  ;;  %v16635_v51 = vld [vmem:[#allocation102_spill] sm:$0xff]  ;;  %v3244_v35 = vrot.slane %v3148_v18, 2  ;;  %v8444_v24 = vld [vmem:[%s15535_s5 + $0x6c8] sm:$0xff]  ;;  %5910 = vmatprep.subr.mxu1 %v8446_v12 }
 0x33c   :  { %v3741_v54 = vmul.f32 %v16568_v10, %v3605_v31  ;;  %v3508_v50 = vmax.f32 %v16633_v20, %v3316_v58  ;;  %v3521_v1 = vmax.f32 %v16634_v59, %v3329_v7  ;;  %v3520_v39 = vmax.f32 %v16635_v51, %v3328_v53  ;;  %v8445_v47 = vld [vmem:[%s15535_s5 + $0x6d0] sm:$0xff]  ;;  %v16636_v38 = vld [vmem:[#allocation60_spill] sm:$0xff]  ;;  %v16637_v31 = vld [vmem:[#allocation109_spill] sm:$0xff]  ;;  %6317 = vmatpush2.msra.mxu0 %v8509_v6 }
 0x33d   :  { %v3243_v61 = vrot.slane %v3146_v46, 2  ;;  %v6120_v33 = vsel %vm4595_vm6, %v16637_v31, %v16636_v38  ;;  %v8443_v36 = vld [vmem:[%s15535_s5 + $0x6c0] sm:$0xff]  ;;  %v3341_v51 = vsel %vm3245_vm5, %v3148_v18, %v3244_v35  ;;  %5911 = vmatpush2.msra.mxu1 %v8445_v47  ;;  %v8442_v12 = vld [vmem:[%s15535_s5 + $0x6b8] sm:$0xff]  ;;  %v8506_v6 = vld [vmem:[%s15535_s5 + $0x868] sm:$0xff]  ;;  %6318 = vmatprep.subr.mxu0 %v8508_v48 }
 0x33e   :  { %v13845_v7 = vadd.f32 %v16572_v37, %v3741_v54  ;;  %v3604_v53 = vmax.f32 %v3508_v50, 0.0  ;;  %v3617_v20 = vmax.f32 %v3521_v1, 0.0  ;;  %v3616_v59 = vmax.f32 %v3520_v39, 0.0  ;;  %v8507_v54 = vld [vmem:[%s15535_s5 + $0x870] sm:$0xff]  ;;  %v16638_v15 = vld [vmem:[#allocation15_spill] sm:$0xff]  ;;  %5912 = vmatprep.subr.mxu1 %v8444_v24  ;;  %v8440_v48 = vld [vmem:[%s15535_s5 + $0x6a8] sm:$0xff] }
 0x33f   :  { %v3340_v58 = vsel %vm3245_vm5, %v3146_v46, %v3243_v61  ;;  %v6121_v50 = vsel %vm4597_vm7, %v16638_v15, %v6120_v33  ;;  %v16639_v46 = vld [vmem:[#allocation104_spill] sm:$0xff]  ;;  %v8441_v35 = vld [vmem:[%s15535_s5 + $0x6b0] sm:$0xff]  ;;  %v16640_v61 = vld [vmem:[#allocation105_spill] sm:$0xff]  ;;  %5913 = vmatpush2.msra.mxu1 %v8443_v36  ;;  %v6141_v24 = vsel %vm4595_vm6, %v16502_v43, %v16501_v2  ;;  %6319 = vmatpush2.msra.mxu0 %v8507_v54 }
 0x340   :  { %v3740_v1 = vmul.f32 %v16574_v41, %v3604_v53  ;;  %v3753_v39 = vmul.f32 %v10843_v45, %v3617_v20  ;;  %v3752_v18 = vmul.f32 %v10802_v55, %v3616_v59  ;;  %v3533_v47 = vmax.f32 %v16639_v46, %v3341_v51  ;;  %v8505_v45 = vld [vmem:[%s15535_s5 + $0x860] sm:$0xff]  ;;  %v16641_v55 = vld [vmem:[#allocation30_spill] sm:$0xff]  ;;  %5914 = vmatprep.subr.mxu1 %v8442_v12  ;;  %v8504_v36 = vld [vmem:[%s15535_s5 + $0x858] sm:$0xff] }
 0x341   :  { %v3532_v26 = vmax.f32 %v16640_v61, %v3340_v58  ;;  %v6122_v33 = vsel %vm4599_vm8, %v16641_v55, %v6121_v50  ;;  %6320 = vmatprep.subr.mxu0 %v8506_v6  ;;  %5915 = vmatpush2.msra.mxu1 %v8441_v35  ;;  %v16642_v54 = vld [vmem:[#allocation31_spill] sm:$0xff]  ;;  %v6142_v50 = vsel %vm4597_vm7, %v16505_v57, %v6141_v24  ;;  %v16644_v24 = vld [vmem:[#allocation85_spill] sm:$0xff] }
 0x342   :  { %v3876_v53 = vadd.f32 %v16577_v5, %v3740_v1  ;;  %v13884_v20 = vadd.f32 %v10886_v25, %v3753_v39  ;;  %v3888_v58 = vadd.f32 %v10827_v14, %v3752_v18  ;;  %v3629_v59 = vmax.f32 %v3533_v47, 0.0  ;;  %v8439_v25 = vld [vmem:[%s15535_s5 + $0x6a0] sm:$0xff]  ;;  %v8503_v14 = vld [vmem:[%s15535_s5 + $0x850] sm:$0xff]  ;;  %6321 = vmatpush2.msra.mxu0 %v8505_v45  ;;  %v8438_v6 = vld [vmem:[%s15535_s5 + $0x698] sm:$0xff]  ;;  %5916 = vmatprep.subr.mxu1 %v8440_v48 }
 0x343   :  { %v3628_v51 = vmax.f32 %v3532_v26, 0.0  ;;  %v6123_v12 = vsel %vm4601_vm9, %v16642_v54, %v6122_v33  ;;  %v16643_v1 = vld [vmem:[#allocation64_spill] sm:$0xff]  ;;  %6322 = vmatprep.subr.mxu0 %v8504_v36  ;;  %v8437_v33 = vld [vmem:[%s15535_s5 + $0x690] sm:$0xff]  ;;  %5917 = vmatpush2.msra.mxu1 %v8439_v25 }
 0x344   :  { %v5718_v26 = vsel %vm4595_vm6, %v16636_v38, %v16643_v1  ;;  %v13907_v39 = vrot.slane %v3876_v53, %v16263_v40  ;;  %v13910_v18 = vrot.slane %v3876_v53, %v16265_v63  ;;  %v13913_v46 = vrot.slane %v3888_v58, %v16263_v40  ;;  %v8502_v38 = vld [vmem:[%s15535_s5 + $0x848] sm:$0xff]  ;;  %v8501_v45 = vld [vmem:[%s15535_s5 + $0x840] sm:$0xff]  ;;  %6323 = vmatpush2.msra.mxu0 %v8503_v14 }
 0x345   :  { %v13916_v47 = vrot.slane %v3888_v58, %v16265_v63  ;;  %v3765_v35 = vmul.f32 %v16568_v10, %v3629_v59  ;;  %v3764_v61 = vmul.f32 %v16574_v41, %v3628_v51  ;;  %v6124_v53 = vsel %vm4603_vm10, %v16644_v24, %v6123_v12  ;;  %v8436_v10 = vld [vmem:[%s15535_s5 + $0x688] sm:$0xff]  ;;  %5918 = vmatprep.subr.mxu1 %v8438_v6  ;;  %v8435_v14 = vld [vmem:[%s15535_s5 + $0x680] sm:$0xff] }
 0x346   :  { %v6125_v41 = vsel %vm4605_vm11, %v13352_v34, %v6124_v53  ;;  %v6143_v58 = vsel %vm4599_vm8, %v16507_v11, %v6142_v50  ;;  %v5719_v59 = vsel %vm4597_vm7, %v16637_v31, %v5718_v26  ;;  %6324 = vmatprep.subr.mxu0 %v8502_v38  ;;  %v16645_v51 = vrot.slane %v13291_v13, %v16263_v40  ;;  %v8433_v26 = vld [vmem:[%s15535_s5 + $0x670] sm:$0xff] }
 0x347   :  { %v13944_v48 = vadd.f32 %v16572_v37, %v3765_v35  ;;  %v3900_v36 = vadd.f32 %v16577_v5, %v3764_v61  ;;  %5919 = vmatpush2.msra.mxu1 %v8437_v33  ;;  %6325 = vmatpush2.msra.mxu0 %v8501_v45  ;;  %v6144_v31 = vsel %vm4601_vm9, %v16509_v44, %v6143_v58  ;;  %v8434_v37 = vld [vmem:[%s15535_s5 + $0x678] sm:$0xff] }
 0x348   :  { %v6126_v25 = vsel %vm4607_vm13, %v16645_v51, %v6125_v41  ;;  %v5720_v5 = vsel %vm4599_vm8, %v16638_v15, %v5719_v59  ;;  %v6067_v13 = vrot.slane %v13407_v42, %v16263_v40  ;;  %5920 = vmatprep.subr.mxu1 %v8436_v10  ;;  %v6145_v1 = vsel %vm4603_vm10, %v12933_v32, %v6144_v31  ;;  %v16648_v41 = vld [vmem:[#allocation35_spill] sm:$0xff]  ;;  %v16653_v31 = vld [vmem:[#allocation113_spill] sm:$0xff] }
 0x349   :  { %v13964_v12 = vrot.slane %v3900_v36, %v16263_v40  ;;  %v13967_v50 = vrot.slane %v3900_v36, %v16265_v63  ;;  %6327 = vmatmul.mubr.f32.vlgmr.msra.gmra.mxu0 %v6126_v25  ;;  %5921 = vmatpush2.msra.mxu1 %v8435_v14  ;;  %v6146_v15 = vsel %vm4605_vm11, %v13461_v52, %v6145_v1  ;;  %v16649_v36 = vmov 0.0   ;;  %v16651_v25 = vld [vmem:[#allocation122_spill] sm:$0xff]  ;;  %v16654_v1 = vld [vmem:[#allocation125_spill] sm:$0xff] }
 0x34a   :  { %v5721_v6 = vsel %vm4601_vm9, %v16641_v55, %v5720_v5  ;;  %v6134_v38 = vsel %vm4595_vm6, %v16510_v17, %v16508_v49  ;;  %v5739_v35 = vsel %vm4595_vm6, %v16501_v2, %v16499_v8  ;;  %v16646_v61 = vrot.slane %v13407_v42, %v16265_v63  ;;  %5922 = vmatprep.subr.mxu1 %v8434_v37  ;;  %v16647_v8 = vld [vmem:[#allocation120_spill] sm:$0xff] }
 0x34b   :  { %v5722_v45 = vsel %vm4603_vm10, %v16642_v54, %v5721_v6  ;;  %v6135_v55 = vsel %vm4597_vm7, %v16512_v29, %v6134_v38  ;;  %v5740_v53 = vsel %vm4597_vm7, %v16502_v43, %v5739_v35  ;;  %5923 = vmatpush2.msra.mxu1 %v8433_v26  ;;  %v6079_v59 = vrot.slane %v13525_v16, %v16265_v63 }
 0x34c   :  { %v6147_v33 = vsel %vm4607_vm13, %v16646_v61, %v6146_v15  ;;  %v5723_v2 = vsel %vm4605_vm11, %v16644_v24, %v5722_v45  ;;  %v6136_v42 = vsel %vm4599_vm8, %v16647_v8, %v6135_v55  ;;  %v5741_v10 = vsel %vm4599_vm8, %v16505_v57, %v5740_v53  ;;  %7270 = vmatprep.subr.mxu1 %v16649_v36  ;;  %v16650_v24 = vld [vmem:[#allocation80_spill] sm:$0xff]  ;;  %v16657_v45 = vld [vmem:[#allocation38_spill] sm:$0xff] }
 0x34d   :  { %8530 = vmatprep.mubr.msk.f32.mxu0 %vm4722_vm12, %v6147_v33  ;;  %v5724_v54 = vsel %vm4607_vm13, %v13352_v34, %v5723_v2  ;;  %v6137_v58 = vsel %vm4601_vm9, %v16648_v41, %v6136_v42  ;;  %v5742_v43 = vsel %vm4601_vm9, %v16507_v11, %v5741_v10  ;;  %v16652_v34 = vld [vmem:[#allocation124_spill] sm:$0xff]  ;;  %v5732_v11 = vsel %vm4595_vm6, %v16508_v49, %v16653_v31  ;;  %v16655_v49 = vld [vmem:[#allocation127_spill] sm:$0xff]  ;;  %v16660_v42 = vld [vmem:[#allocation13_spill] sm:$0xff] }
 0x34e   :  { %5925 = vmatmul.mubr.f32.vlgmr.msra.gmra.mxu1 %v5724_v54  ;;  %v6138_v51 = vsel %vm4603_vm10, %v16650_v24, %v6137_v58  ;;  %v5743_v57 = vsel %vm4603_vm10, %v16509_v44, %v5742_v43  ;;  %v6155_v14 = vsel %vm4595_vm6, %v16652_v34, %v16651_v25  ;;  %v5733_v44 = vsel %vm4597_vm7, %v16510_v17, %v5732_v11  ;;  %v16656_v61 = vld [vmem:[#allocation76_spill] sm:$0xff]  ;;  %v16664_v31 = vld [vmem:[#allocation86_spill] sm:$0xff] }
 0x34f   :  { %v6139_v37 = vsel %vm4605_vm11, %v13458_v4, %v6138_v51  ;;  %v5744_v5 = vsel %vm4605_vm11, %v12933_v32, %v5743_v57  ;;  %v6156_v26 = vsel %vm4597_vm7, %v16654_v1, %v6155_v14  ;;  %7613 = vmatprep.subr.mxu0 %v16649_v36  ;;  %v5734_v35 = vsel %vm4599_vm8, %v16512_v29, %v5733_v44  ;;  %v16658_v29 = vld [vmem:[#allocation123_spill] sm:$0xff]  ;;  %v16659_v53 = vld [vmem:[#allocation36_spill] sm:$0xff]  ;;  %v16662_v51 = vld [vmem:[#allocation126_spill] sm:$0xff] }
 0x350   :  { %v6140_v15 = vsel %vm4607_vm13, %v6067_v13, %v6139_v37  ;;  %v5745_v6 = vsel %vm4607_vm13, %v13461_v52, %v5744_v5  ;;  %v6157_v38 = vsel %vm4599_vm8, %v16655_v49, %v6156_v26  ;;  %v5735_v17 = vsel %vm4601_vm9, %v16647_v8, %v5734_v35  ;;  %v16661_v10 = vld [vmem:[#allocation40_spill] sm:$0xff]  ;;  %v16665_v37 = vld [vmem:[#allocation129_spill] sm:$0xff]  ;;  %v16666_v5 = vld [vmem:[#allocation131_spill] sm:$0xff] }
 0x351   :  { %6333 = vmatmul.mubr.f32.gmra.mxu0 %v6140_v15  ;;  %8462 = vmatprep.mubr.msk.f32.mxu1 %vm4722_vm12, %v5745_v6  ;;  %v6158_v32 = vsel %vm4601_vm9, %v16530_v3, %v6157_v38  ;;  %v6075_v13 = vrot.slane %v13525_v16, %v16263_v40  ;;  %v5736_v33 = vsel %vm4603_vm10, %v16648_v41, %v5735_v17  ;;  %v16667_v26 = vld [vmem:[#allocation34_spill] sm:$0xff] }
 0x352   :  { %v6159_v52 = vsel %vm4603_vm10, %v16656_v61, %v6158_v32  ;;  %v6148_v55 = vsel %vm4595_vm6, %v16658_v29, %v16657_v45  ;;  %v5753_v2 = vsel %vm4595_vm6, %v16651_v25, %v16659_v53  ;;  %v5737_v16 = vsel %vm4605_vm11, %v16650_v24, %v5736_v33  ;;  %v16663_v24 = vld [vmem:[#allocation132_spill] sm:$0xff]  ;;  %v16668_v15 = vld [vmem:[#allocation110_spill] sm:$0xff] }
 0x353   :  { %v6160_v8 = vsel %vm4605_vm11, %v16660_v42, %v6159_v52  ;;  %v6149_v54 = vsel %vm4597_vm7, %v16661_v10, %v6148_v55  ;;  %v5754_v41 = vsel %vm4597_vm7, %v16652_v34, %v5753_v2  ;;  %v5738_v43 = vsel %vm4607_vm13, %v13458_v4, %v5737_v16  ;;  %v16669_v38 = vld [vmem:[#allocation134_spill] sm:$0xff]  ;;  %v16670_v52 = vld [vmem:[#allocation136_spill] sm:$0xff] }
 0x354   :  { %v6161_v58 = vsel %vm4607_vm13, %v6079_v59, %v6160_v8  ;;  %v6150_v57 = vsel %vm4599_vm8, %v16662_v51, %v6149_v54  ;;  %v5755_v25 = vsel %vm4599_vm8, %v16654_v1, %v5754_v41  ;;  %5931 = vmatmul.mubr.f32.gmra.mxu1 %v5738_v43  ;;  %v6087_v59 = vrot.slane %v13647_v9, %v16265_v63  ;;  %v16672_v53 = vld [vmem:[#allocation16_spill] sm:$0xff]  ;;  %v16674_v16 = vld [vmem:[#allocation130_spill] sm:$0xff]  ;;  %v16676_v43 = vld [vmem:[#allocation133_spill] sm:$0xff] }
 0x355   :  { %8531 = vmatprep.mubr.msk.f32.mxu0 %vm4722_vm12, %v6161_v58  ;;  %v6151_v14 = vsel %vm4601_vm9, %v16663_v24, %v6150_v57  ;;  %v5756_v34 = vsel %vm4601_vm9, %v16655_v49, %v5755_v25  ;;  %v6169_v1 = vsel %vm4595_vm6, %v16666_v5, %v16665_v37  ;;  %v5746_v44 = vsel %vm4595_vm6, %v16657_v45, %v16667_v26  ;;  %v16673_v8 = vld [vmem:[#allocation128_spill] sm:$0xff] }
 0x356   :  { %v6152_v4 = vsel %vm4603_vm10, %v16664_v31, %v6151_v14  ;;  %v5757_v11 = vsel %vm4603_vm10, %v16530_v3, %v5756_v34  ;;  %v6170_v35 = vsel %vm4597_vm7, %v16669_v38, %v6169_v1  ;;  %v5747_v3 = vsel %vm4597_vm7, %v16658_v29, %v5746_v44  ;;  %v16675_v54 = vld [vmem:[#allocation44_spill] sm:$0xff]  ;;  %v16677_v14 = vld [vmem:[#allocation135_spill] sm:$0xff]  ;;  %v16680_v44 = vld [vmem:[#allocation138_spill] sm:$0xff] }
 0x357   :  { %v6153_v6 = vsel %vm4605_vm11, %v16668_v15, %v6152_v4  ;;  %v5758_v49 = vsel %vm4605_vm11, %v16656_v61, %v5757_v11  ;;  %v6171_v33 = vsel %vm4599_vm8, %v16670_v52, %v6170_v35  ;;  %v5748_v45 = vsel %vm4599_vm8, %v16661_v10, %v5747_v3  ;;  %v16671_v61 = vld [vmem:[#allocation47_spill] sm:$0xff] }
 0x358   :  { %v6154_v32 = vsel %vm4607_vm13, %v6075_v13, %v6153_v6  ;;  %v5759_v17 = vsel %vm4607_vm13, %v16660_v42, %v5758_v49  ;;  %v6172_v55 = vsel %vm4601_vm9, %v16671_v61, %v6171_v33  ;;  %v5749_v29 = vsel %vm4601_vm9, %v16662_v51, %v5748_v45  ;;  %v16682_v49 = vld [vmem:[#allocation41_spill] sm:$0xff] }
 0x359   :  { %6339 = vmatmul.mubr.f32.gmra.mxu0 %v6154_v32  ;;  %8463 = vmatprep.mubr.msk.f32.mxu1 %vm4722_vm12, %v5759_v17  ;;  %v6083_v13 = vrot.slane %v13647_v9, %v16263_v40  ;;  %v6173_v2 = vsel %vm4603_vm10, %v16672_v53, %v6172_v55  ;;  %v5750_v42 = vsel %vm4603_vm10, %v16663_v24, %v5749_v29  ;;  %v16683_v32 = vld [vmem:[#allocation142_spill] sm:$0xff] }
 0x35a   :  { %v6162_v10 = vsel %vm4595_vm6, %v16674_v16, %v16673_v8  ;;  %v5767_v41 = vsel %vm4595_vm6, %v16665_v37, %v16675_v54  ;;  %v6174_v58 = vsel %vm4605_vm11, %v13705_v27, %v6173_v2  ;;  %v5751_v9 = vsel %vm4605_vm11, %v16664_v31, %v5750_v42  ;;  %v16678_v31 = vld [vmem:[#allocation27_spill] sm:$0xff] }
 0x35b   :  { %v6163_v51 = vsel %vm4597_vm7, %v16676_v43, %v6162_v10  ;;  %v5768_v57 = vsel %vm4597_vm7, %v16666_v5, %v5767_v41  ;;  %v6175_v25 = vsel %vm4607_vm13, %v6087_v59, %v6174_v58  ;;  %v5752_v24 = vsel %vm4607_vm13, %v16668_v15, %v5751_v9  ;;  %v16679_v5 = vld [vmem:[#allocation112_spill] sm:$0xff]  ;;  %v16687_v10 = vld [vmem:[#allocation137_spill] sm:$0xff]  ;;  %v16688_v54 = vld [vmem:[#allocation139_spill] sm:$0xff] }
 0x35c   :  { %v6164_v34 = vsel %vm4599_vm8, %v16677_v14, %v6163_v51  ;;  %v5769_v4 = vsel %vm4599_vm8, %v16669_v38, %v5768_v57  ;;  %8532 = vmatprep.mubr.msk.f32.mxu0 %vm4722_vm12, %v6175_v25  ;;  %5937 = vmatmul.mubr.f32.gmra.mxu1 %v5752_v24  ;;  %v6095_v59 = vrot.slane %v13764_v23, %v16265_v63  ;;  %v16681_v15 = vld [vmem:[#allocation140_spill] sm:$0xff]  ;;  %v16689_v58 = vld [vmem:[#allocation49_spill] sm:$0xff] }
 0x35d   :  { %v6165_v11 = vsel %vm4601_vm9, %v16678_v31, %v6164_v34  ;;  %v5770_v37 = vsel %vm4601_vm9, %v16670_v52, %v5769_v4  ;;  %v6183_v6 = vsel %vm4595_vm6, %v16681_v15, %v16680_v44  ;;  %v5760_v38 = vsel %vm4595_vm6, %v16673_v8, %v16682_v49  ;;  %v16686_v8 = vld [vmem:[#allocation43_spill] sm:$0xff]  ;;  %v16690_v51 = vld [vmem:[#allocation141_spill] sm:$0xff]  ;;  %v16696_v49 = vld [vmem:[#allocation48_spill] sm:$0xff] }
 0x35e   :  { %v6166_v1 = vsel %vm4603_vm10, %v16679_v5, %v6165_v11  ;;  %v5771_v26 = vsel %vm4603_vm10, %v16671_v61, %v5770_v37  ;;  %v6184_v17 = vsel %vm4597_vm7, %v16683_v32, %v6183_v6  ;;  %v5761_v52 = vsel %vm4597_vm7, %v16674_v16, %v5760_v38  ;;  %v16684_v61 = vld [vmem:[#allocation144_spill] sm:$0xff]  ;;  %v16691_v34 = vld [vmem:[#allocation143_spill] sm:$0xff]  ;;  %v16692_v11 = vld [vmem:[#allocation53_spill] sm:$0xff] }
 0x35f   :  { %v6167_v35 = vsel %vm4605_vm11, %v13702_v22, %v6166_v1  ;;  %v5772_v3 = vsel %vm4605_vm11, %v16672_v53, %v5771_v26  ;;  %v6185_v55 = vsel %vm4599_vm8, %v16684_v61, %v6184_v17  ;;  %v5762_v29 = vsel %vm4599_vm8, %v16676_v43, %v5761_v52  ;;  %v16685_v53 = vld [vmem:[#allocation55_spill] sm:$0xff]  ;;  %v16693_v1 = vld [vmem:[#allocation46_spill] sm:$0xff] }
 0x360   :  { %v6168_v33 = vsel %vm4607_vm13, %v6083_v13, %v6167_v35  ;;  %v5773_v45 = vsel %vm4607_vm13, %v13705_v27, %v5772_v3  ;;  %v6186_v2 = vsel %vm4601_vm9, %v16685_v53, %v6185_v55  ;;  %v5763_v42 = vsel %vm4601_vm9, %v16677_v14, %v5762_v29 }
 0x361   :  { %6345 = vmatmul.mubr.f32.gmra.mxu0 %v6168_v33  ;;  %8464 = vmatprep.mubr.msk.f32.mxu1 %vm4722_vm12, %v5773_v45  ;;  %v6091_v13 = vrot.slane %v13764_v23, %v16263_v40  ;;  %v6187_v27 = vsel %vm4603_vm10, %v16686_v8, %v6186_v2  ;;  %v5764_v16 = vsel %vm4603_vm10, %v16678_v31, %v5763_v42 }
 0x362   :  { %v6176_v41 = vsel %vm4595_vm6, %v16688_v54, %v16687_v10  ;;  %v5781_v9 = vsel %vm4595_vm6, %v16680_v44, %v16689_v58  ;;  %v6188_v43 = vsel %vm4605_vm11, %v13803_v62, %v6187_v27  ;;  %v5765_v23 = vsel %vm4605_vm11, %v16679_v5, %v5764_v16  ;;  %v16694_v44 = vld [vmem:[#allocation25_spill] sm:$0xff] }
 0x363   :  { %v6177_v57 = vsel %vm4597_vm7, %v16690_v51, %v6176_v41  ;;  %v5782_v25 = vsel %vm4597_vm7, %v16681_v15, %v5781_v9  ;;  %v6189_v24 = vsel %vm4607_vm13, %v6095_v59, %v6188_v43  ;;  %v5766_v14 = vsel %vm4607_vm13, %v13702_v22, %v5765_v23  ;;  %v16695_v15 = vld [vmem:[#allocation146_spill] sm:$0xff]  ;;  %v16701_v16 = vld [vmem:[#allocation61_spill] sm:$0xff] }
 0x364   :  { %v6178_v4 = vsel %vm4599_vm8, %v16691_v34, %v6177_v57  ;;  %v5783_v31 = vsel %vm4599_vm8, %v16683_v32, %v5782_v25  ;;  %8533 = vmatprep.mubr.msk.f32.mxu0 %vm4722_vm12, %v6189_v24  ;;  %5943 = vmatmul.mubr.f32.gmra.mxu1 %v5766_v14  ;;  %v6103_v59 = vrot.slane %v13845_v7, %v16265_v63  ;;  %v16697_v32 = vld [vmem:[#allocation147_spill] sm:$0xff]  ;;  %v16703_v41 = vld [vmem:[#allocation58_spill] sm:$0xff]  ;;  %v16704_v43 = vld [vmem:[#allocation65_spill] sm:$0xff] }
 0x365   :  { %v6179_v37 = vsel %vm4601_vm9, %v16692_v11, %v6178_v4  ;;  %v5784_v5 = vsel %vm4601_vm9, %v16684_v61, %v5783_v31  ;;  %v6197_v6 = vsel %vm4595_vm6, %v16695_v15, %v16694_v44  ;;  %v5774_v38 = vsel %vm4595_vm6, %v16687_v10, %v16696_v49  ;;  %v16698_v61 = vld [vmem:[#allocation149_spill] sm:$0xff]  ;;  %v16705_v24 = vld [vmem:[#allocation148_spill] sm:$0xff] }
 0x366   :  { %v6180_v22 = vsel %vm4603_vm10, %v16693_v1, %v6179_v37  ;;  %v5785_v26 = vsel %vm4603_vm10, %v16685_v53, %v5784_v5  ;;  %v6198_v17 = vsel %vm4597_vm7, %v16697_v32, %v6197_v6  ;;  %v5775_v52 = vsel %vm4597_vm7, %v16688_v54, %v5774_v38  ;;  %v16699_v53 = vld [vmem:[#allocation70_spill] sm:$0xff]  ;;  %v16702_v10 = vld [vmem:[#allocation145_spill] sm:$0xff] }
 0x367   :  { %v6181_v35 = vsel %vm4605_vm11, %v13800_v0, %v6180_v22  ;;  %v5786_v3 = vsel %vm4605_vm11, %v16686_v8, %v5785_v26  ;;  %v6199_v55 = vsel %vm4599_vm8, %v16698_v61, %v6198_v17  ;;  %v5776_v29 = vsel %vm4599_vm8, %v16690_v51, %v5775_v52  ;;  %v16700_v8 = vld [vmem:[#allocation10_spill] sm:$0xff]  ;;  %v16706_v4 = vld [vmem:[#allocation69_spill] sm:$0xff]  ;;  %v16709_v22 = vld [vmem:[#allocation152_spill] sm:$0xff] }
 0x368   :  { %v6182_v33 = vsel %vm4607_vm13, %v6091_v13, %v6181_v35  ;;  %v5787_v45 = vsel %vm4607_vm13, %v13803_v62, %v5786_v3  ;;  %v6200_v2 = vsel %vm4601_vm9, %v16699_v53, %v6199_v55  ;;  %v5777_v42 = vsel %vm4601_vm9, %v16691_v34, %v5776_v29  ;;  %v16707_v5 = vld [vmem:[#allocation50_spill] sm:$0xff]  ;;  %v16712_v52 = vld [vmem:[#allocation156_spill] sm:$0xff] }
 0x369   :  { %6351 = vmatmul.mubr.f32.gmra.mxu0 %v6182_v33  ;;  %8465 = vmatprep.mubr.msk.f32.mxu1 %vm4722_vm12, %v5787_v45  ;;  %v6099_v13 = vrot.slane %v13845_v7, %v16263_v40  ;;  %v6201_v62 = vsel %vm4603_vm10, %v16700_v8, %v6200_v2  ;;  %v5778_v27 = vsel %vm4603_vm10, %v16692_v11, %v5777_v42  ;;  %v16711_v38 = vld [vmem:[#allocation154_spill] sm:$0xff] }
 0x36a   :  { %v6190_v54 = vsel %vm4595_vm6, %v16702_v10, %v16701_v16  ;;  %v5795_v58 = vsel %vm4595_vm6, %v16694_v44, %v16703_v41  ;;  %v6202_v9 = vsel %vm4605_vm11, %v13910_v18, %v6201_v62  ;;  %v5779_v7 = vsel %vm4605_vm11, %v16693_v1, %v5778_v27  ;;  %v16708_v1 = vld [vmem:[#allocation74_spill] sm:$0xff]  ;;  %v16710_v44 = vld [vmem:[#allocation57_spill] sm:$0xff] }
 0x36b   :  { %v6191_v23 = vsel %vm4597_vm7, %v16704_v43, %v6190_v54  ;;  %v5796_v51 = vsel %vm4597_vm7, %v16695_v15, %v5795_v58  ;;  %v6203_v57 = vsel %vm4607_vm13, %v6103_v59, %v6202_v9  ;;  %v5780_v25 = vsel %vm4607_vm13, %v13800_v0, %v5779_v7  ;;  %v16714_v2 = vld [vmem:[#allocation54_spill] sm:$0xff]  ;;  %v16718_v7 = vld [vmem:[#allocation155_spill] sm:$0xff] }
 0x36c   :  { %v6192_v14 = vsel %vm4599_vm8, %v16705_v24, %v6191_v23  ;;  %v5797_v34 = vsel %vm4599_vm8, %v16697_v32, %v5796_v51  ;;  %8534 = vmatprep.mubr.msk.f32.mxu0 %vm4722_vm12, %v6203_v57  ;;  %5949 = vmatmul.mubr.f32.gmra.mxu1 %v5780_v25  ;;  %v6111_v37 = vrot.slane %v13884_v20, %v16265_v63  ;;  %v16716_v62 = vld [vmem:[#allocation150_spill] sm:$0xff] }
 0x36d   :  { %v6193_v31 = vsel %vm4601_vm9, %v16706_v4, %v6192_v14  ;;  %v5798_v11 = vsel %vm4601_vm9, %v16698_v61, %v5797_v34  ;;  %v6211_v26 = vsel %vm4595_vm6, %v16709_v22, %v16708_v1  ;;  %v5788_v15 = vsel %vm4595_vm6, %v16701_v16, %v16710_v44  ;;  %v16713_v61 = vld [vmem:[#allocation79_spill] sm:$0xff]  ;;  %v16719_v51 = vld [vmem:[#allocation78_spill] sm:$0xff]  ;;  %v16720_v14 = vld [vmem:[#allocation108_spill] sm:$0xff] }
 0x36e   :  { %v6194_v0 = vsel %vm4603_vm10, %v16707_v5, %v6193_v31  ;;  %v5799_v59 = vsel %vm4603_vm10, %v16699_v53, %v5798_v11  ;;  %v6212_v35 = vsel %vm4597_vm7, %v16711_v38, %v6211_v26  ;;  %v5789_v3 = vsel %vm4597_vm7, %v16702_v10, %v5788_v15  ;;  %v16717_v10 = vld [vmem:[#allocation153_spill] sm:$0xff]  ;;  %v16722_v31 = vld [vmem:[#allocation160_spill] sm:$0xff] }
 0x36f   :  { %v6195_v6 = vsel %vm4605_vm11, %v13907_v39, %v6194_v0  ;;  %v5800_v49 = vsel %vm4605_vm11, %v16700_v8, %v5799_v59  ;;  %v6213_v33 = vsel %vm4599_vm8, %v16712_v52, %v6212_v35  ;;  %v5790_v45 = vsel %vm4599_vm8, %v16704_v43, %v5789_v3 }
 0x370   :  { %v6196_v32 = vsel %vm4607_vm13, %v6099_v13, %v6195_v6  ;;  %v5801_v17 = vsel %vm4607_vm13, %v13910_v18, %v5800_v49  ;;  %v6214_v55 = vsel %vm4601_vm9, %v16713_v61, %v6213_v33  ;;  %v5791_v29 = vsel %vm4601_vm9, %v16705_v24, %v5790_v45  ;;  %v16715_v13 = vld [vmem:[#allocation151_spill] sm:$0xff]  ;;  %v16728_v45 = vld [vmem:[#allocation82_spill] sm:$0xff] }
 0x371   :  { %6357 = vmatmul.mubr.f32.gmra.mxu0 %v6196_v32  ;;  %8466 = vmatprep.mubr.msk.f32.mxu1 %vm4722_vm12, %v5801_v17  ;;  %v6107_v53 = vrot.slane %v13884_v20, %v16263_v40  ;;  %v6215_v18 = vsel %vm4603_vm10, %v16714_v2, %v6214_v55  ;;  %v5792_v42 = vsel %vm4603_vm10, %v16706_v4, %v5791_v29  ;;  %v16721_v4 = vld [vmem:[#allocation84_spill] sm:$0xff]  ;;  %v16725_v6 = vld [vmem:[#allocation159_spill] sm:$0xff] }
 0x372   :  { %v6204_v8 = vsel %vm4595_vm6, %v16715_v13, %v16599_v19  ;;  %v5809_v27 = vsel %vm4595_vm6, %v16708_v1, %v16716_v62  ;;  %v6216_v16 = vsel %vm4605_vm11, %v13916_v47, %v6215_v18  ;;  %v5793_v20 = vsel %vm4605_vm11, %v16707_v5, %v5792_v42  ;;  %v16724_v1 = vld [vmem:[#allocation157_spill] sm:$0xff]  ;;  %v16727_v17 = vld [vmem:[#allocation59_spill] sm:$0xff] }
 0x373   :  { %v6205_v54 = vsel %vm4597_vm7, %v16717_v10, %v6204_v8  ;;  %v5810_v41 = vsel %vm4597_vm7, %v16709_v22, %v5809_v27  ;;  %v6217_v58 = vsel %vm4607_vm13, %v6111_v37, %v6216_v16  ;;  %v5794_v9 = vsel %vm4607_vm13, %v13907_v39, %v5793_v20  ;;  %v16723_v37 = vld [vmem:[#allocation71_spill] sm:$0xff]  ;;  %v16729_v8 = vld [vmem:[#allocation26_spill] sm:$0xff] }
 0x374   :  { %v6206_v43 = vsel %vm4599_vm8, %v16718_v7, %v6205_v54  ;;  %v5811_v23 = vsel %vm4599_vm8, %v16711_v38, %v5810_v41  ;;  %8535 = vmatprep.mubr.msk.f32.mxu0 %vm4722_vm12, %v6217_v58  ;;  %5955 = vmatmul.mubr.f32.gmra.mxu1 %v5794_v9  ;;  %v6119_v24 = vrot.slane %v13944_v48, %v16265_v63  ;;  %v16726_v38 = vld [vmem:[#allocation66_spill] sm:$0xff] }
 0x375   :  { %v6207_v57 = vsel %vm4601_vm9, %v16719_v51, %v6206_v43  ;;  %v5812_v25 = vsel %vm4601_vm9, %v16712_v52, %v5811_v23  ;;  %v6225_v11 = vsel %vm4595_vm6, %v16722_v31, %v16721_v4  ;;  %v5802_v5 = vsel %vm4595_vm6, %v16599_v19, %v16723_v37  ;;  %v4811_v23 = vpop.f32.mrf.mxu1 }
 0x376   :  { %v6208_v39 = vsel %vm4603_vm10, %v16720_v14, %v6207_v57  ;;  %v5813_v34 = vsel %vm4603_vm10, %v16713_v61, %v5812_v25  ;;  %v6226_v22 = vsel %vm4597_vm7, %v16724_v1, %v6225_v11  ;;  %v5803_v26 = vsel %vm4597_vm7, %v16715_v13, %v5802_v5 }
 0x377   :  { %v6209_v0 = vsel %vm4605_vm11, %v13913_v46, %v6208_v39  ;;  %v5814_v59 = vsel %vm4605_vm11, %v16714_v2, %v5813_v34  ;;  %v6227_v19 = vsel %vm4599_vm8, %v16725_v6, %v6226_v22  ;;  %v5804_v49 = vsel %vm4599_vm8, %v16717_v10, %v5803_v26 }
 0x378   :  { %v6210_v44 = vsel %vm4607_vm13, %v6107_v53, %v6209_v0  ;;  %v5815_v15 = vsel %vm4607_vm13, %v13916_v47, %v5814_v59  ;;  %v6228_v35 = vsel %vm4601_vm9, %v16726_v38, %v6227_v19  ;;  %v5805_v3 = vsel %vm4601_vm9, %v16718_v7, %v5804_v49 }
 0x379   :  { %6363 = vmatmul.mubr.f32.gmra.mxu0 %v6210_v44  ;;  %8467 = vmatprep.mubr.msk.f32.mxu1 %vm4722_vm12, %v5815_v15  ;;  %v6115_v32 = vrot.slane %v13944_v48, %v16263_v40  ;;  %v6229_v47 = vsel %vm4603_vm10, %v16727_v17, %v6228_v35  ;;  %v5806_v52 = vsel %vm4603_vm10, %v16719_v51, %v5805_v3  ;;  %v4813_v51 = vpop.f32.mrf.mxu1 }
 0x37a   :  { %v6218_v33 = vsel %vm4595_vm6, %v16623_v60, %v16621_v56  ;;  %v5823_v61 = vsel %vm4595_vm6, %v16721_v4, %v16728_v45  ;;  %v6230_v55 = vsel %vm4605_vm11, %v13967_v50, %v6229_v47  ;;  %v5807_v48 = vsel %vm4605_vm11, %v16720_v14, %v5806_v52 }
 0x37b   :  { %v6219_v29 = vsel %vm4597_vm7, %v12670_v30, %v6218_v33  ;;  %v5824_v53 = vsel %vm4597_vm7, %v16722_v31, %v5823_v61  ;;  %v6231_v2 = vsel %vm4607_vm13, %v6119_v24, %v6230_v55  ;;  %v5808_v18 = vsel %vm4607_vm13, %v13913_v46, %v5807_v48  ;;  %v16730_v46 = vld [vmem:[#allocation87_spill] sm:$0xff]  ;;  %v4817_v57 = vpop.f32.mrf.mxu1 }
 0x37c   :  { %v6220_v42 = vsel %vm4599_vm8, %v16624_v28, %v6219_v29  ;;  %v5825_v13 = vsel %vm4599_vm8, %v16724_v1, %v5824_v53  ;;  %8536 = vmatprep.mubr.msk.f32.mxu0 %vm4722_vm12, %v6231_v2  ;;  %5961 = vmatmul.mubr.f32.gmra.mxu1 %v5808_v18  ;;  %v5816_v16 = vsel %vm4595_vm6, %v16621_v56, %v16620_v21 }
 0x37d   :  { %v6221_v62 = vsel %vm4601_vm9, %v16729_v8, %v6220_v42  ;;  %v5826_v27 = vsel %vm4601_vm9, %v16725_v6, %v5825_v13  ;;  %v5817_v54 = vsel %vm4597_vm7, %v16623_v60, %v5816_v16 }
 0x37e   :  { %v6222_v20 = vsel %vm4603_vm10, %v16730_v46, %v6221_v62  ;;  %v5827_v10 = vsel %vm4603_vm10, %v16726_v38, %v5826_v27  ;;  %v5818_v9 = vsel %vm4599_vm8, %v12670_v30, %v5817_v54 }
 0x37f   :  { %v6223_v41 = vsel %vm4605_vm11, %v13964_v12, %v6222_v20  ;;  %v5828_v58 = vsel %vm4605_vm11, %v16727_v17, %v5827_v10  ;;  %v5819_v7 = vsel %vm4601_vm9, %v16624_v28, %v5818_v9 }
 0x380   :  { %v6224_v21 = vsel %vm4607_vm13, %v6115_v32, %v6223_v41  ;;  %v5829_v56 = vsel %vm4607_vm13, %v13967_v50, %v5828_v58  ;;  %v5820_v60 = vsel %vm4603_vm10, %v16729_v8, %v5819_v7  ;;  %v4819_v50 = vpop.f32.mrf.mxu1  ;;  %v6391_v58 = vld [vmem:[%s15536_s6] sm:$0x3]  ;;  %s8703_s6 = smov 108  }
 0x381   :  { %6369 = vmatmul.mubr.f32.gmra.mxu0 %v6224_v21  ;;  %8468 = vmatprep.mubr.msk.f32.mxu1 %vm4722_vm12, %v5829_v56  ;;  %v5821_v43 = vsel %vm4605_vm11, %v16730_v46, %v5820_v60 }
 0x382   :  { %v5822_v30 = vsel %vm4607_vm13, %v13964_v12, %v5821_v43  ;;  %v14420_v25 = vpop.f32.mrf.mxu1 }
 0x383   :  { %5967 = vmatmul.mubr.f32.gmra.mxu1 %v5822_v30  ;;  %v14490_v30 = vrot.slane %v6391_v58, %v16263_v40 }
 0x384   :  { %v14422_v28 = vpop.f32.mrf.mxu1 }
 0x386   :  { %v14424_v24 = vpop.f32.mrf.mxu1 }
 0x388   :  { %v14426_v14 = vpop.f32.mrf.mxu1 }
 0x38a   :  { %v14428_v39 = vpop.f32.mrf.mxu1 }
 0x38c   :  { %v14430_v34 = vpop.f32.mrf.mxu1 }
 0x38e   :  { %v14432_v4 = vpop.f32.mrf.mxu1 }
 0x390   :  { %v14434_v12 = vpop.f32.mrf.mxu1 }
 0x392   :  { %v14436_v31 = vpop.f32.mrf.mxu1 }
 0x394   :  { %v14438_v11 = vpop.f32.mrf.mxu1 }
 0x39a   :  { %v14440_v37 = vpop.f32.mrf.mxu1 }
 0x39c   :  { %v14442_v5 = vpop.f32.mrf.mxu1  ;;  %v5524_v0 = vpop.f32.mrf.mxu0 }
 0x39e   :  { %v5526_v1 = vpop.f32.mrf.mxu0 }
 0x3a3   :  { %v5138_v59 = vpop.f32.mrf.mxu1 }
 0x3a4   :  { %v5139_v27 = vadd.f32 %v5138_v59, %v4811_v23 }
 0x3a5   :  { %v5140_v22 = vpop.f32.mrf.mxu1 }
 0x3a6   :  { %v5141_v46 = vadd.f32 %v5140_v22, %v4813_v51  ;;  %v5571_v54 = vadd.f32 %v5524_v0, %v5139_v27  ;;  %v16732_v51 = vld [vmem:[#allocation24_spill] sm:$0xff] }
 0x3a7   :  { %v14493_v59 = vrot.slane %v6391_v58, %v16732_v51 }
 0x3a8   :  { %v5572_v21 = vadd.f32 %v5526_v1, %v5141_v46 }
 0x3ae   :  { %v5530_v26 = vpop.f32.mrf.mxu0 }
 0x3b0   :  { %v5532_v15 = vpop.f32.mrf.mxu0 }
 0x3b2   :  { %v5144_v44 = vpop.f32.mrf.mxu1 }
 0x3b3   :  { %v5145_v56 = vadd.f32 %v5144_v44, %v4817_v57 }
 0x3b4   :  { %v5146_v6 = vpop.f32.mrf.mxu1 }
 0x3b5   :  { %v5147_v22 = vadd.f32 %v5146_v6, %v4819_v50  ;;  %v5573_v63 = vadd.f32 %v5530_v26, %v5145_v56 }
 0x3b7   :  { %v5574_v46 = vadd.f32 %v5532_v15, %v5147_v22 }
 0x3bc   :  { %v5536_v19 = vpop.f32.mrf.mxu0 }
 0x3be   :  { %v5150_v49 = vpop.f32.mrf.mxu1  ;;  %v14444_v38 = vpop.f32.mrf.mxu0 }
 0x3bf   :  { %v5151_v50 = vadd.f32 %v5150_v49, %v14420_v25 }
 0x3c0   :  { %v5152_v35 = vpop.f32.mrf.mxu1 }
 0x3c1   :  { %v5153_v56 = vadd.f32 %v5152_v35, %v14422_v28  ;;  %v5575_v25 = vadd.f32 %v5536_v19, %v5151_v50 }
 0x3c7   :  { %v14446_v3 = vpop.f32.mrf.mxu0 }
 0x3c8   :  { %v14448_v32 = vpop.f32.mrf.mxu1 }
 0x3c9   :  { %v14450_v17 = vpop.f32.mrf.mxu0 }
 0x3ca   :  { %v14452_v47 = vpop.f32.mrf.mxu1 }
 0x3cb   :  { %v5159_v50 = vadd.f32 %v14452_v47, %v14426_v14 }
 0x3cd   :  { %v5578_v14 = vadd.f32 %v14450_v17, %v5159_v50 }
 0x3d1   :  { %v14454_v52 = vpop.f32.mrf.mxu0 }
 0x3d3   :  { %v14458_v45 = vpop.f32.mrf.mxu0 }
 0x3d4   :  { %v14456_v33 = vpop.f32.mrf.mxu1 }
 0x3d6   :  { %v14460_v61 = vpop.f32.mrf.mxu1 }
 0x3d7   :  { %v5165_v17 = vadd.f32 %v14460_v61, %v14430_v34 }
 0x3de   :  { %v14464_v48 = vpop.f32.mrf.mxu1 }
 0x3e0   :  { %v14462_v55 = vpop.f32.mrf.mxu0  ;;  %v14468_v53 = vpop.f32.mrf.mxu1 }
 0x3e2   :  { %v14466_v29 = vpop.f32.mrf.mxu0 }
 0x3e8   :  { %v14470_v2 = vpop.f32.mrf.mxu0 }
 0x3ea   :  { %v14474_v42 = vpop.f32.mrf.mxu0 }
 0x3ec   :  { %v14472_v18 = vpop.f32.mrf.mxu1 }
 0x3ee   :  { %v14476_v13 = vpop.f32.mrf.mxu1 }
 0x3f5   :  { %v14478_v8 = vpop.f32.mrf.mxu0 }
 0x3f7   :  { %v14482_v16 = vpop.f32.mrf.mxu0 }
 0x3f8   :  { %v14480_v62 = vpop.f32.mrf.mxu1  ;;  %16731 = vst [vmem:[#allocation107_spill] sm:$0xff] %v14482_v16 }
 0x3fa   :  { %v14484_v20 = vpop.f32.mrf.mxu1 }
 0x409   :  { %v6328_v10 = vpop.f32.mrf.mxu0 }
 0x40b   :  { %v6330_v7 = vpop.f32.mrf.mxu0 }
 0x40e   :  { %v5926_v41 = vpop.f32.mrf.mxu1 }
 0x40f   :  { %v5973_v9 = vadd.f32 %v5926_v41, %v5571_v54 }
 0x410   :  { %v5928_v60 = vpop.f32.mrf.mxu1 }
 0x411   :  { %v6375_v43 = vadd.f32 %v6328_v10, %v5973_v9  ;;  %v5974_v23 = vadd.f32 %v5928_v60, %v5572_v21  ;;  %v6334_v27 = vpop.f32.mrf.mxu0  ;;  %v16733_v9 = vld [vmem:[#allocation28_spill] sm:$0xff] }
 0x413   :  { %v6376_v0 = vadd.f32 %v6330_v7, %v5974_v23  ;;  %v14496_v16 = vadd.f32 %v14490_v30, %v6375_v43  ;;  %v6336_v6 = vpop.f32.mrf.mxu0 }
 0x414   :  { %v5932_v57 = vpop.f32.mrf.mxu1 }
 0x415   :  { %v14499_v1 = vadd.f32 %v14493_v59, %v6376_v0  ;;  %v5975_v44 = vadd.f32 %v5932_v57, %v5573_v63  ;;  %v5576_v0 = vadd.f32 %v14444_v38, %v5153_v56 }
 0x416   :  { %v5934_v41 = vpop.f32.mrf.mxu1 }
 0x417   :  { %v6435_v10 = vcombine.low %v14496_v16, %v14499_v1  ;;  %v6436_v54 = vcombine.high %v14496_v16, %v14499_v1  ;;  %v6377_v26 = vadd.f32 %v6334_v27, %v5975_v44  ;;  %v5976_v58 = vadd.f32 %v5934_v41, %v5574_v46  ;;  %v8570_v16 = vld [vmem:[%s15539_s9 + $0x98] sm:$0xff] }
 0x418   :  { %v5157_v44 = vadd.f32 %v14448_v32, %v14424_v24 }
 0x419   :  { %v14507_v21 = vrot.slane %v6435_v10, %v16733_v9  ;;  %v6378_v7 = vadd.f32 %v6336_v6, %v5976_v58  ;;  %v14513_v15 = vadd.f32 %v14490_v30, %v6377_v26  ;;  %v6340_v60 = vpop.f32.mrf.mxu0 }
 0x41a   :  { %v5577_v58 = vadd.f32 %v14446_v3, %v5157_v44 }
 0x41b   :  { %v6451_v63 = vcombine.high %v14507_v21, %v14507_v21  ;;  %v14516_v43 = vadd.f32 %v14493_v59, %v6378_v7  ;;  %v6342_v19 = vpop.f32.mrf.mxu0 }
 0x41c   :  { %v5938_v49 = vpop.f32.mrf.mxu1 }
 0x41d   :  { %v8538_v23 = vrot.slane %v6451_v63, 9  ;;  %v6453_v22 = vcombine.low %v14513_v15, %v14516_v43  ;;  %v6454_v28 = vcombine.high %v14513_v15, %v14516_v43  ;;  %v5977_v35 = vadd.f32 %v5938_v49, %v5575_v25  ;;  %v8586_v15 = vld [vmem:[%s15539_s9 + $0x118] sm:$0xf] }
 0x41e   :  { %v5940_v27 = vpop.f32.mrf.mxu1  ;;  %v5163_v49 = vadd.f32 %v14456_v33, %v14428_v39 }
 0x41f   :  { %v14523_v57 = vmax.f32 %v6451_v63, %v8538_v23  ;;  %v14528_v46 = vrot.slane %v6453_v22, %v16733_v9  ;;  %v6379_v10 = vadd.f32 %v6340_v60, %v5977_v35  ;;  %v5978_v41 = vadd.f32 %v5940_v27, %v5576_v0  ;;  %v8584_v0 = vld [vmem:[%s15539_s9 + $0x108] sm:$0xff] }
 0x420   :  { %7271 = vmatpush1.msra.mxu1 %v8584_v0 }
 0x421   :  { %6773 = vrot.lane.b32.xlu0 %v14523_v57, %s8703_s6  ;;  %v6380_v38 = vadd.f32 %v6342_v19, %v5978_v41  ;;  %v6469_v6 = vcombine.high %v14528_v46, %v14528_v46  ;;  %v14537_v26 = vadd.f32 %v14490_v30, %v6379_v10  ;;  %v6346_v24 = vpop.f32.mrf.mxu0  ;;  %7272 = vmatprep.subr.mxu1 %v16649_v36 }
 0x422   :  { %v5579_v10 = vadd.f32 %v14454_v52, %v5163_v49 }
 0x423   :  { %v14540_v32 = vadd.f32 %v14493_v59, %v6380_v38  ;;  %v8542_v56 = vrot.slane %v6469_v6, 9  ;;  %v6348_v22 = vpop.f32.mrf.mxu0  ;;  %v5580_v38 = vadd.f32 %v14458_v45, %v5165_v17  ;;  %v8582_v45 = vld [vmem:[%s15539_s9 + $0xf8] sm:$0xff] }
 0x424   :  { %v5944_v7 = vpop.f32.mrf.mxu1 }
 0x425   :  { %v6471_v63 = vcombine.low %v14537_v26, %v14540_v32  ;;  %v5979_v60 = vadd.f32 %v5944_v7, %v5577_v58  ;;  %v14546_v47 = vmax.f32 %v6469_v6, %v8542_v56  ;;  %v5169_v58 = vadd.f32 %v14464_v48, %v14432_v4 }
 0x426   :  { %v5946_v25 = vpop.f32.mrf.mxu1  ;;  %v5171_v4 = vadd.f32 %v14468_v53, %v14434_v12 }
 0x427   :  { %v14551_v23 = vrot.slane %v6471_v63, %v16733_v9  ;;  %v6381_v35 = vadd.f32 %v6346_v24, %v5979_v60  ;;  %v5980_v3 = vadd.f32 %v5946_v25, %v5578_v14  ;;  %6781 = vrot.lane.b32.xlu1 %v14546_v47, %s8703_s6  ;;  %v8583_v60 = vld [vmem:[%s15539_s9 + $0x100] sm:$0xff] }
 0x428   :  { %7273 = vmatpush1.msra.mxu1 %v8583_v60  ;;  %v5582_v17 = vadd.f32 %v14466_v29, %v5171_v4  ;;  %v8580_v29 = vld [vmem:[%s15539_s9 + $0xe8] sm:$0xff]  ;;  %v5181_v4 = vadd.f32 %v14480_v62, %v14440_v37  ;;  %v5183_v37 = vadd.f32 %v14484_v20, %v14442_v5  ;;  %v16734_v20 = vld [vmem:[#allocation107_spill] sm:$0xff] }
 0x429   :  { %v6382_v27 = vadd.f32 %v6348_v22, %v5980_v3  ;;  %v6487_v39 = vcombine.high %v14551_v23, %v14551_v23  ;;  %v14564_v33 = vadd.f32 %v14490_v30, %v6381_v35  ;;  %v6352_v44 = vpop.f32.mrf.mxu0  ;;  %7274 = vmatprep.subr.mxu1 %v16649_v36  ;;  %v5581_v35 = vadd.f32 %v14462_v55, %v5169_v58 }
 0x42a   :  { %7275 = vmatpush1.msra.mxu1 %v8582_v45 }
 0x42b   :  { %v14567_v19 = vadd.f32 %v14493_v59, %v6382_v27  ;;  %v8546_v41 = vrot.slane %v6487_v39, 9  ;;  %v6354_v7 = vpop.f32.mrf.mxu0  ;;  %7276 = vmatprep.subr.mxu1 %v16649_v36 }
 0x42c   :  { %v5950_v50 = vpop.f32.mrf.mxu1 }
 0x42d   :  { %v6489_v34 = vcombine.low %v14564_v33, %v14567_v19  ;;  %v5981_v61 = vadd.f32 %v5950_v50, %v5579_v10  ;;  %v14573_v6 = vmax.f32 %v6487_v39, %v8546_v41 }
 0x42e   :  { %v5952_v24 = vpop.f32.mrf.mxu1 }
 0x42f   :  { %v14578_v56 = vrot.slane %v6489_v34, %v16733_v9  ;;  %v6383_v63 = vadd.f32 %v6352_v44, %v5981_v61  ;;  %v5982_v52 = vadd.f32 %v5952_v24, %v5580_v38  ;;  %6789 = vrot.lane.b32.xlu0 %v14573_v6, %s8703_s6  ;;  %v5175_v44 = vadd.f32 %v14472_v18, %v14436_v31  ;;  %v8581_v34 = vld [vmem:[%s15539_s9 + $0xf0] sm:$0xff] }
 0x430   :  { %7277 = vmatpush1.msra.mxu1 %v8581_v34  ;;  %v5177_v31 = vadd.f32 %v14476_v13, %v14438_v11 }
 0x431   :  { %v6384_v48 = vadd.f32 %v6354_v7, %v5982_v52  ;;  %v6505_v14 = vcombine.high %v14578_v56, %v14578_v56  ;;  %v14594_v25 = vadd.f32 %v14490_v30, %v6383_v63  ;;  %v6358_v49 = vpop.f32.mrf.mxu0  ;;  %7278 = vmatprep.subr.mxu1 %v16649_v36  ;;  %v5583_v7 = vadd.f32 %v14470_v2, %v5175_v44 }
 0x432   :  { %7279 = vmatpush1.msra.mxu1 %v8580_v29  ;;  %v5584_v60 = vadd.f32 %v14474_v42, %v5177_v31  ;;  %v8578_v42 = vld [vmem:[%s15539_s9 + $0xd8] sm:$0xff]  ;;  %v8577_v29 = vld [vmem:[%s15539_s9 + $0xd0] sm:$0xff]  ;;  %v8576_v31 = vld [vmem:[%s15539_s9 + $0xc8] sm:$0xff] }
 0x433   :  { %v14597_v22 = vadd.f32 %v14493_v59, %v6384_v48  ;;  %v8550_v3 = vrot.slane %v6505_v14, 9  ;;  %v6360_v55 = vpop.f32.mrf.mxu0  ;;  %7280 = vmatprep.subr.mxu1 %v16649_v36 }
 0x434   :  { %v5956_v12 = vpop.f32.mrf.mxu1 }
 0x435   :  { %v6507_v53 = vcombine.low %v14594_v25, %v14597_v22  ;;  %v5983_v0 = vadd.f32 %v5956_v12, %v5581_v35  ;;  %v14604_v27 = vmax.f32 %v6505_v14, %v8550_v3  ;;  %v8579_v3 = vld [vmem:[%s15539_s9 + $0xe0] sm:$0xff] }
 0x436   :  { %v5958_v39 = vpop.f32.mrf.mxu1  ;;  %7281 = vmatpush1.msra.mxu1 %v8579_v3 }
 0x437   :  { %v14609_v10 = vrot.slane %v6507_v53, %v16733_v9  ;;  %v6385_v41 = vadd.f32 %v6358_v49, %v5983_v0  ;;  %v5984_v50 = vadd.f32 %v5958_v39, %v5582_v17  ;;  %6797 = vrot.lane.b32.xlu1 %v14604_v27, %s8703_s6  ;;  %7282 = vmatprep.subr.mxu1 %v16649_v36 }
 0x438   :  { %v5585_v53 = vadd.f32 %v14478_v8, %v5181_v4  ;;  %7283 = vmatpush1.msra.mxu1 %v8578_v42  ;;  %v8545_v42 = vrot.slane %v14551_v23, 9 }
 0x439   :  { %v6386_v18 = vadd.f32 %v6360_v55, %v5984_v50  ;;  %v6523_v61 = vcombine.high %v14609_v10, %v14609_v10  ;;  %v14625_v38 = vadd.f32 %v14490_v30, %v6385_v41  ;;  %v6364_v24 = vpop.f32.mrf.mxu0  ;;  %7284 = vmatprep.subr.mxu1 %v16649_v36  ;;  %v5586_v41 = vadd.f32 %v16734_v20, %v5183_v37 }
 0x43a   :  { %7285 = vmatpush1.msra.mxu1 %v8577_v29  ;;  %v6472_v20 = vcombine.high %v14537_v26, %v14540_v32  ;;  %v6468_v26 = vrot.slane %v6454_v28, %v16733_v9  ;;  %v6490_v29 = vcombine.high %v14564_v33, %v14567_v19 }
 0x43b   :  { %v14628_v58 = vadd.f32 %v14493_v59, %v6386_v18  ;;  %v8554_v63 = vrot.slane %v6523_v61, 9  ;;  %v6366_v2 = vpop.f32.mrf.mxu0  ;;  %7286 = vmatprep.subr.mxu1 %v16649_v36 }
 0x43c   :  { %v5962_v11 = vpop.f32.mrf.mxu1  ;;  %7287 = vmatpush1.msra.mxu1 %v8576_v31  ;;  %v6486_v32 = vrot.slane %v6472_v20, %v16733_v9  ;;  %v8543_v19 = vrot.slane %v6468_v26, 9 }
 0x43d   :  { %v6525_v13 = vcombine.low %v14625_v38, %v14628_v58  ;;  %v5985_v52 = vadd.f32 %v5962_v11, %v5583_v7  ;;  %v14635_v45 = vmax.f32 %v6523_v61, %v8554_v63  ;;  %7288 = vmatprep.subr.mxu1 %v16649_v36 }
 0x43e   :  { %v5964_v48 = vpop.f32.mrf.mxu1 }
 0x43f   :  { %v14640_v14 = vrot.slane %v6525_v13, %v16733_v9  ;;  %v6387_v49 = vadd.f32 %v6364_v24, %v5985_v52  ;;  %v5986_v35 = vadd.f32 %v5964_v48, %v5584_v60  ;;  %6805 = vrot.lane.b32.xlu0 %v14635_v45, %s8703_s6 }
 0x441   :  { %v6388_v62 = vadd.f32 %v6366_v2, %v5986_v35  ;;  %v6541_v12 = vcombine.high %v14640_v14, %v14640_v14  ;;  %v14657_v0 = vadd.f32 %v14490_v30, %v6387_v49  ;;  %v6370_v17 = vpop.f32.mrf.mxu0  ;;  %v8537_v2 = vrot.slane %v14507_v21, 9  ;;  %v8575_v49 = vld [vmem:[%s15539_s9 + $0xc0] sm:$0xff] }
 0x442   :  { %7289 = vmatpush1.msra.mxu1 %v8575_v49 }
 0x443   :  { %v14660_v39 = vadd.f32 %v14493_v59, %v6388_v62  ;;  %v5968_v44 = vpop.f32.mrf.mxu1  ;;  %v8558_v55 = vrot.slane %v6541_v12, 9  ;;  %v6372_v7 = vpop.f32.mrf.mxu0  ;;  %7290 = vmatprep.subr.mxu1 %v16649_v36  ;;  %v14701_v3 = vmax.f32 %v14507_v21, %v8537_v2  ;;  %v8572_v21 = vld [vmem:[%s15539_s9 + $0xa8] sm:$0xff]  ;;  %v14801_v2 = vmax.f32 %v6468_v26, %v8543_v19 }
 0x444   :  { %v5987_v5 = vadd.f32 %v5968_v44, %v5585_v53  ;;  %v8573_v53 = vld [vmem:[%s15539_s9 + $0xb0] sm:$0xff]  ;;  %v8553_v44 = vrot.slane %v14609_v10, 9 }
 0x445   :  { %v6543_v50 = vcombine.low %v14657_v0, %v14660_v39  ;;  %v5970_v34 = vpop.f32.mrf.mxu1  ;;  %v14666_v8 = vmax.f32 %v6541_v12, %v8558_v55  ;;  %v8541_v12 = vrot.slane %v14528_v46, 9 }
 0x446   :  { %v6389_v18 = vadd.f32 %v6370_v17, %v5987_v5  ;;  %v5988_v61 = vadd.f32 %v5970_v34, %v5586_v41  ;;  %v14717_v17 = vmax.f32 %v14551_v23, %v8545_v42  ;;  %v8549_v5 = vrot.slane %v14578_v56, 9 }
 0x447   :  { %v6551_v24 = vrot.slane %v6543_v50, %v16733_v9  ;;  %6813 = vrot.lane.b32.xlu1 %v14666_v8, %s8703_s6  ;;  %v14726_v55 = vmax.f32 %v14528_v46, %v8541_v12  ;;  %v6450_v23 = vrot.slane %v6436_v54, %v16733_v9  ;;  %v14737_v41 = vmax.f32 %v14609_v10, %v8553_v44  ;;  %v8571_v46 = vld [vmem:[%s15539_s9 + $0xa0] sm:$0xff]  ;;  %v8606_v44 = vld [vmem:[%s15539_s9 + $0x198] sm:$0xff] }
 0x448   :  { %v6390_v63 = vadd.f32 %v6372_v7, %v5988_v61  ;;  %v14680_v13 = vadd.f32 %v14490_v30, %v6389_v18  ;;  %v8574_v30 = vld [vmem:[%s15539_s9 + $0xb8] sm:$0xff]  ;;  %v14750_v1 = vmax.f32 %v14578_v56, %v8549_v5  ;;  %v8557_v54 = vrot.slane %v14640_v14, 9  ;;  %v8569_v56 = vld [vmem:[%s15539_s9 + $0x90] sm:$0xff]  ;;  %7614 = vmatpush1.msra.mxu0 %v8606_v44  ;;  %v8592_v44 = vld [vmem:[%s15539_s9 + $0x128] sm:$0xff] }
 0x449   :  { %v6559_v11 = vcombine.high %v6551_v24, %v6551_v24  ;;  %7291 = vmatpush1.msra.mxu1 %v8574_v30  ;;  %v8561_v50 = vrot.slane %v6551_v24, 9  ;;  %v8539_v34 = vrot.slane %v6450_v23, 9  ;;  %v8547_v18 = vrot.slane %v6486_v32, 9  ;;  %v8605_v5 = vld [vmem:[%s15539_s9 + $0x190] sm:$0xff]  ;;  %7615 = vmatprep.subr.mxu0 %v16649_v36 }
 0x44a   :  { %v14683_v52 = vadd.f32 %v14493_v59, %v6390_v63  ;;  %7292 = vmatprep.subr.mxu1 %v16649_v36  ;;  %v14773_v43 = vmax.f32 %v14640_v14, %v8557_v54  ;;  %v6470_v61 = vcombine.high %v6468_v26, %v6468_v26  ;;  %v6452_v14 = vcombine.high %v6450_v23, %v6450_v23 }
 0x44b   :  { %v8562_v60 = vrot.slane %v6559_v11, 9  ;;  %7293 = vmatpush1.msra.mxu1 %v8573_v53  ;;  %v14758_v10 = vmax.f32 %v6551_v24, %v8561_v50  ;;  %v14777_v31 = vmax.f32 %v6450_v23, %v8539_v34  ;;  %v8585_v24 = vld [vmem:[%s15539_s9 + $0x110] sm:$0xff]  ;;  %v6488_v7 = vcombine.high %v6486_v32, %v6486_v32  ;;  %7616 = vmatpush1.msra.mxu0 %v8605_v5  ;;  %v8603_v34 = vld [vmem:[%s15539_s9 + $0x180] sm:$0xff] }
 0x44c   :  { %v6561_v4 = vcombine.low %v14680_v13, %v14683_v52  ;;  %7294 = vmatprep.subr.mxu1 %v16649_v36  ;;  %v6504_v63 = vrot.slane %v6490_v29, %v16733_v9  ;;  %v8540_v49 = vrot.slane %v6452_v14, 9  ;;  %7617 = vmatprep.subr.mxu0 %v16649_v36  ;;  %v6562_v54 = vcombine.high %v14680_v13, %v14683_v52  ;;  %v8591_v5 = vld [vmem:[%s15539_s9 + $0x120] sm:$0xff] }
 0x44d   :  { %v14687_v48 = vmax.f32 %v6559_v11, %v8562_v60  ;;  %7295 = vmatpush1.msra.mxu1 %v8572_v21  ;;  %v6508_v11 = vcombine.high %v14594_v25, %v14597_v22  ;;  %v14794_v60 = vmax.f32 %v6486_v32, %v8547_v18  ;;  %v8548_v30 = vrot.slane %v6488_v7, 9 }
 0x44e   :  { %v6569_v35 = vrot.slane %v6561_v4, %v16733_v9  ;;  %7296 = vmatprep.subr.mxu1 %v16649_v36  ;;  %v8544_v4 = vrot.slane %v6470_v61, 9  ;;  %v6526_v25 = vcombine.high %v14625_v38, %v14628_v58  ;;  %v14812_v42 = vmax.f32 %v6452_v14, %v8540_v49 }
 0x44f   :  { %6821 = vrot.lane.b32.xlu0 %v14687_v48, %s8703_s6  ;;  %7297 = vmatpush1.msra.mxu1 %v8571_v46  ;;  %v8551_v12 = vrot.slane %v6504_v63, 9  ;;  %v6544_v21 = vcombine.high %v14657_v0, %v14660_v39  ;;  %v6576_v13 = vrot.slane %v6562_v54, %v16733_v9 }
 0x450   :  { %v6577_v59 = vcombine.high %v6569_v35, %v6569_v35  ;;  %7298 = vmatprep.subr.mxu1 %v16649_v36  ;;  %v8565_v28 = vrot.slane %v6569_v35, 9  ;;  %v14806_v22 = vmax.f32 %v6470_v61, %v8544_v4  ;;  %v6540_v53 = vrot.slane %v6526_v25, %v16733_v9  ;;  %v8600_v4 = vld [vmem:[%s15539_s9 + $0x168] sm:$0xff]  ;;  %v8598_v25 = vld [vmem:[%s15539_s9 + $0x158] sm:$0xff] }
 0x451   :  { %7299 = vmatpush1.msra.mxu1 %v8570_v16  ;;  %v14829_v23 = vmax.f32 %v6504_v63, %v8551_v12  ;;  %v6558_v0 = vrot.slane %v6544_v21, %v16733_v9  ;;  %v8604_v16 = vld [vmem:[%s15539_s9 + $0x188] sm:$0xff]  ;;  %v8567_v19 = vrot.slane %v6576_v13, 9  ;;  %v6578_v14 = vcombine.high %v6576_v13, %v6576_v13  ;;  %v8597_v12 = vld [vmem:[%s15539_s9 + $0x150] sm:$0xff]  ;;  %v8595_v21 = vld [vmem:[%s15539_s9 + $0x140] sm:$0xff] }
 0x452   :  { %v8566_v37 = vrot.slane %v6577_v59, 9  ;;  %7300 = vmatprep.subr.mxu1 %v16649_v36  ;;  %v14789_v33 = vmax.f32 %v6569_v35, %v8565_v28  ;;  %v6522_v35 = vrot.slane %v6508_v11, %v16733_v9  ;;  %v6542_v46 = vcombine.high %v6540_v53, %v6540_v53  ;;  %7618 = vmatpush1.msra.mxu0 %v8604_v16  ;;  %v8601_v11 = vld [vmem:[%s15539_s9 + $0x170] sm:$0xff]  ;;  %v6996_v16 = vld [vmem:[%s15537_s7] sm:$0x3] }
 0x453   :  { %6771 = vrot.lane.b32.xlu0 %v14701_v3, %s8703_s6  ;;  %7301 = vmatpush1.msra.mxu1 %v8569_v56  ;;  %v8559_v32 = vrot.slane %v6540_v53, 9  ;;  %v6560_v28 = vcombine.high %v6558_v0, %v6558_v0  ;;  %v8563_v29 = vrot.slane %v6558_v0, 9  ;;  %v14885_v49 = vmax.f32 %v6576_v13, %v8567_v19 }
 0x454   :  { %v14707_v62 = vmax.f32 %v6577_v59, %v8566_v37  ;;  %7330 = vmatprep.subr.mxu1 %v16649_v36  ;;  %v6506_v59 = vcombine.high %v6504_v63, %v6504_v63  ;;  %v14814_v37 = vmax.f32 %v6488_v7, %v8548_v30  ;;  %v6524_v58 = vcombine.high %v6522_v35, %v6522_v35  ;;  %v8602_v7 = vld [vmem:[%s15539_s9 + $0x178] sm:$0xff] }
 0x455   :  { %8587 = vmatpush2.msk.msra.mxu1 %vm232_vm0, %v8586_v15  ;;  %v8555_v20 = vrot.slane %v6522_v35, 9  ;;  %v8560_v15 = vrot.slane %v6542_v46, 9  ;;  %7619 = vmatprep.subr.mxu0 %v16649_v36  ;;  %v14859_v52 = vmax.f32 %v6540_v53, %v8559_v32  ;;  %v8564_v61 = vrot.slane %v6560_v28, 9  ;;  %v8596_v53 = vld [vmem:[%s15539_s9 + $0x148] sm:$0xff] }
 0x456   :  { %6829 = vrot.lane.b32.xlu1 %v14707_v62, %s8703_s6  ;;  %7332 = vmatprep.subr.mxu1 %v16649_v36  ;;  %v8552_v38 = vrot.slane %v6506_v59, 9  ;;  %v8556_v50 = vrot.slane %v6524_v58, 9  ;;  %v8568_v30 = vrot.slane %v6578_v14, 9 }
 0x457   :  { %6787 = vrot.lane.b32.xlu0 %v14717_v17, %s8703_s6  ;;  %7333 = vmatpush2.msra.mxu1 %v8585_v24  ;;  %v14845_v26 = vmax.f32 %v6522_v35, %v8555_v20  ;;  %v14861_v18 = vmax.f32 %v6542_v46, %v8560_v15  ;;  %v14867_v24 = vmax.f32 %v6558_v0, %v8563_v29  ;;  %v8599_v35 = vld [vmem:[%s15539_s9 + $0x160] sm:$0xff]  ;;  %v8608_v20 = vld [vmem:[%s15539_s9 + $0x1a8] sm:$0xf] }
 0x458   :  { %7432 = vmatprep.subr.mxu1 %v16649_v36  ;;  %v14832_v39 = vmax.f32 %v6506_v59, %v8552_v38  ;;  %v14850_v56 = vmax.f32 %v6524_v58, %v8556_v50  ;;  %7620 = vmatpush1.msra.mxu0 %v8603_v34  ;;  %v14872_v63 = vmax.f32 %v6560_v28, %v8564_v61  ;;  %v8594_v38 = vld [vmem:[%s15539_s9 + $0x138] sm:$0xff]  ;;  %v8593_v58 = vld [vmem:[%s15539_s9 + $0x130] sm:$0xff]  ;;  %v8607_v0 = vld [vmem:[%s15539_s9 + $0x1a0] sm:$0xff] }
 0x459   :  { %7621 = vmatprep.subr.mxu0 %v16649_v36  ;;  %v14897_v59 = vmax.f32 %v6578_v14, %v8568_v30  ;;  %v7001_v34 = vrot.slane %v6996_v16, %v16263_v40  ;;  %v7005_v15 = vrot.slane %v6996_v16, %v16732_v51  ;;  %v7068_v28 = vld [vmem:[%s15538_s8] sm:$0x3] }
 0x45a   :  { %6779 = vrot.lane.b32.xlu1 %v14726_v55, %s8703_s6  ;;  %16735 = vst [vmem:[#allocation12_spill] sm:$0xff] %v14872_v63  ;;  %7622 = vmatpush1.msra.mxu0 %v8602_v7  ;;  %v7073_v14 = vrot.slane %v7068_v28, %v16263_v40  ;;  %v7077_v7 = vrot.slane %v7068_v28, %v16732_v51 }
 0x45b   :  { %6803 = vrot.lane.b32.xlu0 %v14737_v41, %s8703_s6  ;;  %7623 = vmatprep.subr.mxu0 %v16649_v36  ;;  %16736 = vst [vmem:[#allocation11_spill] sm:$0xff] %v14897_v59  ;;  %v7007_v61 = vcombine.high %v7001_v34, %v7005_v15 }
 0x45c   :  { %7624 = vmatpush1.msra.mxu0 %v8601_v11 }
 0x45d   :  { %7625 = vmatprep.subr.mxu0 %v16649_v36 }
 0x45e   :  { %6795 = vrot.lane.b32.xlu1 %v14750_v1, %s8703_s6  ;;  %7626 = vmatpush1.msra.mxu0 %v8600_v4  ;;  %v7006_v4 = vcombine.low %v7001_v34, %v7005_v15 }
 0x45f   :  { %6819 = vrot.lane.b32.xlu0 %v14758_v10, %s8703_s6  ;;  %7627 = vmatprep.subr.mxu0 %v16649_v36 }
 0x460   :  { %7628 = vmatpush1.msra.mxu0 %v8599_v35 }
 0x461   :  { %7629 = vmatprep.subr.mxu0 %v16649_v36 }
 0x462   :  { %6811 = vrot.lane.b32.xlu1 %v14773_v43, %s8703_s6  ;;  %7630 = vmatpush1.msra.mxu0 %v8598_v25 }
 0x463   :  { %6775 = vrot.lane.b32.xlu0 %v14777_v31, %s8703_s6  ;;  %7631 = vmatprep.subr.mxu0 %v16649_v36 }
 0x464   :  { %7632 = vmatpush1.msra.mxu0 %v8597_v12  ;;  %v14953_v12 = vrot.slane %v7007_v61, %v16733_v9 }
 0x465   :  { %7633 = vmatprep.subr.mxu0 %v16649_v36 }
 0x466   :  { %6827 = vrot.lane.b32.xlu1 %v14789_v33, %s8703_s6  ;;  %7634 = vmatpush1.msra.mxu0 %v8596_v53  ;;  %v7079_v53 = vcombine.high %v7073_v14, %v7077_v7 }
 0x467   :  { %6791 = vrot.lane.b32.xlu0 %v14794_v60, %s8703_s6  ;;  %7635 = vmatprep.subr.mxu0 %v16649_v36 }
 0x468   :  { %7636 = vmatpush1.msra.mxu0 %v8595_v21  ;;  %v14967_v16 = vrot.slane %v7079_v53, %v16733_v9 }
 0x469   :  { %7637 = vmatprep.subr.mxu0 %v16649_v36 }
 0x46a   :  { %6783 = vrot.lane.b32.xlu1 %v14801_v2, %s8703_s6  ;;  %7638 = vmatpush1.msra.mxu0 %v8594_v38 }
 0x46b   :  { %6785 = vrot.lane.b32.xlu0 %v14806_v22, %s8703_s6  ;;  %7639 = vmatprep.subr.mxu0 %v16649_v36 }
 0x46c   :  { %7640 = vmatpush1.msra.mxu0 %v8593_v58  ;;  %v7078_v58 = vcombine.low %v7073_v14, %v7077_v7 }
 0x46d   :  { %7641 = vmatprep.subr.mxu0 %v16649_v36 }
 0x46e   :  { %6777 = vrot.lane.b32.xlu1 %v14812_v42, %s8703_s6  ;;  %7642 = vmatpush1.msra.mxu0 %v8592_v44  ;;  %v14958_v44 = vrot.slane %v7006_v4, %v16733_v9 }
 0x46f   :  { %6793 = vrot.lane.b32.xlu0 %v14814_v37, %s8703_s6  ;;  %7643 = vmatprep.subr.mxu0 %v16649_v36 }
 0x470   :  { %7644 = vmatpush1.msra.mxu0 %v8591_v5  ;;  %v7024_v34 = vrot.slane %v14958_v44, 1 }
 0x471   :  { %7673 = vmatprep.subr.mxu0 %v16649_v36 }
 0x472   :  { %6799 = vrot.lane.b32.xlu1 %v14829_v23, %s8703_s6  ;;  %8609 = vmatpush2.msk.msra.mxu0 %vm232_vm0, %v8608_v20 }
 0x473   :  { %6801 = vrot.lane.b32.xlu0 %v14832_v39, %s8703_s6  ;;  %7675 = vmatprep.subr.mxu0 %v16649_v36 }
 0x474   :  { %7676 = vmatpush2.msra.mxu0 %v8607_v0 }
 0x475   :  { %8643 = vmatprep.subr.mxu0 %v16649_v36 }
 0x476   :  { %6807 = vrot.lane.b32.xlu1 %v14845_v26, %s8703_s6 }
 0x477   :  { %6809 = vrot.lane.b32.xlu0 %v14850_v56, %s8703_s6 }
 0x47a   :  { %6815 = vrot.lane.b32.xlu1 %v14859_v52, %s8703_s6 }
 0x47b   :  { %6817 = vrot.lane.b32.xlu0 %v14861_v18, %s8703_s6 }
 0x47e   :  { %6823 = vrot.lane.b32.xlu1 %v14867_v24, %s8703_s6 }
 0x47f   :  { %6825 = vrot.lane.b32.xlu0 %v14872_v63, %s8703_s6 }
 0x482   :  { %6831 = vrot.lane.b32.xlu1 %v14885_v49, %s8703_s6 }
 0x486   :  { %6833 = vrot.lane.b32.xlu1 %v14897_v59, %s8703_s6 }
 0x493   :  { %v6774_v50 = vpop.permute.xlu0 %6773 }
 0x494   :  { %v6836_v13 = vrot.slane %v6774_v50, 2 }
 0x496   :  { %v6869_v35 = vsel %vm6867_vm14, %v6774_v50, %v6836_v13 }
 0x497   :  { %v6933_v51 = vmax.f32 %v14523_v57, %v6869_v35  ;;  %v14972_v57 = vrot.slane %v7078_v58, %v16733_v9 }
 0x499   :  { %v6782_v46 = vpop.permute.xlu1 %6781  ;;  %v6965_v15 = vmax.f32 %v6933_v51, 0.0 }
 0x49a   :  { %v6840_v54 = vrot.slane %v6782_v46, 2 }
 0x49b   :  { %v7037_v7 = vmul.f32 %v7024_v34, %v6965_v15 }
 0x49c   :  { %v6873_v11 = vsel %vm6867_vm14, %v6782_v46, %v6840_v54  ;;  %v14964_v46 = vrot.slane %v14953_v12, 1 }
 0x49d   :  { %v6937_v21 = vmax.f32 %v14546_v47, %v6873_v11 }
 0x49f   :  { %v6969_v47 = vmax.f32 %v6937_v21, 0.0 }
 0x4a1   :  { %v6790_v32 = vpop.permute.xlu0 %6789  ;;  %v7041_v61 = vmul.f32 %v14964_v46, %v6969_v47  ;;  %v14998_v47 = vcombine.high %v14953_v12, %v14953_v12 }
 0x4a2   :  { %v6844_v19 = vrot.slane %v6790_v32, 2 }
 0x4a4   :  { %v6877_v38 = vsel %vm6867_vm14, %v6790_v32, %v6844_v19 }
 0x4a5   :  { %v6941_v0 = vmax.f32 %v14573_v6, %v6877_v38 }
 0x4a7   :  { %v6973_v6 = vmax.f32 %v6941_v0, 0.0 }
 0x4a9   :  { %v6798_v29 = vpop.permute.xlu1 %6797  ;;  %v7045_v11 = vmul.f32 %v7024_v34, %v6973_v6 }
 0x4aa   :  { %v6848_v30 = vrot.slane %v6798_v29, 2 }
 0x4ac   :  { %v6881_v5 = vsel %vm6867_vm14, %v6798_v29, %v6848_v30  ;;  %v14977_v29 = vrot.slane %v14967_v16, 1 }
 0x4ad   :  { %v6945_v32 = vmax.f32 %v14604_v27, %v6881_v5  ;;  %v7096_v27 = vrot.slane %v14972_v57, 1 }
 0x4ae   :  { %v7113_v30 = vadd.f32 %v14977_v29, %v7041_v61 }
 0x4af   :  { %v6977_v19 = vmax.f32 %v6945_v32, 0.0  ;;  %v7109_v21 = vadd.f32 %v7096_v27, %v7037_v7  ;;  %v7117_v51 = vadd.f32 %v7096_v27, %v7045_v11 }
 0x4b0   :  { %v7196_v0 = vrot.slane %v7113_v30, %v16263_v40 }
 0x4b1   :  { %v6806_v25 = vpop.permute.xlu0 %6805  ;;  %v7188_v6 = vrot.slane %v7109_v21, %v16263_v40 }
 0x4b2   :  { %v6852_v20 = vrot.slane %v6806_v25, 2 }
 0x4b4   :  { %v6885_v28 = vsel %vm6867_vm14, %v6806_v25, %v6852_v20  ;;  %v7049_v25 = vmul.f32 %v14964_v46, %v6977_v19  ;;  %v14989_v20 = vcombine.high %v14958_v44, %v14958_v44 }
 0x4b5   :  { %v6949_v14 = vmax.f32 %v14635_v45, %v6885_v28 }
 0x4b6   :  { %v15006_v28 = vrot.slane %v14989_v20, 1 }
 0x4b7   :  { %v6981_v53 = vmax.f32 %v6949_v14, 0.0 }
 0x4b9   :  { %v6814_v50 = vpop.permute.xlu1 %6813  ;;  %v7053_v32 = vmul.f32 %v7024_v34, %v6981_v53 }
 0x4ba   :  { %v6856_v54 = vrot.slane %v6814_v50, 2 }
 0x4bb   :  { %v7125_v63 = vadd.f32 %v7096_v27, %v7053_v32 }
 0x4bc   :  { %v6889_v13 = vsel %vm6867_vm14, %v6814_v50, %v6856_v54  ;;  %v15002_v54 = vcombine.high %v14967_v16, %v14967_v16 }
 0x4bd   :  { %v6953_v9 = vmax.f32 %v14666_v8, %v6889_v13  ;;  %v14993_v8 = vcombine.high %v14972_v57, %v14972_v57  ;;  %v16737_v13 = vld [vmem:[#allocation22_spill] sm:$0xff] }
 0x4be   :  { %v7200_v61 = vrot.slane %v7113_v30, %v16737_v13  ;;  %v7208_v11 = vrot.slane %v7117_v51, %v16737_v13  ;;  %v7192_v53 = vrot.slane %v7109_v21, %v16737_v13 }
 0x4bf   :  { %v6985_v38 = vmax.f32 %v6953_v9, 0.0  ;;  %v7204_v9 = vrot.slane %v7117_v51, %v16263_v40 }
 0x4c1   :  { %v6822_v4 = vpop.permute.xlu0 %6821  ;;  %v7057_v19 = vmul.f32 %v14964_v46, %v6985_v38 }
 0x4c2   :  { %v6860_v35 = vrot.slane %v6822_v4, 2 }
 0x4c4   :  { %v6893_v58 = vsel %vm6867_vm14, %v6822_v4, %v6860_v35 }
 0x4c5   :  { %v6957_v45 = vmax.f32 %v14687_v48, %v6893_v58  ;;  %v6772_v5 = vpop.permute.xlu0 %6771  ;;  %v7121_v48 = vadd.f32 %v14977_v29, %v7049_v25  ;;  %v7249_v58 = vsel %vm4595_vm6, %v7196_v0, %v7188_v6 }
 0x4c6   :  { %v6835_v50 = vrot.slane %v6772_v5, 2 }
 0x4c7   :  { %v6989_v15 = vmax.f32 %v6957_v45, 0.0  ;;  %v7212_v30 = vrot.slane %v7121_v48, %v16263_v40  ;;  %v7216_v38 = vrot.slane %v7121_v48, %v16737_v13 }
 0x4c8   :  { %v6830_v14 = vpop.permute.xlu1 %6829  ;;  %v6868_v7 = vsel %vm6867_vm14, %v6772_v5, %v6835_v50  ;;  %v7256_v50 = vsel %vm4595_vm6, %v7200_v61, %v7192_v53 }
 0x4c9   :  { %v7061_v4 = vmul.f32 %v7024_v34, %v6989_v15  ;;  %v6864_v35 = vrot.slane %v6830_v14, 2  ;;  %v6788_v25 = vpop.permute.xlu0 %6787  ;;  %v6932_v45 = vmax.f32 %v14701_v3, %v6868_v7  ;;  %v15022_v34 = vadd.f32 %v14977_v29, %v7057_v19 }
 0x4ca   :  { %v6843_v59 = vrot.slane %v6788_v25, 2  ;;  %v7250_v3 = vsel %vm4597_vm7, %v7204_v9, %v7249_v58  ;;  %v7257_v15 = vsel %vm4597_vm7, %v7208_v11, %v7256_v50 }
 0x4cb   :  { %v6897_v5 = vsel %vm6867_vm14, %v6830_v14, %v6864_v35  ;;  %v15028_v6 = vadd.f32 %v7096_v27, %v7061_v4  ;;  %v6964_v7 = vmax.f32 %v6932_v45, 0.0  ;;  %v7251_v35 = vsel %vm4599_vm8, %v7212_v30, %v7250_v3 }
 0x4cc   :  { %v6961_v51 = vmax.f32 %v14707_v62, %v6897_v5  ;;  %v6780_v21 = vpop.permute.xlu1 %6779  ;;  %v6876_v0 = vsel %vm6867_vm14, %v6788_v25, %v6843_v59  ;;  %v7224_v62 = vrot.slane %v7125_v63, %v16737_v13  ;;  %v7258_v9 = vsel %vm4599_vm8, %v7216_v38, %v7257_v15 }
 0x4cd   :  { %v6839_v48 = vrot.slane %v6780_v21, 2  ;;  %v6804_v32 = vpop.permute.xlu0 %6803  ;;  %v6940_v61 = vmax.f32 %v14717_v17, %v6876_v0  ;;  %v7232_v27 = vrot.slane %v15022_v34, %v16737_v13  ;;  %v7240_v17 = vrot.slane %v15028_v6, %v16737_v13 }
 0x4ce   :  { %v6993_v14 = vmax.f32 %v6961_v51, 0.0  ;;  %v6851_v19 = vrot.slane %v6804_v32, 2  ;;  %v7036_v50 = vmul.f32 %v14958_v44, %v6964_v7  ;;  %v7259_v3 = vsel %vm4601_vm9, %v7224_v62, %v7258_v9 }
 0x4cf   :  { %v6872_v59 = vsel %vm6867_vm14, %v6780_v21, %v6839_v48  ;;  %v6972_v58 = vmax.f32 %v6940_v61, 0.0  ;;  %v7228_v15 = vrot.slane %v15022_v34, %v16263_v40  ;;  %v7236_v62 = vrot.slane %v15028_v6, %v16263_v40 }
 0x4d0   :  { %v7065_v11 = vmul.f32 %v14964_v46, %v6993_v14  ;;  %v6936_v4 = vmax.f32 %v14726_v55, %v6872_v59  ;;  %v6796_v25 = vpop.permute.xlu1 %6795  ;;  %v6884_v53 = vsel %vm6867_vm14, %v6804_v32, %v6851_v19  ;;  %v7220_v46 = vrot.slane %v7125_v63, %v16263_v40 }
 0x4d1   :  { %v6847_v45 = vrot.slane %v6796_v25, 2  ;;  %v6948_v30 = vmax.f32 %v14737_v41, %v6884_v53  ;;  %v6820_v5 = vpop.permute.xlu0 %6819  ;;  %v7044_v14 = vmul.f32 %v14958_v44, %v6972_v58  ;;  %v7108_v34 = vadd.f32 %v14972_v57, %v7036_v50 }
 0x4d2   :  { %v7137_v38 = vadd.f32 %v14977_v29, %v7065_v11  ;;  %v6968_v51 = vmax.f32 %v6936_v4, 0.0  ;;  %v6859_v21 = vrot.slane %v6820_v5, 2  ;;  %v7260_v29 = vsel %vm4603_vm10, %v7232_v27, %v7259_v3 }
 0x4d3   :  { %v6880_v55 = vsel %vm6867_vm14, %v6796_v25, %v6847_v45  ;;  %v6980_v0 = vmax.f32 %v6948_v30, 0.0  ;;  %v7252_v25 = vsel %vm4601_vm9, %v7220_v46, %v7251_v35  ;;  %v15068_v58 = vrot.slane %v14993_v8, 1 }
 0x4d4   :  { %v7040_v48 = vmul.f32 %v14953_v12, %v6968_v51  ;;  %v6944_v41 = vmax.f32 %v14750_v1, %v6880_v55  ;;  %v6812_v32 = vpop.permute.xlu1 %6811  ;;  %v6892_v63 = vsel %vm6867_vm14, %v6820_v5, %v6859_v21  ;;  %v7248_v61 = vrot.slane %v7137_v38, %v16737_v13 }
 0x4d5   :  { %v6855_v7 = vrot.slane %v6812_v32, 2  ;;  %v6776_v19 = vpop.permute.xlu0 %6775  ;;  %v7052_v59 = vmul.f32 %v14958_v44, %v6980_v0  ;;  %v7261_v1 = vsel %vm4605_vm11, %v7240_v17, %v7260_v29  ;;  %v6956_v53 = vmax.f32 %v14758_v10, %v6892_v63 }
 0x4d6   :  { %v7112_v9 = vadd.f32 %v14967_v16, %v7040_v48  ;;  %v6976_v27 = vmax.f32 %v6944_v41, 0.0  ;;  %v7262_v4 = vsel %vm4607_vm13, %v7248_v61, %v7261_v1  ;;  %v15071_v45 = vrot.slane %v14998_v47, 1  ;;  %v7154_v1 = vld [vmem:[%s15539_s9 + $0x70] sm:$0xff] }
 0x4d7   :  { %v6888_v11 = vsel %vm6867_vm14, %v6812_v32, %v6855_v7  ;;  %8588 = vmatprep.mubr.msk.f32.mxu1 %vm7264_vm15, %v7262_v4  ;;  %v7244_v17 = vrot.slane %v7137_v38, %v16263_v40  ;;  %v15075_v30 = vadd.f32 %v14972_v57, %v7044_v14  ;;  %v7253_v50 = vsel %vm4603_vm10, %v7228_v15, %v7252_v25  ;;  %v7155_v32 = vld [vmem:[%s15539_s9 + $0x78] sm:$0xff] }
 0x4d8   :  { %v6828_v6 = vpop.permute.xlu1 %6827  ;;  %v15079_v10 = vadd.f32 %v14972_v57, %v7052_v59  ;;  %v6952_v51 = vmax.f32 %v14773_v43, %v6888_v11  ;;  %v7254_v21 = vsel %vm4605_vm11, %v7236_v62, %v7253_v50  ;;  %v15084_v46 = vrot.slane %v15002_v54, 1 }
 0x4d9   :  { %v6863_v5 = vrot.slane %v6828_v6, 2  ;;  %v6792_v35 = vpop.permute.xlu0 %6791  ;;  %v7351_v55 = vrot.slane %v7108_v34, %v16263_v40  ;;  %v7359_v38 = vrot.slane %v7112_v9, %v16263_v40  ;;  %v7048_v0 = vmul.f32 %v14953_v12, %v6976_v27 }
 0x4da   :  { %v7355_v15 = vrot.slane %v7108_v34, %v16737_v13  ;;  %v7363_v48 = vrot.slane %v7112_v9, %v16737_v13  ;;  %v6988_v41 = vmax.f32 %v6956_v53, 0.0  ;;  %v7367_v14 = vrot.slane %v15075_v30, %v16263_v40 }
 0x4db   :  { %v6896_v3 = vsel %vm6867_vm14, %v6828_v6, %v6863_v5  ;;  %v7255_v7 = vsel %vm4607_vm13, %v7244_v17, %v7254_v21  ;;  %v6837_v63 = vrot.slane %v6776_v19, 2  ;;  %v7371_v34 = vrot.slane %v15075_v30, %v16737_v13  ;;  %v7153_v5 = vld [vmem:[%s15539_s9 + $0x68] sm:$0xff] }
 0x4dc   :  { %v6960_v43 = vmax.f32 %v14789_v33, %v6896_v3  ;;  %v6784_v29 = vpop.permute.xlu1 %6783  ;;  %v7383_v59 = vrot.slane %v15079_v10, %v16263_v40  ;;  %v6984_v33 = vmax.f32 %v6952_v51, 0.0  ;;  %7335 = vmatmul.mubr.f32.vlgmr.msra.gmra.mxu1 %v7255_v7  ;;  %v6845_v9 = vrot.slane %v6792_v35, 2  ;;  %v7152_v3 = vld [vmem:[%s15539_s9 + $0x60] sm:$0xff]  ;;  %v7151_v7 = vld [vmem:[%s15539_s9 + $0x58] sm:$0xff] }
 0x4dd   :  { %v6841_v61 = vrot.slane %v6784_v29, 2  ;;  %v6786_v62 = vpop.permute.xlu0 %6785  ;;  %v7412_v27 = vsel %vm4595_vm6, %v7359_v38, %v7351_v55  ;;  %v15108_v11 = vadd.f32 %v14967_v16, %v7048_v0  ;;  %7433 = vmatpush1.msra.mxu1 %v7155_v32  ;;  %v6870_v4 = vsel %vm6867_vm14, %v6776_v19, %v6837_v63 }
 0x4de   :  { %v7419_v53 = vsel %vm4595_vm6, %v7363_v48, %v7355_v15  ;;  %v7060_v6 = vmul.f32 %v14958_v44, %v6988_v41  ;;  %v6992_v17 = vmax.f32 %v6960_v43, 0.0  ;;  %v6934_v30 = vmax.f32 %v14777_v31, %v6870_v4  ;;  %7434 = vmatprep.subr.mxu1 %v16649_v36 }
 0x4df   :  { %v6874_v25 = vsel %vm6867_vm14, %v6784_v29, %v6841_v61  ;;  %7435 = vmatpush1.msra.mxu1 %v7154_v1  ;;  %v6878_v19 = vsel %vm6867_vm14, %v6792_v35, %v6845_v9  ;;  %v6842_v55 = vrot.slane %v6786_v62, 2  ;;  %v7056_v44 = vmul.f32 %v14953_v12, %v6984_v33 }
 0x4e0   :  { %v6778_v50 = vpop.permute.xlu1 %6777  ;;  %v6938_v51 = vmax.f32 %v14801_v2, %v6874_v25  ;;  %v6966_v0 = vmax.f32 %v6934_v30, 0.0  ;;  %7436 = vmatprep.subr.mxu1 %v16649_v36  ;;  %v6942_v31 = vmax.f32 %v14794_v60, %v6878_v19  ;;  %v7375_v2 = vrot.slane %v15108_v11, %v16263_v40 }
 0x4e1   :  { %v6838_v21 = vrot.slane %v6778_v50, 2  ;;  %v6794_v38 = vpop.permute.xlu0 %6793  ;;  %7437 = vmatpush1.msra.mxu1 %v7153_v5  ;;  %v6875_v41 = vsel %vm6867_vm14, %v6786_v62, %v6842_v55  ;;  %v15132_v43 = vadd.f32 %v14972_v57, %v7060_v6  ;;  %v7064_v32 = vmul.f32 %v14953_v12, %v6992_v17 }
 0x4e2   :  { %v6846_v15 = vrot.slane %v6794_v38, 2  ;;  %v6970_v48 = vmax.f32 %v6938_v51, 0.0  ;;  %v7038_v60 = vmul.f32 %v14989_v20, %v6966_v0  ;;  %v6974_v29 = vmax.f32 %v6942_v31, 0.0  ;;  %7438 = vmatprep.subr.mxu1 %v16649_v36  ;;  %v7148_v0 = vld [vmem:[%s15539_s9 + $0x40] sm:$0xff] }
 0x4e3   :  { %v6871_v35 = vsel %vm6867_vm14, %v6778_v50, %v6838_v21  ;;  %7439 = vmatpush1.msra.mxu1 %v7152_v3  ;;  %v7413_v12 = vsel %vm4597_vm7, %v7367_v14, %v7412_v27  ;;  %v7387_v9 = vrot.slane %v15079_v10, %v16737_v13  ;;  %v15149_v4 = vadd.f32 %v14967_v16, %v7056_v44 }
 0x4e4   :  { %v6800_v63 = vpop.permute.xlu1 %6799  ;;  %v7042_v61 = vmul.f32 %v14998_v47, %v6970_v48  ;;  %v6935_v62 = vmax.f32 %v14812_v42, %v6871_v35  ;;  %v6879_v57 = vsel %vm6867_vm14, %v6794_v38, %v6846_v15  ;;  %7440 = vmatprep.subr.mxu1 %v16649_v36  ;;  %v6939_v25 = vmax.f32 %v14806_v22, %v6875_v41  ;;  %v7150_v42 = vld [vmem:[%s15539_s9 + $0x50] sm:$0xff] }
 0x4e5   :  { %v6849_v33 = vrot.slane %v6800_v63, 2  ;;  %v15143_v1 = vpop.permute.xlu0 %6801  ;;  %v7379_v6 = vrot.slane %v15108_v11, %v16737_v13  ;;  %v7046_v17 = vmul.f32 %v14989_v20, %v6974_v29  ;;  %7441 = vmatpush1.msra.mxu1 %v7151_v7  ;;  %v6943_v27 = vmax.f32 %v14814_v37, %v6879_v57  ;;  %v7149_v11 = vld [vmem:[%s15539_s9 + $0x48] sm:$0xff] }
 0x4e6   :  { %v7420_v30 = vsel %vm4597_vm7, %v7371_v34, %v7419_v53  ;;  %v15163_v5 = vsel %vm4599_vm8, %v7375_v2, %v7413_v12  ;;  %v15166_v22 = vadd.f32 %v14967_v16, %v7064_v32  ;;  %v7110_v50 = vadd.f32 %v14993_v8, %v7038_v60  ;;  %7442 = vmatprep.subr.mxu1 %v16649_v36  ;;  %v7147_v32 = vld [vmem:[%s15539_s9 + $0x38] sm:$0xff] }
 0x4e7   :  { %v6882_v14 = vsel %vm6867_vm14, %v6800_v63, %v6849_v33  ;;  %v7399_v37 = vrot.slane %v15132_v43, %v16263_v40  ;;  %v7114_v34 = vadd.f32 %v15002_v54, %v7042_v61  ;;  %v6967_v53 = vmax.f32 %v6935_v62, 0.0  ;;  %7443 = vmatpush1.msra.mxu1 %v7150_v42 }
 0x4e8   :  { %v6808_v51 = vpop.permute.xlu1 %6807  ;;  %v6946_v19 = vmax.f32 %v14829_v23, %v6882_v14  ;;  %v7391_v21 = vrot.slane %v15149_v4, %v16263_v40  ;;  %v7395_v55 = vrot.slane %v15149_v4, %v16737_v13  ;;  %v7403_v38 = vrot.slane %v15132_v43, %v16737_v13  ;;  %7444 = vmatprep.subr.mxu1 %v16649_v36 }
 0x4e9   :  { %v15177_v16 = vpop.permute.xlu0 %6809  ;;  %v6971_v44 = vmax.f32 %v6939_v25, 0.0  ;;  %v15190_v23 = vadd.f32 %v14993_v8, %v7046_v17  ;;  %7445 = vmatpush1.msra.mxu1 %v7149_v11  ;;  %v6975_v3 = vmax.f32 %v6943_v27, 0.0  ;;  %v7421_v15 = vsel %vm4599_vm8, %v7379_v6, %v7420_v30  ;;  %v7146_v25 = vld [vmem:[%s15539_s9 + $0x30] sm:$0xff] }
 0x4ea   :  { %v6978_v31 = vmax.f32 %v6946_v19, 0.0  ;;  %v7407_v2 = vrot.slane %v15166_v22, %v16263_v40  ;;  %v7532_v48 = vrot.slane %v7110_v50, %v16263_v40  ;;  %v7536_v35 = vrot.slane %v7110_v50, %v16737_v13  ;;  %7446 = vmatprep.subr.mxu1 %v16649_v36 }
 0x4eb   :  { %v7411_v41 = vrot.slane %v15166_v22, %v16737_v13  ;;  %v7540_v29 = vrot.slane %v7114_v34, %v16263_v40  ;;  %v7544_v7 = vrot.slane %v7114_v34, %v16737_v13  ;;  %v7039_v63 = vmul.f32 %v15006_v28, %v6967_v53  ;;  %7447 = vmatpush1.msra.mxu1 %v7148_v0  ;;  %v7145_v53 = vld [vmem:[%s15539_s9 + $0x28] sm:$0xff] }
 0x4ec   :  { %v6816_v60 = vpop.permute.xlu1 %6815  ;;  %v7050_v61 = vmul.f32 %v14998_v47, %v6978_v31  ;;  %v7043_v33 = vmul.f32 %v15071_v45, %v6971_v44  ;;  %7448 = vmatprep.subr.mxu1 %v16649_v36  ;;  %v6853_v57 = vrot.slane %v6808_v51, 2  ;;  %v6850_v12 = vrot.slane %v15143_v1, 2 }
 0x4ed   :  { %v6818_v62 = vpop.permute.xlu0 %6817  ;;  %v6857_v42 = vrot.slane %v6816_v60, 2  ;;  %v7548_v6 = vrot.slane %v15190_v23, %v16263_v40  ;;  %v7047_v14 = vmul.f32 %v15006_v28, %v6975_v3  ;;  %v7422_v27 = vsel %vm4601_vm9, %v7387_v9, %v7421_v15  ;;  %7449 = vmatpush1.msra.mxu1 %v7147_v32  ;;  %v7144_v15 = vld [vmem:[%s15539_s9 + $0x20] sm:$0xff] }
 0x4ee   :  { %v15216_v17 = vadd.f32 %v15002_v54, %v7050_v61  ;;  %v7423_v30 = vsel %vm4603_vm10, %v7395_v55, %v7422_v27  ;;  %v6886_v50 = vsel %vm6867_vm14, %v6808_v51, %v6853_v57  ;;  %v6883_v11 = vsel %vm6867_vm14, %v15143_v1, %v6850_v12  ;;  %7450 = vmatprep.subr.mxu1 %v16649_v36 }
 0x4ef   :  { %v6890_v34 = vsel %vm6867_vm14, %v6816_v60, %v6857_v42  ;;  %v7593_v44 = vsel %vm4595_vm6, %v7540_v29, %v7532_v48  ;;  %v7600_v9 = vsel %vm4595_vm6, %v7544_v7, %v7536_v35  ;;  %v7552_v55 = vrot.slane %v15190_v23, %v16737_v13  ;;  %7451 = vmatpush1.msra.mxu1 %v7146_v25  ;;  %v7143_v29 = vld [vmem:[%s15539_s9 + $0x18] sm:$0xff] }
 0x4f0   :  { %v6824_v19 = vpop.permute.xlu1 %6823  ;;  %v15234_v51 = vadd.f32 %v15068_v58, %v7039_v63  ;;  %v7424_v1 = vsel %vm4605_vm11, %v7403_v38, %v7423_v30  ;;  %v6950_v0 = vmax.f32 %v14845_v26, %v6886_v50  ;;  %v6947_v31 = vmax.f32 %v14832_v39, %v6883_v11  ;;  %7452 = vmatprep.subr.mxu1 %v16649_v36 }
 0x4f1   :  { %v6954_v3 = vmax.f32 %v14859_v52, %v6890_v34  ;;  %v6826_v48 = vpop.permute.xlu0 %6825  ;;  %v15245_v23 = vadd.f32 %v15084_v46, %v7043_v33  ;;  %v7556_v35 = vrot.slane %v15216_v17, %v16263_v40  ;;  %v15250_v38 = vadd.f32 %v15068_v58, %v7047_v14  ;;  %7453 = vmatpush1.msra.mxu1 %v7145_v53  ;;  %v7142_v14 = vld [vmem:[%s15539_s9 + $0x10] sm:$0xff] }
 0x4f2   :  { %v7425_v39 = vsel %vm4607_vm13, %v7411_v41, %v7424_v1  ;;  %v6982_v26 = vmax.f32 %v6950_v0, 0.0  ;;  %v6979_v52 = vmax.f32 %v6947_v31, 0.0  ;;  %v6854_v60 = vrot.slane %v15177_v16, 2  ;;  %7454 = vmatprep.subr.mxu1 %v16649_v36 }
 0x4f3   :  { %8590 = vmatprep.mubr.msk.f32.mxu1 %vm7264_vm15, %v7425_v39  ;;  %v6986_v32 = vmax.f32 %v6954_v3, 0.0  ;;  %7455 = vmatpush1.msra.mxu1 %v7144_v15  ;;  %v6861_v63 = vrot.slane %v6824_v19, 2  ;;  %v6858_v61 = vrot.slane %v6818_v62, 2  ;;  %v6862_v41 = vrot.slane %v6826_v48, 2 }
 0x4f4   :  { %v6832_v7 = vpop.permute.xlu1 %6831  ;;  %v7054_v57 = vmul.f32 %v14989_v20, %v6982_v26  ;;  %v7051_v12 = vmul.f32 %v15071_v45, %v6979_v52  ;;  %v6887_v42 = vsel %vm6867_vm14, %v15177_v16, %v6854_v60  ;;  %7456 = vmatprep.subr.mxu1 %v16649_v36  ;;  %v7594_v34 = vsel %vm4597_vm7, %v7548_v6, %v7593_v44 }
 0x4f5   :  { %v6865_v33 = vrot.slane %v6832_v7, 2  ;;  %v7058_v25 = vmul.f32 %v14998_v47, %v6986_v32  ;;  %v6951_v27 = vmax.f32 %v14850_v56, %v6887_v42  ;;  %v6894_v30 = vsel %vm6867_vm14, %v6824_v19, %v6861_v63  ;;  %7457 = vmatpush1.msra.mxu1 %v7143_v29  ;;  %v7141_v56 = vld [vmem:[%s15539_s9 + $0x8] sm:$0xff]  ;;  %v16738_v29 = vld [vmem:[#allocation12_spill] sm:$0xff] }
 0x4f6   :  { %v6891_v50 = vsel %vm6867_vm14, %v6818_v62, %v6858_v61  ;;  %v7601_v53 = vsel %vm4597_vm7, %v7552_v55, %v7600_v9  ;;  %v15275_v16 = vadd.f32 %v14993_v8, %v7054_v57  ;;  %v6958_v1 = vmax.f32 %v14867_v24, %v6894_v30  ;;  %7458 = vmatprep.subr.mxu1 %v16649_v36 }
 0x4f7   :  { %v6898_v11 = vsel %vm6867_vm14, %v6832_v7, %v6865_v33  ;;  %v7718_v62 = vrot.slane %v15234_v51, %v16737_v13  ;;  %v6983_v19 = vmax.f32 %v6951_v27, 0.0  ;;  %v6955_v0 = vmax.f32 %v14861_v18, %v6891_v50  ;;  %7459 = vmatpush1.msra.mxu1 %v7142_v14  ;;  %v7140_v18 = vld [vmem:[%s15539_s9] sm:$0xff] }
 0x4f8   :  { %v6962_v6 = vmax.f32 %v14885_v49, %v6898_v11  ;;  %v7726_v44 = vrot.slane %v15245_v23, %v16737_v13  ;;  %v15289_v24 = vadd.f32 %v15084_v46, %v7051_v12  ;;  %v15292_v9 = vadd.f32 %v15002_v54, %v7058_v25  ;;  %7460 = vmatprep.subr.mxu1 %v16649_v36  ;;  %v6834_v31 = vpop.permute.xlu1 %6833 }
 0x4f9   :  { %v6895_v55 = vsel %vm6867_vm14, %v6826_v48, %v6862_v41  ;;  %v7560_v49 = vrot.slane %v15216_v17, %v16737_v13  ;;  %v7595_v3 = vsel %vm4599_vm8, %v7556_v35, %v7594_v34  ;;  %v7734_v15 = vrot.slane %v15250_v38, %v16737_v13  ;;  %7461 = vmatpush1.msra.mxu1 %v7141_v56  ;;  %v7157_v17 = vld [vmem:[%s15539_s9 + $0x88] sm:$0xf] }
 0x4fa   :  { %v6990_v39 = vmax.f32 %v6958_v1, 0.0  ;;  %v7564_v26 = vrot.slane %v15275_v16, %v16263_v40  ;;  %v7055_v48 = vmul.f32 %v15006_v28, %v6983_v19  ;;  %v6987_v52 = vmax.f32 %v6955_v0, 0.0  ;;  %7462 = vmatprep.subr.mxu1 %v16649_v36 }
 0x4fb   :  { %v6994_v32 = vmax.f32 %v6962_v6, 0.0  ;;  %v7568_v35 = vrot.slane %v15275_v16, %v16737_v13  ;;  %v6959_v7 = vmax.f32 %v16738_v29, %v6895_v55  ;;  %7463 = vmatpush1.msra.mxu1 %v7140_v18  ;;  %v6866_v63 = vrot.slane %v6834_v31, 2  ;;  %v8624_v55 = vld [vmem:[%s15539_s9 + $0x218] sm:$0xff]  ;;  %v8618_v29 = vld [vmem:[%s15539_s9 + $0x1e8] sm:$0xff] }
 0x4fc   :  { %v7062_v60 = vmul.f32 %v14989_v20, %v6990_v39  ;;  %v7742_v61 = vrot.slane %v15289_v24, %v16737_v13  ;;  %v7572_v33 = vrot.slane %v15292_v9, %v16263_v40  ;;  %v7059_v41 = vmul.f32 %v15071_v45, %v6987_v52  ;;  %7492 = vmatprep.subr.mxu1 %v16649_v36  ;;  %v7156_v20 = vld [vmem:[%s15539_s9 + $0x80] sm:$0xff]  ;;  %v8623_v39 = vld [vmem:[%s15539_s9 + $0x210] sm:$0xff]  ;;  %v8622_v52 = vld [vmem:[%s15539_s9 + $0x208] sm:$0xff] }
 0x4fd   :  { %v7066_v57 = vmul.f32 %v14998_v47, %v6994_v32  ;;  %v7576_v12 = vrot.slane %v15292_v9, %v16737_v13  ;;  %v6991_v42 = vmax.f32 %v6959_v7, 0.0  ;;  %8589 = vmatpush2.msk.msra.mxu1 %vm232_vm0, %v7157_v17  ;;  %v7415_v47 = vsel %vm4601_vm9, %v7383_v59, %v15163_v5  ;;  %v16739_v59 = vld [vmem:[#allocation11_spill] sm:$0xff]  ;;  %v8617_v7 = vld [vmem:[%s15539_s9 + $0x1e0] sm:$0xff] }
 0x4fe   :  { %v7134_v25 = vadd.f32 %v14993_v8, %v7062_v60  ;;  %v15335_v14 = vadd.f32 %v15068_v58, %v7055_v48  ;;  %v6899_v30 = vsel %vm6867_vm14, %v6834_v31, %v6866_v63  ;;  %7494 = vmatprep.subr.mxu1 %v16649_v36  ;;  %v7416_v8 = vsel %vm4603_vm10, %v7391_v21, %v7415_v47  ;;  %v8619_v60 = vld [vmem:[%s15539_s9 + $0x1f0] sm:$0xff]  ;;  %v8616_v63 = vld [vmem:[%s15539_s9 + $0x1d8] sm:$0xff] }
 0x4ff   :  { %v7138_v27 = vadd.f32 %v15002_v54, %v7066_v57  ;;  %v15345_v50 = vadd.f32 %v15084_v46, %v7059_v41  ;;  %v7063_v10 = vmul.f32 %v15006_v28, %v6991_v42  ;;  %v6963_v5 = vmax.f32 %v16739_v59, %v6899_v30  ;;  %7495 = vmatpush2.msra.mxu1 %v7156_v20  ;;  %v8626_v28 = vld [vmem:[%s15539_s9 + $0x228] sm:$0xff]  ;;  %v8613_v41 = vld [vmem:[%s15539_s9 + $0x1c0] sm:$0xff] }
 0x500   :  { %v7602_v11 = vsel %vm4599_vm8, %v7560_v49, %v7601_v53  ;;  %v7580_v54 = vrot.slane %v7134_v25, %v16263_v40  ;;  %v7584_v34 = vrot.slane %v7134_v25, %v16737_v13  ;;  %v7417_v4 = vsel %vm4605_vm11, %v7399_v37, %v7416_v8  ;;  %7795 = vmatprep.subr.mxu1 %v16649_v36  ;;  %v8612_v25 = vld [vmem:[%s15539_s9 + $0x1b8] sm:$0xff] }
 0x501   :  { %v7588_v16 = vrot.slane %v7138_v27, %v16263_v40  ;;  %v15362_v21 = vadd.f32 %v15068_v58, %v7063_v10  ;;  %v6995_v53 = vmax.f32 %v6963_v5, 0.0  ;;  %v7418_v1 = vsel %vm4607_vm13, %v7407_v2, %v7417_v4  ;;  %v8625_v58 = vld [vmem:[%s15539_s9 + $0x220] sm:$0xff]  ;;  %v7877_v4 = vld [vmem:[%s15541_s11 + $0x10] sm:$0xff] }
 0x502   :  { %v7592_v56 = vrot.slane %v7138_v27, %v16737_v13  ;;  %v7782_v43 = vsel %vm4595_vm6, %v7726_v44, %v7718_v62  ;;  %v7596_v37 = vsel %vm4601_vm9, %v7564_v26, %v7595_v3  ;;  %v7750_v19 = vrot.slane %v15335_v14, %v16737_v13  ;;  %7497 = vmatmul.mubr.f32.vlgmr.msra.gmra.mxu1 %v7418_v1 }
 0x503   :  { %v7603_v0 = vsel %vm4601_vm9, %v7568_v35, %v7602_v11  ;;  %v7758_v22 = vrot.slane %v15345_v50, %v16737_v13  ;;  %v7067_v2 = vmul.f32 %v15071_v45, %v6995_v53  ;;  %7796 = vmatpush1.msra.mxu1 %v8626_v28  ;;  %v7597_v6 = vsel %vm4603_vm10, %v7572_v33, %v7596_v37  ;;  %v8621_v35 = vld [vmem:[%s15539_s9 + $0x200] sm:$0xff]  ;;  %v8614_v33 = vld [vmem:[%s15539_s9 + $0x1c8] sm:$0xff]  ;;  %v7881_v11 = vld [vmem:[%s15541_s11 + $0x30] sm:$0x3] }
 0x504   :  { %v7604_v62 = vsel %vm4603_vm10, %v7576_v12, %v7603_v0  ;;  %v7783_v44 = vsel %vm4597_vm7, %v7734_v15, %v7782_v43  ;;  %v7766_v9 = vrot.slane %v15362_v21, %v16737_v13  ;;  %7797 = vmatprep.subr.mxu1 %v16649_v36  ;;  %v7598_v45 = vsel %vm4605_vm11, %v7580_v54, %v7597_v6  ;;  %v7880_v54 = vld [vmem:[%s15541_s11 + $0x28] sm:$0xff] }
 0x505   :  { %v7605_v18 = vsel %vm4605_vm11, %v7584_v34, %v7604_v62  ;;  %v15392_v31 = vadd.f32 %v15084_v46, %v7067_v2  ;;  %7798 = vmatpush1.msra.mxu1 %v8625_v58  ;;  %v7599_v3 = vsel %vm4607_vm13, %v7588_v16, %v7598_v45  ;;  %v7784_v15 = vsel %vm4599_vm8, %v7742_v61, %v7783_v44  ;;  %v8615_v61 = vld [vmem:[%s15539_s9 + $0x1d0] sm:$0xff]  ;;  %v7879_v34 = vld [vmem:[%s15541_s11 + $0x20] sm:$0xff]  ;;  %v7878_v16 = vld [vmem:[%s15541_s11 + $0x18] sm:$0xff] }
 0x506   :  { %v7606_v49 = vsel %vm4607_vm13, %v7592_v56, %v7605_v18  ;;  %7799 = vmatprep.subr.mxu1 %v16649_v36  ;;  %v7785_v26 = vsel %vm4601_vm9, %v7750_v19, %v7784_v15  ;;  %v7714_v57 = vrot.slane %v15234_v51, %v16263_v40  ;;  %v7722_v20 = vrot.slane %v15245_v23, %v16263_v40  ;;  %v8611_v23 = vld [vmem:[%s15539_s9 + $0x1b0] sm:$0xff]  ;;  %v7876_v28 = vld [vmem:[%s15541_s11 + $0x8] sm:$0xff]  ;;  %v8631_v2 = vld [vmem:[%s15540_s10] ss:$0 sm:$0xff]  ;;  %s8705_s10 = smov [#allocation2]  }
 0x507   :  { %8610 = vmatprep.mubr.msk.f32.mxu0 %vm7264_vm15, %v7606_v49  ;;  %7800 = vmatpush1.msra.mxu1 %v8624_v55  ;;  %v7774_v46 = vrot.slane %v15392_v31, %v16737_v13  ;;  %v7786_v48 = vsel %vm4603_vm10, %v7758_v22, %v7785_v26  ;;  %v8620_v13 = vld [vmem:[%s15539_s9 + $0x1f8] sm:$0xff]  ;;  %v7730_v12 = vrot.slane %v15250_v38, %v16263_v40 }
 0x508   :  { %7678 = vmatmul.mubr.f32.vlgmr.msra.gmra.mxu0 %v7599_v3  ;;  %7801 = vmatprep.subr.mxu1 %v16649_v36  ;;  %v7787_v32 = vsel %vm4605_vm11, %v7766_v9, %v7786_v48  ;;  %v7738_v42 = vrot.slane %v15289_v24, %v16263_v40  ;;  %v7746_v51 = vrot.slane %v15335_v14, %v16263_v40  ;;  %v8628_v14 = vld [vmem:[%s15539_s9 + $0x238] sm:$0xf] }
 0x509   :  { %7802 = vmatpush1.msra.mxu1 %v8623_v39  ;;  %v7788_v17 = vsel %vm4607_vm13, %v7774_v46, %v7787_v32  ;;  %v7775_v38 = vsel %vm4595_vm6, %v7722_v20, %v7714_v57  ;;  %v7754_v47 = vrot.slane %v15345_v50, %v16263_v40  ;;  %v7762_v24 = vrot.slane %v15362_v21, %v16263_v40  ;;  %v8627_v50 = vld [vmem:[%s15539_s9 + $0x230] sm:$0xff]  ;;  %v7875_v21 = vld [vmem:[%s15541_s11] sm:$0xff] }
 0x50a   :  { %7803 = vmatprep.subr.mxu1 %v16649_v36  ;;  %8630 = vmatprep.mubr.msk.f32.mxu1 %vm7264_vm15, %v7788_v17  ;;  %v7776_v27 = vsel %vm4597_vm7, %v7730_v12, %v7775_v38  ;;  %v7770_v8 = vrot.slane %v15392_v31, %v16263_v40 }
 0x50b   :  { %7804 = vmatpush1.msra.mxu1 %v8622_v52  ;;  %v7777_v30 = vsel %vm4599_vm8, %v7738_v42, %v7776_v27  ;;  %8644 = vmatpush3.msk.msra.mxu0 %vm7893_vm1, %v7881_v11 }
 0x50c   :  { %7805 = vmatprep.subr.mxu1 %v16649_v36  ;;  %v7778_v10 = vsel %vm4601_vm9, %v7746_v51, %v7777_v30  ;;  %8645 = vmatprep.subr.mxu0 %v16649_v36 }
 0x50d   :  { %7806 = vmatpush1.msra.mxu1 %v8621_v35  ;;  %v7779_v59 = vsel %vm4603_vm10, %v7754_v47, %v7778_v10  ;;  %8646 = vmatpush3.msra.mxu0 %v7880_v54 }
 0x50e   :  { %7807 = vmatprep.subr.mxu1 %v16649_v36  ;;  %v7780_v5 = vsel %vm4605_vm11, %v7762_v24, %v7779_v59  ;;  %8647 = vmatprep.subr.mxu0 %v16649_v36 }
 0x50f   :  { %7808 = vmatpush1.msra.mxu1 %v8620_v13  ;;  %v7781_v40 = vsel %vm4607_vm13, %v7770_v8, %v7780_v5  ;;  %8648 = vmatpush3.msra.mxu0 %v7879_v34 }
 0x510   :  { %7809 = vmatprep.subr.mxu1 %v16649_v36  ;;  %8649 = vmatprep.subr.mxu0 %v16649_v36 }
 0x511   :  { %7810 = vmatpush1.msra.mxu1 %v8619_v60  ;;  %8650 = vmatpush3.msra.mxu0 %v7878_v16 }
 0x512   :  { %7811 = vmatprep.subr.mxu1 %v16649_v36  ;;  %8651 = vmatprep.subr.mxu0 %v16649_v36 }
 0x513   :  { %7812 = vmatpush1.msra.mxu1 %v8618_v29  ;;  %8652 = vmatpush3.msra.mxu0 %v7877_v4 }
 0x514   :  { %7813 = vmatprep.subr.mxu1 %v16649_v36  ;;  %8653 = vmatprep.subr.mxu0 %v16649_v36 }
 0x515   :  { %7814 = vmatpush1.msra.mxu1 %v8617_v7  ;;  %8654 = vmatpush3.msra.mxu0 %v7876_v28 }
 0x516   :  { %7815 = vmatprep.subr.mxu1 %v16649_v36  ;;  %8655 = vmatprep.subr.mxu0 %v16649_v36 }
 0x517   :  { %7816 = vmatpush1.msra.mxu1 %v8616_v63  ;;  %8656 = vmatpush3.msra.mxu0 %v7875_v21 }
 0x518   :  { %7817 = vmatprep.subr.mxu1 %v16649_v36 }
 0x519   :  { %7818 = vmatpush1.msra.mxu1 %v8615_v61 }
 0x51a   :  { %7819 = vmatprep.subr.mxu1 %v16649_v36 }
 0x51b   :  { %7820 = vmatpush1.msra.mxu1 %v8614_v33 }
 0x51c   :  { %7821 = vmatprep.subr.mxu1 %v16649_v36 }
 0x51d   :  { %7822 = vmatpush1.msra.mxu1 %v8613_v41 }
 0x51e   :  { %7823 = vmatprep.subr.mxu1 %v16649_v36 }
 0x51f   :  { %7824 = vmatpush1.msra.mxu1 %v8612_v25 }
 0x520   :  { %7825 = vmatprep.subr.mxu1 %v16649_v36 }
 0x521   :  { %7826 = vmatpush1.msra.mxu1 %v8611_v23 }
 0x522   :  { %7855 = vmatprep.subr.mxu1 %v16649_v36 }
 0x523   :  { %8629 = vmatpush2.msk.msra.mxu1 %vm232_vm0, %v8628_v14  ;;  %vm8704_vm0 = vmmov 0  }
 0x524   :  { %7857 = vmatprep.subr.mxu1 %v16649_v36  ;;  %8657 = vmatprep.mubr.msk.f32.mxu0 %vm8704_vm0, %v16649_v36  ;;  %v8632_v36 = vld [vmem:[%s15542_s12] ss:$0 sm:$0xff]  ;;  %s7989_s12 = sshll.u32 %s8705_s10, 4  ;;  %s7990_s12 = int_to_ptr.vmem [resolvable:$true] %s7989_s12 }
 0x525   :  { %7858 = vmatpush2.msra.mxu1 %v8627_v50  ;;  %s8678_s0 = scalar_lea.vmem %s7990_s12, 128  ;;  %p8683_p1 = scmp.lt.s32.totalorder %s7990_s12, %s7990_s12 }
 0x526   :  { %7860 = vmatmul.mubr.f32.vlgmr.msra.gmra.mxu1 %v7781_v40  ;;  %p8679_p0 = scmp.ne.s32.totalorder %s7990_s12, %s8678_s0  ;;  %p8684_p2 = scmp.lt.s32.totalorder %s8678_s0, %s8678_s0 }
 0x528   :  { %p8685_p3 = por %p8684_p2, %p8683_p1 }
 0x52a   :  { %p8686_p4 = pnand %p8685_p3, %p8679_p0 }
 0x59c   :  { %v7336_v53 = vpop.f32.mrf.mxu1 }
 0x59e   :  { %v7338_v1 = vpop.f32.mrf.mxu1 }
 0x5c2   :  { %v7498_v56 = vpop.f32.mrf.mxu1 }
 0x5c3   :  { %v7499_v58 = vadd.f32 %v7498_v56, %v7336_v53 }
 0x5c4   :  { %v7500_v43 = vpop.f32.mrf.mxu1 }
 0x5c8   :  { %v7679_v37 = vpop.f32.mrf.mxu0 }
 0x5c9   :  { %v7683_v0 = vadd.f32 %v7679_v37, %v7499_v58 }
 0x5ca   :  { %v7681_v19 = vpop.f32.mrf.mxu0 }
 0x5e6   :  { %v7861_v22 = vpop.f32.mrf.mxu1 }
 0x5e7   :  { %v7865_v62 = vadd.f32 %v7861_v22, %v7683_v0 }
 0x5e8   :  { %v7863_v6 = vpop.f32.mrf.mxu1 }
 0x5e9   :  { %v7873_v44 = vadd.f32 %v8631_v2, %v7865_v62 }
 0x5eb   :  { %v7874_v9 = vmax.f32 %v7873_v44, 0.0 }
 0x5ed   :  { %8658 = vmatmul.mubr.msk.f32.vlgmr.msra.gmra.mxu0 %vm7889_vm2, %v7874_v9 }
 0x6ad   :  { %v7963_v55 = vpop.f32.mrf.mxu0 }
 0x6ae   :  { %v7964_v18 = vadd.f32 %v8632_v36, %v7963_v55 }
 0x6af   :  { %v8659_v45 = vpop.f32.mrf.mxu0 }
 0x6b0   :  { %v7967_v31 = vmax.f32 %v7964_v18, 0.0 }
 0x6b2   :  { %v7969_v49 = vsel %vm7968_vm3, %v7967_v31, -inf }
 0x6b3   :  { %7970 = vmax.xlane.f32.xlu0 %v7969_v49 }
 0x73c   :  { %v7971_v3 = vpop.xlane.xlu0 %7970 }
 0x73d   :  { %v7972_v15 = vsub.f32 %v7967_v31, %v7971_v3 }
 0x73f   :  { %v7973_v39 = vmul.f32 1.442695, %v7972_v15 }
 0x741   :  { %8674 = vpow2.f32 %v7973_v39 }
 0x74e   :  { %v8675_v26 = vpop.eup %8674 }
 0x74f   :  { %v7975_v46 = vsel %vm7968_vm3, %v8675_v26, 0.0 }
 0x750   :  { %7976 = vadd.xlane.f32.xlu1 %v7975_v46 }
 0x7d9   :  { %v7977_v48 = vpop.xlane.xlu1 %7976 }
 0x7da   :  { %8676 = vlog2.f32 %v7977_v48 }
 0x7e7   :  { %v8677_v52 = vpop.eup %8676 }
 0x7e8   :  { %v7979_v32 = vmul.f32 0.6931472, %v8677_v52 }
 0x7ea   :  { %v7980_v17 = vadd.f32 %v7979_v32, %v7971_v3 }
 0x7ec   :  { %v7981_v35 = vsub.f32 %v7967_v31, %v7980_v17 }
 0x7ee   :  { %7982 = vst.msk [vmem:[#allocation2] sm:$0xff] %vm7968_vm3, %v7981_v35 }
 0x7ef   :  { %8689 = shalt.err (!%p8686_p4)
}
 0x7f0   :  { %7992 = dma.vmem_to_hbm [thread:$0]  %s7990_s12, 128, %s15543_s13, [#allocation3]  }
 0x7f1   :  { %8698 = dma.done.wait [#allocation3], 128  }
 0x7f2   :  { %8699 = vsyncadd [#allocation3], 4294967168 }
 0x7f3   :  { %7996 = vsyncpa [#allocation3], 1 }

</bundles_post_ra>
